<compile_context>
chip_gen: v7x
topology: tpu7x:2x2x1
jax: 0.10.0
libtpu: 0.0.40
codegen_flags: <defaults>
</compile_context>

<pallas_src>
import functools
import numpy as np
import jax
import jax.numpy as jnp
from jax.experimental import pallas as pl
from jax.experimental.pallas import tpu as pltpu

PRIMES = np.array([1, 2654435761, 805459861, 3674653429], dtype=np.uint32)


def compute_resolutions(input_dim, num_levels, base_resolution, desired_resolution):
    """Per-level, per-axis grid resolutions (Instant-NGP style geometric schedule)."""
    base = np.asarray(base_resolution, dtype=np.float64).reshape(-1)
    des = np.asarray(desired_resolution, dtype=np.float64).reshape(-1)
    # per-axis lists shorter than input_dim (e.g. [8,8,8] for a 4-D encoder) are padded
    # by repeating the last entry (the time axis reuses the z settings).
    if base.size < input_dim:
        base = np.concatenate([base, np.full(input_dim - base.size, base[-1])])
    if des.size < input_dim:
        des = np.concatenate([des, np.full(input_dim - des.size, des[-1])])
    scale = np.exp2(np.log2(des / base) / max(num_levels - 1, 1))
    levels = np.arange(num_levels, dtype=np.float64)[:, None]
    res = np.floor(base[None, :] * scale[None, :] ** levels + 0.5).astype(np.int32)
    return np.maximum(res, 2)  # (L, d)


def _interp_kernel(u_ref, resm1_ref, feats_ref, out_ref, *, d, G, L, F):
    """d-linear interpolation of 2**d gathered corner features, all levels and all G
    folded points per row at once (every vector operand is G*L*F = 128 lanes wide)."""
    CW = G * L * F                                  # per-corner chunk width (128)

    # Folded per-dim fracs: column g*L*F + l*F + f of fk[k] is the frac of point-fold
    # g, dim k, level l (replicated over the F features).  resm1_ref is block-diagonal
    # over the G folds, so the sum over g routes each fold's coordinate into its own
    # lane block.  Bit-identical to the glue's floor() used to build the hash indices.
    fk = []
    for k in range(d):
        pos = None
        for g in range(G):
            r = g * d + k
            term = u_ref[:, r:r + 1] * resm1_ref[r:r + 1, :]
            pos = term if pos is None else pos + term
        fk.append(pos - jnp.floor(pos))

    # Successive-lerp tree over the 2**d corners (bit k of the corner index = +1 along
    # dim k, matching the glue's hash bits): 2**d - 1 lerps, <= d+1 live temporaries.
    def tree(base, dim):
        if dim == 0:
            return feats_ref[:, base * CW:(base + 1) * CW].astype(jnp.float32)
        lo = tree(base, dim - 1)
        hi = tree(base + (1 << (dim - 1)), dim - 1)
        f = fk[dim - 1]
        return lo + f * (hi - lo)

    out_ref[...] = tree(0, d).astype(out_ref.dtype)


def hash_encode(x, tables, res_np, bound, *, tile_n=1024, out_dtype=jnp.float32,
                feats_buffers=2):
    """x: (N, d) in [-bound, bound]; tables: (L, T, F) bf16; res_np: (L, d) numpy int."""
    N, d = x.shape
    L, T, F = tables.shape
    C = 1 << d
    LF = L * F
    assert d >= 2 and (T & (T - 1)) == 0

    # Fold G points per kernel row so every vector operand is a 128-lane multiple.
    G = 128 // LF if (LF <= 128 and 128 % LF == 0) else 1
    assert tile_n % G == 0 and (tile_n // G) % 8 == 0

    # The in-kernel frac recompute (pos - floor(pos)) matches the glue's clipped
    # floor() only while floor(u_max * (res-1)) <= res-2 in fp32 (true for any sane
    # resolution; breaks only around res ~ 1e6).
    rm1 = res_np.astype(np.float32) - 1.0
    assert np.all(np.floor(np.float32(1.0 - 1e-6) * rm1) <= rm1 - 1.0), (
        "in-kernel frac recompute would diverge from the hashed cell at this resolution")

    # --- pad points to a whole number of tiles ----------------------------------------
    steps = max(1, (N + tile_n - 1) // tile_n)
    n_pad = steps * tile_n
    if n_pad != N:
        x = jnp.pad(x, ((0, n_pad - N), (0, 0)))

    u = jnp.clip((x.astype(jnp.float32) + bound) / (2.0 * bound), 0.0, 1.0 - 1e-6)

    resm1_np = res_np.T.astype(np.float32) - 1.0              # (d, L): res[l,k]-1
    res_t = jnp.asarray(res_np.T.astype(np.int32))            # (d, L)

    # Block-diagonal folded resolution table: row g*d+k holds res[l,k]-1 in lane block
    # g (columns g*LF + l*F + f), zeros elsewhere.
    resm1_rep = np.zeros((G * d, G * LF), dtype=np.float32)
    rep = np.repeat(resm1_np, F, axis=1)                      # (d, L*F)
    for g in range(G):
        resm1_rep[g * d:(g + 1) * d, g * LF:(g + 1) * LF] = rep
    resm1_rep = jnp.asarray(resm1_rep)

    # --- glue: per-level integer cell + spatial hash -> corner indices (n, C, L) ------
    pos = u[:, :, None] * jnp.asarray(resm1_np)[None]         # (n, d, L)
    cell = jnp.clip(jnp.floor(pos).astype(jnp.int32), 0,
                    jnp.maximum(res_t - 2, 0)[None]).astype(jnp.uint32)
    primes = np.asarray(PRIMES[:d])
    corner_hash = []
    for c in range(C):                                        # static unroll, C <= 16
        h = None
        for k in range(d):
            bit = (c >> k) & 1
            ck = cell[:, k, :] + np.uint32(bit) if bit else cell[:, k, :]
            term = ck * primes[k]
            h = term if h is None else h ^ term
        corner_hash.append(h & np.uint32(T - 1))
    idx = jnp.stack(corner_hash, axis=1).astype(jnp.int32)    # (n, C, L)

    # Fold the point axis in the (cheap, int32) index stream so the gather writes its
    # bf16 output directly in the kernel's (row, corner, fold, level, feature) layout.
    idx = idx.reshape(n_pad // G, G, C, L).transpose(0, 2, 1, 3)   # (n/G, C, G, L)

    # TODO(synk): the data-dependent gather from the 2**19-entry hash tables stays in
    # XLA — no practical Pallas-TPU in-kernel gather at this table size; end-to-end it
    # likely dominates total time and should be profiled alongside the kernel.
    lvl = jnp.arange(L, dtype=jnp.int32)[None, None, None, :]
    corner_feats = tables[lvl, idx]                           # (n/G, C, G, L, F) bf16
    feats_in = corner_feats.reshape(n_pad // G, C * G * LF)

    u_in = u.reshape(n_pad // G, G * d)                       # free reshape

    rows = tile_n // G
    feats_spec_kwargs = {}
    if feats_buffers != 2:   # v5e: Buffered(3) hides the per-step feats DMA jitter
        feats_spec_kwargs["pipeline_mode"] = pl.Buffered(feats_buffers)

    flops = int(n_pad) * LF * (3 * d + 3 * (C - 1))
    bytes_accessed = (feats_in.size * feats_in.dtype.itemsize + u_in.size * 4
                      + n_pad * LF * np.dtype(out_dtype).itemsize + resm1_rep.size * 4)

    out = pl.pallas_call(
        functools.partial(_interp_kernel, d=d, G=G, L=L, F=F),
        out_shape=jax.ShapeDtypeStruct((n_pad // G, G * LF), out_dtype),
        grid=(n_pad // tile_n,),
        in_specs=[
            pl.BlockSpec((rows, G * d), lambda i: (i, 0)),
            pl.BlockSpec((G * d, G * LF), lambda i: (0, 0)),
            pl.BlockSpec((rows, C * G * LF), lambda i: (i, 0), **feats_spec_kwargs),
        ],
        out_specs=pl.BlockSpec((rows, G * LF), lambda i: (i, 0)),
        compiler_params=pltpu.CompilerParams(
            dimension_semantics=("parallel",),
            vmem_limit_bytes=32 * 1024 * 1024,   # safe on v5e/v6e and v7x's 64 MiB
        ),
        cost_estimate=pl.CostEstimate(flops=int(flops), transcendentals=0,
                                      bytes_accessed=int(bytes_accessed)),
    )(u_in, resm1_rep, feats_in)

    # Folded (n/G, G*LF) output is byte-identical to (n, LF) row-major -> free reshape.
    return out.reshape(n_pad, LF)[:N]


class Dash4dPallas:
    """JAX/Pallas port of scene.network.Dash4d.forward (encode_3d, encode_4d)."""

    def __init__(self, key,
                 D3_canonical_num_levels=16, D3_canonical_level_dim=2,
                 D3_canonical_base_resolution=16, D3_canonical_desired_resolution=2048,
                 D3_canonical_log2_hashmap_size=19,
                 D4_deform_num_levels=32, D4_deform_level_dim=2,
                 D4_deform_base_resolution=(8, 8, 8),
                 D4_deform_desired_resolution=(32, 32, 16),
                 D4_deform_log2_hashmap_size=19,
                 bound=1.6, tile_n=1024, out_dtype=jnp.float32, feats_buffers=2):
        self.bound = float(bound)
        self.tile_n = int(tile_n)
        self.out_dtype = out_dtype
        self.feats_buffers = int(feats_buffers)
        self.L3, self.F3 = D3_canonical_num_levels, D3_canonical_level_dim
        self.L4, self.F4 = D4_deform_num_levels, D4_deform_level_dim
        self.res3 = compute_resolutions(3, self.L3, D3_canonical_base_resolution,
                                        D3_canonical_desired_resolution)
        self.res4 = compute_resolutions(4, self.L4, list(D4_deform_base_resolution),
                                        list(D4_deform_desired_resolution))
        T3 = 1 << D3_canonical_log2_hashmap_size
        T4 = 1 << D4_deform_log2_hashmap_size
        k3, k4 = jax.random.split(key)
        # Instant-NGP style init (uniform in [-1e-4, 1e-4]); stored bf16 to halve the
        # dominant gathered-feature HBM stream, interpolation accumulates in f32.
        self.tables3 = jax.random.uniform(
            k3, (self.L3, T3, self.F3), jnp.float32, minval=-1e-4, maxval=1e-4
        ).astype(jnp.bfloat16)
        self.tables4 = jax.random.uniform(
            k4, (self.L4, T4, self.F4), jnp.float32, minval=-1e-4, maxval=1e-4
        ).astype(jnp.bfloat16)
        self._enc3 = self._make_encoder(self.res3)
        self._enc4 = self._make_encoder(self.res4)

    def _make_encoder(self, res_np):
        bound = self.bound
        tile_n = self.tile_n
        out_dtype = self.out_dtype
        feats_buffers = self.feats_buffers

        @jax.jit
        def enc(x, tables):
            return hash_encode(x, tables, res_np, bound, tile_n=tile_n,
                               out_dtype=out_dtype, feats_buffers=feats_buffers)

        return enc

    def encode_3d(self, xyzt):
        return self._enc3(xyzt[..., :3], self.tables3)

    def encode_4d(self, xyzt):
        return self._enc4(xyzt, self.tables4)

    def __call__(self, xyzt):
        return self.encode_3d(xyzt), self.encode_4d(xyzt)


if __name__ == "__main__":
    key = jax.random.PRNGKey(0)
    k_in, k_par = jax.random.split(key)

    model = Dash4dPallas(k_par)

    N = 128  # points
    xyzt = jax.random.uniform(k_in, (N, 4), jnp.float32, minval=-1.6, maxval=1.6)

    enc3, enc4 = model(xyzt)
    jax.block_until_ready((enc3, enc4))

    assert enc3.shape == (N, model.L3 * model.F3), enc3.shape   # (128, 32)
    assert enc4.shape == (N, model.L4 * model.F4), enc4.shape   # (128, 64)
    assert enc3.dtype == jnp.float32 and enc4.dtype == jnp.float32
    assert bool(jnp.all(jnp.isfinite(enc3))) and bool(jnp.all(jnp.isfinite(enc4)))

    print("KERNEL_OK")
</pallas_src>

<mosaic_0001>
module attributes {stable_mosaic.version = 11 : i64} {
  func.func private @main(%arg0: i32) attributes {dimension_semantics = [#tpu.dimension_semantics<core_parallel>], iteration_bounds = array<i64: 2>, tpu.core_type = #tpu.core_type<sc_scalar_subcore>, window_params = []} {
    return
  }
}

module attributes {stable_mosaic.version = 11 : i64} {
  func.func private @main(%arg0: i32) attributes {dimension_semantics = [#tpu.dimension_semantics<core_parallel>], iteration_bounds = array<i64: 2>, tpu.core_type = #tpu.core_type<sc_scalar_subcore>, window_params = []} {
    return
  }
}

module attributes {stable_mosaic.version = 11 : i64} {
  func.func @_interp_kernel(%arg0: i32, %arg1: memref<256x12xf32, #tpu.memory_space<vmem>>, %arg2: memref<12x128xf32, #tpu.memory_space<vmem>>, %arg3: memref<256x1024xbf16, #tpu.memory_space<vmem>>, %arg4: memref<256x128xf32, #tpu.memory_space<vmem>>) attributes {dimension_semantics = [#tpu.dimension_semantics<parallel>], iteration_bounds = array<i64: 1>, scalar_prefetch = 0 : i64, scratch_operands = 0 : i64, tpu.core_type = #tpu.core_type<tc>, window_params = [{transform_indices = @transform_0, window_bounds = array<i64: 256, 12>}, {pipeline_mode = #tpu.pipeline_mode<synchronous>, transform_indices = @transform_1, window_bounds = array<i64: 12, 128>}, {transform_indices = @transform_2, window_bounds = array<i64: 256, 1024>}, {transform_indices = @transform_3, window_bounds = array<i64: 256, 128>}]} {
    %c0 = arith.constant 0 : index
    %c0_0 = arith.constant 0 : index
    %0 = vector.load %arg1[%c0, %c0_0] : memref<256x12xf32, #tpu.memory_space<vmem>>, vector<256x1xf32>
    %c0_1 = arith.constant 0 : index
    %c0_2 = arith.constant 0 : index
    %1 = vector.load %arg2[%c0_1, %c0_2] : memref<12x128xf32, #tpu.memory_space<vmem>>, vector<1x128xf32>
    %2 = vector.broadcast %0 : vector<256x1xf32> to vector<256x128xf32>
    %3 = vector.broadcast %1 : vector<1x128xf32> to vector<256x128xf32>
    %4 = arith.mulf %2, %3 : vector<256x128xf32>
    %c0_3 = arith.constant 0 : index
    %c3 = arith.constant 3 : index
    %5 = vector.load %arg1[%c0_3, %c3] : memref<256x12xf32, #tpu.memory_space<vmem>>, vector<256x1xf32>
    %c3_4 = arith.constant 3 : index
    %c0_5 = arith.constant 0 : index
    %6 = vector.load %arg2[%c3_4, %c0_5] : memref<12x128xf32, #tpu.memory_space<vmem>>, vector<1x128xf32>
    %7 = vector.broadcast %5 : vector<256x1xf32> to vector<256x128xf32>
    %8 = vector.broadcast %6 : vector<1x128xf32> to vector<256x128xf32>
    %9 = arith.mulf %7, %8 : vector<256x128xf32>
    %10 = arith.addf %4, %9 : vector<256x128xf32>
    %c0_6 = arith.constant 0 : index
    %c6 = arith.constant 6 : index
    %11 = vector.load %arg1[%c0_6, %c6] : memref<256x12xf32, #tpu.memory_space<vmem>>, vector<256x1xf32>
    %c6_7 = arith.constant 6 : index
    %c0_8 = arith.constant 0 : index
    %12 = vector.load %arg2[%c6_7, %c0_8] : memref<12x128xf32, #tpu.memory_space<vmem>>, vector<1x128xf32>
    %13 = vector.broadcast %11 : vector<256x1xf32> to vector<256x128xf32>
    %14 = vector.broadcast %12 : vector<1x128xf32> to vector<256x128xf32>
    %15 = arith.mulf %13, %14 : vector<256x128xf32>
    %16 = arith.addf %10, %15 : vector<256x128xf32>
    %c0_9 = arith.constant 0 : index
    %c9 = arith.constant 9 : index
    %17 = vector.load %arg1[%c0_9, %c9] : memref<256x12xf32, #tpu.memory_space<vmem>>, vector<256x1xf32>
    %c9_10 = arith.constant 9 : index
    %c0_11 = arith.constant 0 : index
    %18 = vector.load %arg2[%c9_10, %c0_11] : memref<12x128xf32, #tpu.memory_space<vmem>>, vector<1x128xf32>
    %19 = vector.broadcast %17 : vector<256x1xf32> to vector<256x128xf32>
    %20 = vector.broadcast %18 : vector<1x128xf32> to vector<256x128xf32>
    %21 = arith.mulf %19, %20 : vector<256x128xf32>
    %22 = arith.addf %16, %21 : vector<256x128xf32>
    %23 = math.floor %22 : vector<256x128xf32>
    %24 = arith.subf %22, %23 : vector<256x128xf32>
    %c0_12 = arith.constant 0 : index
    %c1 = arith.constant 1 : index
    %25 = vector.load %arg1[%c0_12, %c1] : memref<256x12xf32, #tpu.memory_space<vmem>>, vector<256x1xf32>
    %c1_13 = arith.constant 1 : index
    %c0_14 = arith.constant 0 : index
    %26 = vector.load %arg2[%c1_13, %c0_14] : memref<12x128xf32, #tpu.memory_space<vmem>>, vector<1x128xf32>
    %27 = vector.broadcast %25 : vector<256x1xf32> to vector<256x128xf32>
    %28 = vector.broadcast %26 : vector<1x128xf32> to vector<256x128xf32>
    %29 = arith.mulf %27, %28 : vector<256x128xf32>
    %c0_15 = arith.constant 0 : index
    %c4 = arith.constant 4 : index
    %30 = vector.load %arg1[%c0_15, %c4] : memref<256x12xf32, #tpu.memory_space<vmem>>, vector<256x1xf32>
    %c4_16 = arith.constant 4 : index
    %c0_17 = arith.constant 0 : index
    %31 = vector.load %arg2[%c4_16, %c0_17] : memref<12x128xf32, #tpu.memory_space<vmem>>, vector<1x128xf32>
    %32 = vector.broadcast %30 : vector<256x1xf32> to vector<256x128xf32>
    %33 = vector.broadcast %31 : vector<1x128xf32> to vector<256x128xf32>
    %34 = arith.mulf %32, %33 : vector<256x128xf32>
    %35 = arith.addf %29, %34 : vector<256x128xf32>
    %c0_18 = arith.constant 0 : index
    %c7 = arith.constant 7 : index
    %36 = vector.load %arg1[%c0_18, %c7] : memref<256x12xf32, #tpu.memory_space<vmem>>, vector<256x1xf32>
    %c7_19 = arith.constant 7 : index
    %c0_20 = arith.constant 0 : index
    %37 = vector.load %arg2[%c7_19, %c0_20] : memref<12x128xf32, #tpu.memory_space<vmem>>, vector<1x128xf32>
    %38 = vector.broadcast %36 : vector<256x1xf32> to vector<256x128xf32>
    %39 = vector.broadcast %37 : vector<1x128xf32> to vector<256x128xf32>
    %40 = arith.mulf %38, %39 : vector<256x128xf32>
    %41 = arith.addf %35, %40 : vector<256x128xf32>
    %c0_21 = arith.constant 0 : index
    %c10 = arith.constant 10 : index
    %42 = vector.load %arg1[%c0_21, %c10] : memref<256x12xf32, #tpu.memory_space<vmem>>, vector<256x1xf32>
    %c10_22 = arith.constant 10 : index
    %c0_23 = arith.constant 0 : index
    %43 = vector.load %arg2[%c10_22, %c0_23] : memref<12x128xf32, #tpu.memory_space<vmem>>, vector<1x128xf32>
    %44 = vector.broadcast %42 : vector<256x1xf32> to vector<256x128xf32>
    %45 = vector.broadcast %43 : vector<1x128xf32> to vector<256x128xf32>
    %46 = arith.mulf %44, %45 : vector<256x128xf32>
    %47 = arith.addf %41, %46 : vector<256x128xf32>
    %48 = math.floor %47 : vector<256x128xf32>
    %49 = arith.subf %47, %48 : vector<256x128xf32>
    %c0_24 = arith.constant 0 : index
    %c2 = arith.constant 2 : index
    %50 = vector.load %arg1[%c0_24, %c2] : memref<256x12xf32, #tpu.memory_space<vmem>>, vector<256x1xf32>
    %c2_25 = arith.constant 2 : index
    %c0_26 = arith.constant 0 : index
    %51 = vector.load %arg2[%c2_25, %c0_26] : memref<12x128xf32, #tpu.memory_space<vmem>>, vector<1x128xf32>
    %52 = vector.broadcast %50 : vector<256x1xf32> to vector<256x128xf32>
    %53 = vector.broadcast %51 : vector<1x128xf32> to vector<256x128xf32>
    %54 = arith.mulf %52, %53 : vector<256x128xf32>
    %c0_27 = arith.constant 0 : index
    %c5 = arith.constant 5 : index
    %55 = vector.load %arg1[%c0_27, %c5] : memref<256x12xf32, #tpu.memory_space<vmem>>, vector<256x1xf32>
    %c5_28 = arith.constant 5 : index
    %c0_29 = arith.constant 0 : index
    %56 = vector.load %arg2[%c5_28, %c0_29] : memref<12x128xf32, #tpu.memory_space<vmem>>, vector<1x128xf32>
    %57 = vector.broadcast %55 : vector<256x1xf32> to vector<256x128xf32>
    %58 = vector.broadcast %56 : vector<1x128xf32> to vector<256x128xf32>
    %59 = arith.mulf %57, %58 : vector<256x128xf32>
    %60 = arith.addf %54, %59 : vector<256x128xf32>
    %c0_30 = arith.constant 0 : index
    %c8 = arith.constant 8 : index
    %61 = vector.load %arg1[%c0_30, %c8] : memref<256x12xf32, #tpu.memory_space<vmem>>, vector<256x1xf32>
    %c8_31 = arith.constant 8 : index
    %c0_32 = arith.constant 0 : index
    %62 = vector.load %arg2[%c8_31, %c0_32] : memref<12x128xf32, #tpu.memory_space<vmem>>, vector<1x128xf32>
    %63 = vector.broadcast %61 : vector<256x1xf32> to vector<256x128xf32>
    %64 = vector.broadcast %62 : vector<1x128xf32> to vector<256x128xf32>
    %65 = arith.mulf %63, %64 : vector<256x128xf32>
    %66 = arith.addf %60, %65 : vector<256x128xf32>
    %c0_33 = arith.constant 0 : index
    %c11 = arith.constant 11 : index
    %67 = vector.load %arg1[%c0_33, %c11] : memref<256x12xf32, #tpu.memory_space<vmem>>, vector<256x1xf32>
    %c11_34 = arith.constant 11 : index
    %c0_35 = arith.constant 0 : index
    %68 = vector.load %arg2[%c11_34, %c0_35] : memref<12x128xf32, #tpu.memory_space<vmem>>, vector<1x128xf32>
    %69 = vector.broadcast %67 : vector<256x1xf32> to vector<256x128xf32>
    %70 = vector.broadcast %68 : vector<1x128xf32> to vector<256x128xf32>
    %71 = arith.mulf %69, %70 : vector<256x128xf32>
    %72 = arith.addf %66, %71 : vector<256x128xf32>
    %73 = math.floor %72 : vector<256x128xf32>
    %74 = arith.subf %72, %73 : vector<256x128xf32>
    %c0_36 = arith.constant 0 : index
    %c0_37 = arith.constant 0 : index
    %75 = vector.load %arg3[%c0_36, %c0_37] : memref<256x1024xbf16, #tpu.memory_space<vmem>>, vector<256x128xbf16>
    %76 = arith.extf %75 : vector<256x128xbf16> to vector<256x128xf32>
    %c0_38 = arith.constant 0 : index
    %c128 = arith.constant 128 : index
    %77 = vector.load %arg3[%c0_38, %c128] : memref<256x1024xbf16, #tpu.memory_space<vmem>>, vector<256x128xbf16>
    %78 = arith.extf %77 : vector<256x128xbf16> to vector<256x128xf32>
    %79 = arith.subf %78, %76 : vector<256x128xf32>
    %80 = arith.mulf %24, %79 : vector<256x128xf32>
    %81 = arith.addf %76, %80 : vector<256x128xf32>
    %c0_39 = arith.constant 0 : index
    %c256 = arith.constant 256 : index
    %82 = vector.load %arg3[%c0_39, %c256] : memref<256x1024xbf16, #tpu.memory_space<vmem>>, vector<256x128xbf16>
    %83 = arith.extf %82 : vector<256x128xbf16> to vector<256x128xf32>
    %c0_40 = arith.constant 0 : index
    %c384 = arith.constant 384 : index
    %84 = vector.load %arg3[%c0_40, %c384] : memref<256x1024xbf16, #tpu.memory_space<vmem>>, vector<256x128xbf16>
    %85 = arith.extf %84 : vector<256x128xbf16> to vector<256x128xf32>
    %86 = arith.subf %85, %83 : vector<256x128xf32>
    %87 = arith.mulf %24, %86 : vector<256x128xf32>
    %88 = arith.addf %83, %87 : vector<256x128xf32>
    %89 = arith.subf %88, %81 : vector<256x128xf32>
    %90 = arith.mulf %49, %89 : vector<256x128xf32>
    %91 = arith.addf %81, %90 : vector<256x128xf32>
    %c0_41 = arith.constant 0 : index
    %c512 = arith.constant 512 : index
    %92 = vector.load %arg3[%c0_41, %c512] : memref<256x1024xbf16, #tpu.memory_space<vmem>>, vector<256x128xbf16>
    %93 = arith.extf %92 : vector<256x128xbf16> to vector<256x128xf32>
    %c0_42 = arith.constant 0 : index
    %c640 = arith.constant 640 : index
    %94 = vector.load %arg3[%c0_42, %c640] : memref<256x1024xbf16, #tpu.memory_space<vmem>>, vector<256x128xbf16>
    %95 = arith.extf %94 : vector<256x128xbf16> to vector<256x128xf32>
    %96 = arith.subf %95, %93 : vector<256x128xf32>
    %97 = arith.mulf %24, %96 : vector<256x128xf32>
    %98 = arith.addf %93, %97 : vector<256x128xf32>
    %c0_43 = arith.constant 0 : index
    %c768 = arith.constant 768 : index
    %99 = vector.load %arg3[%c0_43, %c768] : memref<256x1024xbf16, #tpu.memory_space<vmem>>, vector<256x128xbf16>
    %100 = arith.extf %99 : vector<256x128xbf16> to vector<256x128xf32>
    %c0_44 = arith.constant 0 : index
    %c896 = arith.constant 896 : index
    %101 = vector.load %arg3[%c0_44, %c896] : memref<256x1024xbf16, #tpu.memory_space<vmem>>, vector<256x128xbf16>
    %102 = arith.extf %101 : vector<256x128xbf16> to vector<256x128xf32>
    %103 = arith.subf %102, %100 : vector<256x128xf32>
    %104 = arith.mulf %24, %103 : vector<256x128xf32>
    %105 = arith.addf %100, %104 : vector<256x128xf32>
    %106 = arith.subf %105, %98 : vector<256x128xf32>
    %107 = arith.mulf %49, %106 : vector<256x128xf32>
    %108 = arith.addf %98, %107 : vector<256x128xf32>
    %109 = arith.subf %108, %91 : vector<256x128xf32>
    %110 = arith.mulf %74, %109 : vector<256x128xf32>
    %111 = arith.addf %91, %110 : vector<256x128xf32>
    %c0_45 = arith.constant 0 : index
    %c0_46 = arith.constant 0 : index
    %112 = vector.load %arg4[%c0_45, %c0_46] : memref<256x128xf32, #tpu.memory_space<vmem>>, vector<256x128xf32>
    tpu.vector_store %arg4[%c0_45, %c0_46], %111 {strides = array<i32>} : memref<256x128xf32, #tpu.memory_space<vmem>>, vector<256x128xf32>,
    return
  }
  func.func @transform_0(%arg0: i32) -> (i32, i32) {
    %c0_i32 = arith.constant 0 : i32
    %c0_i32_0 = arith.constant 0 : i32
    return %arg0, %c0_i32 : i32, i32
  }
  func.func @transform_1(%arg0: i32) -> (i32, i32) {
    %c0_i32 = arith.constant 0 : i32
    %c0_i32_0 = arith.constant 0 : i32
    %c0_i32_1 = arith.constant 0 : i32
    return %c0_i32, %c0_i32_0 : i32, i32
  }
  func.func @transform_2(%arg0: i32) -> (i32, i32) {
    %c0_i32 = arith.constant 0 : i32
    %c0_i32_0 = arith.constant 0 : i32
    return %arg0, %c0_i32 : i32, i32
  }
  func.func @transform_3(%arg0: i32) -> (i32, i32) {
    %c0_i32 = arith.constant 0 : i32
    %c0_i32_0 = arith.constant 0 : i32
    return %arg0, %c0_i32 : i32, i32
  }
}

</mosaic_0001>

<bundles_post_ra>
// kernel: enc.1
= control target key start
LH: loop header
LB: loop body
LE: loop exit
PB: predicated region body
PF: predicated region fallthrough
CT: control target
= control target key end

     0   :  { %8 = vsyncpa [#allocation3], 0  ;;  %s9049_s0 = inlined_call_operand.hbm [shape: f32[256,12], index: 0, kind: input, shape index: {}]   ;;  %s9050_s1 = inlined_call_operand.hbm [shape: f32[12,128], index: 1, kind: input, shape index: {}]   ;;  %s9051_s2 = inlined_call_operand.hbm [shape: bf16[256,1024], index: 2, kind: input, shape index: {}]   ;;  %s9052_s3 = inlined_call_operand.vmem [shape: f32[256,128], index: 3, kind: output, shape index: {}]  }
   0x1   :  { %9 = vsyncpa [#allocation5], 0  ;;  %s4014_s12 = smov [#allocation4]   ;;  %s4015_s14 = smov [#allocation2]  }
   0x2   :  { %s27_s13 = sshll.u32 %s4014_s12, 4  ;;  %s15_s15 = sshll.u32 %s4015_s14, 4  ;;  %s28_s13 = int_to_ptr.vmem [resolvable:$true] %s27_s13  ;;  %s4053_s15 = int_to_ptr.vmem [resolvable:$true] %s15_s15 }
   0x3   :  { %s3944_s18 = scalar_lea.hbm %s9050_s1, 256 }
   0x4   :  { %p3945_p0 = scmp.ne.s32.totalorder %s9050_s1, %s3944_s18  ;;  %p3948_p1 = scmp.lt.u32.totalorder %s3944_s18, %s9050_s1 }
   0x6   :  { %p3950_p2 = pnand %p3948_p1, %p3945_p0 }
   0x8   :  { %3953 = shalt.err (!%p3950_p2)
}
   0x9   :  { %s3954_s23 = scalar_lea.vmem %s28_s13, 256  ;;  %p3959_p4 = scmp.lt.s32.totalorder %s28_s13, %s28_s13 }
   0xa   :  { %p3955_p3 = scmp.ne.s32.totalorder %s28_s13, %s3954_s23  ;;  %p3960_p5 = scmp.lt.s32.totalorder %s3954_s23, %s3954_s23 }
   0xc   :  { %p3961_p6 = por %p3960_p5, %p3959_p4 }
   0xe   :  { %p3962_p7 = pnand %p3961_p6, %p3955_p3 }
  0x10   :  { %3965 = shalt.err (!%p3962_p7)
}
  0x11   :  { %s4016_s24 = smov 128   ;;  %s4017_s25 = smov 8  }
  0x12   :  { %33 = dma.hbm_to_vmem [thread:$0]  %s9050_s1, 256, %s28_s13, [#allocation5], %s4016_s24, %s4016_s24, %s4017_s25  }
  0x13   :  { %s3966_s30 = scalar_lea.hbm %s9049_s0, 4096 }
  0x14   :  { %p3967_p8 = scmp.ne.s32.totalorder %s9049_s0, %s3966_s30  ;;  %p3970_p9 = scmp.lt.u32.totalorder %s3966_s30, %s9049_s0 }
  0x16   :  { %p3972_p10 = pnand %p3970_p9, %p3967_p8 }
  0x18   :  { %3975 = shalt.err (!%p3972_p10)
}
  0x19   :  { %s3976_s8 = scalar_lea.vmem %s4053_s15, 4096  ;;  %p3981_p12 = scmp.lt.s32.totalorder %s4053_s15, %s4053_s15 }
  0x1a   :  { %p3977_p11 = scmp.ne.s32.totalorder %s4053_s15, %s3976_s8  ;;  %p3982_p13 = scmp.lt.s32.totalorder %s3976_s8, %s3976_s8 }
  0x1c   :  { %p3983_p0 = por %p3982_p13, %p3981_p12 }
  0x1e   :  { %p3984_p1 = pnand %p3983_p0, %p3977_p11 }
  0x20   :  { %3987 = shalt.err (!%p3984_p1)
}
  0x21   :  { %21 = dma.hbm_to_vmem [thread:$0]  %s9049_s0, 4096, %s4053_s15, [#allocation3], %s4016_s24, %s4016_s24, %s4017_s25  }
  0x22   :  { %s4018_s10 = smov [#allocation6]   ;;  %s3988_s14 = scalar_lea.hbm %s9051_s2, 16384 }
  0x23   :  { %s39_s11 = sshll.u32 %s4018_s10, 4  ;;  %p3989_p2 = scmp.ne.s32.totalorder %s9051_s2, %s3988_s14  ;;  %s40_s11 = int_to_ptr.vmem [resolvable:$true] %s39_s11 }
  0x24   :  { %p3992_p3 = scmp.lt.u32.totalorder %s3988_s14, %s9051_s2 }
  0x26   :  { %p3994_p4 = pnand %p3992_p3, %p3989_p2 }
  0x28   :  { %3997 = shalt.err (!%p3994_p4)
}
  0x29   :  { %s3998_s20 = scalar_lea.vmem %s40_s11, 16384  ;;  %p4003_p6 = scmp.lt.s32.totalorder %s40_s11, %s40_s11 }
  0x2a   :  { %p3999_p5 = scmp.ne.s32.totalorder %s40_s11, %s3998_s20  ;;  %p4004_p7 = scmp.lt.s32.totalorder %s3998_s20, %s3998_s20 }
  0x2c   :  { %p4005_p8 = por %p4004_p7, %p4003_p6 }
  0x2e   :  { %p4006_p9 = pnand %p4005_p8, %p3999_p5 }
  0x30   :  { %4009 = shalt.err (!%p4006_p9)
}
  0x31   :  { %s4019_s0 = smov 512   ;;  %s4020_s15 = smov 32  }
  0x32   :  { %45 = dma.hbm_to_vmem [thread:$0]  %s9051_s2, 16384, %s40_s11, [#allocation5], %s4019_s0, %s4019_s0, %s4020_s15  }
  0x33   :  { %4010 = dma.done.wait [#allocation3], 4096  }
  0x34   :  { %4011 = vsyncadd [#allocation3], 4294963200 }
  0x35   :  { %4012 = dma.done.wait [#allocation5], 16640  }
  0x36   :  { %4013 = vsyncadd [#allocation5], 4294950656  ;;  %v4021_v0 = vmov 0   ;;  %v4096_v1 = vld [vmem:[#allocation2 + $0x10] sm:$0xff]  ;;  %v4098_v2 = vld [vmem:[#allocation2] sm:$0xff]  ;;  %v4022_v33 = vmov 3  }
  0x37   :  { %3833 = vset.pattern.permute.xlu1 %v4021_v0  ;;  %3832 = vset.pattern.permute.xlu0 %v4021_v0  ;;  %v4102_v3 = vld [vmem:[#allocation2 + $0x18] sm:$0xff]  ;;  %v4104_v4 = vld [vmem:[#allocation2 + $0x8] sm:$0xff]  ;;  %v4110_v6 = vld [vmem:[#allocation2 + $0x20] sm:$0xff]  ;;  %v4023_v36 = vmov 6  }
  0x38   :  { %100 = vperm.xlu1 %3833, %v4096_v1   ;;  %90 = vperm.xlu0 %3832, %v4098_v2   ;;  %v4108_v5 = vld [vmem:[#allocation2 + $0x28] sm:$0xff]  ;;  %v4114_v7 = vld [vmem:[#allocation2 + $0x38] sm:$0xff]  ;;  %v4116_v8 = vld [vmem:[#allocation2 + $0x30] sm:$0xff] }
  0x39   :  { %v4120_v9 = vld [vmem:[#allocation2 + $0x48] sm:$0xff]  ;;  %v4122_v10 = vld [vmem:[#allocation2 + $0x40] sm:$0xff]  ;;  %v4126_v11 = vld [vmem:[#allocation2 + $0x58] sm:$0xff] }
  0x3a   :  { %v4128_v12 = vld [vmem:[#allocation2 + $0x50] sm:$0xff]  ;;  %v4132_v13 = vld [vmem:[#allocation2 + $0x68] sm:$0xff]  ;;  %v4134_v14 = vld [vmem:[#allocation2 + $0x60] sm:$0xff] }
  0x3b   :  { %v4138_v15 = vld [vmem:[#allocation2 + $0x78] sm:$0xff]  ;;  %v4140_v16 = vld [vmem:[#allocation2 + $0x70] sm:$0xff]  ;;  %v4144_v17 = vld [vmem:[#allocation2 + $0x88] sm:$0xff] }
  0x3c   :  { %105 = vperm.xlu1 %3833, %v4102_v3   ;;  %95 = vperm.xlu0 %3832, %v4104_v4   ;;  %v4146_v18 = vld [vmem:[#allocation2 + $0x80] sm:$0xff]  ;;  %v4150_v19 = vld [vmem:[#allocation2 + $0x98] sm:$0xff]  ;;  %v4152_v20 = vld [vmem:[#allocation2 + $0x90] sm:$0xff] }
  0x3d   :  { %v4156_v21 = vld [vmem:[#allocation2 + $0xa8] sm:$0xff]  ;;  %v4158_v22 = vld [vmem:[#allocation2 + $0xa0] sm:$0xff]  ;;  %v4162_v23 = vld [vmem:[#allocation2 + $0xb8] sm:$0xff] }
  0x3e   :  { %v4164_v24 = vld [vmem:[#allocation2 + $0xb0] sm:$0xff]  ;;  %v4168_v25 = vld [vmem:[#allocation2 + $0xc8] sm:$0xff]  ;;  %v4170_v26 = vld [vmem:[#allocation2 + $0xc0] sm:$0xff] }
  0x3f   :  { %v4174_v27 = vld [vmem:[#allocation2 + $0xd8] sm:$0xff]  ;;  %v4176_v28 = vld [vmem:[#allocation2 + $0xd0] sm:$0xff]  ;;  %v4180_v29 = vld [vmem:[#allocation2 + $0xe8] sm:$0xff] }
  0x40   :  { %115 = vperm.xlu1 %3833, %v4108_v5   ;;  %110 = vperm.xlu0 %3832, %v4110_v6   ;;  %v4182_v30 = vld [vmem:[#allocation2 + $0xe0] sm:$0xff]  ;;  %v4186_v31 = vld [vmem:[#allocation2 + $0xf8] sm:$0xff]  ;;  %v4188_v32 = vld [vmem:[#allocation2 + $0xf0] sm:$0xff] }
  0x44   :  { %125 = vperm.xlu1 %3833, %v4114_v7   ;;  %120 = vperm.xlu0 %3832, %v4116_v8  }
  0x48   :  { %135 = vperm.xlu1 %3833, %v4120_v9   ;;  %130 = vperm.xlu0 %3832, %v4122_v10  }
  0x4c   :  { %145 = vperm.xlu1 %3833, %v4126_v11   ;;  %140 = vperm.xlu0 %3832, %v4128_v12  }
  0x50   :  { %155 = vperm.xlu1 %3833, %v4132_v13   ;;  %150 = vperm.xlu0 %3832, %v4134_v14  }
  0x54   :  { %165 = vperm.xlu1 %3833, %v4138_v15   ;;  %160 = vperm.xlu0 %3832, %v4140_v16  }
  0x58   :  { %175 = vperm.xlu1 %3833, %v4144_v17   ;;  %170 = vperm.xlu0 %3832, %v4146_v18  }
  0x5c   :  { %185 = vperm.xlu1 %3833, %v4150_v19   ;;  %180 = vperm.xlu0 %3832, %v4152_v20  }
  0x60   :  { %195 = vperm.xlu1 %3833, %v4156_v21   ;;  %190 = vperm.xlu0 %3832, %v4158_v22  }
  0x64   :  { %205 = vperm.xlu1 %3833, %v4162_v23   ;;  %200 = vperm.xlu0 %3832, %v4164_v24  }
  0x68   :  { %215 = vperm.xlu1 %3833, %v4168_v25   ;;  %210 = vperm.xlu0 %3832, %v4170_v26  }
  0x6c   :  { %225 = vperm.xlu1 %3833, %v4174_v27   ;;  %220 = vperm.xlu0 %3832, %v4176_v28  }
  0x70   :  { %235 = vperm.xlu1 %3833, %v4180_v29   ;;  %230 = vperm.xlu0 %3832, %v4182_v30  }
  0x74   :  { %245 = vperm.xlu1 %3833, %v4186_v31   ;;  %240 = vperm.xlu0 %3832, %v4188_v32  }
  0x78   :  { %3835 = vset.pattern.permute.xlu1 %v4022_v33  ;;  %3834 = vset.pattern.permute.xlu0 %v4022_v33 }
  0x79   :  { %290 = vperm.xlu1 %3835, %v4104_v4   ;;  %286 = vperm.xlu0 %3834, %v4098_v2  }
  0x7d   :  { %294 = vperm.xlu1 %3835, %v4096_v1   ;;  %298 = vperm.xlu0 %3834, %v4102_v3  }
  0x81   :  { %302 = vperm.xlu1 %3835, %v4110_v6   ;;  %306 = vperm.xlu0 %3834, %v4108_v5  }
  0x85   :  { %310 = vperm.xlu1 %3835, %v4116_v8   ;;  %314 = vperm.xlu0 %3834, %v4114_v7  }
  0x89   :  { %318 = vperm.xlu1 %3835, %v4122_v10   ;;  %322 = vperm.xlu0 %3834, %v4120_v9  }
  0x8d   :  { %326 = vperm.xlu1 %3835, %v4128_v12   ;;  %330 = vperm.xlu0 %3834, %v4126_v11  }
  0x91   :  { %334 = vperm.xlu1 %3835, %v4134_v14   ;;  %338 = vperm.xlu0 %3834, %v4132_v13  }
  0x95   :  { %342 = vperm.xlu1 %3835, %v4140_v16   ;;  %346 = vperm.xlu0 %3834, %v4138_v15  }
  0x99   :  { %350 = vperm.xlu1 %3835, %v4146_v18   ;;  %354 = vperm.xlu0 %3834, %v4144_v17  }
  0x9d   :  { %358 = vperm.xlu1 %3835, %v4152_v20   ;;  %362 = vperm.xlu0 %3834, %v4150_v19  }
  0xa1   :  { %366 = vperm.xlu1 %3835, %v4158_v22   ;;  %370 = vperm.xlu0 %3834, %v4156_v21  }
  0xa5   :  { %374 = vperm.xlu1 %3835, %v4164_v24   ;;  %378 = vperm.xlu0 %3834, %v4162_v23  }
  0xa9   :  { %382 = vperm.xlu1 %3835, %v4170_v26   ;;  %386 = vperm.xlu0 %3834, %v4168_v25  }
  0xad   :  { %390 = vperm.xlu1 %3835, %v4176_v28   ;;  %394 = vperm.xlu0 %3834, %v4174_v27  }
  0xb1   :  { %398 = vperm.xlu1 %3835, %v4182_v30   ;;  %402 = vperm.xlu0 %3834, %v4180_v29  }
  0xb5   :  { %406 = vperm.xlu1 %3835, %v4188_v32   ;;  %410 = vperm.xlu0 %3834, %v4186_v31  }
  0xb7   :  { %v4224_v34 = vpop.permute.xlu1 %100  ;;  %v4226_v35 = vpop.permute.xlu0 %90 }
  0xb9   :  { %3836 = vset.pattern.permute.xlu1 %v4023_v36  ;;  %3837 = vset.pattern.permute.xlu0 %v4023_v36 }
  0xba   :  { %483 = vperm.xlu1 %3836, %v4098_v2   ;;  %487 = vperm.xlu0 %3837, %v4104_v4  }
  0xbb   :  { %v4230_v37 = vpop.permute.xlu1 %105  ;;  %v4232_v38 = vpop.permute.xlu0 %95 }
  0xbe   :  { %491 = vperm.xlu1 %3836, %v4096_v1   ;;  %499 = vperm.xlu0 %3837, %v4110_v6  }
  0xbf   :  { %v4236_v39 = vpop.permute.xlu1 %115  ;;  %v4238_v40 = vpop.permute.xlu0 %110 }
  0xc2   :  { %495 = vperm.xlu1 %3836, %v4102_v3   ;;  %507 = vperm.xlu0 %3837, %v4116_v8  }
  0xc3   :  { %v4242_v41 = vpop.permute.xlu1 %125  ;;  %v4244_v42 = vpop.permute.xlu0 %120 }
  0xc6   :  { %503 = vperm.xlu1 %3836, %v4108_v5   ;;  %515 = vperm.xlu0 %3837, %v4122_v10  }
  0xc7   :  { %v4248_v43 = vpop.permute.xlu1 %135  ;;  %v4250_v44 = vpop.permute.xlu0 %130 }
  0xca   :  { %511 = vperm.xlu1 %3836, %v4114_v7   ;;  %523 = vperm.xlu0 %3837, %v4128_v12  }
  0xcb   :  { %v4254_v45 = vpop.permute.xlu1 %145  ;;  %v4256_v46 = vpop.permute.xlu0 %140 }
  0xce   :  { %519 = vperm.xlu1 %3836, %v4120_v9   ;;  %531 = vperm.xlu0 %3837, %v4134_v14  }
  0xcf   :  { %v4260_v47 = vpop.permute.xlu1 %155  ;;  %v4262_v48 = vpop.permute.xlu0 %150 }
  0xd0   :  { %9391 = vst [vmem:[#allocation9_spill] sm:$0xff] %v4260_v47  ;;  %9392 = vst [vmem:[#allocation10_spill] sm:$0xff] %v4262_v48 }
  0xd2   :  { %527 = vperm.xlu1 %3836, %v4126_v11   ;;  %539 = vperm.xlu0 %3837, %v4140_v16  }
  0xd3   :  { %v4266_v49 = vpop.permute.xlu1 %165  ;;  %v4268_v50 = vpop.permute.xlu0 %160 }
  0xd4   :  { %9393 = vst [vmem:[#allocation11_spill] sm:$0xff] %v4266_v49 }
  0xd6   :  { %535 = vperm.xlu1 %3836, %v4132_v13   ;;  %547 = vperm.xlu0 %3837, %v4146_v18  }
  0xd7   :  { %v4272_v51 = vpop.permute.xlu1 %175  ;;  %v4274_v52 = vpop.permute.xlu0 %170 }
  0xd8   :  { %9394 = vst [vmem:[#allocation12_spill] sm:$0xff] %v4272_v51 }
  0xda   :  { %543 = vperm.xlu1 %3836, %v4138_v15   ;;  %555 = vperm.xlu0 %3837, %v4152_v20  }
  0xdb   :  { %v4278_v53 = vpop.permute.xlu1 %185  ;;  %v4280_v54 = vpop.permute.xlu0 %180 }
  0xdc   :  { %9395 = vst [vmem:[#allocation13_spill] sm:$0xff] %v4278_v53 }
  0xde   :  { %551 = vperm.xlu1 %3836, %v4144_v17   ;;  %563 = vperm.xlu0 %3837, %v4158_v22  }
  0xdf   :  { %v4284_v55 = vpop.permute.xlu1 %195  ;;  %v4286_v56 = vpop.permute.xlu0 %190 }
  0xe0   :  { %9396 = vst [vmem:[#allocation14_spill] sm:$0xff] %v4284_v55 }
  0xe2   :  { %559 = vperm.xlu1 %3836, %v4150_v19   ;;  %571 = vperm.xlu0 %3837, %v4164_v24  }
  0xe3   :  { %v4290_v57 = vpop.permute.xlu1 %205  ;;  %v4292_v58 = vpop.permute.xlu0 %200 }
  0xe4   :  { %9397 = vst [vmem:[#allocation15_spill] sm:$0xff] %v4290_v57 }
  0xe6   :  { %567 = vperm.xlu1 %3836, %v4156_v21   ;;  %579 = vperm.xlu0 %3837, %v4170_v26  }
  0xe7   :  { %v4296_v59 = vpop.permute.xlu1 %215  ;;  %v4298_v60 = vpop.permute.xlu0 %210 }
  0xe8   :  { %9398 = vst [vmem:[#allocation16_spill] sm:$0xff] %v4296_v59 }
  0xea   :  { %575 = vperm.xlu1 %3836, %v4162_v23   ;;  %587 = vperm.xlu0 %3837, %v4176_v28  }
  0xeb   :  { %v4302_v61 = vpop.permute.xlu1 %225  ;;  %v4304_v62 = vpop.permute.xlu0 %220 }
  0xec   :  { %9399 = vst [vmem:[#allocation17_spill] sm:$0xff] %v4302_v61  ;;  %v4024_v61 = vmov 9  }
  0xee   :  { %583 = vperm.xlu1 %3836, %v4168_v25   ;;  %595 = vperm.xlu0 %3837, %v4182_v30  }
  0xef   :  { %v4308_v63 = vpop.permute.xlu1 %235  ;;  %v4310_v0 = vpop.permute.xlu0 %230 }
  0xf0   :  { %9400 = vst [vmem:[#allocation18_spill] sm:$0xff] %v4308_v63 }
  0xf2   :  { %591 = vperm.xlu1 %3836, %v4174_v27   ;;  %603 = vperm.xlu0 %3837, %v4188_v32  }
  0xf3   :  { %v4314_v33 = vpop.permute.xlu1 %245  ;;  %v4316_v36 = vpop.permute.xlu0 %240 }
  0xf4   :  { %9401 = vst [vmem:[#allocation19_spill] sm:$0xff] %v4314_v33 }
  0xf6   :  { %599 = vperm.xlu1 %3836, %v4180_v29   ;;  %3838 = vset.pattern.permute.xlu0 %v4024_v61 }
  0xf7   :  { %680 = vperm.xlu0 %3838, %v4098_v2  }
  0xf8   :  { %v4320_v59 = vpop.permute.xlu1 %290  ;;  %v4322_v57 = vpop.permute.xlu0 %286 }
  0xf9   :  { %9402 = vst [vmem:[#allocation20_spill] sm:$0xff] %v4320_v59  ;;  %9403 = vst [vmem:[#allocation21_spill] sm:$0xff] %v4322_v57 }
  0xfa   :  { %607 = vperm.xlu1 %3836, %v4186_v31  }
  0xfb   :  { %692 = vperm.xlu0 %3838, %v4102_v3  }
  0xfc   :  { %v4326_v63 = vpop.permute.xlu1 %294  ;;  %v4328_v55 = vpop.permute.xlu0 %298 }
  0xfd   :  { %9404 = vst [vmem:[#allocation22_spill] sm:$0xff] %v4326_v63  ;;  %9405 = vst [vmem:[#allocation23_spill] sm:$0xff] %v4328_v55 }
  0xfe   :  { %3839 = vset.pattern.permute.xlu1 %v4024_v61 }
  0xff   :  { %684 = vperm.xlu1 %3839, %v4104_v4   ;;  %700 = vperm.xlu0 %3838, %v4108_v5  }
 0x100   :  { %v4332_v33 = vpop.permute.xlu1 %302  ;;  %v4334_v53 = vpop.permute.xlu0 %306 }
 0x101   :  { %9406 = vst [vmem:[#allocation24_spill] sm:$0xff] %v4332_v33  ;;  %9407 = vst [vmem:[#allocation25_spill] sm:$0xff] %v4334_v53 }
 0x103   :  { %688 = vperm.xlu1 %3839, %v4096_v1   ;;  %708 = vperm.xlu0 %3838, %v4114_v7  }
 0x104   :  { %v4338_v57 = vpop.permute.xlu1 %310  ;;  %v4340_v59 = vpop.permute.xlu0 %314 }
 0x105   :  { %9408 = vst [vmem:[#allocation26_spill] sm:$0xff] %v4338_v57  ;;  %9409 = vst [vmem:[#allocation27_spill] sm:$0xff] %v4340_v59 }
 0x107   :  { %696 = vperm.xlu1 %3839, %v4110_v6   ;;  %716 = vperm.xlu0 %3838, %v4120_v9  }
 0x108   :  { %v4344_v61 = vpop.permute.xlu1 %318  ;;  %v4346_v55 = vpop.permute.xlu0 %322 }
 0x109   :  { %9410 = vst [vmem:[#allocation28_spill] sm:$0xff] %v4344_v61  ;;  %9411 = vst [vmem:[#allocation29_spill] sm:$0xff] %v4346_v55  ;;  %v4362_v55 = vld [vmem:[#allocation4] ss:$0 sm:$0xff]  ;;  %v4364_v61 = vld [vmem:[#allocation4 + $0x3] ss:$0 sm:$0xff] }
 0x10a   :  { %v268_v48 = vmul.f32 %v4362_v55, %v4274_v52  ;;  %v272_v52 = vmul.f32 %v4362_v55, %v4286_v56 }
 0x10b   :  { %704 = vperm.xlu1 %3839, %v4116_v8   ;;  %724 = vperm.xlu0 %3838, %v4126_v11  }
 0x10c   :  { %v4350_v53 = vpop.permute.xlu1 %326  ;;  %v4352_v33 = vpop.permute.xlu0 %330 }
 0x10d   :  { %9412 = vst [vmem:[#allocation30_spill] sm:$0xff] %v4350_v53  ;;  %9413 = vst [vmem:[#allocation31_spill] sm:$0xff] %v4352_v33  ;;  %v266_v33 = vmul.f32 %v4362_v55, %v4268_v50 }
 0x10f   :  { %712 = vperm.xlu1 %3839, %v4122_v10   ;;  %732 = vperm.xlu0 %3838, %v4132_v13  }
 0x110   :  { %v4356_v59 = vpop.permute.xlu1 %334  ;;  %v4358_v57 = vpop.permute.xlu0 %338 }
 0x111   :  { %9414 = vst [vmem:[#allocation32_spill] sm:$0xff] %v4356_v59  ;;  %9415 = vst [vmem:[#allocation33_spill] sm:$0xff] %v4358_v57 }
 0x113   :  { %720 = vperm.xlu1 %3839, %v4128_v12   ;;  %740 = vperm.xlu0 %3838, %v4138_v15  }
 0x114   :  { %v343_v63 = vpop.permute.xlu1 %342  ;;  %v4366_v53 = vpop.permute.xlu0 %346 }
 0x115   :  { %9416 = vst [vmem:[#allocation34_spill] sm:$0xff] %v4366_v53  ;;  %v431_v51 = vmul.f32 %v4364_v61, %v343_v63  ;;  %v270_v63 = vmul.f32 %v4362_v55, %v4280_v54 }
 0x117   :  { %v4371_v49 = vadd.f32 %v431_v51, %v266_v33  ;;  %728 = vperm.xlu1 %3839, %v4134_v14   ;;  %748 = vperm.xlu0 %3838, %v4144_v17  }
 0x118   :  { %v351_v57 = vpop.permute.xlu1 %350  ;;  %v4375_v59 = vpop.permute.xlu0 %354 }
 0x119   :  { %9417 = vst [vmem:[#allocation35_spill] sm:$0xff] %v4375_v59  ;;  %v433_v47 = vmul.f32 %v4364_v61, %v351_v57 }
 0x11b   :  { %v4380_v53 = vadd.f32 %v433_v47, %v268_v48  ;;  %736 = vperm.xlu1 %3839, %v4140_v16   ;;  %756 = vperm.xlu0 %3838, %v4150_v19  }
 0x11c   :  { %v359_v50 = vpop.permute.xlu1 %358  ;;  %v4384_v51 = vpop.permute.xlu0 %362 }
 0x11d   :  { %9418 = vst [vmem:[#allocation36_spill] sm:$0xff] %v4384_v51  ;;  %v435_v33 = vmul.f32 %v4364_v61, %v359_v50 }
 0x11f   :  { %v4389_v59 = vadd.f32 %v435_v33, %v270_v63  ;;  %744 = vperm.xlu1 %3839, %v4146_v18   ;;  %764 = vperm.xlu0 %3838, %v4156_v21   ;;  %v274_v63 = vmul.f32 %v4362_v55, %v4292_v58 }
 0x120   :  { %v367_v47 = vpop.permute.xlu1 %366  ;;  %v4393_v48 = vpop.permute.xlu0 %370 }
 0x121   :  { %9419 = vst [vmem:[#allocation37_spill] sm:$0xff] %v4393_v48  ;;  %v437_v57 = vmul.f32 %v4364_v61, %v367_v47 }
 0x123   :  { %v4398_v51 = vadd.f32 %v437_v57, %v272_v52  ;;  %752 = vperm.xlu1 %3839, %v4152_v20   ;;  %772 = vperm.xlu0 %3838, %v4162_v23   ;;  %v276_v52 = vmul.f32 %v4362_v55, %v4298_v60 }
 0x124   :  { %v375_v54 = vpop.permute.xlu1 %374  ;;  %v4402_v50 = vpop.permute.xlu0 %378 }
 0x125   :  { %9420 = vst [vmem:[#allocation38_spill] sm:$0xff] %v4402_v50  ;;  %v439_v33 = vmul.f32 %v4364_v61, %v375_v54 }
 0x127   :  { %v4407_v48 = vadd.f32 %v439_v33, %v274_v63  ;;  %760 = vperm.xlu1 %3839, %v4158_v22   ;;  %780 = vperm.xlu0 %3838, %v4168_v25   ;;  %v278_v63 = vmul.f32 %v4362_v55, %v4304_v62 }
 0x128   :  { %v383_v56 = vpop.permute.xlu1 %382  ;;  %v4411_v47 = vpop.permute.xlu0 %386 }
 0x129   :  { %9421 = vst [vmem:[#allocation39_spill] sm:$0xff] %v4411_v47  ;;  %v441_v57 = vmul.f32 %v4364_v61, %v383_v56 }
 0x12b   :  { %v4416_v50 = vadd.f32 %v441_v57, %v276_v52  ;;  %768 = vperm.xlu1 %3839, %v4164_v24   ;;  %788 = vperm.xlu0 %3838, %v4174_v27   ;;  %v280_v52 = vmul.f32 %v4362_v55, %v4310_v0  ;;  %v4025_v0 = vmov 1  }
 0x12c   :  { %v391_v58 = vpop.permute.xlu1 %390  ;;  %v4420_v54 = vpop.permute.xlu0 %394 }
 0x12d   :  { %9422 = vst [vmem:[#allocation40_spill] sm:$0xff] %v4420_v54  ;;  %v443_v33 = vmul.f32 %v4364_v61, %v391_v58 }
 0x12f   :  { %v4425_v47 = vadd.f32 %v443_v33, %v278_v63  ;;  %776 = vperm.xlu1 %3839, %v4170_v26   ;;  %796 = vperm.xlu0 %3838, %v4180_v29   ;;  %v282_v63 = vmul.f32 %v4362_v55, %v4316_v36 }
 0x130   :  { %v399_v60 = vpop.permute.xlu1 %398  ;;  %v4429_v56 = vpop.permute.xlu0 %402 }
 0x131   :  { %9423 = vst [vmem:[#allocation41_spill] sm:$0xff] %v4429_v56  ;;  %v445_v57 = vmul.f32 %v4364_v61, %v399_v60 }
 0x133   :  { %v4434_v54 = vadd.f32 %v445_v57, %v280_v52  ;;  %784 = vperm.xlu1 %3839, %v4176_v28   ;;  %804 = vperm.xlu0 %3838, %v4186_v31  }
 0x134   :  { %v407_v62 = vpop.permute.xlu1 %406  ;;  %v4438_v58 = vpop.permute.xlu0 %410 }
 0x135   :  { %9424 = vst [vmem:[#allocation42_spill] sm:$0xff] %v4438_v58  ;;  %v447_v33 = vmul.f32 %v4364_v61, %v407_v62 }
 0x137   :  { %v4443_v56 = vadd.f32 %v447_v33, %v282_v63  ;;  %792 = vperm.xlu1 %3839, %v4182_v30   ;;  %3841 = vset.pattern.permute.xlu0 %v4025_v0 }
 0x138   :  { %945 = vperm.xlu0 %3841, %v4104_v4  }
 0x139   :  { %v4447_v60 = vpop.permute.xlu1 %483  ;;  %v4449_v52 = vpop.permute.xlu0 %487 }
 0x13a   :  { %9425 = vst [vmem:[#allocation43_spill] sm:$0xff] %v4447_v60  ;;  %9426 = vst [vmem:[#allocation44_spill] sm:$0xff] %v4449_v52 }
 0x13b   :  { %800 = vperm.xlu1 %3839, %v4188_v32  }
 0x13c   :  { %957 = vperm.xlu0 %3841, %v4110_v6  }
 0x13d   :  { %v4453_v57 = vpop.permute.xlu1 %491  ;;  %v4455_v36 = vpop.permute.xlu0 %499 }
 0x13e   :  { %9427 = vst [vmem:[#allocation45_spill] sm:$0xff] %v4453_v57  ;;  %9428 = vst [vmem:[#allocation46_spill] sm:$0xff] %v4455_v36 }
 0x13f   :  { %3840 = vset.pattern.permute.xlu1 %v4025_v0 }
 0x140   :  { %941 = vperm.xlu1 %3840, %v4098_v2   ;;  %965 = vperm.xlu0 %3841, %v4116_v8  }
 0x141   :  { %v4459_v62 = vpop.permute.xlu1 %495  ;;  %v4461_v63 = vpop.permute.xlu0 %507 }
 0x142   :  { %9429 = vst [vmem:[#allocation47_spill] sm:$0xff] %v4459_v62  ;;  %9430 = vst [vmem:[#allocation48_spill] sm:$0xff] %v4461_v63 }
 0x144   :  { %949 = vperm.xlu1 %3840, %v4096_v1   ;;  %973 = vperm.xlu0 %3841, %v4122_v10  }
 0x145   :  { %v4465_v33 = vpop.permute.xlu1 %503  ;;  %v4467_v52 = vpop.permute.xlu0 %515 }
 0x146   :  { %9431 = vst [vmem:[#allocation49_spill] sm:$0xff] %v4465_v33  ;;  %9432 = vst [vmem:[#allocation50_spill] sm:$0xff] %v4467_v52  ;;  %v3803_v52 = vld [vmem:[#allocation4 + $0x6] ss:$0 sm:$0xff] }
 0x148   :  { %953 = vperm.xlu1 %3840, %v4102_v3   ;;  %981 = vperm.xlu0 %3841, %v4128_v12  }
 0x149   :  { %v4471_v0 = vpop.permute.xlu1 %511  ;;  %v4473_v36 = vpop.permute.xlu0 %523 }
 0x14a   :  { %9433 = vst [vmem:[#allocation51_spill] sm:$0xff] %v4471_v0  ;;  %9434 = vst [vmem:[#allocation52_spill] sm:$0xff] %v4473_v36 }
 0x14c   :  { %961 = vperm.xlu1 %3840, %v4108_v5   ;;  %989 = vperm.xlu0 %3841, %v4134_v14  }
 0x14d   :  { %v4477_v63 = vpop.permute.xlu1 %519  ;;  %v4479_v62 = vpop.permute.xlu0 %531 }
 0x14e   :  { %9435 = vst [vmem:[#allocation53_spill] sm:$0xff] %v4477_v63  ;;  %9436 = vst [vmem:[#allocation54_spill] sm:$0xff] %v4479_v62 }
 0x150   :  { %969 = vperm.xlu1 %3840, %v4114_v7   ;;  %997 = vperm.xlu0 %3841, %v4140_v16  }
 0x151   :  { %v4483_v33 = vpop.permute.xlu1 %527  ;;  %v540_v57 = vpop.permute.xlu0 %539 }
 0x152   :  { %9437 = vst [vmem:[#allocation55_spill] sm:$0xff] %v4483_v33  ;;  %v628_v60 = vmul.f32 %v3803_v52, %v540_v57 }
 0x154   :  { %v4486_v0 = vadd.f32 %v628_v60, %v4371_v49  ;;  %977 = vperm.xlu1 %3840, %v4120_v9   ;;  %1005 = vperm.xlu0 %3841, %v4146_v18  }
 0x155   :  { %v4490_v36 = vpop.permute.xlu1 %535  ;;  %v548_v63 = vpop.permute.xlu0 %547 }
 0x156   :  { %9438 = vst [vmem:[#allocation56_spill] sm:$0xff] %v4486_v0  ;;  %v630_v62 = vmul.f32 %v3803_v52, %v548_v63 }
 0x158   :  { %v4493_v58 = vadd.f32 %v630_v62, %v4380_v53  ;;  %985 = vperm.xlu1 %3840, %v4126_v11   ;;  %1013 = vperm.xlu0 %3841, %v4152_v20  }
 0x159   :  { %v4497_v33 = vpop.permute.xlu1 %543  ;;  %v556_v57 = vpop.permute.xlu0 %555 }
 0x15a   :  { %9439 = vst [vmem:[#allocation57_spill] sm:$0xff] %v4493_v58  ;;  %v632_v49 = vmul.f32 %v3803_v52, %v556_v57 }
 0x15c   :  { %v4500_v60 = vadd.f32 %v632_v49, %v4389_v59  ;;  %993 = vperm.xlu1 %3840, %v4132_v13   ;;  %1021 = vperm.xlu0 %3841, %v4158_v22  }
 0x15d   :  { %v4504_v0 = vpop.permute.xlu1 %551  ;;  %v564_v63 = vpop.permute.xlu0 %563 }
 0x15e   :  { %9440 = vst [vmem:[#allocation58_spill] sm:$0xff] %v4500_v60  ;;  %9441 = vst [vmem:[#allocation59_spill] sm:$0xff] %v4504_v0  ;;  %v634_v53 = vmul.f32 %v3803_v52, %v564_v63 }
 0x160   :  { %v4507_v62 = vadd.f32 %v634_v53, %v4398_v51  ;;  %1001 = vperm.xlu1 %3840, %v4138_v15   ;;  %1029 = vperm.xlu0 %3841, %v4164_v24  }
 0x161   :  { %v4511_v58 = vpop.permute.xlu1 %559  ;;  %v572_v57 = vpop.permute.xlu0 %571 }
 0x162   :  { %9442 = vst [vmem:[#allocation60_spill] sm:$0xff] %v4507_v62  ;;  %9443 = vst [vmem:[#allocation61_spill] sm:$0xff] %v4511_v58  ;;  %v636_v59 = vmul.f32 %v3803_v52, %v572_v57 }
 0x164   :  { %v4514_v49 = vadd.f32 %v636_v59, %v4407_v48  ;;  %1009 = vperm.xlu1 %3840, %v4144_v17   ;;  %1037 = vperm.xlu0 %3841, %v4170_v26  }
 0x165   :  { %v4518_v60 = vpop.permute.xlu1 %567  ;;  %v580_v63 = vpop.permute.xlu0 %579 }
 0x166   :  { %9444 = vst [vmem:[#allocation62_spill] sm:$0xff] %v4514_v49  ;;  %9445 = vst [vmem:[#allocation63_spill] sm:$0xff] %v4518_v60  ;;  %v638_v51 = vmul.f32 %v3803_v52, %v580_v63 }
 0x168   :  { %v4521_v53 = vadd.f32 %v638_v51, %v4416_v50  ;;  %1017 = vperm.xlu1 %3840, %v4150_v19   ;;  %1045 = vperm.xlu0 %3841, %v4176_v28  }
 0x169   :  { %v4525_v62 = vpop.permute.xlu1 %575  ;;  %v588_v57 = vpop.permute.xlu0 %587 }
 0x16a   :  { %9446 = vst [vmem:[#allocation64_spill] sm:$0xff] %v4521_v53  ;;  %9447 = vst [vmem:[#allocation65_spill] sm:$0xff] %v4525_v62  ;;  %v640_v48 = vmul.f32 %v3803_v52, %v588_v57  ;;  %v3862_v62 = vld [vmem:[#allocation2 + $0xf8] sm:$0xff] }
 0x16c   :  { %v4528_v59 = vadd.f32 %v640_v48, %v4425_v47  ;;  %1025 = vperm.xlu1 %3840, %v4156_v21   ;;  %1053 = vperm.xlu0 %3841, %v4182_v30  }
 0x16d   :  { %v4532_v49 = vpop.permute.xlu1 %583  ;;  %v596_v63 = vpop.permute.xlu0 %595 }
 0x16e   :  { %9448 = vst [vmem:[#allocation66_spill] sm:$0xff] %v4528_v59  ;;  %9449 = vst [vmem:[#allocation67_spill] sm:$0xff] %v4532_v49  ;;  %v642_v50 = vmul.f32 %v3803_v52, %v596_v63  ;;  %v4026_v59 = vmov 4  }
 0x170   :  { %v4535_v51 = vadd.f32 %v642_v50, %v4434_v54  ;;  %1033 = vperm.xlu1 %3840, %v4162_v23   ;;  %1061 = vperm.xlu0 %3841, %v4188_v32  }
 0x171   :  { %v4539_v53 = vpop.permute.xlu1 %591  ;;  %v604_v57 = vpop.permute.xlu0 %603 }
 0x172   :  { %9450 = vst [vmem:[#allocation68_spill] sm:$0xff] %v4535_v51  ;;  %9451 = vst [vmem:[#allocation69_spill] sm:$0xff] %v4539_v53  ;;  %v644_v47 = vmul.f32 %v3803_v52, %v604_v57 }
 0x174   :  { %v4542_v48 = vadd.f32 %v644_v47, %v4443_v56  ;;  %1041 = vperm.xlu1 %3840, %v4168_v25   ;;  %3842 = vset.pattern.permute.xlu0 %v4026_v59 }
 0x175   :  { %v4545_v49 = vpop.permute.xlu1 %599  ;;  %1106 = vperm.xlu0 %3842, %v4098_v2  }
 0x176   :  { %9452 = vst [vmem:[#allocation70_spill] sm:$0xff] %v4542_v48  ;;  %9453 = vst [vmem:[#allocation71_spill] sm:$0xff] %v4545_v49  ;;  %v4548_v54 = vpop.permute.xlu0 %680 }
 0x177   :  { %9454 = vst [vmem:[#allocation72_spill] sm:$0xff] %v4548_v54 }
 0x178   :  { %1049 = vperm.xlu1 %3840, %v4174_v27  }
 0x179   :  { %v4551_v63 = vpop.permute.xlu1 %607  ;;  %1118 = vperm.xlu0 %3842, %v4102_v3  }
 0x17a   :  { %9455 = vst [vmem:[#allocation73_spill] sm:$0xff] %v4551_v63  ;;  %v4554_v52 = vpop.permute.xlu0 %692 }
 0x17b   :  { %9456 = vst [vmem:[#allocation74_spill] sm:$0xff] %v4554_v52  ;;  %v4997_v52 = vld [vmem:[#allocation2 + $0x90] sm:$0xff] }
 0x17c   :  { %1057 = vperm.xlu1 %3840, %v4180_v29  }
 0x17d   :  { %1126 = vperm.xlu0 %3842, %v4108_v5  }
 0x17e   :  { %v4558_v56 = vpop.permute.xlu1 %684  ;;  %v4560_v50 = vpop.permute.xlu0 %700 }
 0x17f   :  { %9457 = vst [vmem:[#allocation75_spill] sm:$0xff] %v4558_v56  ;;  %9458 = vst [vmem:[#allocation76_spill] sm:$0xff] %v4560_v50 }
 0x180   :  { %1065 = vperm.xlu1 %3840, %v4186_v31  }
 0x181   :  { %1134 = vperm.xlu0 %3842, %v4114_v7  }
 0x182   :  { %v4564_v57 = vpop.permute.xlu1 %688  ;;  %v4566_v47 = vpop.permute.xlu0 %708 }
 0x183   :  { %9459 = vst [vmem:[#allocation77_spill] sm:$0xff] %v4564_v57  ;;  %9460 = vst [vmem:[#allocation78_spill] sm:$0xff] %v4566_v47 }
 0x184   :  { %3843 = vset.pattern.permute.xlu1 %v4026_v59 }
 0x185   :  { %1110 = vperm.xlu1 %3843, %v4104_v4   ;;  %1142 = vperm.xlu0 %3842, %v4120_v9  }
 0x186   :  { %v4570_v48 = vpop.permute.xlu1 %696  ;;  %v4572_v51 = vpop.permute.xlu0 %716 }
 0x187   :  { %9461 = vst [vmem:[#allocation79_spill] sm:$0xff] %v4570_v48  ;;  %9462 = vst [vmem:[#allocation80_spill] sm:$0xff] %v4572_v51 }
 0x189   :  { %1114 = vperm.xlu1 %3843, %v4096_v1   ;;  %1150 = vperm.xlu0 %3842, %v4126_v11  }
 0x18a   :  { %v4576_v56 = vpop.permute.xlu1 %704  ;;  %v4578_v50 = vpop.permute.xlu0 %724 }
 0x18b   :  { %9463 = vst [vmem:[#allocation81_spill] sm:$0xff] %v4576_v56  ;;  %9464 = vst [vmem:[#allocation82_spill] sm:$0xff] %v4578_v50 }
 0x18d   :  { %1122 = vperm.xlu1 %3843, %v4110_v6   ;;  %1158 = vperm.xlu0 %3842, %v4132_v13  }
 0x18e   :  { %v4582_v59 = vpop.permute.xlu1 %712  ;;  %v4584_v57 = vpop.permute.xlu0 %732 }
 0x18f   :  { %9465 = vst [vmem:[#allocation83_spill] sm:$0xff] %v4582_v59  ;;  %9466 = vst [vmem:[#allocation84_spill] sm:$0xff] %v4584_v57 }
 0x191   :  { %1130 = vperm.xlu1 %3843, %v4116_v8   ;;  %1166 = vperm.xlu0 %3842, %v4138_v15  }
 0x192   :  { %v4588_v48 = vpop.permute.xlu1 %720  ;;  %v4590_v51 = vpop.permute.xlu0 %740 }
 0x193   :  { %9467 = vst [vmem:[#allocation85_spill] sm:$0xff] %v4588_v48  ;;  %9468 = vst [vmem:[#allocation86_spill] sm:$0xff] %v4590_v51 }
 0x195   :  { %1138 = vperm.xlu1 %3843, %v4122_v10   ;;  %1174 = vperm.xlu0 %3842, %v4144_v17  }
 0x196   :  { %v4594_v56 = vpop.permute.xlu1 %728  ;;  %v4596_v50 = vpop.permute.xlu0 %748 }
 0x197   :  { %9469 = vst [vmem:[#allocation87_spill] sm:$0xff] %v4594_v56  ;;  %9470 = vst [vmem:[#allocation88_spill] sm:$0xff] %v4596_v50 }
 0x199   :  { %1146 = vperm.xlu1 %3843, %v4128_v12   ;;  %1182 = vperm.xlu0 %3842, %v4150_v19  }
 0x19a   :  { %v4600_v57 = vpop.permute.xlu1 %736  ;;  %v4602_v59 = vpop.permute.xlu0 %756 }
 0x19b   :  { %9471 = vst [vmem:[#allocation89_spill] sm:$0xff] %v4600_v57  ;;  %9472 = vst [vmem:[#allocation90_spill] sm:$0xff] %v4602_v59 }
 0x19d   :  { %1154 = vperm.xlu1 %3843, %v4134_v14   ;;  %1190 = vperm.xlu0 %3842, %v4156_v21  }
 0x19e   :  { %v4606_v51 = vpop.permute.xlu1 %744  ;;  %v4608_v48 = vpop.permute.xlu0 %764 }
 0x19f   :  { %9473 = vst [vmem:[#allocation91_spill] sm:$0xff] %v4606_v51  ;;  %9474 = vst [vmem:[#allocation92_spill] sm:$0xff] %v4608_v48 }
 0x1a1   :  { %1162 = vperm.xlu1 %3843, %v4140_v16   ;;  %1198 = vperm.xlu0 %3842, %v4162_v23  }
 0x1a2   :  { %v4612_v50 = vpop.permute.xlu1 %752  ;;  %v4614_v56 = vpop.permute.xlu0 %772 }
 0x1a3   :  { %9475 = vst [vmem:[#allocation93_spill] sm:$0xff] %v4612_v50  ;;  %9476 = vst [vmem:[#allocation94_spill] sm:$0xff] %v4614_v56 }
 0x1a5   :  { %1170 = vperm.xlu1 %3843, %v4146_v18   ;;  %1206 = vperm.xlu0 %3842, %v4168_v25  }
 0x1a6   :  { %v4618_v59 = vpop.permute.xlu1 %760  ;;  %v4620_v57 = vpop.permute.xlu0 %780 }
 0x1a7   :  { %9477 = vst [vmem:[#allocation95_spill] sm:$0xff] %v4618_v59  ;;  %9478 = vst [vmem:[#allocation96_spill] sm:$0xff] %v4620_v57 }
 0x1a9   :  { %1178 = vperm.xlu1 %3843, %v4152_v20   ;;  %1214 = vperm.xlu0 %3842, %v4174_v27  }
 0x1aa   :  { %v4624_v48 = vpop.permute.xlu1 %768  ;;  %v4626_v51 = vpop.permute.xlu0 %788 }
 0x1ab   :  { %9479 = vst [vmem:[#allocation97_spill] sm:$0xff] %v4624_v48  ;;  %9480 = vst [vmem:[#allocation98_spill] sm:$0xff] %v4626_v51  ;;  %v4027_v48 = vmov 7  }
 0x1ad   :  { %1186 = vperm.xlu1 %3843, %v4158_v22   ;;  %1222 = vperm.xlu0 %3842, %v4180_v29  }
 0x1ae   :  { %v4630_v56 = vpop.permute.xlu1 %776  ;;  %v4632_v50 = vpop.permute.xlu0 %796 }
 0x1af   :  { %9481 = vst [vmem:[#allocation99_spill] sm:$0xff] %v4630_v56  ;;  %9482 = vst [vmem:[#allocation100_spill] sm:$0xff] %v4632_v50 }
 0x1b1   :  { %1194 = vperm.xlu1 %3843, %v4164_v24   ;;  %1230 = vperm.xlu0 %3842, %v4186_v31  }
 0x1b2   :  { %v4636_v57 = vpop.permute.xlu1 %784  ;;  %v4638_v59 = vpop.permute.xlu0 %804 }
 0x1b3   :  { %9483 = vst [vmem:[#allocation101_spill] sm:$0xff] %v4636_v57  ;;  %9484 = vst [vmem:[#allocation102_spill] sm:$0xff] %v4638_v59 }
 0x1b5   :  { %1202 = vperm.xlu1 %3843, %v4170_v26   ;;  %3845 = vset.pattern.permute.xlu0 %v4027_v48 }
 0x1b6   :  { %v4641_v51 = vpop.permute.xlu1 %792  ;;  %1307 = vperm.xlu0 %3845, %v4104_v4  }
 0x1b7   :  { %9485 = vst [vmem:[#allocation103_spill] sm:$0xff] %v4641_v51  ;;  %v4644_v47 = vpop.permute.xlu0 %945 }
 0x1b8   :  { %9486 = vst [vmem:[#allocation104_spill] sm:$0xff] %v4644_v47 }
 0x1b9   :  { %1210 = vperm.xlu1 %3843, %v4176_v28  }
 0x1ba   :  { %v4647_v50 = vpop.permute.xlu1 %800  ;;  %1319 = vperm.xlu0 %3845, %v4110_v6  }
 0x1bb   :  { %9487 = vst [vmem:[#allocation105_spill] sm:$0xff] %v4647_v50  ;;  %v4650_v56 = vpop.permute.xlu0 %957 }
 0x1bc   :  { %9488 = vst [vmem:[#allocation106_spill] sm:$0xff] %v4650_v56 }
 0x1bd   :  { %1218 = vperm.xlu1 %3843, %v4182_v30  }
 0x1be   :  { %1327 = vperm.xlu0 %3845, %v4116_v8  }
 0x1bf   :  { %v4654_v59 = vpop.permute.xlu1 %941  ;;  %v4656_v57 = vpop.permute.xlu0 %965 }
 0x1c0   :  { %9489 = vst [vmem:[#allocation107_spill] sm:$0xff] %v4654_v59  ;;  %9490 = vst [vmem:[#allocation108_spill] sm:$0xff] %v4656_v57 }
 0x1c1   :  { %1226 = vperm.xlu1 %3843, %v4188_v32  }
 0x1c2   :  { %1335 = vperm.xlu0 %3845, %v4122_v10  }
 0x1c3   :  { %v4660_v47 = vpop.permute.xlu1 %949  ;;  %v4662_v51 = vpop.permute.xlu0 %973 }
 0x1c4   :  { %9491 = vst [vmem:[#allocation109_spill] sm:$0xff] %v4660_v47  ;;  %9492 = vst [vmem:[#allocation110_spill] sm:$0xff] %v4662_v51  ;;  %v9579_v47 = vld [vmem:[#allocation27_spill] sm:$0xff] }
 0x1c5   :  { %3844 = vset.pattern.permute.xlu1 %v4027_v48 }
 0x1c6   :  { %1303 = vperm.xlu1 %3844, %v4098_v2   ;;  %1343 = vperm.xlu0 %3845, %v4128_v12  }
 0x1c7   :  { %v4666_v56 = vpop.permute.xlu1 %953  ;;  %v4668_v50 = vpop.permute.xlu0 %981 }
 0x1c8   :  { %9493 = vst [vmem:[#allocation111_spill] sm:$0xff] %v4666_v56  ;;  %9494 = vst [vmem:[#allocation112_spill] sm:$0xff] %v4668_v50 }
 0x1ca   :  { %1311 = vperm.xlu1 %3844, %v4096_v1   ;;  %1351 = vperm.xlu0 %3845, %v4134_v14  }
 0x1cb   :  { %v4672_v57 = vpop.permute.xlu1 %961  ;;  %v4674_v59 = vpop.permute.xlu0 %989 }
 0x1cc   :  { %9495 = vst [vmem:[#allocation113_spill] sm:$0xff] %v4672_v57  ;;  %9496 = vst [vmem:[#allocation114_spill] sm:$0xff] %v4674_v59 }
 0x1ce   :  { %1315 = vperm.xlu1 %3844, %v4102_v3   ;;  %1359 = vperm.xlu0 %3845, %v4140_v16  }
 0x1cf   :  { %v4678_v48 = vpop.permute.xlu1 %969  ;;  %v4680_v51 = vpop.permute.xlu0 %997 }
 0x1d0   :  { %9497 = vst [vmem:[#allocation115_spill] sm:$0xff] %v4678_v48  ;;  %9498 = vst [vmem:[#allocation116_spill] sm:$0xff] %v4680_v51  ;;  %v9578_v48 = vld [vmem:[#allocation26_spill] sm:$0xff] }
 0x1d1   :  { %v423_v57 = vmul.f32 %v4364_v61, %v9578_v48 }
 0x1d2   :  { %1323 = vperm.xlu1 %3844, %v4108_v5   ;;  %1367 = vperm.xlu0 %3845, %v4146_v18  }
 0x1d3   :  { %v4684_v50 = vpop.permute.xlu1 %977  ;;  %v4686_v56 = vpop.permute.xlu0 %1005 }
 0x1d4   :  { %9499 = vst [vmem:[#allocation117_spill] sm:$0xff] %v4684_v50  ;;  %9500 = vst [vmem:[#allocation118_spill] sm:$0xff] %v4686_v56  ;;  %v4970_v50 = vld [vmem:[#allocation6 + $0xb0] sm:$0xff]  }
 0x1d6   :  { %1331 = vperm.xlu1 %3844, %v4114_v7   ;;  %1375 = vperm.xlu0 %3845, %v4152_v20  }
 0x1d7   :  { %v4690_v14 = vpop.permute.xlu1 %985  ;;  %v4692_v59 = vpop.permute.xlu0 %1013 }
 0x1d8   :  { %9501 = vst [vmem:[#allocation119_spill] sm:$0xff] %v4690_v14  ;;  %9502 = vst [vmem:[#allocation120_spill] sm:$0xff] %v4692_v59 }
 0x1da   :  { %1339 = vperm.xlu1 %3844, %v4120_v9   ;;  %1383 = vperm.xlu0 %3845, %v4158_v22  }
 0x1db   :  { %v4696_v16 = vpop.permute.xlu1 %993  ;;  %v4698_v51 = vpop.permute.xlu0 %1021 }
 0x1dc   :  { %9503 = vst [vmem:[#allocation121_spill] sm:$0xff] %v4696_v16  ;;  %9504 = vst [vmem:[#allocation122_spill] sm:$0xff] %v4698_v51 }
 0x1de   :  { %1347 = vperm.xlu1 %3844, %v4126_v11   ;;  %1391 = vperm.xlu0 %3845, %v4164_v24  }
 0x1df   :  { %v4702_v18 = vpop.permute.xlu1 %1001  ;;  %v4704_v56 = vpop.permute.xlu0 %1029 }
 0x1e0   :  { %9505 = vst [vmem:[#allocation123_spill] sm:$0xff] %v4702_v18  ;;  %9506 = vst [vmem:[#allocation124_spill] sm:$0xff] %v4704_v56  ;;  %v4938_v18 = vld [vmem:[#allocation6 + $0x70] sm:$0xff]  }
 0x1e2   :  { %1355 = vperm.xlu1 %3844, %v4132_v13   ;;  %1399 = vperm.xlu0 %3845, %v4170_v26  }
 0x1e3   :  { %v4708_v20 = vpop.permute.xlu1 %1009  ;;  %v4710_v59 = vpop.permute.xlu0 %1037 }
 0x1e4   :  { %9507 = vst [vmem:[#allocation125_spill] sm:$0xff] %v4708_v20  ;;  %9508 = vst [vmem:[#allocation126_spill] sm:$0xff] %v4710_v59 }
 0x1e6   :  { %1363 = vperm.xlu1 %3844, %v4138_v15   ;;  %1407 = vperm.xlu0 %3845, %v4176_v28   ;;  %v4028_v28 = vmov 10  }
 0x1e7   :  { %v4714_v22 = vpop.permute.xlu1 %1017  ;;  %v4716_v51 = vpop.permute.xlu0 %1045 }
 0x1e8   :  { %9509 = vst [vmem:[#allocation127_spill] sm:$0xff] %v4714_v22  ;;  %9510 = vst [vmem:[#allocation128_spill] sm:$0xff] %v4716_v51  ;;  %v3858_v22 = vld [vmem:[#allocation2 + $0xd8] sm:$0xff] }
 0x1ea   :  { %1371 = vperm.xlu1 %3844, %v4144_v17   ;;  %1415 = vperm.xlu0 %3845, %v4182_v30  }
 0x1eb   :  { %v4720_v24 = vpop.permute.xlu1 %1025  ;;  %v4722_v56 = vpop.permute.xlu0 %1053 }
 0x1ec   :  { %9511 = vst [vmem:[#allocation129_spill] sm:$0xff] %v4720_v24  ;;  %9512 = vst [vmem:[#allocation130_spill] sm:$0xff] %v4722_v56  ;;  %v4923_v24 = vld [vmem:[#allocation6 + $0x68] sm:$0xff]  }
 0x1ed   :  { %v2902_v14 = vunpack.c.h.bf16 %v4923_v24  ;;  %v9589_v60 = vunpack.c.l.bf16 %v4923_v24 }
 0x1ee   :  { %1379 = vperm.xlu1 %3844, %v4150_v19   ;;  %1423 = vperm.xlu0 %3845, %v4188_v32  }
 0x1ef   :  { %v4726_v26 = vpop.permute.xlu1 %1033  ;;  %v4728_v59 = vpop.permute.xlu0 %1061  ;;  %v5017_v58 = vsub.f32 %v2902_v14, %v9589_v60  ;;  %v5039_v14 = vld [vmem:[#allocation6 + $0xe0] sm:$0xff]  }
 0x1f0   :  { %9513 = vst [vmem:[#allocation131_spill] sm:$0xff] %v4726_v26  ;;  %9514 = vst [vmem:[#allocation132_spill] sm:$0xff] %v4728_v59 }
 0x1f1   :  { %9590 = vst [vmem:[#allocation160_spill] sm:$0xff] %v5017_v58  ;;  %9598 = vst [vmem:[#allocation166_spill] sm:$0xff] %v5039_v14  ;;  %v9622_v58 = vunpack.c.l.bf16 %v5039_v14 }
 0x1f2   :  { %1387 = vperm.xlu1 %3844, %v4156_v21   ;;  %3846 = vset.pattern.permute.xlu0 %v4028_v28 }
 0x1f3   :  { %v4731_v51 = vpop.permute.xlu1 %1041  ;;  %1500 = vperm.xlu0 %3846, %v4098_v2  }
 0x1f4   :  { %9515 = vst [vmem:[#allocation133_spill] sm:$0xff] %v4731_v51  ;;  %v4734_v30 = vpop.permute.xlu0 %1106 }
 0x1f5   :  { %9516 = vst [vmem:[#allocation134_spill] sm:$0xff] %v4734_v30 }
 0x1f6   :  { %1395 = vperm.xlu1 %3844, %v4162_v23  }
 0x1f7   :  { %v4737_v56 = vpop.permute.xlu1 %1049  ;;  %1512 = vperm.xlu0 %3846, %v4102_v3  }
 0x1f8   :  { %9517 = vst [vmem:[#allocation135_spill] sm:$0xff] %v4737_v56  ;;  %v4740_v32 = vpop.permute.xlu0 %1118 }
 0x1f9   :  { %9518 = vst [vmem:[#allocation136_spill] sm:$0xff] %v4740_v32  ;;  %v9559_v32 = vld [vmem:[#allocation19_spill] sm:$0xff] }
 0x1fa   :  { %1403 = vperm.xlu1 %3844, %v4168_v25  }
 0x1fb   :  { %v4743_v59 = vpop.permute.xlu1 %1057  ;;  %1520 = vperm.xlu0 %3846, %v4108_v5  }
 0x1fc   :  { %9519 = vst [vmem:[#allocation137_spill] sm:$0xff] %v4743_v59  ;;  %v4746_v26 = vpop.permute.xlu0 %1126 }
 0x1fd   :  { %9520 = vst [vmem:[#allocation138_spill] sm:$0xff] %v4746_v26  ;;  %v9558_v26 = vld [vmem:[#allocation18_spill] sm:$0xff] }
 0x1fe   :  { %1411 = vperm.xlu1 %3844, %v4174_v27  }
 0x1ff   :  { %v4749_v2 = vpop.permute.xlu1 %1065  ;;  %1528 = vperm.xlu0 %3846, %v4114_v7  }
 0x200   :  { %9521 = vst [vmem:[#allocation139_spill] sm:$0xff] %v4749_v2  ;;  %v4752_v51 = vpop.permute.xlu0 %1134 }
 0x201   :  { %9522 = vst [vmem:[#allocation140_spill] sm:$0xff] %v4752_v51 }
 0x202   :  { %1419 = vperm.xlu1 %3844, %v4180_v29  }
 0x203   :  { %1536 = vperm.xlu0 %3846, %v4120_v9  }
 0x204   :  { %v4756_v3 = vpop.permute.xlu1 %1110  ;;  %v4758_v56 = vpop.permute.xlu0 %1142 }
 0x205   :  { %9523 = vst [vmem:[#allocation141_spill] sm:$0xff] %v4756_v3  ;;  %9524 = vst [vmem:[#allocation142_spill] sm:$0xff] %v4758_v56 }
 0x206   :  { %1427 = vperm.xlu1 %3844, %v4186_v31  }
 0x207   :  { %1544 = vperm.xlu0 %3846, %v4126_v11  }
 0x208   :  { %v4762_v5 = vpop.permute.xlu1 %1114  ;;  %v4764_v27 = vpop.permute.xlu0 %1150 }
 0x209   :  { %9525 = vst [vmem:[#allocation143_spill] sm:$0xff] %v4762_v5  ;;  %9526 = vst [vmem:[#allocation144_spill] sm:$0xff] %v4764_v27  ;;  %v4886_v5 = vld [vmem:[#allocation6 + $0x18] sm:$0xff]  }
 0x20a   :  { %3847 = vset.pattern.permute.xlu1 %v4028_v28  ;;  %v4811_v28 = vmul.f32 %v4362_v55, %v4238_v40  ;;  %v4836_v40 = vld [vmem:[#allocation6 + $0x8] sm:$0xff]   ;;  %v9583_v63 = vunpack.c.l.bf16 %v4886_v5 }
 0x20b   :  { %1504 = vperm.xlu1 %3847, %v4104_v4   ;;  %1552 = vperm.xlu0 %3846, %v4132_v13   ;;  %9540 = vst [vmem:[#allocation158_spill] sm:$0xff] %v4836_v40 }
 0x20c   :  { %v4768_v7 = vpop.permute.xlu1 %1122  ;;  %v4770_v9 = vpop.permute.xlu0 %1158 }
 0x20d   :  { %9527 = vst [vmem:[#allocation145_spill] sm:$0xff] %v4768_v7  ;;  %9528 = vst [vmem:[#allocation146_spill] sm:$0xff] %v4770_v9  ;;  %v2899_v9 = vunpack.c.h.bf16 %v4836_v40 }
 0x20f   :  { %1508 = vperm.xlu1 %3847, %v4096_v1   ;;  %1560 = vperm.xlu0 %3846, %v4138_v15  }
 0x210   :  { %v4774_v29 = vpop.permute.xlu1 %1130  ;;  %v4776_v11 = vpop.permute.xlu0 %1166 }
 0x211   :  { %9529 = vst [vmem:[#allocation147_spill] sm:$0xff] %v4774_v29  ;;  %9530 = vst [vmem:[#allocation148_spill] sm:$0xff] %v4776_v11  ;;  %v4868_v11 = vld [vmem:[#allocation2 + $0x60] sm:$0xff] }
 0x213   :  { %1516 = vperm.xlu1 %3847, %v4110_v6   ;;  %1568 = vperm.xlu0 %3846, %v4144_v17   ;;  %v254_v17 = vmul.f32 %v4362_v55, %v4224_v34 }
 0x214   :  { %v4780_v31 = vpop.permute.xlu1 %1138  ;;  %v4782_v4 = vpop.permute.xlu0 %1174 }
 0x215   :  { %9531 = vst [vmem:[#allocation149_spill] sm:$0xff] %v4780_v31  ;;  %9532 = vst [vmem:[#allocation150_spill] sm:$0xff] %v4782_v4  ;;  %v9547_v31 = vld [vmem:[#allocation21_spill] sm:$0xff] }
 0x216   :  { %9561 = vst [vmem:[#allocation21_spill] sm:$0xff] %v4923_v24 }
 0x217   :  { %1524 = vperm.xlu1 %3847, %v4116_v8   ;;  %1576 = vperm.xlu0 %3846, %v4150_v19   ;;  %v252_v8 = vmul.f32 %v4362_v55, %v4226_v35  ;;  %v255_v19 = vmul.f32 %v4362_v55, %v4230_v37  ;;  %v4822_v35 = vmul.f32 %v4362_v55, %v4244_v42 }
 0x218   :  { %v4786_v13 = vpop.permute.xlu1 %1146  ;;  %v4788_v1 = vpop.permute.xlu0 %1182  ;;  %v4826_v37 = vmul.f32 %v4362_v55, %v4248_v43  ;;  %v4844_v42 = vmul.f32 %v4362_v55, %v4256_v46  ;;  %v9541_v43 = vld [vmem:[#allocation9_spill] sm:$0xff]  ;;  %v9546_v46 = vld [vmem:[#allocation20_spill] sm:$0xff] }
 0x219   :  { %9533 = vst [vmem:[#allocation151_spill] sm:$0xff] %v4786_v13  ;;  %9534 = vst [vmem:[#allocation152_spill] sm:$0xff] %v4788_v1  ;;  %v418_v4 = vmul.f32 %v4364_v61, %v9546_v46  ;;  %v9549_v46 = vld [vmem:[#allocation22_spill] sm:$0xff] }
 0x21a   :  { %v419_v7 = vmul.f32 %v4364_v61, %v9549_v46  ;;  %v9555_v46 = vld [vmem:[#allocation15_spill] sm:$0xff] }
 0x21b   :  { %1532 = vperm.xlu1 %3847, %v4122_v10   ;;  %1584 = vperm.xlu0 %3846, %v4156_v21   ;;  %v253_v10 = vmul.f32 %v4362_v55, %v4232_v38  ;;  %v4807_v21 = vmul.f32 %v4362_v55, %v4236_v39  ;;  %v4830_v38 = vmul.f32 %v4362_v55, %v4250_v44  ;;  %v9542_v44 = vld [vmem:[#allocation10_spill] sm:$0xff] }
 0x21c   :  { %v4792_v15 = vpop.permute.xlu1 %1154  ;;  %v4794_v6 = vpop.permute.xlu0 %1190  ;;  %v4898_v51 = vmul.f32 %v4362_v55, %v9555_v46  ;;  %v4918_v46 = vld [vmem:[#allocation2 + $0x70] sm:$0xff]  ;;  %v4940_v16 = vadd.f32 %v419_v7, %v254_v17 }
 0x21d   :  { %9535 = vst [vmem:[#allocation153_spill] sm:$0xff] %v4792_v15  ;;  %9536 = vst [vmem:[#allocation154_spill] sm:$0xff] %v4794_v6  ;;  %v4852_v6 = vmul.f32 %v4362_v55, %v9542_v44  ;;  %v9544_v15 = vld [vmem:[#allocation11_spill] sm:$0xff]  ;;  %v4916_v30 = vadd.f32 %v418_v4, %v253_v10  ;;  %v4958_v17 = vld [vmem:[#allocation6 + $0xa0] sm:$0xff]   ;;  %v3222_v10 = vunpack.c.h.bf16 %v4938_v18 }
 0x21e   :  { %v4858_v1 = vmul.f32 %v4362_v55, %v9544_v15  ;;  %v9553_v15 = vld [vmem:[#allocation13_spill] sm:$0xff]  ;;  %9573 = vst [vmem:[#allocation18_spill] sm:$0xff] %v4958_v17 }
 0x21f   :  { %1540 = vperm.xlu1 %3847, %v4128_v12   ;;  %1592 = vperm.xlu0 %3846, %v4162_v23   ;;  %v4818_v12 = vmul.f32 %v4362_v55, %v4242_v41  ;;  %v4834_v23 = vld [vmem:[#allocation6] sm:$0xff]   ;;  %v4840_v41 = vmul.f32 %v4362_v55, %v4254_v45  ;;  %v9545_v45 = vld [vmem:[#allocation12_spill] sm:$0xff]  ;;  %v4890_v56 = vmul.f32 %v4362_v55, %v9553_v15 }
 0x220   :  { %v4814_v34 = vpop.permute.xlu1 %1162  ;;  %v4832_v39 = vpop.permute.xlu0 %1198  ;;  %9539 = vst [vmem:[#allocation157_spill] sm:$0xff] %v4834_v23  ;;  %v4862_v13 = vmul.f32 %v4362_v55, %v9545_v45  ;;  %v2675_v29 = vunpack.c.h.bf16 %v4834_v23  ;;  %9552 = vst [vmem:[#allocation12_spill] sm:$0xff] %v4886_v5  ;;  %v9554_v45 = vld [vmem:[#allocation14_spill] sm:$0xff]  ;;  %v4910_v15 = vmul.f32 %v4362_v55, %v9558_v26  ;;  %v9563_v20 = vunpack.c.l.bf16 %v4834_v23 }
 0x221   :  { %9537 = vst [vmem:[#allocation155_spill] sm:$0xff] %v4814_v34  ;;  %9538 = vst [vmem:[#allocation156_spill] sm:$0xff] %v4832_v39  ;;  %v4848_v34 = vmul.f32 %v4362_v55, %v9541_v43  ;;  %v4854_v39 = vld [vmem:[#allocation6 + $0x10] sm:$0xff]   ;;  %v417_v43 = vmul.f32 %v4364_v61, %v9547_v31  ;;  %v4894_v3 = vmul.f32 %v4362_v55, %v9554_v45 }
 0x222   :  { %9543 = vst [vmem:[#allocation9_spill] sm:$0xff] %v4854_v39  ;;  %v9550_v31 = vld [vmem:[#allocation23_spill] sm:$0xff]  ;;  %v4914_v45 = vmul.f32 %v4362_v55, %v9559_v32  ;;  %v9565_v32 = vunpack.c.l.bf16 %v4836_v40  ;;  %9567 = vst [vmem:[#allocation14_spill] sm:$0xff] %v4938_v18 }
 0x223   :  { %1548 = vperm.xlu1 %3847, %v4868_v11   ;;  %1600 = vperm.xlu0 %3846, %v4168_v25   ;;  %v420_v2 = vmul.f32 %v4364_v61, %v9550_v31  ;;  %v9556_v31 = vld [vmem:[#allocation16_spill] sm:$0xff]  ;;  %v9557_v25 = vld [vmem:[#allocation17_spill] sm:$0xff] }
 0x224   :  { %v4872_v44 = vpop.permute.xlu1 %1170  ;;  %v4882_v27 = vpop.permute.xlu0 %1206  ;;  %v4906_v59 = vmul.f32 %v4362_v55, %v9557_v25  ;;  %v4925_v25 = vadd.f32 %v417_v43, %v252_v8  ;;  %v4935_v4 = vsub.f32 %v2899_v9, %v9565_v32  ;;  %v9572_v9 = vld [vmem:[#allocation24_spill] sm:$0xff] }
 0x225   :  { %9548 = vst [vmem:[#allocation10_spill] sm:$0xff] %v4872_v44  ;;  %9551 = vst [vmem:[#allocation11_spill] sm:$0xff] %v4882_v27  ;;  %v3219_v44 = vunpack.c.h.bf16 %v4854_v39  ;;  %v4902_v27 = vmul.f32 %v4362_v55, %v9556_v31  ;;  %v4921_v31 = vld [vmem:[#allocation6 + $0x60] sm:$0xff]   ;;  %v4931_v55 = vsub.f32 %v2675_v29, %v9563_v20  ;;  %v4942_v8 = vadd.f32 %v420_v2, %v255_v19  ;;  %v4951_v29 = vld [vmem:[#allocation6 + $0x78] sm:$0xff]  }
 0x226   :  { %9560 = vst [vmem:[#allocation20_spill] sm:$0xff] %v4921_v31  ;;  %9566 = vst [vmem:[#allocation13_spill] sm:$0xff] %v4935_v4  ;;  %v3443_v20 = vunpack.c.h.bf16 %v4886_v5  ;;  %v421_v32 = vmul.f32 %v4364_v61, %v9572_v9  ;;  %v2678_v7 = vunpack.c.h.bf16 %v4921_v31  ;;  %v4960_v19 = vld [vmem:[#allocation6 + $0xa8] sm:$0xff]   ;;  %v4972_v2 = vld [vmem:[#allocation6 + $0xb8] sm:$0xff]   ;;  %v3446_v9 = vunpack.c.h.bf16 %v4951_v29 }
 0x227   :  { %1556 = vperm.xlu1 %3847, %v4918_v46   ;;  %1608 = vperm.xlu0 %3846, %v3858_v22   ;;  %9564 = vst [vmem:[#allocation23_spill] sm:$0xff] %v4931_v55  ;;  %v9569_v22 = vunpack.c.l.bf16 %v4854_v39  ;;  %9571 = vst [vmem:[#allocation17_spill] sm:$0xff] %v4951_v29  ;;  %v3860_v39 = vld [vmem:[#allocation2 + $0xe8] sm:$0xff]  ;;  %v2680_v55 = vunpack.c.h.bf16 %v4958_v17  ;;  %v2904_v48 = vunpack.c.h.bf16 %v4960_v19  ;;  %v3448_v23 = vunpack.c.h.bf16 %v4972_v2 }
 0x228   :  { %v4927_v26 = vpop.permute.xlu1 %1178  ;;  %v4944_v43 = vpop.permute.xlu0 %1214  ;;  %9574 = vst [vmem:[#allocation19_spill] sm:$0xff] %v4960_v19  ;;  %9576 = vst [vmem:[#allocation24_spill] sm:$0xff] %v4970_v50  ;;  %v4993_v49 = vadd.f32 %v421_v32, %v4811_v28  ;;  %v5002_v53 = vsub.f32 %v3443_v20, %v9583_v63  ;;  %v9587_v28 = vld [vmem:[#allocation29_spill] sm:$0xff]  ;;  %v9591_v63 = vunpack.c.l.bf16 %v4938_v18 }
 0x229   :  { %9562 = vst [vmem:[#allocation22_spill] sm:$0xff] %v4927_v26  ;;  %9568 = vst [vmem:[#allocation15_spill] sm:$0xff] %v4944_v43  ;;  %v4948_v26 = vsub.f32 %v3219_v44, %v9569_v22  ;;  %v9575_v43 = vld [vmem:[#allocation25_spill] sm:$0xff]  ;;  %v4964_v22 = vld [vmem:[#allocation2 + $0x80] sm:$0xff]  ;;  %v426_v32 = vmul.f32 %v4364_v61, %v9587_v28  ;;  %v9596_v28 = vunpack.c.l.bf16 %v4951_v29 }
 0x22a   :  { %v422_v44 = vmul.f32 %v4364_v61, %v9575_v43  ;;  %9577 = vst [vmem:[#allocation25_spill] sm:$0xff] %v4972_v2  ;;  %v424_v43 = vmul.f32 %v4364_v61, %v9579_v47  ;;  %v9585_v47 = vunpack.c.l.bf16 %v4921_v31  ;;  %v5021_v20 = vsub.f32 %v3222_v10, %v9591_v63 }
 0x22b   :  { %9570 = vst [vmem:[#allocation16_spill] sm:$0xff] %v4948_v26  ;;  %1564 = vperm.xlu1 %3847, %v4964_v22   ;;  %1616 = vperm.xlu0 %3846, %v3860_v39   ;;  %v3224_v39 = vunpack.c.h.bf16 %v4970_v50  ;;  %v5037_v60 = vsub.f32 %v3446_v9, %v9596_v28  ;;  %v9599_v10 = vunpack.c.l.bf16 %v4958_v17  ;;  %v5057_v9 = vld [vmem:[#allocation6 + $0xe8] sm:$0xff]  }
 0x22c   :  { %v4978_v40 = vpop.permute.xlu1 %1186  ;;  %v4982_v26 = vpop.permute.xlu0 %1222  ;;  %v5006_v54 = vsub.f32 %v2678_v7, %v9585_v47  ;;  %9592 = vst [vmem:[#allocation161_spill] sm:$0xff] %v5021_v20  ;;  %v5023_v7 = vld [vmem:[#allocation6 + $0x20] sm:$0xff]   ;;  %v5025_v47 = vld [vmem:[#allocation6 + $0x28] sm:$0xff]   ;;  %9607 = vst [vmem:[#allocation171_spill] sm:$0xff] %v5057_v9 }
 0x22d   :  { %9580 = vst [vmem:[#allocation26_spill] sm:$0xff] %v4978_v40  ;;  %9581 = vst [vmem:[#allocation27_spill] sm:$0xff] %v4982_v26  ;;  %v9582_v26 = vld [vmem:[#allocation28_spill] sm:$0xff]  ;;  %v5009_v40 = vadd.f32 %v422_v44, %v4807_v21  ;;  %v5028_v21 = vadd.f32 %v423_v57, %v4822_v35  ;;  %v5031_v44 = vadd.f32 %v424_v43, %v4818_v12  ;;  %v9603_v57 = vunpack.c.l.bf16 %v4970_v50  ;;  %v5082_v50 = vld [vmem:[#allocation6 + $0x128] sm:$0xff]  }
 0x22e   :  { %v425_v4 = vmul.f32 %v4364_v61, %v9582_v26  ;;  %9584 = vst [vmem:[#allocation28_spill] sm:$0xff] %v5002_v53  ;;  %9586 = vst [vmem:[#allocation159_spill] sm:$0xff] %v5006_v54  ;;  %v5043_v63 = vsub.f32 %v2680_v55, %v9599_v10  ;;  %v9605_v35 = vunpack.c.l.bf16 %v4972_v2  ;;  %v5065_v55 = vld [vmem:[#allocation6 + $0xf0] sm:$0xff]   ;;  %v5073_v10 = vadd.f32 %v426_v32, %v4826_v37  ;;  %v5080_v2 = vld [vmem:[#allocation6 + $0x120] sm:$0xff]  }
 0x22f   :  { %1572 = vperm.xlu1 %3847, %v4997_v52   ;;  %1624 = vperm.xlu0 %3846, %v3862_v62   ;;  %9593 = vst [vmem:[#allocation162_spill] sm:$0xff] %v5023_v7  ;;  %9594 = vst [vmem:[#allocation163_spill] sm:$0xff] %v5025_v47  ;;  %v5051_v12 = vsub.f32 %v3224_v39, %v9603_v57  ;;  %v9060_v57 = vmov 2   ;;  %v9613_v39 = vld [vmem:[#allocation30_spill] sm:$0xff]  ;;  %v9614_v37 = vld [vmem:[#allocation31_spill] sm:$0xff]  ;;  %v2908_v5 = vunpack.c.h.bf16 %v5082_v50 }
 0x230   :  { %v5013_v26 = vpop.permute.xlu1 %1194  ;;  %v5033_v62 = vpop.permute.xlu0 %1230  ;;  %9597 = vst [vmem:[#allocation165_spill] sm:$0xff] %v5037_v60  ;;  %9600 = vst [vmem:[#allocation167_spill] sm:$0xff] %v5043_v63  ;;  %v5055_v43 = vsub.f32 %v3448_v23, %v9605_v35  ;;  %v5060_v28 = vadd.f32 %v425_v4, %v4830_v38  ;;  %v2682_v35 = vunpack.c.h.bf16 %v5039_v14  ;;  %v427_v23 = vmul.f32 %v4364_v61, %v9613_v39  ;;  %v5105_v63 = vld [vmem:[#allocation2 + $0xb0] sm:$0xff]  ;;  %v3866_v20 = vld [vmem:[#allocation2 + $0x20] sm:$0xff] }
 0x231   :  { %9588 = vst [vmem:[#allocation29_spill] sm:$0xff] %v5013_v26  ;;  %9595 = vst [vmem:[#allocation164_spill] sm:$0xff] %v5033_v62  ;;  %v9601_v26 = vunpack.c.l.bf16 %v4960_v19  ;;  %v5062_v62 = vld [vmem:[#allocation2 + $0xa0] sm:$0xff]  ;;  %v428_v32 = vmul.f32 %v4364_v61, %v9614_v37  ;;  %v3864_v19 = vld [vmem:[#allocation2 + $0x8] sm:$0xff]  ;;  %v2906_v4 = vunpack.c.h.bf16 %v5057_v9 }
 0x232   :  { %9604 = vst [vmem:[#allocation169_spill] sm:$0xff] %v5051_v12  ;;  %9606 = vst [vmem:[#allocation170_spill] sm:$0xff] %v5055_v43  ;;  %v5101_v37 = vld [vmem:[#allocation6 + $0x30] sm:$0xff]   ;;  %v2684_v43 = vunpack.c.h.bf16 %v5080_v2  ;;  %v9620_v12 = vld [vmem:[#allocation33_spill] sm:$0xff] }
 0x233   :  { %v5047_v18 = vsub.f32 %v2904_v48, %v9601_v26  ;;  %1580 = vperm.xlu1 %3847, %v5062_v62   ;;  %9608 = vst [vmem:[#allocation172_spill] sm:$0xff] %v5065_v55  ;;  %v5067_v48 = vld [vmem:[#allocation6 + $0xf8] sm:$0xff]   ;;  %3849 = vset.pattern.permute.xlu0 %v9060_v57  ;;  %9611 = vst [vmem:[#allocation175_spill] sm:$0xff] %v5080_v2  ;;  %v3226_v26 = vunpack.c.h.bf16 %v5065_v55  ;;  %v430_v24 = vmul.f32 %v4364_v61, %v9620_v12  ;;  %v5146_v14 = vld [vmem:[#allocation2 + $0xc0] sm:$0xff] }
 0x234   :  { %9609 = vst [vmem:[#allocation173_spill] sm:$0xff] %v5067_v48  ;;  %v5076_v38 = vpop.permute.xlu1 %1202  ;;  %9612 = vst [vmem:[#allocation176_spill] sm:$0xff] %v5082_v50  ;;  %1765 = vperm.xlu0 %3849, %v3864_v19   ;;  %v3450_v39 = vunpack.c.h.bf16 %v5067_v48  ;;  %v9619_v19 = vld [vmem:[#allocation32_spill] sm:$0xff]  ;;  %v5131_v60 = vadd.f32 %v428_v32, %v4840_v41  ;;  %v9630_v41 = vunpack.c.l.bf16 %v5067_v48  ;;  %v9644_v48 = vld [vmem:[#allocation34_spill] sm:$0xff] }
 0x235   :  { %9602 = vst [vmem:[#allocation168_spill] sm:$0xff] %v5047_v18  ;;  %9610 = vst [vmem:[#allocation174_spill] sm:$0xff] %v5076_v38  ;;  %v5091_v38 = vld [vmem:[#allocation6 + $0x130] sm:$0xff]   ;;  %v5093_v17 = vpop.permute.xlu0 %1307  ;;  %v5099_v18 = vld [vmem:[#allocation6 + $0x138] sm:$0xff]   ;;  %v429_v57 = vmul.f32 %v4364_v61, %v9619_v19 }
 0x236   :  { %9615 = vst [vmem:[#allocation30_spill] sm:$0xff] %v5091_v38  ;;  %9616 = vst [vmem:[#allocation31_spill] sm:$0xff] %v5093_v17  ;;  %v3228_v19 = vunpack.c.h.bf16 %v5091_v38  ;;  %v5120_v17 = vsub.f32 %v2682_v35, %v9622_v58  ;;  %v3452_v29 = vunpack.c.h.bf16 %v5099_v18  ;;  %v5125_v53 = vld [vmem:[#allocation6 + $0x38] sm:$0xff]   ;;  %v9628_v35 = vunpack.c.l.bf16 %v5065_v55 }
 0x237   :  { %9617 = vst [vmem:[#allocation177_spill] sm:$0xff] %v5099_v18  ;;  %9618 = vst [vmem:[#allocation178_spill] sm:$0xff] %v5101_v37  ;;  %1588 = vperm.xlu1 %3847, %v5105_v63   ;;  %v5144_v12 = vadd.f32 %v429_v57, %v4852_v6  ;;  %v5163_v6 = vadd.f32 %v430_v24, %v4848_v34  ;;  %v432_v24 = vmul.f32 %v4364_v61, %v9644_v48  ;;  %v3868_v34 = vld [vmem:[#allocation2 + $0x30] sm:$0xff]  ;;  %v5210_v61 = vld [vmem:[#allocation6 + $0x50] sm:$0xff]  }
 0x238   :  { %v5113_v31 = vpop.permute.xlu1 %1210  ;;  %1777 = vperm.xlu0 %3849, %v3866_v20   ;;  %9623 = vst [vmem:[#allocation33_spill] sm:$0xff] %v5120_v17  ;;  %9624 = vst [vmem:[#allocation179_spill] sm:$0xff] %v5125_v53  ;;  %v9626_v20 = vunpack.c.l.bf16 %v5057_v9  ;;  %v5141_v54 = vsub.f32 %v3226_v26, %v9628_v35  ;;  %v3220_v26 = vunpack.c.h.bf16 %v5101_v37  ;;  %v9638_v35 = vunpack.c.l.bf16 %v5082_v50  ;;  %v9658_v9 = vld [vmem:[#allocation37_spill] sm:$0xff] }
 0x239   :  { %9621 = vst [vmem:[#allocation32_spill] sm:$0xff] %v5113_v31  ;;  %v5128_v31 = vadd.f32 %v427_v23, %v4844_v42  ;;  %v5133_v0 = vpop.permute.xlu0 %1319  ;;  %v5151_v42 = vsub.f32 %v3450_v39, %v9630_v41  ;;  %v9632_v23 = vunpack.c.l.bf16 %v5080_v2  ;;  %9636 = vst [vmem:[#allocation187_spill] sm:$0xff] %v5163_v6  ;;  %v9640_v39 = vunpack.c.l.bf16 %v5091_v38  ;;  %v5193_v38 = vld [vmem:[#allocation6 + $0x40] sm:$0xff]   ;;  %v5245_v6 = vld [vmem:[#allocation2 + $0xe0] sm:$0xff] }
 0x23a   :  { %9625 = vst [vmem:[#allocation180_spill] sm:$0xff] %v5133_v0  ;;  %v5137_v58 = vsub.f32 %v2906_v4, %v9626_v20  ;;  %9629 = vst [vmem:[#allocation182_spill] sm:$0xff] %v5141_v54  ;;  %v5157_v4 = vld [vmem:[#allocation6 + $0x160] sm:$0xff]   ;;  %v5159_v20 = vld [vmem:[#allocation6 + $0x168] sm:$0xff]   ;;  %v5169_v0 = vsub.f32 %v2908_v5, %v9638_v35  ;;  %v9647_v5 = vunpack.c.l.bf16 %v5023_v7 }
 0x23b   :  { %1596 = vperm.xlu1 %3847, %v5146_v14   ;;  %9631 = vst [vmem:[#allocation183_spill] sm:$0xff] %v5151_v42  ;;  %v5155_v32 = vsub.f32 %v2684_v43, %v9632_v23  ;;  %9634 = vst [vmem:[#allocation185_spill] sm:$0xff] %v5157_v4  ;;  %v5173_v41 = vsub.f32 %v3228_v19, %v9640_v39  ;;  %v5175_v43 = vld [vmem:[#allocation6 + $0x170] sm:$0xff]   ;;  %v5177_v23 = vld [vmem:[#allocation6 + $0x178] sm:$0xff]   ;;  %v9648_v19 = vunpack.c.h.bf16 %v5023_v7  ;;  %v3444_v39 = vunpack.c.h.bf16 %v5125_v53 }
 0x23c   :  { %9627 = vst [vmem:[#allocation181_spill] sm:$0xff] %v5137_v58  ;;  %9635 = vst [vmem:[#allocation186_spill] sm:$0xff] %v5159_v20  ;;  %v5165_v57 = vpop.permute.xlu1 %1218  ;;  %1785 = vperm.xlu0 %3849, %v3868_v34   ;;  %v2686_v48 = vunpack.c.h.bf16 %v5157_v4  ;;  %v9654_v34 = vld [vmem:[#allocation35_spill] sm:$0xff]  ;;  %v2677_v7 = vunpack.c.h.bf16 %v5193_v38  ;;  %v9659_v58 = vunpack.c.l.bf16 %v5025_v47 }
 0x23d   :  { %9633 = vst [vmem:[#allocation184_spill] sm:$0xff] %v5155_v32  ;;  %9637 = vst [vmem:[#allocation188_spill] sm:$0xff] %v5165_v57  ;;  %v9645_v57 = vunpack.c.l.bf16 %v5099_v18  ;;  %v5190_v35 = vsub.f32 %v9648_v19, %v9647_v5  ;;  %v5195_v2 = vpop.permute.xlu0 %1327  ;;  %v3230_v19 = vunpack.c.h.bf16 %v5175_v43  ;;  %v5212_v18 = vld [vmem:[#allocation4 + $0x3] ss:$0 sm:$0xff]  ;;  %v5223_v32 = vadd.f32 %v432_v24, %v4858_v1 }
 0x23e   :  { %9639 = vst [vmem:[#allocation189_spill] sm:$0xff] %v5169_v0  ;;  %9641 = vst [vmem:[#allocation190_spill] sm:$0xff] %v5173_v41  ;;  %v9655_v41 = vld [vmem:[#allocation36_spill] sm:$0xff]  ;;  %v438_v42 = vmul.f32 %v5212_v18, %v9658_v9  ;;  %v3871_v54 = vld [vmem:[#allocation2 + $0x40] sm:$0xff]  ;;  %v9670_v1 = vunpack.c.l.bf16 %v5175_v43  ;;  %v9672_v9 = vunpack.c.l.bf16 %v5125_v53 }
 0x23f   :  { %9642 = vst [vmem:[#allocation191_spill] sm:$0xff] %v5175_v43  ;;  %9643 = vst [vmem:[#allocation192_spill] sm:$0xff] %v5177_v23  ;;  %v5184_v50 = vsub.f32 %v3452_v29, %v9645_v57  ;;  %v2910_v29 = vunpack.c.h.bf16 %v5159_v20  ;;  %v5201_v57 = vld [vmem:[#allocation2 + $0xd0] sm:$0xff]  ;;  %v436_v55 = vmul.f32 %v5212_v18, %v9655_v41  ;;  %v9662_v41 = vunpack.c.l.bf16 %v5101_v37  ;;  %v5338_v43 = vld [vmem:[#allocation6 + $0x98] sm:$0xff]  }
 0x240   :  { %9649 = vst [vmem:[#allocation193_spill] sm:$0xff] %v5190_v35  ;;  %9650 = vst [vmem:[#allocation194_spill] sm:$0xff] %v5193_v38  ;;  %1604 = vperm.xlu1 %3847, %v5201_v57   ;;  %v5208_v35 = vld [vmem:[#allocation6 + $0x48] sm:$0xff]   ;;  %v5218_v0 = vpop.permute.xlu1 %1226  ;;  %1793 = vperm.xlu0 %3849, %v3871_v54   ;;  %v3221_v54 = vunpack.c.h.bf16 %v5210_v61  ;;  %v5262_v37 = vsub.f32 %v3444_v39, %v9672_v9  ;;  %v5283_v39 = vadd.f32 %v438_v42, %v4894_v3  ;;  %v5308_v53 = vld [vmem:[#allocation6 + $0x80] sm:$0xff]  }
 0x241   :  { %9646 = vst [vmem:[#allocation34_spill] sm:$0xff] %v5184_v50  ;;  %9651 = vst [vmem:[#allocation195_spill] sm:$0xff] %v5195_v2  ;;  %v3454_v2 = vunpack.c.h.bf16 %v5177_v23  ;;  %v434_v50 = vmul.f32 %v5212_v18, %v9654_v34  ;;  %v9660_v34 = vunpack.c.h.bf16 %v5025_v47  ;;  %v5237_v5 = vpop.permute.xlu0 %1335  ;;  %v2901_v24 = vunpack.c.h.bf16 %v5208_v35  ;;  %v5264_v47 = vld [vmem:[#allocation6 + $0x1a0] sm:$0xff]   ;;  %v9680_v9 = vld [vmem:[#allocation38_spill] sm:$0xff] }
 0x242   :  { %9652 = vst [vmem:[#allocation196_spill] sm:$0xff] %v5208_v35  ;;  %9653 = vst [vmem:[#allocation197_spill] sm:$0xff] %v5210_v61 }
 0x243   :  { %9656 = vst [vmem:[#allocation35_spill] sm:$0xff] %v5218_v0  ;;  %9657 = vst [vmem:[#allocation36_spill] sm:$0xff] %v5223_v32  ;;  %v5231_v17 = vsub.f32 %v9660_v34, %v9659_v58  ;;  %v5235_v0 = vsub.f32 %v3220_v26, %v9662_v41  ;;  %v5243_v32 = vld [vmem:[#allocation6 + $0x58] sm:$0xff]   ;;  %v9666_v58 = vunpack.c.l.bf16 %v5157_v4  ;;  %v9668_v34 = vunpack.c.l.bf16 %v5159_v20 }
 0x244   :  { %9664 = vst [vmem:[#allocation199_spill] sm:$0xff] %v5237_v5  ;;  %9665 = vst [vmem:[#allocation200_spill] sm:$0xff] %v5243_v32  ;;  %1612 = vperm.xlu1 %3847, %v5245_v6   ;;  %v5258_v5 = vsub.f32 %v3230_v19, %v9670_v1  ;;  %v9678_v19 = vunpack.c.l.bf16 %v5193_v38  ;;  %v3445_v38 = vunpack.c.h.bf16 %v5243_v32 }
 0x245   :  { %9661 = vst [vmem:[#allocation37_spill] sm:$0xff] %v5231_v17  ;;  %9663 = vst [vmem:[#allocation198_spill] sm:$0xff] %v5235_v0  ;;  %v5250_v26 = vsub.f32 %v2686_v48, %v9666_v58  ;;  %v5254_v41 = vsub.f32 %v2910_v29, %v9668_v34  ;;  %v5267_v0 = vadd.f32 %v434_v50, %v4862_v13  ;;  %v9675_v58 = vunpack.c.l.bf16 %v5177_v23  ;;  %v5276_v34 = vld [vmem:[#allocation6 + $0x1a8] sm:$0xff]   ;;  %v3873_v13 = vld [vmem:[#allocation2 + $0x50] sm:$0xff]  ;;  %v5297_v3 = vpop.permute.xlu0 %1343 }
 0x246   :  { %9671 = vst [vmem:[#allocation203_spill] sm:$0xff] %v5258_v5  ;;  %9673 = vst [vmem:[#allocation204_spill] sm:$0xff] %v5262_v37  ;;  %v5270_v48 = vadd.f32 %v436_v55, %v4890_v56  ;;  %v5280_v1 = vsub.f32 %v2677_v7, %v9678_v19  ;;  %v440_v50 = vmul.f32 %v5212_v18, %v9680_v9  ;;  %1801 = vperm.xlu0 %3849, %v3873_v13   ;;  %v5287_v56 = vpop.permute.xlu1 %1303  ;;  %v5289_v55 = vld [vmem:[#allocation6 + $0x1b0] sm:$0xff]   ;;  %v5312_v17 = vld [vmem:[#allocation2 + $0xf0] sm:$0xff]  ;;  %v9704_v23 = vmov 2  }
 0x247   :  { %9667 = vst [vmem:[#allocation201_spill] sm:$0xff] %v5250_v26  ;;  %9669 = vst [vmem:[#allocation202_spill] sm:$0xff] %v5254_v41  ;;  %v5274_v29 = vsub.f32 %v3454_v2, %v9675_v58  ;;  %v5291_v2 = vld [vmem:[#allocation6 + $0x1b8] sm:$0xff]   ;;  %v9684_v7 = vld [vmem:[#allocation39_spill] sm:$0xff]  ;;  %v9686_v9 = vunpack.c.l.bf16 %v5208_v35  ;;  %v9696_v35 = vunpack.c.l.bf16 %v5243_v32  ;;  %v9725_v26 = vunpack.c.l.bf16 %v5308_v53 }
 0x248   :  { %9674 = vst [vmem:[#allocation205_spill] sm:$0xff] %v5264_v47  ;;  %9677 = vst [vmem:[#allocation207_spill] sm:$0xff] %v5276_v34  ;;  %v442_v19 = vmul.f32 %v5212_v18, %v9684_v7  ;;  %v9691_v58 = vld [vmem:[#allocation40_spill] sm:$0xff]  ;;  %1620 = vperm.xlu1 %3847, %v5312_v17   ;;  %v2688_v7 = vunpack.c.h.bf16 %v5264_v47  ;;  %v5364_v32 = vld [vmem:[#allocation6 + $0x1e0] sm:$0xff]  }
 0x249   :  { %9676 = vst [vmem:[#allocation206_spill] sm:$0xff] %v5274_v29  ;;  %9679 = vst [vmem:[#allocation208_spill] sm:$0xff] %v5280_v1  ;;  %v5302_v13 = vsub.f32 %v2901_v24, %v9686_v9  ;;  %v444_v37 = vmul.f32 %v5212_v18, %v9691_v58  ;;  %v2912_v24 = vunpack.c.h.bf16 %v5276_v34  ;;  %v5318_v9 = vld [vmem:[#allocation6 + $0x88] sm:$0xff]   ;;  %v5343_v20 = vpop.permute.xlu0 %1351  ;;  %v5369_v29 = vld [vmem:[#allocation2] sm:$0xff] }
 0x24a   :  { %9681 = vst [vmem:[#allocation38_spill] sm:$0xff] %v5287_v56  ;;  %9682 = vst [vmem:[#allocation209_spill] sm:$0xff] %v5289_v55  ;;  %v9688_v56 = vunpack.c.l.bf16 %v5210_v61  ;;  %v3456_v61 = vunpack.c.h.bf16 %v5291_v2  ;;  %1809 = vperm.xlu0 %3849, %v4868_v11   ;;  %v5330_v42 = vpop.permute.xlu1 %1311  ;;  %v5341_v58 = vadd.f32 %v442_v19, %v4902_v27  ;;  %v2903_v11 = vunpack.c.h.bf16 %v5318_v9  ;;  %v5414_v5 = vld [vmem:[#allocation4 + $0x6] ss:$0 sm:$0xff] }
 0x24b   :  { %9683 = vst [vmem:[#allocation210_spill] sm:$0xff] %v5291_v2  ;;  %9685 = vst [vmem:[#allocation39_spill] sm:$0xff] %v5297_v3  ;;  %v5320_v3 = vld [vmem:[#allocation6 + $0x90] sm:$0xff]   ;;  %v9705_v27 = vunpack.c.l.bf16 %v5264_v47 }
 0x24c   :  { %9687 = vst [vmem:[#allocation211_spill] sm:$0xff] %v5302_v13  ;;  %v5306_v1 = vsub.f32 %v3221_v54, %v9688_v56  ;;  %9690 = vst [vmem:[#allocation213_spill] sm:$0xff] %v5308_v53  ;;  %v3232_v56 = vunpack.c.h.bf16 %v5289_v55  ;;  %v5334_v13 = vsub.f32 %v3445_v38, %v9696_v35  ;;  %v2679_v54 = vunpack.c.h.bf16 %v5308_v53  ;;  %v5350_v38 = vld [vmem:[#allocation6 + $0xc8] sm:$0xff]   ;;  %3848 = vset.pattern.permute.xlu1 %v9704_v23 }
 0x24d   :  { %9692 = vst [vmem:[#allocation40_spill] sm:$0xff] %v5318_v9  ;;  %9693 = vst [vmem:[#allocation214_spill] sm:$0xff] %v5320_v3  ;;  %v5353_v35 = vadd.f32 %v444_v37, %v4906_v59  ;;  %v5358_v19 = vsub.f32 %v2688_v7, %v9705_v27  ;;  %1761 = vperm.xlu1 %3848, %v5369_v29   ;;  %v9711_v59 = vunpack.c.l.bf16 %v5289_v55  ;;  %v9713_v23 = vunpack.c.l.bf16 %v5291_v2  ;;  %v9720_v2 = vld [vmem:[#allocation42_spill] sm:$0xff]  ;;  %v5398_v27 = vpop.permute.xlu0 %1359 }
 0x24e   :  { %9689 = vst [vmem:[#allocation212_spill] sm:$0xff] %v5306_v1  ;;  %v5327_v1 = vadd.f32 %v440_v50, %v4898_v51  ;;  %9695 = vst [vmem:[#allocation216_spill] sm:$0xff] %v5330_v42  ;;  %v5348_v42 = vld [vmem:[#allocation6 + $0xc0] sm:$0xff]   ;;  %v3223_v50 = vunpack.c.h.bf16 %v5320_v3  ;;  %1817 = vperm.xlu0 %3849, %v4918_v46   ;;  %v3447_v55 = vunpack.c.h.bf16 %v5338_v43  ;;  %v448_v47 = vmul.f32 %v5212_v18, %v9720_v2 }
 0x24f   :  { %9697 = vst [vmem:[#allocation217_spill] sm:$0xff] %v5334_v13  ;;  %9698 = vst [vmem:[#allocation218_spill] sm:$0xff] %v5338_v43  ;;  %v9710_v13 = vld [vmem:[#allocation41_spill] sm:$0xff]  ;;  %v5374_v37 = vsub.f32 %v3232_v56, %v9711_v59  ;;  %v5378_v7 = vsub.f32 %v3456_v61, %v9713_v23  ;;  %v2681_v59 = vunpack.c.h.bf16 %v5348_v42  ;;  %v5394_v23 = vld [vmem:[#allocation6 + $0xd0] sm:$0xff]   ;;  %v9729_v46 = vunpack.c.l.bf16 %v5320_v3 }
 0x250   :  { %9694 = vst [vmem:[#allocation215_spill] sm:$0xff] %v5327_v1  ;;  %9699 = vst [vmem:[#allocation219_spill] sm:$0xff] %v5341_v58  ;;  %v446_v4 = vmul.f32 %v5212_v18, %v9710_v13  ;;  %v5386_v13 = vpop.permute.xlu1 %1315  ;;  %v9727_v18 = vunpack.c.l.bf16 %v5318_v9  ;;  %v5433_v1 = vld [vmem:[#allocation6 + $0xd8] sm:$0xff]  }
 0x251   :  { %9700 = vst [vmem:[#allocation220_spill] sm:$0xff] %v5343_v20  ;;  %9701 = vst [vmem:[#allocation221_spill] sm:$0xff] %v5348_v42  ;;  %v9707_v20 = vunpack.c.l.bf16 %v5276_v34  ;;  %v5388_v34 = vld [vmem:[#allocation6 + $0x1f8] sm:$0xff]   ;;  %v5431_v58 = vsub.f32 %v3223_v50, %v9729_v46  ;;  %v5451_v50 = vld [vmem:[#allocation6 + $0x100] sm:$0xff]   ;;  %v9765_v53 = vunpack.c.l.bf16 %v5433_v1 }
 0x252   :  { %9702 = vst [vmem:[#allocation222_spill] sm:$0xff] %v5350_v38  ;;  %9703 = vst [vmem:[#allocation223_spill] sm:$0xff] %v5353_v35  ;;  %v3458_v2 = vunpack.c.h.bf16 %v5388_v34  ;;  %1825 = vperm.xlu0 %3849, %v4964_v22   ;;  %v5427_v35 = vsub.f32 %v2903_v11, %v9727_v18  ;;  %v5439_v22 = vadd.f32 %v448_v47, %v4914_v45  ;;  %v9735_v11 = vunpack.c.l.bf16 %v5338_v43  ;;  %v5516_v9 = vld [vmem:[#allocation2 + $0x28] sm:$0xff] }
 0x253   :  { %9706 = vst [vmem:[#allocation224_spill] sm:$0xff] %v5358_v19  ;;  %v5362_v51 = vsub.f32 %v2912_v24, %v9707_v20  ;;  %9709 = vst [vmem:[#allocation226_spill] sm:$0xff] %v5364_v32  ;;  %v5380_v20 = vld [vmem:[#allocation6 + $0x1e8] sm:$0xff]   ;;  %v5382_v24 = vld [vmem:[#allocation6 + $0x1f0] sm:$0xff]   ;;  %v9742_v47 = vunpack.c.l.bf16 %v5348_v42 }
 0x254   :  { %9712 = vst [vmem:[#allocation41_spill] sm:$0xff] %v5374_v37  ;;  %9714 = vst [vmem:[#allocation227_spill] sm:$0xff] %v5378_v7  ;;  %v2905_v7 = vunpack.c.h.bf16 %v5350_v38  ;;  %v2914_v56 = vunpack.c.h.bf16 %v5380_v20  ;;  %v3234_v61 = vunpack.c.h.bf16 %v5382_v24  ;;  %v5407_v19 = vld [vmem:[#allocation2 + $0x10] sm:$0xff]  ;;  %v9723_v37 = vld [vmem:[#allocation43_spill] sm:$0xff]  ;;  %v5449_v18 = vsub.f32 %v3447_v55, %v9735_v11 }
 0x255   :  { %9708 = vst [vmem:[#allocation225_spill] sm:$0xff] %v5362_v51  ;;  %9715 = vst [vmem:[#allocation228_spill] sm:$0xff] %v5380_v20  ;;  %1769 = vperm.xlu1 %3848, %v5407_v19   ;;  %v614_v41 = vmul.f32 %v5414_v5, %v9723_v37  ;;  %v5419_v51 = vpop.permute.xlu1 %1323  ;;  %v5436_v37 = vadd.f32 %v446_v4, %v4910_v15  ;;  %v9738_v46 = vunpack.c.l.bf16 %v5380_v20  ;;  %v9740_v15 = vunpack.c.l.bf16 %v5382_v24  ;;  %v5469_v55 = vld [vmem:[#allocation6 + $0x108] sm:$0xff]   ;;  %v5471_v11 = vld [vmem:[#allocation6 + $0x110] sm:$0xff]  }
 0x256   :  { %9716 = vst [vmem:[#allocation229_spill] sm:$0xff] %v5382_v24  ;;  %9717 = vst [vmem:[#allocation230_spill] sm:$0xff] %v5386_v13  ;;  %v2690_v13 = vunpack.c.h.bf16 %v5364_v32  ;;  %v5463_v4 = vsub.f32 %v2681_v59, %v9742_v47  ;;  %v5482_v59 = vld [vmem:[#allocation6 + $0x220] sm:$0xff]   ;;  %1833 = vperm.xlu0 %3849, %v4997_v52   ;;  %v5495_v42 = vld [vmem:[#allocation6 + $0x228] sm:$0xff]  }
 0x257   :  { %9718 = vst [vmem:[#allocation231_spill] sm:$0xff] %v5388_v34  ;;  %9719 = vst [vmem:[#allocation232_spill] sm:$0xff] %v5394_v23  ;;  %v5455_v3 = vsub.f32 %v2914_v56, %v9738_v46  ;;  %v5459_v45 = vsub.f32 %v3234_v61, %v9740_v15  ;;  %v5475_v46 = vld [vmem:[#allocation2 + $0x18] sm:$0xff]  ;;  %v9749_v61 = vunpack.c.l.bf16 %v5388_v34  ;;  %v5531_v34 = vld [vmem:[#allocation6 + $0x238] sm:$0xff]  }
 0x258   :  { %9721 = vst [vmem:[#allocation42_spill] sm:$0xff] %v5398_v27  ;;  %9722 = vst [vmem:[#allocation233_spill] sm:$0xff] %v5407_v19  ;;  %v3225_v27 = vunpack.c.h.bf16 %v5394_v23  ;;  %v5423_v19 = vsub.f32 %v2679_v54, %v9725_v26  ;;  %v9733_v26 = vunpack.c.l.bf16 %v5364_v32  ;;  %v5553_v52 = vld [vmem:[#allocation6 + $0x140] sm:$0xff]  }
 0x259   :  { %9724 = vst [vmem:[#allocation43_spill] sm:$0xff] %v5419_v51  ;;  %9728 = vst [vmem:[#allocation235_spill] sm:$0xff] %v5427_v35  ;;  %v5441_v51 = vpop.permute.xlu0 %1367  ;;  %1773 = vperm.xlu1 %3848, %v5475_v46   ;;  %v5480_v15 = vsub.f32 %v3458_v2, %v9749_v61  ;;  %v3449_v2 = vunpack.c.h.bf16 %v5433_v1 }
 0x25a   :  { %9726 = vst [vmem:[#allocation234_spill] sm:$0xff] %v5423_v19  ;;  %9730 = vst [vmem:[#allocation236_spill] sm:$0xff] %v5431_v58  ;;  %v5445_v54 = vsub.f32 %v2690_v13, %v9733_v26  ;;  %v9744_v13 = vunpack.c.l.bf16 %v5350_v38  ;;  %v5490_v38 = vadd.f32 %v614_v41, %v4925_v25  ;;  %v2907_v25 = vunpack.c.h.bf16 %v5469_v55  ;;  %1841 = vperm.xlu0 %3849, %v5062_v62  }
 0x25b   :  { %9731 = vst [vmem:[#allocation237_spill] sm:$0xff] %v5433_v1  ;;  %9732 = vst [vmem:[#allocation238_spill] sm:$0xff] %v5441_v51  ;;  %v9748_v51 = vld [vmem:[#allocation44_spill] sm:$0xff]  ;;  %v3227_v41 = vunpack.c.h.bf16 %v5471_v11  ;;  %v5539_v19 = vsub.f32 %v3449_v2, %v9765_v53  ;;  %v9769_v62 = vunpack.c.l.bf16 %v5469_v55 }
 0x25c   :  { %9734 = vst [vmem:[#allocation239_spill] sm:$0xff] %v5445_v54  ;;  %9736 = vst [vmem:[#allocation240_spill] sm:$0xff] %v5449_v18  ;;  %v5467_v26 = vsub.f32 %v2905_v7, %v9744_v13  ;;  %v615_v56 = vmul.f32 %v5414_v5, %v9748_v51  ;;  %v9752_v7 = vunpack.c.l.bf16 %v5394_v23  ;;  %v5493_v51 = vpop.permute.xlu1 %1331  ;;  %v9759_v23 = vld [vmem:[#allocation45_spill] sm:$0xff]  ;;  %v2916_v13 = vunpack.c.h.bf16 %v5495_v42  ;;  %v9774_v2 = vld [vmem:[#allocation48_spill] sm:$0xff] }
 0x25d   :  { %9737 = vst [vmem:[#allocation241_spill] sm:$0xff] %v5451_v50  ;;  %9739 = vst [vmem:[#allocation242_spill] sm:$0xff] %v5455_v3  ;;  %1781 = vperm.xlu1 %3848, %v5516_v9   ;;  %v5856_v3 = vld [vmem:[#allocation2 + $0x98] sm:$0xff] }
 0x25e   :  { %9741 = vst [vmem:[#allocation243_spill] sm:$0xff] %v5459_v45  ;;  %9743 = vst [vmem:[#allocation244_spill] sm:$0xff] %v5463_v4  ;;  %v5486_v47 = vsub.f32 %v3225_v27, %v9752_v7  ;;  %v2683_v27 = vunpack.c.h.bf16 %v5451_v50  ;;  %v5502_v7 = vpop.permute.xlu0 %1375  ;;  %v9760_v4 = vld [vmem:[#allocation46_spill] sm:$0xff]  ;;  %1849 = vperm.xlu0 %3849, %v5105_v63  }
 0x25f   :  { %9745 = vst [vmem:[#allocation245_spill] sm:$0xff] %v5467_v26  ;;  %9746 = vst [vmem:[#allocation246_spill] sm:$0xff] %v5469_v55  ;;  %v5497_v26 = vld [vmem:[#allocation6 + $0x230] sm:$0xff]   ;;  %v618_v61 = vmul.f32 %v5414_v5, %v9760_v4 }
 0x260   :  { %9747 = vst [vmem:[#allocation247_spill] sm:$0xff] %v5471_v11  ;;  %9750 = vst [vmem:[#allocation44_spill] sm:$0xff] %v5480_v15  ;;  %v3236_v18 = vunpack.c.h.bf16 %v5497_v26  ;;  %v9761_v4 = vld [vmem:[#allocation47_spill] sm:$0xff]  ;;  %v5529_v58 = vpop.permute.xlu1 %1339 }
 0x261   :  { %9751 = vst [vmem:[#allocation248_spill] sm:$0xff] %v5482_v59  ;;  %9753 = vst [vmem:[#allocation249_spill] sm:$0xff] %v5486_v47  ;;  %v616_v47 = vmul.f32 %v5414_v5, %v9759_v23  ;;  %v5524_v23 = vadd.f32 %v615_v56, %v4916_v30  ;;  %v617_v43 = vmul.f32 %v5414_v5, %v9761_v4  ;;  %v9767_v30 = vunpack.c.l.bf16 %v5451_v50  ;;  %v5600_v50 = vld [vmem:[#allocation6 + $0x148] sm:$0xff]  }
 0x262   :  { %9754 = vst [vmem:[#allocation250_spill] sm:$0xff] %v5493_v51  ;;  %9755 = vst [vmem:[#allocation251_spill] sm:$0xff] %v5495_v42  ;;  %v5508_v51 = vld [vmem:[#allocation6 + $0x118] sm:$0xff]   ;;  %v5535_v35 = vpop.permute.xlu0 %1383  ;;  %v5547_v4 = vsub.f32 %v2907_v25, %v9769_v62  ;;  %v5559_v53 = vadd.f32 %v618_v61, %v4993_v49  ;;  %v5567_v25 = vld [vmem:[#allocation6 + $0x260] sm:$0xff]   ;;  %v9780_v49 = vunpack.c.l.bf16 %v5497_v26  ;;  %v2685_v61 = vunpack.c.h.bf16 %v5553_v52  ;;  %1857 = vperm.xlu0 %3849, %v5146_v14  }
 0x263   :  { %9756 = vst [vmem:[#allocation252_spill] sm:$0xff] %v5497_v26  ;;  %9757 = vst [vmem:[#allocation253_spill] sm:$0xff] %v5502_v7  ;;  %v2692_v7 = vunpack.c.h.bf16 %v5482_v59  ;;  %v3451_v24 = vunpack.c.h.bf16 %v5508_v51  ;;  %v5543_v56 = vsub.f32 %v2683_v27, %v9767_v30  ;;  %v620_v27 = vmul.f32 %v5414_v5, %v9774_v2  ;;  %v5569_v62 = vld [vmem:[#allocation2 + $0x38] sm:$0xff]  ;;  %v5584_v2 = vld [vmem:[#allocation6 + $0x270] sm:$0xff]  }
 0x264   :  { %9758 = vst [vmem:[#allocation254_spill] sm:$0xff] %v5508_v51  ;;  %9762 = vst [vmem:[#allocation45_spill] sm:$0xff] %v5529_v58  ;;  %v9771_v58 = vunpack.c.l.bf16 %v5471_v11  ;;  %v9775_v30 = vunpack.c.l.bf16 %v5482_v59  ;;  %1789 = vperm.xlu1 %3848, %v5569_v62   ;;  %v5590_v11 = vpop.permute.xlu1 %1347  ;;  %v2909_v1 = vunpack.c.h.bf16 %v5600_v50  ;;  %v9794_v26 = vunpack.c.l.bf16 %v5531_v34 }
 0x265   :  { %9763 = vst [vmem:[#allocation46_spill] sm:$0xff] %v5531_v34  ;;  %9764 = vst [vmem:[#allocation47_spill] sm:$0xff] %v5535_v35  ;;  %v5556_v35 = vadd.f32 %v616_v47, %v4940_v16  ;;  %v5578_v47 = vsub.f32 %v3236_v18, %v9780_v49  ;;  %v9786_v18 = vunpack.c.l.bf16 %v5508_v51  ;;  %v2694_v51 = vunpack.c.h.bf16 %v5567_v25 }
 0x266   :  { %9766 = vst [vmem:[#allocation255_spill] sm:$0xff] %v5539_v19  ;;  %9768 = vst [vmem:[#allocation256_spill] sm:$0xff] %v5543_v56  ;;  %v5551_v20 = vsub.f32 %v3227_v41, %v9771_v58  ;;  %v5565_v55 = vsub.f32 %v2692_v7, %v9775_v30  ;;  %v9778_v58 = vunpack.c.l.bf16 %v5495_v42  ;;  %v3460_v41 = vunpack.c.h.bf16 %v5531_v34  ;;  %v5582_v7 = vld [vmem:[#allocation6 + $0x268] sm:$0xff]   ;;  %v9804_v19 = vld [vmem:[#allocation51_spill] sm:$0xff]  ;;  %1865 = vperm.xlu0 %3849, %v5201_v57  }
 0x267   :  { %9770 = vst [vmem:[#allocation257_spill] sm:$0xff] %v5547_v4  ;;  %9773 = vst [vmem:[#allocation259_spill] sm:$0xff] %v5553_v52  ;;  %v5587_v30 = vadd.f32 %v617_v43, %v4942_v8  ;;  %v9790_v43 = vld [vmem:[#allocation50_spill] sm:$0xff]  ;;  %v5606_v4 = vpop.permute.xlu0 %1391  ;;  %v2918_v49 = vunpack.c.h.bf16 %v5582_v7  ;;  %v3238_v56 = vunpack.c.h.bf16 %v5584_v2  ;;  %v9796_v59 = vunpack.c.l.bf16 %v5553_v52 }
 0x268   :  { %9772 = vst [vmem:[#allocation258_spill] sm:$0xff] %v5551_v20  ;;  %9776 = vst [vmem:[#allocation48_spill] sm:$0xff] %v5565_v55  ;;  %v5574_v16 = vsub.f32 %v2916_v13, %v9778_v58  ;;  %v5592_v13 = vld [vmem:[#allocation6 + $0x278] sm:$0xff]   ;;  %v5596_v58 = vsub.f32 %v3451_v24, %v9786_v18  ;;  %v9789_v20 = vld [vmem:[#allocation49_spill] sm:$0xff]  ;;  %v622_v63 = vmul.f32 %v5414_v5, %v9790_v43 }
 0x269   :  { %9777 = vst [vmem:[#allocation260_spill] sm:$0xff] %v5567_v25  ;;  %9781 = vst [vmem:[#allocation262_spill] sm:$0xff] %v5578_v47  ;;  %v619_v8 = vmul.f32 %v5414_v5, %v9789_v20  ;;  %v5610_v24 = vld [vmem:[#allocation6 + $0x150] sm:$0xff]   ;;  %v5616_v20 = vld [vmem:[#allocation2 + $0x48] sm:$0xff]  ;;  %v5624_v18 = vadd.f32 %v620_v27, %v5028_v21  ;;  %v5631_v42 = vsub.f32 %v3460_v41, %v9794_v26  ;;  %v9800_v27 = vunpack.c.l.bf16 %v5567_v25 }
 0x26a   :  { %9779 = vst [vmem:[#allocation261_spill] sm:$0xff] %v5574_v16  ;;  %9782 = vst [vmem:[#allocation263_spill] sm:$0xff] %v5582_v7  ;;  %1797 = vperm.xlu1 %3848, %v5616_v20   ;;  %v5635_v43 = vsub.f32 %v2685_v61, %v9796_v59  ;;  %v5644_v21 = vadd.f32 %v622_v63, %v5060_v28  ;;  %v3229_v41 = vunpack.c.h.bf16 %v5610_v24  ;;  %v5653_v59 = vld [vmem:[#allocation6 + $0x180] sm:$0xff]   ;;  %v5655_v61 = vld [vmem:[#allocation6 + $0x188] sm:$0xff]   ;;  %v9806_v28 = vunpack.c.l.bf16 %v5582_v7 }
 0x26b   :  { %9783 = vst [vmem:[#allocation264_spill] sm:$0xff] %v5584_v2  ;;  %9784 = vst [vmem:[#allocation265_spill] sm:$0xff] %v5590_v11  ;;  %v3462_v11 = vunpack.c.h.bf16 %v5592_v13  ;;  %v5641_v47 = vadd.f32 %v619_v8, %v5009_v40  ;;  %v5646_v14 = vpop.permute.xlu0 %1399  ;;  %v5650_v26 = vsub.f32 %v2694_v51, %v9800_v27  ;;  %v9805_v40 = vld [vmem:[#allocation52_spill] sm:$0xff]  ;;  %v5669_v27 = vld [vmem:[#allocation6 + $0x2a0] sm:$0xff]   ;;  %1873 = vperm.xlu0 %3849, %v5245_v6  }
 0x26c   :  { %9785 = vst [vmem:[#allocation266_spill] sm:$0xff] %v5592_v13  ;;  %9787 = vst [vmem:[#allocation267_spill] sm:$0xff] %v5596_v58  ;;  %v5627_v58 = vpop.permute.xlu1 %1355  ;;  %v624_v8 = vmul.f32 %v5414_v5, %v9805_v40  ;;  %v5663_v63 = vsub.f32 %v2918_v49, %v9806_v28  ;;  %v5671_v52 = vld [vmem:[#allocation2 + $0x58] sm:$0xff]  ;;  %v5680_v40 = vld [vmem:[#allocation6 + $0x2b0] sm:$0xff]   ;;  %v9815_v49 = vunpack.c.l.bf16 %v5600_v50 }
 0x26d   :  { %9788 = vst [vmem:[#allocation268_spill] sm:$0xff] %v5600_v50  ;;  %9791 = vst [vmem:[#allocation49_spill] sm:$0xff] %v5606_v4  ;;  %v5638_v4 = vld [vmem:[#allocation6 + $0x158] sm:$0xff]   ;;  %v5678_v25 = vld [vmem:[#allocation6 + $0x2a8] sm:$0xff]   ;;  %v2911_v50 = vunpack.c.h.bf16 %v5655_v61  ;;  %v3240_v34 = vunpack.c.h.bf16 %v5680_v40 }
 0x26e   :  { %9792 = vst [vmem:[#allocation50_spill] sm:$0xff] %v5610_v24  ;;  %9793 = vst [vmem:[#allocation269_spill] sm:$0xff] %v5627_v58  ;;  %v621_v58 = vmul.f32 %v5414_v5, %v9804_v19  ;;  %1805 = vperm.xlu1 %3848, %v5671_v52   ;;  %v5684_v28 = vsub.f32 %v2909_v1, %v9815_v49  ;;  %v5691_v7 = vld [vmem:[#allocation6 + $0x2b8] sm:$0xff]   ;;  %v5697_v1 = vld [vmem:[#allocation6 + $0x190] sm:$0xff]  }
 0x26f   :  { %9795 = vst [vmem:[#allocation270_spill] sm:$0xff] %v5631_v42  ;;  %9797 = vst [vmem:[#allocation271_spill] sm:$0xff] %v5635_v43  ;;  %v9811_v43 = vunpack.c.l.bf16 %v5592_v13  ;;  %v9820_v49 = vld [vmem:[#allocation53_spill] sm:$0xff]  ;;  %v2920_v13 = vunpack.c.h.bf16 %v5678_v25  ;;  %v5722_v42 = vadd.f32 %v624_v8, %v5128_v31  ;;  %1881 = vperm.xlu0 %3849, %v5312_v17   ;;  %v5808_v17 = vld [vmem:[#allocation6 + $0x328] sm:$0xff]  }
 0x270   :  { %9798 = vst [vmem:[#allocation272_spill] sm:$0xff] %v5638_v4  ;;  %9799 = vst [vmem:[#allocation273_spill] sm:$0xff] %v5646_v14  ;;  %v9808_v14 = vunpack.c.l.bf16 %v5584_v2  ;;  %v5689_v2 = vpop.permute.xlu1 %1363  ;;  %v5747_v6 = vld [vmem:[#allocation6 + $0x2e0] sm:$0xff]  }
 0x271   :  { %9801 = vst [vmem:[#allocation274_spill] sm:$0xff] %v5650_v26  ;;  %9802 = vst [vmem:[#allocation275_spill] sm:$0xff] %v5653_v59  ;;  %v5676_v19 = vsub.f32 %v3462_v11, %v9811_v43  ;;  %v2687_v43 = vunpack.c.h.bf16 %v5653_v59  ;;  %v2696_v11 = vunpack.c.h.bf16 %v5669_v27  ;;  %v5711_v26 = vld [vmem:[#allocation2 + $0x68] sm:$0xff] }
 0x272   :  { %9803 = vst [vmem:[#allocation276_spill] sm:$0xff] %v5655_v61  ;;  %9807 = vst [vmem:[#allocation51_spill] sm:$0xff] %v5663_v63  ;;  %v5667_v51 = vsub.f32 %v3238_v56, %v9808_v14  ;;  %v3453_v14 = vunpack.c.h.bf16 %v5638_v4  ;;  %v623_v56 = vmul.f32 %v5414_v5, %v9820_v49  ;;  %1813 = vperm.xlu1 %3848, %v5711_v26   ;;  %v3464_v49 = vunpack.c.h.bf16 %v5691_v7  ;;  %v9823_v63 = vld [vmem:[#allocation55_spill] sm:$0xff] }
 0x273   :  { %9810 = vst [vmem:[#allocation277_spill] sm:$0xff] %v5669_v27  ;;  %9812 = vst [vmem:[#allocation278_spill] sm:$0xff] %v5676_v19  ;;  %v5703_v19 = vpop.permute.xlu0 %1407  ;;  %v625_v16 = vmul.f32 %v5414_v5, %v9823_v63  ;;  %v9832_v63 = vunpack.c.l.bf16 %v5653_v59 }
 0x274   :  { %9809 = vst [vmem:[#allocation52_spill] sm:$0xff] %v5667_v51  ;;  %9813 = vst [vmem:[#allocation279_spill] sm:$0xff] %v5678_v25  ;;  %v5719_v51 = vadd.f32 %v621_v58, %v5031_v44  ;;  %v5727_v55 = vpop.permute.xlu1 %1371  ;;  %v5736_v15 = vadd.f32 %v623_v56, %v5073_v10  ;;  %v9829_v58 = vunpack.c.l.bf16 %v5638_v4  ;;  %v9835_v10 = vunpack.c.l.bf16 %v5669_v27  ;;  %v5821_v4 = vld [vmem:[#allocation2 + $0x88] sm:$0xff] }
 0x275   :  { %9814 = vst [vmem:[#allocation280_spill] sm:$0xff] %v5680_v40  ;;  %9816 = vst [vmem:[#allocation281_spill] sm:$0xff] %v5684_v28  ;;  %v9821_v28 = vld [vmem:[#allocation54_spill] sm:$0xff] }
 0x276   :  { %9817 = vst [vmem:[#allocation282_spill] sm:$0xff] %v5689_v2  ;;  %9818 = vst [vmem:[#allocation283_spill] sm:$0xff] %v5691_v7  ;;  %v626_v57 = vmul.f32 %v5414_v5, %v9821_v28  ;;  %v9825_v28 = vunpack.c.l.bf16 %v5610_v24  ;;  %v5733_v2 = vld [vmem:[#allocation6 + $0x198] sm:$0xff]   ;;  %v5745_v8 = vsub.f32 %v3453_v14, %v9829_v58  ;;  %v5757_v56 = vsub.f32 %v2696_v11, %v9835_v10  ;;  %v5767_v58 = vld [vmem:[#allocation6 + $0x2e8] sm:$0xff]  }
 0x277   :  { %9819 = vst [vmem:[#allocation284_spill] sm:$0xff] %v5697_v1  ;;  %9822 = vst [vmem:[#allocation53_spill] sm:$0xff] %v5703_v19  ;;  %v3231_v19 = vunpack.c.h.bf16 %v5697_v1  ;;  %v5741_v31 = vpop.permute.xlu0 %1415  ;;  %v9844_v11 = vunpack.c.l.bf16 %v5691_v7  ;;  %v9126_v7 = vmov 5  }
 0x278   :  { %9824 = vst [vmem:[#allocation54_spill] sm:$0xff] %v5727_v55  ;;  %v5731_v32 = vsub.f32 %v3229_v41, %v9825_v28  ;;  %9827 = vst [vmem:[#allocation285_spill] sm:$0xff] %v5733_v2  ;;  %v5739_v44 = vadd.f32 %v626_v57, %v5144_v12  ;;  %v5751_v41 = vsub.f32 %v2687_v43, %v9832_v63  ;;  %v5753_v28 = vld [vmem:[#allocation6 + $0x1c0] sm:$0xff]   ;;  %v9837_v12 = vunpack.c.l.bf16 %v5678_v25  ;;  %v5773_v63 = vld [vmem:[#allocation2 + $0x78] sm:$0xff]  ;;  %v5794_v59 = vpop.permute.xlu1 %1379 }
 0x279   :  { %9828 = vst [vmem:[#allocation286_spill] sm:$0xff] %v5741_v31  ;;  %9830 = vst [vmem:[#allocation287_spill] sm:$0xff] %v5745_v8  ;;  %v9839_v31 = vunpack.c.l.bf16 %v5680_v40  ;;  %v9842_v55 = vunpack.c.l.bf16 %v5655_v61  ;;  %1821 = vperm.xlu1 %3848, %v5773_v63   ;;  %v5778_v10 = vsub.f32 %v3464_v49, %v9844_v11  ;;  %v627_v49 = vmul.f32 %v5414_v5, %v4490_v36  ;;  %v5834_v25 = vld [vmem:[#allocation6 + $0x1d0] sm:$0xff]  }
 0x27a   :  { %9826 = vst [vmem:[#allocation55_spill] sm:$0xff] %v5731_v32  ;;  %9831 = vst [vmem:[#allocation288_spill] sm:$0xff] %v5747_v6  ;;  %v5761_v57 = vsub.f32 %v2920_v13, %v9837_v12  ;;  %v5780_v13 = vld [vmem:[#allocation6 + $0x2f0] sm:$0xff]   ;;  %v5782_v12 = vld [vmem:[#allocation6 + $0x2f8] sm:$0xff]   ;;  %v629_v61 = vmul.f32 %v5414_v5, %v4497_v33  ;;  %3850 = vset.pattern.permute.xlu0 %v9126_v7  ;;  %v2924_v32 = vunpack.c.h.bf16 %v5808_v17 }
 0x27b   :  { %9833 = vst [vmem:[#allocation289_spill] sm:$0xff] %v5751_v41  ;;  %9834 = vst [vmem:[#allocation290_spill] sm:$0xff] %v5753_v28  ;;  %v5765_v14 = vsub.f32 %v3240_v34, %v9839_v31  ;;  %v5771_v43 = vsub.f32 %v2911_v50, %v9842_v55  ;;  %v9848_v34 = vunpack.c.l.bf16 %v5697_v1  ;;  %v3455_v50 = vunpack.c.h.bf16 %v5733_v2  ;;  %v5799_v1 = vld [vmem:[#allocation6 + $0x1c8] sm:$0xff]   ;;  %v5817_v41 = vld [vmem:[#allocation6 + $0x338] sm:$0xff]   ;;  %1926 = vperm.xlu0 %3850, %v5369_v29  }
 0x27c   :  { %9836 = vst [vmem:[#allocation291_spill] sm:$0xff] %v5757_v56  ;;  %9838 = vst [vmem:[#allocation292_spill] sm:$0xff] %v5761_v57  ;;  %v5791_v55 = vadd.f32 %v625_v16, %v5131_v60  ;;  %v2922_v60 = vunpack.c.h.bf16 %v5767_v58  ;;  %v5806_v16 = vld [vmem:[#allocation6 + $0x320] sm:$0xff]   ;;  %v3466_v24 = vunpack.c.h.bf16 %v5782_v12  ;;  %v2913_v11 = vunpack.c.h.bf16 %v5799_v1 }
 0x27d   :  { %9840 = vst [vmem:[#allocation293_spill] sm:$0xff] %v5765_v14  ;;  %9841 = vst [vmem:[#allocation294_spill] sm:$0xff] %v5767_v58  ;;  %v5786_v31 = vsub.f32 %v3231_v19, %v9848_v34  ;;  %v5801_v19 = vpop.permute.xlu0 %1423  ;;  %v2698_v34 = vunpack.c.h.bf16 %v5747_v6  ;;  %1829 = vperm.xlu1 %3848, %v5821_v4   ;;  %v2700_v8 = vunpack.c.h.bf16 %v5806_v16  ;;  %v9860_v14 = vld [vmem:[#allocation59_spill] sm:$0xff]  ;;  %v9862_v56 = vunpack.c.l.bf16 %v5747_v6 }
 0x27e   :  { %9843 = vst [vmem:[#allocation295_spill] sm:$0xff] %v5771_v43  ;;  %9845 = vst [vmem:[#allocation296_spill] sm:$0xff] %v5778_v10  ;;  %v2689_v43 = vunpack.c.h.bf16 %v5753_v28  ;;  %v9859_v10 = vld [vmem:[#allocation187_spill] sm:$0xff]  ;;  %v631_v33 = vmul.f32 %v5414_v5, %v9860_v14  ;;  %v9864_v29 = vunpack.c.l.bf16 %v5767_v58  ;;  %v9868_v14 = vunpack.c.l.bf16 %v5782_v12 }
 0x27f   :  { %9846 = vst [vmem:[#allocation297_spill] sm:$0xff] %v5780_v13  ;;  %9847 = vst [vmem:[#allocation298_spill] sm:$0xff] %v5782_v12  ;;  %v5842_v40 = vadd.f32 %v627_v49, %v9859_v10  ;;  %v5850_v45 = vsub.f32 %v2698_v34, %v9862_v56  ;;  %v9866_v10 = vunpack.c.l.bf16 %v5780_v13  ;;  %v3233_v56 = vunpack.c.h.bf16 %v5834_v25  ;;  %v5869_v34 = vld [vmem:[#allocation6 + $0x1d8] sm:$0xff]   ;;  %1938 = vperm.xlu0 %3850, %v5475_v46  }
 0x280   :  { %9849 = vst [vmem:[#allocation299_spill] sm:$0xff] %v5786_v31  ;;  %9850 = vst [vmem:[#allocation300_spill] sm:$0xff] %v5794_v59  ;;  %v3242_v59 = vunpack.c.h.bf16 %v5780_v13  ;;  %v5828_v31 = vpop.permute.xlu1 %1387  ;;  %v5854_v36 = vsub.f32 %v2922_v60, %v9864_v29  ;;  %v5865_v7 = vsub.f32 %v3466_v24, %v9868_v14  ;;  %v5871_v60 = vld [vmem:[#allocation6 + $0x360] sm:$0xff]   ;;  %v9872_v29 = vld [vmem:[#allocation36_spill] sm:$0xff]  ;;  %v9876_v24 = vunpack.c.l.bf16 %v5806_v16 }
 0x281   :  { %9851 = vst [vmem:[#allocation301_spill] sm:$0xff] %v5799_v1  ;;  %9852 = vst [vmem:[#allocation302_spill] sm:$0xff] %v5801_v19  ;;  %v5815_v19 = vld [vmem:[#allocation6 + $0x330] sm:$0xff]   ;;  %v5846_v57 = vpop.permute.xlu0 %1500  ;;  %1837 = vperm.xlu1 %3848, %v5856_v3   ;;  %v5874_v58 = vadd.f32 %v629_v61, %v9872_v29  ;;  %v5890_v13 = vld [vmem:[#allocation6 + $0x368] sm:$0xff]   ;;  %v9881_v61 = vunpack.c.l.bf16 %v5808_v17  ;;  %v5914_v46 = vadd.f32 %v631_v33, %v5267_v0  ;;  %v2702_v33 = vunpack.c.h.bf16 %v5871_v60 }
 0x282   :  { %9853 = vst [vmem:[#allocation303_spill] sm:$0xff] %v5806_v16  ;;  %9854 = vst [vmem:[#allocation304_spill] sm:$0xff] %v5808_v17  ;;  %v3244_v27 = vunpack.c.h.bf16 %v5815_v19  ;;  %v5861_v49 = vsub.f32 %v3242_v59, %v9866_v10  ;;  %v9874_v59 = vunpack.c.l.bf16 %v5733_v2  ;;  %v5884_v14 = vsub.f32 %v2700_v8, %v9876_v24  ;;  %v5953_v2 = vld [vmem:[#allocation6 + $0x3a8] sm:$0xff]   ;;  %v9902_v17 = vld [vmem:[#allocation63_spill] sm:$0xff] }
 0x283   :  { %9855 = vst [vmem:[#allocation305_spill] sm:$0xff] %v5815_v19  ;;  %9856 = vst [vmem:[#allocation306_spill] sm:$0xff] %v5817_v41  ;;  %v5895_v29 = vsub.f32 %v2924_v32, %v9881_v61  ;;  %v9887_v24 = vunpack.c.l.bf16 %v5799_v1  ;;  %v5921_v61 = vld [vmem:[#allocation6 + $0x200] sm:$0xff]   ;;  %v5935_v1 = vld [vmem:[#allocation6 + $0x210] sm:$0xff]   ;;  %1946 = vperm.xlu0 %3850, %v5516_v9  }
 0x284   :  { %9857 = vst [vmem:[#allocation307_spill] sm:$0xff] %v5828_v31  ;;  %9858 = vst [vmem:[#allocation308_spill] sm:$0xff] %v5834_v25  ;;  %v3468_v31 = vunpack.c.h.bf16 %v5817_v41  ;;  %v5876_v6 = vpop.permute.xlu1 %1395  ;;  %v5880_v10 = vsub.f32 %v3455_v50, %v9874_v59  ;;  %v9885_v59 = vunpack.c.l.bf16 %v5817_v41  ;;  %v3235_v9 = vunpack.c.h.bf16 %v5935_v1 }
 0x285   :  { %9861 = vst [vmem:[#allocation187_spill] sm:$0xff] %v5846_v57  ;;  %9863 = vst [vmem:[#allocation59_spill] sm:$0xff] %v5850_v45  ;;  %v9878_v57 = vunpack.c.l.bf16 %v5753_v28  ;;  %v5911_v28 = vld [vmem:[#allocation6 + $0x378] sm:$0xff]   ;;  %v5916_v32 = vpop.permute.xlu0 %1512 }
 0x286   :  { %9865 = vst [vmem:[#allocation309_spill] sm:$0xff] %v5854_v36  ;;  %9867 = vst [vmem:[#allocation310_spill] sm:$0xff] %v5861_v49  ;;  %v5903_v8 = vsub.f32 %v3468_v31, %v9885_v59  ;;  %v5923_v59 = vld [vmem:[#allocation6 + $0x208] sm:$0xff]   ;;  %v9897_v31 = vld [vmem:[#allocation61_spill] sm:$0xff] }
 0x287   :  { %9869 = vst [vmem:[#allocation311_spill] sm:$0xff] %v5865_v7  ;;  %9870 = vst [vmem:[#allocation312_spill] sm:$0xff] %v5869_v34  ;;  %v5888_v12 = vsub.f32 %v2689_v43, %v9878_v57  ;;  %v5907_v57 = vsub.f32 %v2913_v11, %v9887_v24  ;;  %v5909_v43 = vld [vmem:[#allocation6 + $0x370] sm:$0xff]   ;;  %v5925_v11 = vld [vmem:[#allocation2 + $0xa8] sm:$0xff]  ;;  %v9894_v24 = vunpack.c.l.bf16 %v5834_v25  ;;  %v633_v41 = vmul.f32 %v5414_v5, %v9897_v31 }
 0x288   :  { %9871 = vst [vmem:[#allocation313_spill] sm:$0xff] %v5871_v60  ;;  %9873 = vst [vmem:[#allocation36_spill] sm:$0xff] %v5876_v6  ;;  %v9883_v6 = vunpack.c.l.bf16 %v5815_v19  ;;  %1845 = vperm.xlu1 %3848, %v5925_v11   ;;  %v5939_v19 = vpop.permute.xlu1 %1403  ;;  %v3246_v16 = vunpack.c.h.bf16 %v5909_v43  ;;  %v5946_v25 = vld [vmem:[#allocation6 + $0x3a0] sm:$0xff]   ;;  %v2691_v31 = vunpack.c.h.bf16 %v5921_v61  ;;  %v5981_v36 = vld [vmem:[#allocation6 + $0x3b0] sm:$0xff]   ;;  %1954 = vperm.xlu0 %3850, %v5569_v62   ;;  %v9918_v62 = vunpack.c.l.bf16 %v5921_v61 }
 0x289   :  { %9875 = vst [vmem:[#allocation314_spill] sm:$0xff] %v5880_v10  ;;  %9877 = vst [vmem:[#allocation315_spill] sm:$0xff] %v5884_v14  ;;  %v5930_v0 = vsub.f32 %v3233_v56, %v9894_v24  ;;  %v5944_v24 = vld [vmem:[#allocation6 + $0x218] sm:$0xff]   ;;  %v5957_v56 = vpop.permute.xlu0 %1520 }
 0x28a   :  { %9879 = vst [vmem:[#allocation316_spill] sm:$0xff] %v5888_v12  ;;  %9880 = vst [vmem:[#allocation317_spill] sm:$0xff] %v5890_v13  ;;  %v5899_v50 = vsub.f32 %v3244_v27, %v9883_v6  ;;  %v3457_v6 = vunpack.c.h.bf16 %v5869_v34  ;;  %v3470_v27 = vunpack.c.h.bf16 %v5911_v28  ;;  %v2915_v12 = vunpack.c.h.bf16 %v5923_v59  ;;  %v5999_v49 = vld [vmem:[#allocation6 + $0x3b8] sm:$0xff]  }
 0x28b   :  { %9882 = vst [vmem:[#allocation318_spill] sm:$0xff] %v5895_v29  ;;  %9886 = vst [vmem:[#allocation320_spill] sm:$0xff] %v5903_v8  ;;  %v9907_v8 = vunpack.c.l.bf16 %v5871_v60  ;;  %v5984_v29 = vadd.f32 %v633_v41, %v5270_v48  ;;  %v6008_v41 = vsub.f32 %v2691_v31, %v9918_v62  ;;  %v9927_v31 = vunpack.c.l.bf16 %v5944_v24 }
 0x28c   :  { %9884 = vst [vmem:[#allocation319_spill] sm:$0xff] %v5899_v50  ;;  %9888 = vst [vmem:[#allocation321_spill] sm:$0xff] %v5907_v57  ;;  %v635_v57 = vmul.f32 %v5414_v5, %v9902_v17  ;;  %v5962_v50 = vld [vmem:[#allocation2 + $0xb8] sm:$0xff]  ;;  %v2704_v17 = vunpack.c.h.bf16 %v5946_v25  ;;  %v5969_v14 = vpop.permute.xlu1 %1411  ;;  %1962 = vperm.xlu0 %3850, %v5616_v20  }
 0x28d   :  { %9889 = vst [vmem:[#allocation322_spill] sm:$0xff] %v5909_v43  ;;  %9890 = vst [vmem:[#allocation323_spill] sm:$0xff] %v5911_v28  ;;  %1853 = vperm.xlu1 %3848, %v5962_v50   ;;  %v5977_v7 = vsub.f32 %v2702_v33, %v9907_v8  ;;  %v9914_v8 = vunpack.c.l.bf16 %v5911_v28  ;;  %v6004_v48 = vpop.permute.xlu0 %1528  ;;  %v6071_v28 = vld [vmem:[#allocation2 + $0xd8] sm:$0xff] }
 0x28e   :  { %9891 = vst [vmem:[#allocation324_spill] sm:$0xff] %v5916_v32  ;;  %9892 = vst [vmem:[#allocation325_spill] sm:$0xff] %v5921_v61  ;;  %v2926_v32 = vunpack.c.h.bf16 %v5890_v13  ;;  %v6002_v60 = vadd.f32 %v635_v57, %v5283_v39  ;;  %v9926_v39 = vld [vmem:[#allocation65_spill] sm:$0xff] }
 0x28f   :  { %9893 = vst [vmem:[#allocation326_spill] sm:$0xff] %v5923_v59  ;;  %9895 = vst [vmem:[#allocation327_spill] sm:$0xff] %v5930_v0  ;;  %v2928_v0 = vunpack.c.h.bf16 %v5953_v2  ;;  %v5997_v33 = vsub.f32 %v3470_v27, %v9914_v8  ;;  %v6018_v27 = vld [vmem:[#allocation6 + $0x240] sm:$0xff]   ;;  %v6020_v8 = vld [vmem:[#allocation6 + $0x248] sm:$0xff]   ;;  %v637_v57 = vmul.f32 %v5414_v5, %v9926_v39 }
 0x290   :  { %9896 = vst [vmem:[#allocation328_spill] sm:$0xff] %v5935_v1  ;;  %9898 = vst [vmem:[#allocation61_spill] sm:$0xff] %v5939_v19  ;;  %v3459_v19 = vunpack.c.h.bf16 %v5944_v24  ;;  %v6042_v39 = vpop.permute.xlu1 %1419  ;;  %1970 = vperm.xlu0 %3850, %v5671_v52  }
 0x291   :  { %9899 = vst [vmem:[#allocation329_spill] sm:$0xff] %v5944_v24  ;;  %9900 = vst [vmem:[#allocation330_spill] sm:$0xff] %v5946_v25 }
 0x292   :  { %9901 = vst [vmem:[#allocation331_spill] sm:$0xff] %v5953_v2  ;;  %9903 = vst [vmem:[#allocation63_spill] sm:$0xff] %v5957_v56  ;;  %v9905_v56 = vunpack.c.l.bf16 %v5869_v34  ;;  %v6029_v62 = vsub.f32 %v3459_v19, %v9927_v31  ;;  %v3248_v19 = vunpack.c.h.bf16 %v5981_v36  ;;  %v6062_v31 = vpop.permute.xlu0 %1536 }
 0x293   :  { %9904 = vst [vmem:[#allocation332_spill] sm:$0xff] %v5969_v14  ;;  %9908 = vst [vmem:[#allocation334_spill] sm:$0xff] %v5977_v7  ;;  %v9910_v14 = vunpack.c.l.bf16 %v5890_v13 }
 0x294   :  { %v5973_v10 = vsub.f32 %v3457_v6, %v9905_v56  ;;  %9909 = vst [vmem:[#allocation335_spill] sm:$0xff] %v5981_v36  ;;  %v9912_v6 = vunpack.c.l.bf16 %v5909_v43  ;;  %9915 = vst [vmem:[#allocation338_spill] sm:$0xff] %v5997_v33  ;;  %1978 = vperm.xlu0 %3850, %v5711_v26  }
 0x295   :  { %v5989_v34 = vsub.f32 %v2926_v32, %v9910_v14  ;;  %9916 = vst [vmem:[#allocation339_spill] sm:$0xff] %v5999_v49  ;;  %9917 = vst [vmem:[#allocation340_spill] sm:$0xff] %v6004_v48  ;;  %v9920_v14 = vunpack.c.l.bf16 %v5923_v59  ;;  %v6024_v48 = vld [vmem:[#allocation2 + $0xc8] sm:$0xff]  ;;  %v9934_v59 = vunpack.c.l.bf16 %v5953_v2  ;;  %v2917_v2 = vunpack.c.h.bf16 %v6020_v8 }
 0x296   :  { %9906 = vst [vmem:[#allocation333_spill] sm:$0xff] %v5973_v10  ;;  %v5993_v56 = vsub.f32 %v3246_v16, %v9912_v6  ;;  %9919 = vst [vmem:[#allocation341_spill] sm:$0xff] %v6008_v41  ;;  %v9922_v16 = vunpack.c.l.bf16 %v5935_v1  ;;  %1861 = vperm.xlu1 %3848, %v6024_v48   ;;  %v6038_v1 = vld [vmem:[#allocation6 + $0x258] sm:$0xff]   ;;  %v6082_v41 = vpop.permute.xlu1 %1427  ;;  %v9950_v10 = vld [vmem:[#allocation74_spill] sm:$0xff]  ;;  %v6104_v45 = vpop.permute.xlu0 %1544 }
 0x297   :  { %9911 = vst [vmem:[#allocation336_spill] sm:$0xff] %v5989_v34  ;;  %v6012_v32 = vsub.f32 %v2915_v12, %v9920_v14  ;;  %9924 = vst [vmem:[#allocation344_spill] sm:$0xff] %v6018_v27  ;;  %v9929_v12 = vunpack.c.l.bf16 %v5946_v25  ;;  %v6046_v61 = vsub.f32 %v2928_v0, %v9934_v59  ;;  %v2693_v25 = vunpack.c.h.bf16 %v6018_v27  ;;  %v6058_v59 = vld [vmem:[#allocation6 + $0x3e8] sm:$0xff]   ;;  %v9938_v0 = vld [vmem:[#allocation67_spill] sm:$0xff] }
 0x298   :  { %9913 = vst [vmem:[#allocation337_spill] sm:$0xff] %v5993_v56  ;;  %v6016_v6 = vsub.f32 %v3235_v9, %v9922_v16  ;;  %9925 = vst [vmem:[#allocation345_spill] sm:$0xff] %v6020_v8  ;;  %v6036_v16 = vld [vmem:[#allocation6 + $0x250] sm:$0xff]   ;;  %v639_v24 = vmul.f32 %v5414_v5, %v9938_v0  ;;  %v3461_v43 = vunpack.c.h.bf16 %v6038_v1  ;;  %v2930_v33 = vunpack.c.h.bf16 %v6058_v59  ;;  %1986 = vperm.xlu0 %3850, %v5773_v63  }
 0x299   :  { %9921 = vst [vmem:[#allocation342_spill] sm:$0xff] %v6012_v32  ;;  %9928 = vst [vmem:[#allocation65_spill] sm:$0xff] %v6029_v62  ;;  %v6033_v14 = vsub.f32 %v2704_v17, %v9929_v12  ;;  %v3472_v17 = vunpack.c.h.bf16 %v5999_v49  ;;  %v6051_v12 = vld [vmem:[#allocation6 + $0x3e0] sm:$0xff]   ;;  %v6067_v9 = vld [vmem:[#allocation6 + $0x3f0] sm:$0xff]   ;;  %v9945_v56 = vunpack.c.l.bf16 %v5981_v36  ;;  %v9947_v0 = vunpack.c.l.bf16 %v5999_v49 }
 0x29a   :  { %9923 = vst [vmem:[#allocation343_spill] sm:$0xff] %v6016_v6  ;;  %9931 = vst [vmem:[#allocation347_spill] sm:$0xff] %v6036_v16  ;;  %v6040_v6 = vld [vmem:[#allocation4 + $0x9] ss:$0 sm:$0xff]  ;;  %1869 = vperm.xlu1 %3848, %v6071_v28   ;;  %v9943_v32 = vld [vmem:[#allocation69_spill] sm:$0xff] }
 0x29b   :  { %9930 = vst [vmem:[#allocation346_spill] sm:$0xff] %v6033_v14  ;;  %9932 = vst [vmem:[#allocation348_spill] sm:$0xff] %v6038_v1  ;;  %v3237_v14 = vunpack.c.h.bf16 %v6036_v16  ;;  %v9941_v62 = vld [vmem:[#allocation72_spill] sm:$0xff]  ;;  %v641_v20 = vmul.f32 %v5414_v5, %v9943_v32  ;;  %v6089_v34 = vsub.f32 %v3248_v19, %v9945_v56  ;;  %v6093_v7 = vsub.f32 %v3472_v17, %v9947_v0  ;;  %v6116_v49 = vld [vmem:[#allocation6 + $0x288] sm:$0xff]  }
 0x29c   :  { %9933 = vst [vmem:[#allocation349_spill] sm:$0xff] %v6042_v39  ;;  %9935 = vst [vmem:[#allocation350_spill] sm:$0xff] %v6046_v61  ;;  %v811_v39 = vmul.f32 %v6040_v6, %v9941_v62  ;;  %v9942_v61 = vld [vmem:[#allocation215_spill] sm:$0xff]  ;;  %v3250_v32 = vunpack.c.h.bf16 %v6067_v9  ;;  %v814_v52 = vmul.f32 %v6040_v6, %v9950_v10  ;;  %v9952_v56 = vunpack.c.l.bf16 %v6018_v27  ;;  %1994 = vperm.xlu0 %3850, %v5821_v4  }
 0x29d   :  { %9936 = vst [vmem:[#allocation351_spill] sm:$0xff] %v6051_v12  ;;  %9937 = vst [vmem:[#allocation352_spill] sm:$0xff] %v6058_v59  ;;  %v6078_v13 = vadd.f32 %v637_v57, %v9942_v61  ;;  %v6097_v57 = vld [vmem:[#allocation6 + $0x3f8] sm:$0xff]   ;;  %v9954_v17 = vunpack.c.l.bf16 %v6020_v8  ;;  %v6114_v61 = vld [vmem:[#allocation6 + $0x280] sm:$0xff]   ;;  %v9957_v10 = vunpack.c.l.bf16 %v6036_v16  ;;  %v9984_v63 = vunpack.c.l.bf16 %v6116_v49 }
 0x29e   :  { %9939 = vst [vmem:[#allocation67_spill] sm:$0xff] %v6062_v31  ;;  %9940 = vst [vmem:[#allocation353_spill] sm:$0xff] %v6067_v9  ;;  %v2706_v31 = vunpack.c.h.bf16 %v6051_v12  ;;  %v6108_v19 = vsub.f32 %v2693_v25, %v9952_v56  ;;  %v9959_v25 = vunpack.c.l.bf16 %v6038_v1  ;;  %v6134_v8 = vld [vmem:[#allocation6 + $0x290] sm:$0xff]   ;;  %v6145_v1 = vld [vmem:[#allocation6 + $0x298] sm:$0xff]   ;;  %v846_v26 = vadd.f32 %v814_v52, %v5587_v30 }
 0x29f   :  { %9944 = vst [vmem:[#allocation72_spill] sm:$0xff] %v6082_v41  ;;  %9946 = vst [vmem:[#allocation215_spill] sm:$0xff] %v6089_v34  ;;  %v9949_v41 = vld [vmem:[#allocation219_spill] sm:$0xff]  ;;  %v6112_v0 = vsub.f32 %v2917_v2, %v9954_v17  ;;  %v9961_v2 = vunpack.c.l.bf16 %v6051_v12  ;;  %v6170_v12 = vld [vmem:[#allocation2 + $0xf8] sm:$0xff] }
 0x2a0   :  { %9948 = vst [vmem:[#allocation69_spill] sm:$0xff] %v6093_v7  ;;  %v6100_v62 = vadd.f32 %v639_v24, %v9949_v41  ;;  %9951 = vst [vmem:[#allocation219_spill] sm:$0xff] %v6104_v45  ;;  %v843_v24 = vadd.f32 %v811_v39, %v5490_v38  ;;  %v6119_v41 = vld [vmem:[#allocation2 + $0xe8] sm:$0xff]  ;;  %v6124_v45 = vsub.f32 %v3237_v14, %v9957_v10  ;;  %v9964_v27 = vld [vmem:[#allocation223_spill] sm:$0xff]  ;;  %v9966_v39 = vunpack.c.l.bf16 %v6058_v59 }
 0x2a1   :  { %9953 = vst [vmem:[#allocation74_spill] sm:$0xff] %v6108_v19  ;;  %9955 = vst [vmem:[#allocation354_spill] sm:$0xff] %v6112_v0  ;;  %1877 = vperm.xlu1 %3848, %v6119_v41   ;;  %v6128_v56 = vsub.f32 %v3461_v43, %v9959_v25  ;;  %v6132_v17 = vsub.f32 %v2706_v31, %v9961_v2  ;;  %v6137_v38 = vadd.f32 %v641_v20, %v9964_v27  ;;  %v6148_v43 = vpop.permute.xlu1 %1504  ;;  %v6157_v2 = vld [vmem:[#allocation6 + $0x2c0] sm:$0xff]   ;;  %v9974_v14 = vld [vmem:[#allocation71_spill] sm:$0xff] }
 0x2a2   :  { %9956 = vst [vmem:[#allocation355_spill] sm:$0xff] %v6116_v49  ;;  %9958 = vst [vmem:[#allocation356_spill] sm:$0xff] %v6124_v45  ;;  %v6141_v36 = vsub.f32 %v2930_v33, %v9966_v39  ;;  %v3474_v10 = vunpack.c.h.bf16 %v6097_v57  ;;  %v9970_v31 = vunpack.c.l.bf16 %v6067_v9  ;;  %v2695_v20 = vunpack.c.h.bf16 %v6114_v61  ;;  %v6159_v39 = vld [vmem:[#allocation6 + $0x2c8] sm:$0xff]   ;;  %v6168_v27 = vld [vmem:[#allocation6 + $0x2d0] sm:$0xff]   ;;  %2002 = vperm.xlu0 %3850, %v5856_v3  }
 0x2a3   :  { %9960 = vst [vmem:[#allocation357_spill] sm:$0xff] %v6128_v56  ;;  %9962 = vst [vmem:[#allocation358_spill] sm:$0xff] %v6132_v17  ;;  %v643_v59 = vmul.f32 %v5414_v5, %v9974_v14  ;;  %v875_v9 = vfloor.f32 %v843_v24  ;;  %v3239_v33 = vunpack.c.h.bf16 %v6134_v8  ;;  %v3463_v14 = vunpack.c.h.bf16 %v6145_v1  ;;  %v9978_v17 = vld [vmem:[#allocation76_spill] sm:$0xff]  ;;  %v10015_v3 = vld [vmem:[#allocation157_spill] sm:$0xff] }
 0x2a4   :  { %9963 = vst [vmem:[#allocation359_spill] sm:$0xff] %v6134_v8  ;;  %9965 = vst [vmem:[#allocation223_spill] sm:$0xff] %v6137_v38  ;;  %v6152_v25 = vsub.f32 %v3250_v32, %v9970_v31  ;;  %v2919_v32 = vunpack.c.h.bf16 %v6116_v49  ;;  %v2697_v52 = vunpack.c.h.bf16 %v6157_v2  ;;  %v2921_v31 = vunpack.c.h.bf16 %v6159_v39  ;;  %v6189_v0 = vld [vmem:[#allocation6 + $0x2d8] sm:$0xff]  }
 0x2a5   :  { %9967 = vst [vmem:[#allocation360_spill] sm:$0xff] %v6141_v36  ;;  %9968 = vst [vmem:[#allocation361_spill] sm:$0xff] %v6145_v1  ;;  %1885 = vperm.xlu1 %3848, %v6170_v12   ;;  %v816_v56 = vmul.f32 %v6040_v6, %v9978_v17  ;;  %v6185_v45 = vpop.permute.xlu1 %1508  ;;  %v3241_v30 = vunpack.c.h.bf16 %v6168_v27  ;;  %v878_v19 = vfloor.f32 %v846_v26  ;;  %v9982_v7 = vunpack.c.l.bf16 %v6097_v57 }
 0x2a6   :  { %9969 = vst [vmem:[#allocation362_spill] sm:$0xff] %v6148_v43  ;;  %9971 = vst [vmem:[#allocation363_spill] sm:$0xff] %v6152_v25  ;;  %v6164_v43 = vpop.permute.xlu0 %1552  ;;  %v9977_v25 = vld [vmem:[#allocation73_spill] sm:$0xff]  ;;  %v6206_v16 = vadd.f32 %v643_v59, %v5436_v37  ;;  %v9985_v38 = vmov 5   ;;  %v9990_v37 = vunpack.c.l.bf16 %v6157_v2  ;;  %2010 = vperm.xlu0 %3850, %v5925_v11  }
 0x2a7   :  { %9972 = vst [vmem:[#allocation364_spill] sm:$0xff] %v6157_v2  ;;  %9973 = vst [vmem:[#allocation365_spill] sm:$0xff] %v6159_v39  ;;  %v645_v36 = vmul.f32 %v5414_v5, %v9977_v25  ;;  %v6195_v34 = vsub.f32 %v3474_v10, %v9982_v7  ;;  %v9983_v5 = vunpack.c.l.bf16 %v6114_v61  ;;  %v6203_v25 = vsub.f32 %v2919_v32, %v9984_v63  ;;  %v6221_v63 = vld [vmem:[#allocation2 + $0x8] sm:$0xff]  ;;  %v9998_v2 = vld [vmem:[#allocation75_spill] sm:$0xff] }
 0x2a8   :  { %9975 = vst [vmem:[#allocation71_spill] sm:$0xff] %v6164_v43  ;;  %9976 = vst [vmem:[#allocation366_spill] sm:$0xff] %v6168_v27  ;;  %v9987_v7 = vunpack.c.l.bf16 %v6145_v1  ;;  %v910_v59 = vsub.f32 %v846_v26, %v878_v19  ;;  %v812_v1 = vmul.f32 %v6040_v6, %v9998_v2  ;;  %v10004_v2 = vld [vmem:[#allocation16_spill] sm:$0xff] }
 0x2a9   :  { %9979 = vst [vmem:[#allocation73_spill] sm:$0xff] %v6185_v45  ;;  %9980 = vst [vmem:[#allocation76_spill] sm:$0xff] %v6189_v0  ;;  %v6199_v17 = vsub.f32 %v2695_v20, %v9983_v5  ;;  %v907_v45 = vsub.f32 %v843_v24, %v875_v9  ;;  %3851 = vset.pattern.permute.xlu1 %v9985_v38  ;;  %v6217_v20 = vld [vmem:[#allocation6 + $0x300] sm:$0xff]   ;;  %v9989_v5 = vld [vmem:[#allocation78_spill] sm:$0xff]  ;;  %v6226_v9 = vsub.f32 %v2697_v52, %v9990_v37 }
 0x2aa   :  { %v6191_v43 = vpop.permute.xlu0 %1560  ;;  %v6215_v10 = vsub.f32 %v3463_v14, %v9987_v7  ;;  %v818_v32 = vmul.f32 %v6040_v6, %v9989_v5  ;;  %1930 = vperm.xlu1 %3851, %v6221_v63   ;;  %v3465_v24 = vunpack.c.h.bf16 %v6189_v0  ;;  %v6230_v38 = vld [vmem:[#allocation6 + $0x308] sm:$0xff]   ;;  %v6237_v14 = vpop.permute.xlu1 %1516  ;;  %v9994_v7 = vunpack.c.l.bf16 %v6159_v39  ;;  %2018 = vperm.xlu0 %3850, %v5962_v50  }
 0x2ab   :  { %9981 = vst [vmem:[#allocation367_spill] sm:$0xff] %v6191_v43  ;;  %v9986_v43 = vunpack.c.l.bf16 %v6134_v8  ;;  %9991 = vst [vmem:[#allocation78_spill] sm:$0xff] %v6226_v9  ;;  %v9996_v52 = vunpack.c.l.bf16 %v6168_v27  ;;  %v2699_v4 = vunpack.c.h.bf16 %v6217_v20  ;;  %v10003_v27 = vld [vmem:[#allocation13_spill] sm:$0xff]  ;;  %v10009_v9 = vld [vmem:[#allocation28_spill] sm:$0xff] }
 0x2ac   :  { %9988 = vst [vmem:[#allocation368_spill] sm:$0xff] %v6215_v10  ;;  %9992 = vst [vmem:[#allocation369_spill] sm:$0xff] %v6230_v38  ;;  %v6241_v5 = vsub.f32 %v2921_v31, %v9994_v7  ;;  %v10002_v7 = vld [vmem:[#allocation23_spill] sm:$0xff]  ;;  %v850_v26 = vadd.f32 %v818_v32, %v5719_v51  ;;  %v844_v32 = vadd.f32 %v812_v1, %v5524_v23  ;;  %v10018_v51 = vld [vmem:[#allocation158_spill] sm:$0xff] }
 0x2ad   :  { %v6211_v54 = vsub.f32 %v3239_v33, %v9986_v43  ;;  %v6233_v43 = vadd.f32 %v645_v36, %v5439_v22  ;;  %v848_v33 = vadd.f32 %v816_v56, %v5641_v47  ;;  %9993 = vst [vmem:[#allocation370_spill] sm:$0xff] %v6237_v14  ;;  %v6245_v37 = vsub.f32 %v3241_v30, %v9996_v52  ;;  %v6253_v36 = vld [vmem:[#allocation6 + $0x310] sm:$0xff]   ;;  %v10001_v56 = vld [vmem:[#allocation77_spill] sm:$0xff]  ;;  %v10053_v50 = vld [vmem:[#allocation170_spill] sm:$0xff] }
 0x2ae   :  { %9995 = vst [vmem:[#allocation371_spill] sm:$0xff] %v6241_v5  ;;  %v6249_v22 = vpop.permute.xlu0 %1568  ;;  %10000 = vst [vmem:[#allocation373_spill] sm:$0xff] %v6253_v36  ;;  %v813_v31 = vmul.f32 %v6040_v6, %v10001_v56  ;;  %v2739_v14 = vmul.f32 %v10002_v7, %v907_v45  ;;  %v2963_v30 = vmul.f32 %v10003_v27, %v907_v45  ;;  %v10006_v47 = vunpack.c.l.bf16 %v6189_v0  ;;  %v10008_v56 = vld [vmem:[#allocation80_spill] sm:$0xff]  ;;  %v6272_v19 = vpop.permute.xlu1 %1524  ;;  %v10014_v10 = vld [vmem:[#allocation79_spill] sm:$0xff] }
 0x2af   :  { %9997 = vst [vmem:[#allocation372_spill] sm:$0xff] %v6245_v37  ;;  %9999 = vst [vmem:[#allocation75_spill] sm:$0xff] %v6249_v22  ;;  %v3283_v52 = vmul.f32 %v10004_v2, %v907_v45  ;;  %v10005_v22 = vld [vmem:[#allocation233_spill] sm:$0xff]  ;;  %v2923_v37 = vunpack.c.h.bf16 %v6230_v38  ;;  %v880_v5 = vfloor.f32 %v848_v33  ;;  %v820_v7 = vmul.f32 %v6040_v6, %v10008_v56  ;;  %2026 = vperm.xlu0 %3850, %v6024_v48   ;;  %v10068_v48 = vld [vmem:[#allocation24_spill] sm:$0xff] }
 0x2b0   :  { %1934 = vperm.xlu1 %3851, %v10005_v22   ;;  %v6265_v39 = vsub.f32 %v3465_v24, %v10006_v47  ;;  %v3507_v27 = vmul.f32 %v10009_v9, %v907_v45  ;;  %10010 = vst [vmem:[#allocation23_spill] sm:$0xff] %v6272_v19  ;;  %v10011_v22 = vld [vmem:[#allocation159_spill] sm:$0xff]  ;;  %v10012_v24 = vld [vmem:[#allocation160_spill] sm:$0xff]  ;;  %v845_v56 = vadd.f32 %v813_v31, %v5556_v35  ;;  %v10016_v9 = vunpack.c.l.bf16 %v10015_v3  ;;  %v10025_v36 = vld [vmem:[#allocation165_spill] sm:$0xff] }
 0x2b1   :  { %v2742_v2 = vmul.f32 %v10011_v22, %v910_v59  ;;  %v2966_v47 = vmul.f32 %v10012_v24, %v910_v59  ;;  %v815_v45 = vmul.f32 %v6040_v6, %v10014_v10  ;;  %v10019_v8 = vunpack.c.l.bf16 %v10018_v51  ;;  %v10021_v22 = vld [vmem:[#allocation9_spill] sm:$0xff]  ;;  %v6298_v31 = vld [vmem:[#allocation2 + $0x20] sm:$0xff]  ;;  %v10026_v3 = vld [vmem:[#allocation82_spill] sm:$0xff] }
 0x2b2   :  { %10007 = vst [vmem:[#allocation77_spill] sm:$0xff] %v6265_v39  ;;  %v6278_v0 = vpop.permute.xlu0 %1576  ;;  %v6286_v19 = vadd.f32 %v2739_v14, %v10016_v9  ;;  %v882_v1 = vfloor.f32 %v850_v26  ;;  %v10022_v24 = vunpack.c.l.bf16 %v10021_v22  ;;  %v3510_v35 = vmul.f32 %v10025_v36, %v910_v59 }
 0x2b3   :  { %10013 = vst [vmem:[#allocation13_spill] sm:$0xff] %v6278_v0  ;;  %v6290_v23 = vadd.f32 %v2963_v30, %v10019_v8  ;;  %v10024_v0 = vld [vmem:[#allocation161_spill] sm:$0xff]  ;;  %v912_v10 = vsub.f32 %v848_v33, %v880_v5  ;;  %v852_v14 = vadd.f32 %v820_v7, %v5736_v15  ;;  %v822_v8 = vmul.f32 %v6040_v6, %v10026_v3  ;;  %v10027_v30 = vld [vmem:[#allocation12_spill] sm:$0xff] }
 0x2b4   :  { %10017 = vst [vmem:[#allocation16_spill] sm:$0xff] %v6286_v19  ;;  %v6294_v49 = vadd.f32 %v3283_v52, %v10022_v24  ;;  %v3286_v39 = vmul.f32 %v10024_v0, %v910_v59  ;;  %1942 = vperm.xlu1 %3851, %v6298_v31   ;;  %v10028_v51 = vunpack.c.l.bf16 %v10027_v30  ;;  %v6309_v52 = vpop.permute.xlu1 %1532  ;;  %v876_v0 = vfloor.f32 %v844_v32  ;;  %v10031_v59 = vld [vmem:[#allocation20_spill] sm:$0xff]  ;;  %v10034_v24 = vld [vmem:[#allocation21_spill] sm:$0xff]  ;;  %2034 = vperm.xlu0 %3850, %v6071_v28  }
 0x2b5   :  { %10020 = vst [vmem:[#allocation233_spill] sm:$0xff] %v6290_v23  ;;  %10030 = vst [vmem:[#allocation159_spill] sm:$0xff] %v6309_v52  ;;  %v10032_v36 = vunpack.c.l.bf16 %v10031_v59  ;;  %v10035_v33 = vunpack.c.l.bf16 %v10034_v24  ;;  %v10038_v7 = vunpack.c.l.bf16 %v6217_v20  ;;  %v847_v11 = vadd.f32 %v815_v45, %v5559_v53  ;;  %v10041_v24 = vld [vmem:[#allocation14_spill] sm:$0xff]  ;;  %v6342_v53 = vld [vmem:[#allocation2 + $0x30] sm:$0xff] }
 0x2b6   :  { %10023 = vst [vmem:[#allocation80_spill] sm:$0xff] %v6294_v49  ;;  %v6306_v9 = vadd.f32 %v3507_v27, %v10028_v51  ;;  %v6319_v15 = vpop.permute.xlu0 %1584  ;;  %v877_v27 = vfloor.f32 %v845_v56  ;;  %v10039_v51 = vunpack.c.l.bf16 %v6230_v38  ;;  %v914_v59 = vsub.f32 %v850_v26, %v882_v1  ;;  %v10047_v1 = vld [vmem:[#allocation167_spill] sm:$0xff] }
 0x2b7   :  { %v6313_v22 = vadd.f32 %v2742_v2, %v10032_v36  ;;  %v6317_v5 = vadd.f32 %v2966_v47, %v10035_v33  ;;  %10037 = vst [vmem:[#allocation157_spill] sm:$0xff] %v6319_v15  ;;  %v6323_v3 = vsub.f32 %v2699_v4, %v10038_v7  ;;  %v10040_v36 = vld [vmem:[#allocation81_spill] sm:$0xff]  ;;  %v10042_v33 = vunpack.c.l.bf16 %v10041_v24 }
 0x2b8   :  { %10029 = vst [vmem:[#allocation28_spill] sm:$0xff] %v6306_v9  ;;  %v6330_v2 = vsub.f32 %v2923_v37, %v10039_v51  ;;  %v817_v47 = vmul.f32 %v6040_v6, %v10040_v36  ;;  %v10044_v4 = vld [vmem:[#allocation17_spill] sm:$0xff]  ;;  %1950 = vperm.xlu1 %3851, %v6342_v53   ;;  %v884_v45 = vfloor.f32 %v852_v14  ;;  %v854_v37 = vadd.f32 %v822_v8, %v5791_v55 }
 0x2b9   :  { %10033 = vst [vmem:[#allocation160_spill] sm:$0xff] %v6313_v22  ;;  %10036 = vst [vmem:[#allocation79_spill] sm:$0xff] %v6317_v5  ;;  %v6336_v15 = vadd.f32 %v3286_v39, %v10042_v33  ;;  %v10045_v7 = vunpack.c.l.bf16 %v10044_v4  ;;  %v2744_v51 = vmul.f32 %v10047_v1, %v912_v10  ;;  %v6350_v39 = vpop.permute.xlu1 %1540  ;;  %v6352_v36 = vsub.f32 %v844_v32, %v876_v0  ;;  %v10050_v4 = vld [vmem:[#allocation168_spill] sm:$0xff]  ;;  %v10052_v1 = vld [vmem:[#allocation169_spill] sm:$0xff] }
 0x2ba   :  { %10048 = vst [vmem:[#allocation161_spill] sm:$0xff] %v6350_v39  ;;  %v6359_v55 = vpop.permute.xlu0 %1592  ;;  %v6361_v8 = vsub.f32 %v845_v56, %v877_v27  ;;  %v879_v26 = vfloor.f32 %v847_v11  ;;  %v3288_v30 = vmul.f32 %v10052_v1, %v912_v10  ;;  %v3512_v49 = vmul.f32 %v10053_v50, %v912_v10  ;;  %v10055_v9 = vld [vmem:[#allocation181_spill] sm:$0xff]  ;;  %v6370_v22 = vld [vmem:[#allocation2 + $0x40] sm:$0xff]  ;;  %2042 = vperm.xlu0 %3850, %v6119_v41  }
 0x2bb   :  { %10043 = vst [vmem:[#allocation158_spill] sm:$0xff] %v6336_v15  ;;  %v6340_v52 = vadd.f32 %v3510_v35, %v10045_v7  ;;  %v10049_v35 = vld [vmem:[#allocation83_spill] sm:$0xff]  ;;  %v2968_v7 = vmul.f32 %v10050_v4, %v912_v10  ;;  %10051 = vst [vmem:[#allocation165_spill] sm:$0xff] %v6359_v55  ;;  %v849_v32 = vadd.f32 %v817_v47, %v5624_v18  ;;  %v886_v27 = vfloor.f32 %v854_v37  ;;  %v10056_v4 = vld [vmem:[#allocation84_spill] sm:$0xff] }
 0x2bc   :  { %v819_v24 = vmul.f32 %v6040_v6, %v10049_v35  ;;  %v10054_v35 = vld [vmem:[#allocation33_spill] sm:$0xff]  ;;  %v2970_v33 = vmul.f32 %v10055_v9, %v914_v59  ;;  %1958 = vperm.xlu1 %3851, %v6370_v22   ;;  %v916_v56 = vsub.f32 %v852_v14, %v884_v45  ;;  %v824_v1 = vmul.f32 %v6040_v6, %v10056_v4  ;;  %v10057_v55 = vld [vmem:[#allocation18_spill] sm:$0xff]  ;;  %v10061_v9 = vld [vmem:[#allocation19_spill] sm:$0xff] }
 0x2bd   :  { %10046 = vst [vmem:[#allocation9_spill] sm:$0xff] %v6340_v52  ;;  %v2746_v39 = vmul.f32 %v10054_v35, %v914_v59  ;;  %v10058_v10 = vunpack.c.l.bf16 %v10057_v55  ;;  %v6380_v18 = vpop.permute.xlu1 %1548  ;;  %v10062_v35 = vunpack.c.l.bf16 %v10061_v9  ;;  %v10064_v15 = vld [vmem:[#allocation182_spill] sm:$0xff]  ;;  %v10065_v45 = vld [vmem:[#allocation183_spill] sm:$0xff]  ;;  %v6391_v4 = vsub.f32 %v847_v11, %v879_v26 }
 0x2be   :  { %10060 = vst [vmem:[#allocation12_spill] sm:$0xff] %v6380_v18  ;;  %v851_v47 = vadd.f32 %v819_v24, %v5644_v21  ;;  %v3290_v14 = vmul.f32 %v10064_v15, %v914_v59  ;;  %v3514_v52 = vmul.f32 %v10065_v45, %v914_v59  ;;  %v6389_v5 = vpop.permute.xlu0 %1600  ;;  %v10071_v21 = vld [vmem:[#allocation25_spill] sm:$0xff]  ;;  %v10075_v59 = vld [vmem:[#allocation166_spill] sm:$0xff]  ;;  %v10078_v11 = vld [vmem:[#allocation171_spill] sm:$0xff]  ;;  %2050 = vperm.xlu0 %3850, %v6170_v12  }
 0x2bf   :  { %v6377_v50 = vadd.f32 %v2744_v51, %v10058_v10  ;;  %v6385_v0 = vadd.f32 %v2968_v7, %v10062_v35  ;;  %10066 = vst [vmem:[#allocation21_spill] sm:$0xff] %v6389_v5  ;;  %v10067_v51 = vld [vmem:[#allocation85_spill] sm:$0xff]  ;;  %v10069_v10 = vunpack.c.l.bf16 %v10068_v48  ;;  %v10072_v24 = vunpack.c.l.bf16 %v10071_v21  ;;  %v10074_v35 = vld [vmem:[#allocation86_spill] sm:$0xff]  ;;  %v10081_v48 = vld [vmem:[#allocation184_spill] sm:$0xff] }
 0x2c0   :  { %v821_v55 = vmul.f32 %v6040_v6, %v10067_v51  ;;  %v881_v7 = vfloor.f32 %v849_v32  ;;  %v826_v15 = vmul.f32 %v6040_v6, %v10074_v35  ;;  %v10076_v45 = vunpack.c.l.bf16 %v10075_v59  ;;  %v6413_v51 = vld [vmem:[#allocation2 + $0x50] sm:$0xff]  ;;  %v10084_v59 = vld [vmem:[#allocation172_spill] sm:$0xff]  ;;  %v10123_v12 = vld [vmem:[#allocation186_spill] sm:$0xff] }
 0x2c1   :  { %10059 = vst [vmem:[#allocation82_spill] sm:$0xff] %v6377_v50  ;;  %10063 = vst [vmem:[#allocation20_spill] sm:$0xff] %v6385_v0  ;;  %v6397_v18 = vadd.f32 %v3288_v30, %v10069_v10  ;;  %v6401_v9 = vadd.f32 %v3512_v49, %v10072_v24  ;;  %v10079_v26 = vunpack.c.l.bf16 %v10078_v11  ;;  %1966 = vperm.xlu1 %3851, %v6413_v51   ;;  %v10082_v21 = vld [vmem:[#allocation189_spill] sm:$0xff]  ;;  %v6420_v35 = vpop.permute.xlu1 %1556  ;;  %v10153_v50 = vld [vmem:[#allocation179_spill] sm:$0xff] }
 0x2c2   :  { %v6407_v5 = vadd.f32 %v2746_v39, %v10076_v45  ;;  %v918_v30 = vsub.f32 %v854_v37, %v886_v27  ;;  %v856_v49 = vadd.f32 %v824_v1, %v5842_v40  ;;  %v2748_v10 = vmul.f32 %v10081_v48, %v916_v56  ;;  %10083 = vst [vmem:[#allocation83_spill] sm:$0xff] %v6420_v35  ;;  %v10087_v11 = vld [vmem:[#allocation173_spill] sm:$0xff]  ;;  %v10090_v37 = vld [vmem:[#allocation190_spill] sm:$0xff]  ;;  %v6431_v40 = vpop.permute.xlu0 %1608  ;;  %v10092_v48 = vld [vmem:[#allocation87_spill] sm:$0xff] }
 0x2c3   :  { %10070 = vst [vmem:[#allocation81_spill] sm:$0xff] %v6397_v18  ;;  %10073 = vst [vmem:[#allocation14_spill] sm:$0xff] %v6401_v9  ;;  %v6411_v19 = vadd.f32 %v2970_v33, %v10079_v26  ;;  %v2972_v24 = vmul.f32 %v10082_v21, %v916_v56  ;;  %v883_v39 = vfloor.f32 %v851_v47  ;;  %v10085_v45 = vunpack.c.l.bf16 %v10084_v59 }
 0x2c4   :  { %10077 = vst [vmem:[#allocation17_spill] sm:$0xff] %v6407_v5  ;;  %v10088_v26 = vunpack.c.l.bf16 %v10087_v11  ;;  %v3292_v27 = vmul.f32 %v10090_v37, %v916_v56  ;;  %10091 = vst [vmem:[#allocation170_spill] sm:$0xff] %v6431_v40  ;;  %v853_v1 = vadd.f32 %v821_v55, %v5722_v42  ;;  %v823_v28 = vmul.f32 %v6040_v6, %v10092_v48  ;;  %v6446_v40 = vld [vmem:[#allocation2 + $0x60] sm:$0xff] }
 0x2c5   :  { %10080 = vst [vmem:[#allocation167_spill] sm:$0xff] %v6411_v19  ;;  %v6424_v33 = vadd.f32 %v3290_v14, %v10085_v45  ;;  %v6440_v59 = vsub.f32 %v849_v32, %v881_v7  ;;  %v10093_v45 = vld [vmem:[#allocation88_spill] sm:$0xff]  ;;  %1974 = vperm.xlu1 %3851, %v6446_v40   ;;  %v888_v42 = vfloor.f32 %v856_v49  ;;  %v10095_v48 = vld [vmem:[#allocation175_spill] sm:$0xff]  ;;  %v10154_v0 = vunpack.c.l.bf16 %v10153_v50 }
 0x2c6   :  { %v6428_v23 = vadd.f32 %v3514_v52, %v10088_v26  ;;  %v858_v52 = vadd.f32 %v826_v15, %v5874_v58  ;;  %v828_v11 = vmul.f32 %v6040_v6, %v10093_v45  ;;  %v10094_v26 = vld [vmem:[#allocation34_spill] sm:$0xff]  ;;  %v10096_v21 = vunpack.c.l.bf16 %v10095_v48  ;;  %v10098_v32 = vld [vmem:[#allocation176_spill] sm:$0xff]  ;;  %v6460_v15 = vpop.permute.xlu1 %1564  ;;  %v10105_v48 = vld [vmem:[#allocation201_spill] sm:$0xff] }
 0x2c7   :  { %10086 = vst [vmem:[#allocation168_spill] sm:$0xff] %v6424_v33  ;;  %v3516_v37 = vmul.f32 %v10094_v26, %v916_v56  ;;  %v10099_v7 = vunpack.c.l.bf16 %v10098_v32  ;;  %10101 = vst [vmem:[#allocation84_spill] sm:$0xff] %v6460_v15  ;;  %v6462_v56 = vsub.f32 %v851_v47, %v883_v39  ;;  %v10102_v26 = vld [vmem:[#allocation30_spill] sm:$0xff]  ;;  %v885_v32 = vfloor.f32 %v853_v1  ;;  %v10109_v45 = vld [vmem:[#allocation177_spill] sm:$0xff] }
 0x2c8   :  { %10089 = vst [vmem:[#allocation169_spill] sm:$0xff] %v6428_v23  ;;  %v6453_v14 = vadd.f32 %v2748_v10, %v10096_v21  ;;  %v10103_v35 = vunpack.c.l.bf16 %v10102_v26  ;;  %v2750_v10 = vmul.f32 %v10105_v48, %v918_v30  ;;  %v6471_v21 = vpop.permute.xlu0 %1616  ;;  %v10108_v15 = vld [vmem:[#allocation202_spill] sm:$0xff]  ;;  %v890_v39 = vfloor.f32 %v858_v52  ;;  %v6483_v48 = vld [vmem:[#allocation2 + $0x70] sm:$0xff] }
 0x2c9   :  { %v6457_v58 = vadd.f32 %v2972_v24, %v10099_v7  ;;  %10106 = vst [vmem:[#allocation19_spill] sm:$0xff] %v6471_v21  ;;  %v855_v24 = vadd.f32 %v823_v28, %v5739_v44  ;;  %v10107_v7 = vld [vmem:[#allocation89_spill] sm:$0xff]  ;;  %v2974_v47 = vmul.f32 %v10108_v15, %v918_v30  ;;  %v860_v5 = vadd.f32 %v828_v11, %v5914_v46  ;;  %v10113_v44 = vld [vmem:[#allocation90_spill] sm:$0xff] }
 0x2ca   :  { %10097 = vst [vmem:[#allocation33_spill] sm:$0xff] %v6453_v14  ;;  %v6468_v55 = vadd.f32 %v3292_v27, %v10103_v35  ;;  %v825_v41 = vmul.f32 %v6040_v6, %v10107_v7  ;;  %v10110_v33 = vunpack.c.l.bf16 %v10109_v45  ;;  %v10112_v35 = vld [vmem:[#allocation203_spill] sm:$0xff]  ;;  %1982 = vperm.xlu1 %3851, %v6483_v48   ;;  %v920_v21 = vsub.f32 %v856_v49, %v888_v42  ;;  %v10114_v7 = vld [vmem:[#allocation206_spill] sm:$0xff]  ;;  %v6492_v46 = vpop.permute.xlu1 %1572 }
 0x2cb   :  { %10100 = vst [vmem:[#allocation181_spill] sm:$0xff] %v6457_v58  ;;  %v3294_v27 = vmul.f32 %v10112_v35, %v918_v30  ;;  %v830_v28 = vmul.f32 %v6040_v6, %v10113_v44  ;;  %v3518_v23 = vmul.f32 %v10114_v7, %v918_v30  ;;  %10115 = vst [vmem:[#allocation183_spill] sm:$0xff] %v6492_v46  ;;  %v10118_v35 = vld [vmem:[#allocation185_spill] sm:$0xff]  ;;  %v887_v15 = vfloor.f32 %v855_v24  ;;  %v10122_v30 = vld [vmem:[#allocation56_spill] sm:$0xff] }
 0x2cc   :  { %10104 = vst [vmem:[#allocation18_spill] sm:$0xff] %v6468_v55  ;;  %v6480_v26 = vadd.f32 %v3516_v37, %v10110_v33  ;;  %v10116_v33 = vld [vmem:[#allocation91_spill] sm:$0xff]  ;;  %v10117_v37 = vld [vmem:[#allocation92_spill] sm:$0xff]  ;;  %v10119_v49 = vunpack.c.l.bf16 %v10118_v35  ;;  %v6502_v44 = vpop.permute.xlu0 %1624  ;;  %v6504_v19 = vsub.f32 %v853_v1, %v885_v32  ;;  %v857_v7 = vadd.f32 %v825_v41, %v10122_v30 }
 0x2cd   :  { %v827_v11 = vmul.f32 %v6040_v6, %v10116_v33  ;;  %v832_v45 = vmul.f32 %v6040_v6, %v10117_v37  ;;  %10121 = vst [vmem:[#allocation24_spill] sm:$0xff] %v6502_v44  ;;  %v10124_v14 = vunpack.c.l.bf16 %v10123_v12  ;;  %v6511_v58 = vsub.f32 %v858_v52, %v890_v39  ;;  %v10126_v35 = vld [vmem:[#allocation191_spill] sm:$0xff]  ;;  %v10129_v32 = vld [vmem:[#allocation192_spill] sm:$0xff]  ;;  %v10132_v52 = vld [vmem:[#allocation193_spill] sm:$0xff] }
 0x2ce   :  { %10111 = vst [vmem:[#allocation182_spill] sm:$0xff] %v6480_v26  ;;  %v6500_v42 = vadd.f32 %v2750_v10, %v10119_v49  ;;  %v892_v33 = vfloor.f32 %v860_v5  ;;  %v10127_v10 = vunpack.c.l.bf16 %v10126_v35  ;;  %v6519_v44 = vld [vmem:[#allocation2 + $0x80] sm:$0xff]  ;;  %v862_v1 = vadd.f32 %v830_v28, %v5984_v29  ;;  %v10133_v39 = vld [vmem:[#allocation37_spill] sm:$0xff]  ;;  %v10136_v29 = vld [vmem:[#allocation198_spill] sm:$0xff] }
 0x2cf   :  { %v6509_v46 = vadd.f32 %v2974_v47, %v10124_v14  ;;  %1990 = vperm.xlu1 %3851, %v6519_v44   ;;  %v10130_v41 = vunpack.c.l.bf16 %v10129_v32  ;;  %v2740_v47 = vmul.f32 %v10132_v52, %v6352_v36  ;;  %v2964_v30 = vmul.f32 %v10133_v39, %v6352_v36  ;;  %v10135_v35 = vld [vmem:[#allocation57_spill] sm:$0xff]  ;;  %v10150_v26 = vld [vmem:[#allocation178_spill] sm:$0xff] }
 0x2d0   :  { %10120 = vst [vmem:[#allocation85_spill] sm:$0xff] %v6500_v42  ;;  %v6517_v49 = vadd.f32 %v3294_v27, %v10127_v10  ;;  %v9189_v12 = vmov 8   ;;  %v6532_v27 = vpop.permute.xlu1 %1580  ;;  %v859_v10 = vadd.f32 %v827_v11, %v10135_v35  ;;  %v864_v37 = vadd.f32 %v832_v45, %v6002_v60  ;;  %v10138_v39 = vld [vmem:[#allocation93_spill] sm:$0xff]  ;;  %v6547_v11 = vpop.permute.xlu0 %1765  ;;  %v10140_v45 = vld [vmem:[#allocation94_spill] sm:$0xff] }
 0x2d1   :  { %10125 = vst [vmem:[#allocation25_spill] sm:$0xff] %v6509_v46  ;;  %v6525_v14 = vadd.f32 %v3518_v23, %v10130_v41  ;;  %3853 = vset.pattern.permute.xlu0 %v9189_v12  ;;  %10134 = vst [vmem:[#allocation171_spill] sm:$0xff] %v6532_v27  ;;  %v3284_v28 = vmul.f32 %v10136_v29, %v6352_v36  ;;  %v10137_v23 = vld [vmem:[#allocation204_spill] sm:$0xff]  ;;  %v6541_v41 = vsub.f32 %v855_v24, %v887_v15  ;;  %v6555_v24 = vld [vmem:[#allocation2 + $0x90] sm:$0xff] }
 0x2d2   :  { %10128 = vst [vmem:[#allocation86_spill] sm:$0xff] %v6517_v49  ;;  %v3508_v32 = vmul.f32 %v10137_v23, %v6352_v36  ;;  %2127 = vperm.xlu0 %3853, %v6221_v63   ;;  %v889_v52 = vfloor.f32 %v857_v7  ;;  %v829_v12 = vmul.f32 %v6040_v6, %v10138_v39  ;;  %10139 = vst [vmem:[#allocation184_spill] sm:$0xff] %v6547_v11  ;;  %v10141_v29 = vld [vmem:[#allocation224_spill] sm:$0xff]  ;;  %v10142_v23 = vld [vmem:[#allocation225_spill] sm:$0xff]  ;;  %v894_v15 = vfloor.f32 %v862_v1 }
 0x2d3   :  { %10131 = vst [vmem:[#allocation166_spill] sm:$0xff] %v6525_v14  ;;  %v6549_v60 = vsub.f32 %v860_v5, %v892_v33  ;;  %v834_v35 = vmul.f32 %v6040_v6, %v10140_v45  ;;  %v2752_v36 = vmul.f32 %v10141_v29, %v920_v21  ;;  %v2976_v63 = vmul.f32 %v10142_v23, %v920_v21  ;;  %v10143_v27 = vld [vmem:[#allocation162_spill] sm:$0xff]  ;;  %v10146_v5 = vld [vmem:[#allocation163_spill] sm:$0xff] }
 0x2d4   :  { %1998 = vperm.xlu1 %3851, %v6555_v24   ;;  %v10144_v42 = vunpack.c.l.bf16 %v10143_v27  ;;  %v10147_v33 = vunpack.c.l.bf16 %v10146_v5  ;;  %v6568_v45 = vpop.permute.xlu1 %1588  ;;  %v891_v29 = vfloor.f32 %v859_v10  ;;  %v896_v23 = vfloor.f32 %v864_v37  ;;  %v10207_v14 = vld [vmem:[#allocation226_spill] sm:$0xff] }
 0x2d5   :  { %10149 = vst [vmem:[#allocation173_spill] sm:$0xff] %v6568_v45  ;;  %v10151_v18 = vunpack.c.l.bf16 %v10150_v26  ;;  %v6576_v11 = vadd.f32 %v3508_v32, %v10154_v0  ;;  %v6584_v45 = vpop.permute.xlu0 %1777  ;;  %v866_v26 = vadd.f32 %v834_v35, %v6078_v13  ;;  %v10163_v0 = vld [vmem:[#allocation207_spill] sm:$0xff]  ;;  %v10168_v35 = vld [vmem:[#allocation96_spill] sm:$0xff] }
 0x2d6   :  { %v6562_v46 = vadd.f32 %v2740_v47, %v10144_v42  ;;  %v6566_v55 = vadd.f32 %v2964_v30, %v10147_v33  ;;  %2139 = vperm.xlu0 %3853, %v6298_v31   ;;  %v6579_v42 = vsub.f32 %v857_v7, %v889_v52  ;;  %v10156_v47 = vld [vmem:[#allocation58_spill] sm:$0xff]  ;;  %v10157_v30 = vld [vmem:[#allocation41_spill] sm:$0xff]  ;;  %v10158_v33 = vld [vmem:[#allocation227_spill] sm:$0xff]  ;;  %10159 = vst [vmem:[#allocation88_spill] sm:$0xff] %v6584_v45  ;;  %v10164_v50 = vunpack.c.l.bf16 %v10163_v0 }
 0x2d7   :  { %v6572_v9 = vadd.f32 %v3284_v28, %v10151_v18  ;;  %10155 = vst [vmem:[#allocation87_spill] sm:$0xff] %v6576_v11  ;;  %v861_v27 = vadd.f32 %v829_v12, %v10156_v47  ;;  %v3296_v5 = vmul.f32 %v10157_v30, %v920_v21  ;;  %v3520_v39 = vmul.f32 %v10158_v33, %v920_v21  ;;  %v10160_v18 = vld [vmem:[#allocation205_spill] sm:$0xff]  ;;  %v10166_v31 = vld [vmem:[#allocation208_spill] sm:$0xff]  ;;  %v6597_v12 = vld [vmem:[#allocation2 + $0xa0] sm:$0xff] }
 0x2d8   :  { %10145 = vst [vmem:[#allocation189_spill] sm:$0xff] %v6562_v46  ;;  %10148 = vst [vmem:[#allocation172_spill] sm:$0xff] %v6566_v55  ;;  %v10161_v28 = vunpack.c.l.bf16 %v10160_v18  ;;  %v6593_v32 = vadd.f32 %v2976_v63, %v10164_v50  ;;  %v2741_v7 = vmul.f32 %v10166_v31, %v6361_v8  ;;  %2006 = vperm.xlu1 %3851, %v6597_v12   ;;  %v10167_v52 = vld [vmem:[#allocation95_spill] sm:$0xff]  ;;  %v6608_v63 = vpop.permute.xlu1 %1596  ;;  %v10171_v0 = vld [vmem:[#allocation97_spill] sm:$0xff] }
 0x2d9   :  { %10152 = vst [vmem:[#allocation190_spill] sm:$0xff] %v6572_v9  ;;  %v6600_v21 = vsub.f32 %v862_v1, %v894_v15  ;;  %v831_v13 = vmul.f32 %v6040_v6, %v10167_v52  ;;  %v10169_v47 = vld [vmem:[#allocation211_spill] sm:$0xff]  ;;  %10170 = vst [vmem:[#allocation176_spill] sm:$0xff] %v6608_v63  ;;  %v6610_v33 = vsub.f32 %v859_v10, %v891_v29  ;;  %v893_v15 = vfloor.f32 %v861_v27  ;;  %v10172_v31 = vld [vmem:[#allocation209_spill] sm:$0xff] }
 0x2da   :  { %v6589_v49 = vadd.f32 %v2752_v36, %v10161_v28  ;;  %10165 = vst [vmem:[#allocation175_spill] sm:$0xff] %v6593_v32  ;;  %v836_v36 = vmul.f32 %v6040_v6, %v10168_v35  ;;  %v2965_v30 = vmul.f32 %v10169_v47, %v6361_v8  ;;  %v6612_v18 = vsub.f32 %v864_v37, %v896_v23  ;;  %v10175_v10 = vld [vmem:[#allocation210_spill] sm:$0xff]  ;;  %v6629_v23 = vpop.permute.xlu0 %1785  ;;  %v10191_v32 = vld [vmem:[#allocation217_spill] sm:$0xff] }
 0x2db   :  { %2147 = vperm.xlu0 %3853, %v6342_v53   ;;  %v833_v50 = vmul.f32 %v6040_v6, %v10171_v0  ;;  %v10173_v52 = vunpack.c.l.bf16 %v10172_v31  ;;  %v10176_v29 = vunpack.c.l.bf16 %v10175_v10  ;;  %10178 = vst [vmem:[#allocation89_spill] sm:$0xff] %v6629_v23  ;;  %v898_v47 = vfloor.f32 %v866_v26  ;;  %v10179_v28 = vld [vmem:[#allocation98_spill] sm:$0xff]  ;;  %v6639_v31 = vld [vmem:[#allocation2 + $0xb0] sm:$0xff]  ;;  %v10184_v10 = vld [vmem:[#allocation196_spill] sm:$0xff] }
 0x2dc   :  { %10162 = vst [vmem:[#allocation34_spill] sm:$0xff] %v6589_v49  ;;  %v838_v1 = vmul.f32 %v6040_v6, %v10179_v28  ;;  %v10180_v63 = vld [vmem:[#allocation194_spill] sm:$0xff]  ;;  %2014 = vperm.xlu1 %3851, %v6639_v31   ;;  %v10187_v28 = vld [vmem:[#allocation212_spill] sm:$0xff]  ;;  %v6650_v53 = vpop.permute.xlu1 %1604 }
 0x2dd   :  { %v6623_v35 = vadd.f32 %v3296_v5, %v10173_v52  ;;  %v6627_v37 = vadd.f32 %v3520_v39, %v10176_v29  ;;  %v10181_v9 = vunpack.c.l.bf16 %v10180_v63  ;;  %v10183_v5 = vld [vmem:[#allocation60_spill] sm:$0xff]  ;;  %v868_v52 = vadd.f32 %v836_v36, %v6100_v62  ;;  %10188 = vst [vmem:[#allocation203_spill] sm:$0xff] %v6650_v53  ;;  %v10189_v63 = vld [vmem:[#allocation99_spill] sm:$0xff] }
 0x2de   :  { %v863_v39 = vadd.f32 %v831_v13, %v10183_v5  ;;  %v10185_v29 = vunpack.c.l.bf16 %v10184_v10  ;;  %v3285_v46 = vmul.f32 %v10187_v28, %v6361_v8  ;;  %v3509_v13 = vmul.f32 %v10191_v32, %v6361_v8  ;;  %v10192_v62 = vld [vmem:[#allocation239_spill] sm:$0xff]  ;;  %v10193_v5 = vld [vmem:[#allocation62_spill] sm:$0xff]  ;;  %v6668_v53 = vpop.permute.xlu0 %1793 }
 0x2df   :  { %10174 = vst [vmem:[#allocation30_spill] sm:$0xff] %v6623_v35  ;;  %10177 = vst [vmem:[#allocation201_spill] sm:$0xff] %v6627_v37  ;;  %v6637_v0 = vadd.f32 %v2741_v7, %v10181_v9  ;;  %v835_v9 = vmul.f32 %v6040_v6, %v10189_v63  ;;  %v10190_v7 = vld [vmem:[#allocation100_spill] sm:$0xff]  ;;  %v2754_v36 = vmul.f32 %v10192_v62, %v6511_v58  ;;  %2155 = vperm.xlu0 %3853, %v6370_v22   ;;  %v10194_v28 = vld [vmem:[#allocation242_spill] sm:$0xff] }
 0x2e0   :  { %v6646_v11 = vadd.f32 %v2965_v30, %v10185_v29  ;;  %v840_v49 = vmul.f32 %v6040_v6, %v10190_v7  ;;  %v6661_v30 = vsub.f32 %v861_v27, %v893_v15  ;;  %v865_v10 = vadd.f32 %v833_v50, %v10193_v5  ;;  %10195 = vst [vmem:[#allocation90_spill] sm:$0xff] %v6668_v53  ;;  %v10196_v8 = vld [vmem:[#allocation223_spill] sm:$0xff]  ;;  %v10198_v22 = vld [vmem:[#allocation44_spill] sm:$0xff]  ;;  %v10199_v29 = vld [vmem:[#allocation197_spill] sm:$0xff] }
 0x2e1   :  { %10182 = vst [vmem:[#allocation202_spill] sm:$0xff] %v6637_v0  ;;  %v2978_v63 = vmul.f32 %v10194_v28, %v6511_v58  ;;  %v6670_v7 = vsub.f32 %v866_v26, %v898_v47  ;;  %v870_v32 = vadd.f32 %v838_v1, %v10196_v8  ;;  %v10197_v62 = vld [vmem:[#allocation243_spill] sm:$0xff]  ;;  %v3522_v27 = vmul.f32 %v10198_v22, %v6511_v58  ;;  %v6686_v1 = vpop.permute.xlu1 %1612  ;;  %v10203_v8 = vld [vmem:[#allocation64_spill] sm:$0xff]  ;;  %v10223_v0 = vld [vmem:[#allocation101_spill] sm:$0xff] }
 0x2e2   :  { %10186 = vst [vmem:[#allocation177_spill] sm:$0xff] %v6646_v11  ;;  %v3298_v55 = vmul.f32 %v10197_v62, %v6511_v58  ;;  %v6677_v15 = vld [vmem:[#allocation2 + $0xc0] sm:$0xff]  ;;  %v895_v50 = vfloor.f32 %v863_v39  ;;  %v900_v5 = vfloor.f32 %v868_v52  ;;  %v10200_v26 = vunpack.c.l.bf16 %v10199_v29  ;;  %10202 = vst [vmem:[#allocation91_spill] sm:$0xff] %v6686_v1  ;;  %v10204_v58 = vld [vmem:[#allocation200_spill] sm:$0xff] }
 0x2e3   :  { %2022 = vperm.xlu1 %3851, %v6677_v15   ;;  %v867_v62 = vadd.f32 %v835_v9, %v10203_v8  ;;  %v872_v35 = vadd.f32 %v840_v49, %v6206_v16  ;;  %v10205_v22 = vunpack.c.l.bf16 %v10204_v58  ;;  %v10208_v53 = vunpack.c.l.bf16 %v10207_v14  ;;  %2163 = vperm.xlu0 %3853, %v6413_v51   ;;  %v10210_v29 = vld [vmem:[#allocation228_spill] sm:$0xff]  ;;  %v10213_v1 = vld [vmem:[#allocation234_spill] sm:$0xff]  ;;  %v10214_v16 = vld [vmem:[#allocation235_spill] sm:$0xff]  ;;  %v6707_v8 = vpop.permute.xlu0 %1801 }
 0x2e4   :  { %v6684_v47 = vadd.f32 %v3285_v46, %v10200_v26  ;;  %v897_v28 = vfloor.f32 %v865_v10  ;;  %v10211_v46 = vunpack.c.l.bf16 %v10210_v29  ;;  %v2743_v9 = vmul.f32 %v10213_v1, %v6391_v4  ;;  %10215 = vst [vmem:[#allocation186_spill] sm:$0xff] %v6707_v8  ;;  %v10216_v58 = vld [vmem:[#allocation229_spill] sm:$0xff]  ;;  %v10226_v11 = vld [vmem:[#allocation240_spill] sm:$0xff] }
 0x2e5   :  { %v6692_v37 = vadd.f32 %v3509_v13, %v10205_v22  ;;  %v6696_v23 = vadd.f32 %v2754_v36, %v10208_v53  ;;  %v2967_v49 = vmul.f32 %v10214_v16, %v6391_v4  ;;  %v902_v13 = vfloor.f32 %v870_v32  ;;  %v10219_v36 = vld [vmem:[#allocation231_spill] sm:$0xff] }
 0x2e6   :  { %10201 = vst [vmem:[#allocation206_spill] sm:$0xff] %v6684_v47  ;;  %v6701_v26 = vadd.f32 %v2978_v63, %v10211_v46  ;;  %v10217_v14 = vunpack.c.l.bf16 %v10216_v58  ;;  %v10220_v51 = vunpack.c.l.bf16 %v10219_v36  ;;  %v10222_v63 = vld [vmem:[#allocation236_spill] sm:$0xff]  ;;  %v6719_v46 = vld [vmem:[#allocation2 + $0xd0] sm:$0xff]  ;;  %v6722_v1 = vsub.f32 %v863_v39, %v895_v50  ;;  %v6730_v36 = vpop.permute.xlu1 %1620  ;;  %v10227_v39 = vld [vmem:[#allocation103_spill] sm:$0xff] }
 0x2e7   :  { %10206 = vst [vmem:[#allocation92_spill] sm:$0xff] %v6692_v37  ;;  %10209 = vst [vmem:[#allocation185_spill] sm:$0xff] %v6696_v23  ;;  %v3287_v29 = vmul.f32 %v10222_v63, %v6391_v4  ;;  %2030 = vperm.xlu1 %3851, %v6719_v46   ;;  %v6724_v16 = vsub.f32 %v868_v52, %v900_v5  ;;  %v837_v58 = vmul.f32 %v6040_v6, %v10223_v0  ;;  %v10228_v50 = vld [vmem:[#allocation213_spill] sm:$0xff]  ;;  %v6749_v63 = vpop.permute.xlu0 %1809 }
 0x2e8   :  { %10212 = vst [vmem:[#allocation56_spill] sm:$0xff] %v6701_v26  ;;  %v6711_v53 = vadd.f32 %v3298_v55, %v10217_v14  ;;  %v6715_v22 = vadd.f32 %v3522_v27, %v10220_v51  ;;  %v10224_v55 = vld [vmem:[#allocation102_spill] sm:$0xff]  ;;  %10225 = vst [vmem:[#allocation193_spill] sm:$0xff] %v6730_v36  ;;  %v899_v27 = vfloor.f32 %v867_v62  ;;  %v904_v51 = vfloor.f32 %v872_v35  ;;  %2171 = vperm.xlu0 %3853, %v6446_v40   ;;  %v10231_v36 = vld [vmem:[#allocation40_spill] sm:$0xff] }
 0x2e9   :  { %v842_v14 = vmul.f32 %v6040_v6, %v10224_v55  ;;  %v3511_v8 = vmul.f32 %v10226_v11, %v6391_v4  ;;  %v839_v52 = vmul.f32 %v6040_v6, %v10227_v39  ;;  %v10229_v5 = vunpack.c.l.bf16 %v10228_v50  ;;  %10234 = vst [vmem:[#allocation198_spill] sm:$0xff] %v6749_v63  ;;  %v10235_v11 = vld [vmem:[#allocation214_spill] sm:$0xff]  ;;  %v6761_v50 = vld [vmem:[#allocation2 + $0xe0] sm:$0xff] }
 0x2ea   :  { %10218 = vst [vmem:[#allocation191_spill] sm:$0xff] %v6711_v53  ;;  %10221 = vst [vmem:[#allocation192_spill] sm:$0xff] %v6715_v22  ;;  %v10232_v45 = vunpack.c.l.bf16 %v10231_v36  ;;  %v6751_v47 = vsub.f32 %v865_v10, %v897_v28  ;;  %v6753_v4 = vsub.f32 %v870_v32, %v902_v13  ;;  %v10236_v39 = vunpack.c.l.bf16 %v10235_v11  ;;  %v10239_v10 = vld [vmem:[#allocation48_spill] sm:$0xff]  ;;  %v10240_v32 = vld [vmem:[#allocation261_spill] sm:$0xff] }
 0x2eb   :  { %v6743_v55 = vadd.f32 %v2743_v9, %v10229_v5  ;;  %2038 = vperm.xlu1 %3851, %v6761_v50   ;;  %v10238_v9 = vld [vmem:[#allocation66_spill] sm:$0xff]  ;;  %v2756_v28 = vmul.f32 %v10239_v10, %v6549_v60  ;;  %v2980_v13 = vmul.f32 %v10240_v32, %v6549_v60  ;;  %v6770_v36 = vsub.f32 %v867_v62, %v899_v27  ;;  %v10252_v32 = vld [vmem:[#allocation249_spill] sm:$0xff] }
 0x2ec   :  { %v6747_v38 = vadd.f32 %v2967_v49, %v10232_v45  ;;  %v6759_v0 = vadd.f32 %v3287_v29, %v10236_v39  ;;  %v869_v45 = vadd.f32 %v837_v58, %v10238_v9  ;;  %v874_v49 = vadd.f32 %v842_v14, %v6233_v43  ;;  %v10241_v29 = vld [vmem:[#allocation105_spill] sm:$0xff]  ;;  %v10242_v39 = vld [vmem:[#allocation218_spill] sm:$0xff]  ;;  %2179 = vperm.xlu0 %3853, %v6483_v48   ;;  %v6781_v43 = vpop.permute.xlu1 %1761  ;;  %v10246_v58 = vld [vmem:[#allocation68_spill] sm:$0xff] }
 0x2ed   :  { %10230 = vst [vmem:[#allocation37_spill] sm:$0xff] %v6743_v55  ;;  %v6772_v5 = vsub.f32 %v872_v35, %v904_v51  ;;  %v841_v11 = vmul.f32 %v6040_v6, %v10241_v29  ;;  %v10243_v40 = vunpack.c.l.bf16 %v10242_v39  ;;  %10245 = vst [vmem:[#allocation94_spill] sm:$0xff] %v6781_v43  ;;  %v871_v14 = vadd.f32 %v839_v52, %v10246_v58  ;;  %v10247_v62 = vld [vmem:[#allocation262_spill] sm:$0xff]  ;;  %v6790_v6 = vpop.permute.xlu0 %1817  ;;  %v10251_v48 = vld [vmem:[#allocation245_spill] sm:$0xff] }
 0x2ee   :  { %10233 = vst [vmem:[#allocation57_spill] sm:$0xff] %v6747_v38  ;;  %10237 = vst [vmem:[#allocation204_spill] sm:$0xff] %v6759_v0  ;;  %v3300_v35 = vmul.f32 %v10247_v62, %v6549_v60  ;;  %v10248_v27 = vld [vmem:[#allocation270_spill] sm:$0xff]  ;;  %v2969_v10 = vmul.f32 %v10251_v48, %v6440_v59  ;;  %v3289_v52 = vmul.f32 %v10252_v32, %v6440_v59  ;;  %v10253_v29 = vld [vmem:[#allocation255_spill] sm:$0xff]  ;;  %v901_v62 = vfloor.f32 %v869_v45 }
 0x2ef   :  { %v6778_v53 = vadd.f32 %v3511_v8, %v10243_v40  ;;  %v3524_v51 = vmul.f32 %v10248_v27, %v6549_v60  ;;  %10249 = vst [vmem:[#allocation224_spill] sm:$0xff] %v6790_v6  ;;  %v10250_v8 = vld [vmem:[#allocation244_spill] sm:$0xff]  ;;  %v3513_v39 = vmul.f32 %v10253_v29, %v6440_v59  ;;  %v6800_v58 = vld [vmem:[#allocation2 + $0xf0] sm:$0xff]  ;;  %v906_v60 = vfloor.f32 %v874_v49  ;;  %v6803_v27 = vld [vmem:[#allocation4 + $0x1] ss:$0 sm:$0xff] }
 0x2f0   :  { %v2745_v40 = vmul.f32 %v10250_v8, %v6440_v59  ;;  %2046 = vperm.xlu1 %3851, %v6800_v58   ;;  %v10254_v9 = vld [vmem:[#allocation248_spill] sm:$0xff]  ;;  %v10257_v55 = vld [vmem:[#allocation251_spill] sm:$0xff]  ;;  %v10262_v59 = vld [vmem:[#allocation70_spill] sm:$0xff]  ;;  %2187 = vperm.xlu0 %3853, %v6519_v44  }
 0x2f1   :  { %10244 = vst [vmem:[#allocation93_spill] sm:$0xff] %v6778_v53  ;;  %v10255_v43 = vunpack.c.l.bf16 %v10254_v9  ;;  %v10258_v48 = vunpack.c.l.bf16 %v10257_v55  ;;  %v10260_v32 = vld [vmem:[#allocation104_spill] sm:$0xff]  ;;  %v873_v29 = vadd.f32 %v841_v11, %v10262_v59  ;;  %v10263_v26 = vld [vmem:[#allocation274_spill] sm:$0xff]  ;;  %v10271_v11 = vld [vmem:[#allocation51_spill] sm:$0xff]  ;;  %v6835_v23 = vpop.permute.xlu0 %1825 }
 0x2f2   :  { %v6815_v22 = vmul.f32 %v6803_v27, %v10260_v32  ;;  %v2758_v37 = vmul.f32 %v10263_v26, %v6600_v21  ;;  %v10265_v55 = vld [vmem:[#allocation252_spill] sm:$0xff]  ;;  %v2982_v59 = vmul.f32 %v10271_v11, %v6600_v21  ;;  %10272 = vst [vmem:[#allocation41_spill] sm:$0xff] %v6835_v23  ;;  %v10273_v0 = vld [vmem:[#allocation221_spill] sm:$0xff]  ;;  %v10276_v44 = vld [vmem:[#allocation222_spill] sm:$0xff]  ;;  %v6854_v11 = vsub.f32 %v869_v45, %v901_v62 }
 0x2f3   :  { %v6807_v8 = vadd.f32 %v2756_v28, %v10255_v43  ;;  %v6811_v38 = vadd.f32 %v2980_v13, %v10258_v48  ;;  %v6823_v28 = vpop.permute.xlu1 %1769  ;;  %v903_v43 = vfloor.f32 %v871_v14  ;;  %v10266_v13 = vunpack.c.l.bf16 %v10265_v55  ;;  %v10268_v48 = vld [vmem:[#allocation46_spill] sm:$0xff]  ;;  %v10279_v55 = vld [vmem:[#allocation232_spill] sm:$0xff] }
 0x2f4   :  { %10261 = vst [vmem:[#allocation163_spill] sm:$0xff] %v6815_v22  ;;  %10264 = vst [vmem:[#allocation178_spill] sm:$0xff] %v6823_v28  ;;  %v10269_v32 = vunpack.c.l.bf16 %v10268_v48  ;;  %v10274_v26 = vunpack.c.l.bf16 %v10273_v0  ;;  %v10277_v28 = vunpack.c.l.bf16 %v10276_v44  ;;  %v10282_v48 = vld [vmem:[#allocation237_spill] sm:$0xff]  ;;  %v10285_v22 = vmov 8   ;;  %v10286_v0 = vld [vmem:[#allocation106_spill] sm:$0xff]  ;;  %2195 = vperm.xlu0 %3853, %v6555_v24  }
 0x2f5   :  { %10256 = vst [vmem:[#allocation225_spill] sm:$0xff] %v6807_v8  ;;  %10259 = vst [vmem:[#allocation162_spill] sm:$0xff] %v6811_v38  ;;  %v6827_v9 = vadd.f32 %v3300_v35, %v10266_v13  ;;  %v10280_v35 = vunpack.c.l.bf16 %v10279_v55  ;;  %3852 = vset.pattern.permute.xlu1 %v10285_v22  ;;  %v6856_v23 = vsub.f32 %v874_v49, %v906_v60  ;;  %v10290_v22 = vld [vmem:[#allocation52_spill] sm:$0xff]  ;;  %v10291_v49 = vld [vmem:[#allocation278_spill] sm:$0xff] }
 0x2f6   :  { %v6831_v6 = vadd.f32 %v3524_v51, %v10269_v32  ;;  %v6839_v53 = vadd.f32 %v2745_v40, %v10274_v26  ;;  %v6843_v63 = vadd.f32 %v2969_v10, %v10277_v28  ;;  %v10283_v51 = vunpack.c.l.bf16 %v10282_v48  ;;  %v6864_v28 = vld [vmem:[#allocation2] sm:$0xff]  ;;  %v6888_v10 = vpop.permute.xlu0 %1833  ;;  %v6908_v24 = vld [vmem:[#allocation2 + $0x10] sm:$0xff]  ;;  %v6966_v38 = vld [vmem:[#allocation2 + $0x18] sm:$0xff] }
 0x2f7   :  { %10267 = vst [vmem:[#allocation179_spill] sm:$0xff] %v6827_v9  ;;  %v6847_v13 = vadd.f32 %v3289_v52, %v10280_v35  ;;  %v6860_v40 = vmul.f32 %v6803_v27, %v10286_v0  ;;  %2123 = vperm.xlu1 %3852, %v6864_v28   ;;  %v905_v52 = vfloor.f32 %v873_v29  ;;  %v3302_v45 = vmul.f32 %v10290_v22, %v6600_v21  ;;  %v6876_v60 = vpop.permute.xlu1 %1773  ;;  %v10293_v55 = vld [vmem:[#allocation263_spill] sm:$0xff] }
 0x2f8   :  { %10270 = vst [vmem:[#allocation58_spill] sm:$0xff] %v6831_v6  ;;  %10275 = vst [vmem:[#allocation227_spill] sm:$0xff] %v6839_v53  ;;  %v6851_v32 = vadd.f32 %v3513_v39, %v10283_v51  ;;  %v10287_v39 = vld [vmem:[#allocation260_spill] sm:$0xff]  ;;  %v3526_v62 = vmul.f32 %v10291_v49, %v6600_v21  ;;  %v10294_v35 = vunpack.c.l.bf16 %v10293_v55  ;;  %v6890_v21 = vsub.f32 %v871_v14, %v903_v43  ;;  %v10300_v55 = vld [vmem:[#allocation107_spill] sm:$0xff] }
 0x2f9   :  { %10278 = vst [vmem:[#allocation205_spill] sm:$0xff] %v6843_v63  ;;  %10281 = vst [vmem:[#allocation207_spill] sm:$0xff] %v6847_v13  ;;  %v10288_v26 = vunpack.c.l.bf16 %v10287_v39  ;;  %v10296_v51 = vld [vmem:[#allocation256_spill] sm:$0xff]  ;;  %2203 = vperm.xlu0 %3853, %v6597_v12   ;;  %v10325_v12 = vld [vmem:[#allocation293_spill] sm:$0xff] }
 0x2fa   :  { %10284 = vst [vmem:[#allocation208_spill] sm:$0xff] %v6851_v32  ;;  %10292 = vst [vmem:[#allocation96_spill] sm:$0xff] %v6876_v60  ;;  %v6880_v48 = vadd.f32 %v2982_v59, %v10294_v35  ;;  %v2747_v0 = vmul.f32 %v10296_v51, %v6462_v56  ;;  %v6900_v35 = vmul.f32 %v6803_v27, %v10300_v55  ;;  %v10301_v51 = vld [vmem:[#allocation267_spill] sm:$0xff]  ;;  %v10303_v43 = vld [vmem:[#allocation292_spill] sm:$0xff] }
 0x2fb   :  { %v6869_v44 = vadd.f32 %v2758_v37, %v10288_v26  ;;  %v10297_v37 = vld [vmem:[#allocation257_spill] sm:$0xff]  ;;  %v10298_v26 = vld [vmem:[#allocation258_spill] sm:$0xff]  ;;  %10299 = vst [vmem:[#allocation97_spill] sm:$0xff] %v6888_v10  ;;  %v2984_v60 = vmul.f32 %v10303_v43, %v6612_v18  ;;  %10304 = vst [vmem:[#allocation209_spill] sm:$0xff] %v6908_v24  ;;  %2131 = vperm.xlu1 %3852, %v6908_v24   ;;  %v6911_v59 = vsub.f32 %v873_v29, %v905_v52  ;;  %v6926_v43 = vpop.permute.xlu1 %1781 }
 0x2fc   :  { %10295 = vst [vmem:[#allocation211_spill] sm:$0xff] %v6880_v48  ;;  %v2971_v39 = vmul.f32 %v10297_v37, %v6462_v56  ;;  %v3291_v22 = vmul.f32 %v10298_v26, %v6462_v56  ;;  %v3515_v37 = vmul.f32 %v10301_v51, %v6462_v56  ;;  %v10302_v26 = vld [vmem:[#allocation291_spill] sm:$0xff]  ;;  %v10306_v49 = vld [vmem:[#allocation108_spill] sm:$0xff]  ;;  %v10311_v56 = vld [vmem:[#allocation266_spill] sm:$0xff] }
 0x2fd   :  { %10289 = vst [vmem:[#allocation95_spill] sm:$0xff] %v6869_v44  ;;  %v2760_v14 = vmul.f32 %v10302_v26, %v6612_v18  ;;  %10305 = vst [vmem:[#allocation210_spill] sm:$0xff] %v6911_v59  ;;  %v6915_v13 = vmul.f32 %v6803_v27, %v10306_v49  ;;  %v10308_v55 = vld [vmem:[#allocation264_spill] sm:$0xff]  ;;  %v10312_v51 = vunpack.c.l.bf16 %v10311_v56  ;;  %v10315_v52 = vld [vmem:[#allocation241_spill] sm:$0xff]  ;;  %2211 = vperm.xlu0 %3853, %v6639_v31  }
 0x2fe   :  { %v10309_v32 = vunpack.c.l.bf16 %v10308_v55  ;;  %10314 = vst [vmem:[#allocation196_spill] sm:$0xff] %v6926_v43  ;;  %v10316_v63 = vunpack.c.l.bf16 %v10315_v52  ;;  %v10318_v49 = vld [vmem:[#allocation246_spill] sm:$0xff]  ;;  %v10326_v43 = vld [vmem:[#allocation296_spill] sm:$0xff]  ;;  %v10327_v52 = vld [vmem:[#allocation271_spill] sm:$0xff] }
 0x2ff   :  { %10307 = vst [vmem:[#allocation98_spill] sm:$0xff] %v6915_v13  ;;  %v6923_v26 = vadd.f32 %v3526_v62, %v10312_v51  ;;  %v10319_v6 = vunpack.c.l.bf16 %v10318_v49  ;;  %v6942_v62 = vpop.permute.xlu0 %1841  ;;  %v3304_v51 = vmul.f32 %v10325_v12, %v6612_v18  ;;  %v3528_v29 = vmul.f32 %v10326_v43, %v6612_v18  ;;  %v10335_v48 = vld [vmem:[#allocation279_spill] sm:$0xff]  ;;  %2135 = vperm.xlu1 %3852, %v6966_v38  }
 0x300   :  { %v6919_v53 = vadd.f32 %v3302_v45, %v10309_v32  ;;  %v6932_v9 = vadd.f32 %v2747_v0, %v10316_v63  ;;  %v10321_v32 = vld [vmem:[#allocation247_spill] sm:$0xff]  ;;  %10324 = vst [vmem:[#allocation217_spill] sm:$0xff] %v6942_v62  ;;  %v2749_v63 = vmul.f32 %v10327_v52, %v6504_v19  ;;  %v10328_v0 = vld [vmem:[#allocation281_spill] sm:$0xff]  ;;  %v10336_v8 = vunpack.c.l.bf16 %v10335_v48 }
 0x301   :  { %10313 = vst [vmem:[#allocation60_spill] sm:$0xff] %v6923_v26  ;;  %v6936_v55 = vadd.f32 %v2971_v39, %v10319_v6  ;;  %v10322_v45 = vunpack.c.l.bf16 %v10321_v32  ;;  %v2973_v49 = vmul.f32 %v10328_v0, %v6504_v19  ;;  %v10329_v6 = vld [vmem:[#allocation254_spill] sm:$0xff]  ;;  %v10338_v18 = vld [vmem:[#allocation55_spill] sm:$0xff]  ;;  %v10341_v48 = vld [vmem:[#allocation309_spill] sm:$0xff]  ;;  %2219 = vperm.xlu0 %3853, %v6677_v15  }
 0x302   :  { %10310 = vst [vmem:[#allocation194_spill] sm:$0xff] %v6919_v53  ;;  %10317 = vst [vmem:[#allocation212_spill] sm:$0xff] %v6932_v9  ;;  %v10330_v39 = vunpack.c.l.bf16 %v10329_v6  ;;  %v6962_v12 = vadd.f32 %v2984_v60, %v10336_v8  ;;  %v3293_v43 = vmul.f32 %v10338_v18, %v6504_v19  ;;  %v2986_v8 = vmul.f32 %v10341_v48, %v6670_v7  ;;  %v6978_v60 = vpop.permute.xlu1 %1789  ;;  %v10349_v48 = vld [vmem:[#allocation280_spill] sm:$0xff]  ;;  %v10355_v10 = vld [vmem:[#allocation259_spill] sm:$0xff] }
 0x303   :  { %10320 = vst [vmem:[#allocation99_spill] sm:$0xff] %v6936_v55  ;;  %v6940_v56 = vadd.f32 %v3291_v22, %v10322_v45  ;;  %v10332_v22 = vld [vmem:[#allocation277_spill] sm:$0xff]  ;;  %10342 = vst [vmem:[#allocation223_spill] sm:$0xff] %v6978_v60  ;;  %v6992_v53 = vpop.permute.xlu0 %1849  ;;  %v10350_v31 = vunpack.c.l.bf16 %v10349_v48  ;;  %v10352_v60 = vld [vmem:[#allocation283_spill] sm:$0xff]  ;;  %v10356_v24 = vunpack.c.l.bf16 %v10355_v10 }
 0x304   :  { %v6954_v44 = vadd.f32 %v3515_v37, %v10330_v39  ;;  %v10333_v32 = vunpack.c.l.bf16 %v10332_v22  ;;  %10337 = vst [vmem:[#allocation242_spill] sm:$0xff] %v6962_v12  ;;  %v10339_v37 = vld [vmem:[#allocation287_spill] sm:$0xff]  ;;  %v10343_v39 = vld [vmem:[#allocation109_spill] sm:$0xff]  ;;  %10348 = vst [vmem:[#allocation44_spill] sm:$0xff] %v6992_v53  ;;  %v10353_v62 = vunpack.c.l.bf16 %v10352_v60 }
 0x305   :  { %10323 = vst [vmem:[#allocation100_spill] sm:$0xff] %v6940_v56  ;;  %v3517_v0 = vmul.f32 %v10339_v37, %v6504_v19  ;;  %v6982_v22 = vmul.f32 %v6803_v27, %v10343_v39  ;;  %v10346_v19 = vld [vmem:[#allocation310_spill] sm:$0xff]  ;;  %v6996_v26 = vadd.f32 %v3304_v51, %v10350_v31  ;;  %v7020_v10 = vld [vmem:[#allocation2 + $0x28] sm:$0xff]  ;;  %v10375_v51 = vld [vmem:[#allocation111_spill] sm:$0xff]  ;;  %2227 = vperm.xlu0 %3853, %v6719_v46  }
 0x306   :  { %10331 = vst [vmem:[#allocation239_spill] sm:$0xff] %v6954_v44  ;;  %v6958_v45 = vadd.f32 %v2760_v14, %v10333_v32  ;;  %v10340_v14 = vld [vmem:[#allocation59_spill] sm:$0xff]  ;;  %v10344_v32 = vld [vmem:[#allocation110_spill] sm:$0xff]  ;;  %v3306_v37 = vmul.f32 %v10346_v19, %v6670_v7  ;;  %v7000_v39 = vadd.f32 %v3528_v29, %v10353_v62  ;;  %2143 = vperm.xlu1 %3852, %v7020_v10   ;;  %v10384_v15 = vld [vmem:[#allocation112_spill] sm:$0xff] }
 0x307   :  { %v2762_v6 = vmul.f32 %v10340_v14, %v6670_v7  ;;  %v6986_v18 = vmul.f32 %v6803_v27, %v10344_v32  ;;  %v10347_v14 = vld [vmem:[#allocation311_spill] sm:$0xff]  ;;  %10351 = vst [vmem:[#allocation197_spill] sm:$0xff] %v6996_v26  ;;  %v7004_v32 = vadd.f32 %v2749_v63, %v10356_v24  ;;  %v10361_v60 = vld [vmem:[#allocation50_spill] sm:$0xff]  ;;  %v10364_v24 = vld [vmem:[#allocation272_spill] sm:$0xff] }
 0x308   :  { %10334 = vst [vmem:[#allocation62_spill] sm:$0xff] %v6958_v45  ;;  %v3530_v52 = vmul.f32 %v10347_v14, %v6670_v7  ;;  %10354 = vst [vmem:[#allocation64_spill] sm:$0xff] %v7000_v39  ;;  %v10362_v29 = vunpack.c.l.bf16 %v10361_v60  ;;  %v10370_v31 = vld [vmem:[#allocation294_spill] sm:$0xff]  ;;  %v10373_v60 = vld [vmem:[#allocation289_spill] sm:$0xff] }
 0x309   :  { %10345 = vst [vmem:[#allocation243_spill] sm:$0xff] %v6986_v18  ;;  %10357 = vst [vmem:[#allocation200_spill] sm:$0xff] %v7004_v32  ;;  %v10358_v18 = vld [vmem:[#allocation268_spill] sm:$0xff]  ;;  %v10371_v14 = vunpack.c.l.bf16 %v10370_v31  ;;  %v10391_v12 = vld [vmem:[#allocation315_spill] sm:$0xff]  ;;  %2235 = vperm.xlu0 %3853, %v6761_v50  }
 0x30a   :  { %v10359_v13 = vunpack.c.l.bf16 %v10358_v18  ;;  %v7018_v62 = vadd.f32 %v3293_v43, %v10362_v29  ;;  %v2751_v43 = vmul.f32 %v10373_v60, %v6541_v41  ;;  %v7038_v29 = vpop.permute.xlu1 %1797  ;;  %v7054_v60 = vpop.permute.xlu0 %1857  ;;  %v7078_v26 = vld [vmem:[#allocation2 + $0x38] sm:$0xff] }
 0x30b   :  { %v7033_v7 = vadd.f32 %v2986_v8, %v10371_v14  ;;  %10374 = vst [vmem:[#allocation231_spill] sm:$0xff] %v7038_v29  ;;  %v10382_v8 = vld [vmem:[#allocation295_spill] sm:$0xff]  ;;  %10383 = vst [vmem:[#allocation102_spill] sm:$0xff] %v7054_v60  ;;  %v7058_v29 = vmul.f32 %v6803_v27, %v10384_v15  ;;  %v10390_v15 = vld [vmem:[#allocation314_spill] sm:$0xff]  ;;  %2151 = vperm.xlu1 %3852, %v7078_v26  }
 0x30c   :  { %v7008_v19 = vadd.f32 %v2973_v49, %v10359_v13  ;;  %10363 = vst [vmem:[#allocation228_spill] sm:$0xff] %v7018_v62  ;;  %v10365_v13 = vunpack.c.l.bf16 %v10364_v24  ;;  %v10367_v49 = vld [vmem:[#allocation288_spill] sm:$0xff]  ;;  %v7042_v24 = vmul.f32 %v6803_v27, %v10375_v51  ;;  %v2975_v14 = vmul.f32 %v10382_v8, %v6541_v41  ;;  %v10428_v55 = vld [vmem:[#allocation342_spill] sm:$0xff] }
 0x30d   :  { %v10368_v18 = vunpack.c.l.bf16 %v10367_v49  ;;  %10372 = vst [vmem:[#allocation229_spill] sm:$0xff] %v7033_v7  ;;  %10385 = vst [vmem:[#allocation240_spill] sm:$0xff] %v7058_v29  ;;  %v3519_v45 = vmul.f32 %v10390_v15, %v6541_v41  ;;  %v2764_v51 = vmul.f32 %v10391_v12, %v6724_v16  ;;  %v10397_v15 = vld [vmem:[#allocation115_spill] sm:$0xff]  ;;  %v10398_v62 = vld [vmem:[#allocation276_spill] sm:$0xff]  ;;  %2243 = vperm.xlu0 %3853, %v6800_v58  }
 0x30e   :  { %10360 = vst [vmem:[#allocation226_spill] sm:$0xff] %v7008_v19  ;;  %v7025_v63 = vadd.f32 %v3517_v0, %v10365_v13  ;;  %v10376_v0 = vld [vmem:[#allocation297_spill] sm:$0xff]  ;;  %v10395_v19 = vld [vmem:[#allocation318_spill] sm:$0xff]  ;;  %v7092_v12 = vpop.permute.xlu1 %1805  ;;  %v7096_v39 = vmul.f32 %v6803_v27, %v10397_v15 }
 0x30f   :  { %v7029_v48 = vadd.f32 %v2762_v6, %v10368_v18  ;;  %v10377_v13 = vunpack.c.l.bf16 %v10376_v0  ;;  %v10379_v6 = vld [vmem:[#allocation298_spill] sm:$0xff]  ;;  %v10386_v0 = vld [vmem:[#allocation299_spill] sm:$0xff]  ;;  %10396 = vst [vmem:[#allocation40_spill] sm:$0xff] %v7092_v12  ;;  %v10406_v12 = vld [vmem:[#allocation320_spill] sm:$0xff] }
 0x310   :  { %10366 = vst [vmem:[#allocation234_spill] sm:$0xff] %v7025_v63  ;;  %v10380_v18 = vunpack.c.l.bf16 %v10379_v6  ;;  %v3532_v15 = vmul.f32 %v10406_v12, %v6724_v16  ;;  %v10407_v63 = vld [vmem:[#allocation316_spill] sm:$0xff]  ;;  %v10469_v58 = vld [vmem:[#allocation118_spill] sm:$0xff] }
 0x311   :  { %10369 = vst [vmem:[#allocation235_spill] sm:$0xff] %v7029_v48  ;;  %v7046_v49 = vadd.f32 %v3306_v37, %v10377_v13  ;;  %v3295_v13 = vmul.f32 %v10386_v0, %v6541_v41  ;;  %v10392_v37 = vld [vmem:[#allocation275_spill] sm:$0xff]  ;;  %v2988_v41 = vmul.f32 %v10395_v19, %v6724_v16  ;;  %v10403_v19 = vld [vmem:[#allocation284_spill] sm:$0xff]  ;;  %v2753_v56 = vmul.f32 %v10407_v63, %v6579_v42  ;;  %v10408_v0 = vld [vmem:[#allocation321_spill] sm:$0xff] }
 0x312   :  { %v7050_v31 = vadd.f32 %v3530_v52, %v10380_v18  ;;  %v10387_v52 = vld [vmem:[#allocation113_spill] sm:$0xff]  ;;  %v10388_v18 = vld [vmem:[#allocation114_spill] sm:$0xff]  ;;  %v10393_v32 = vunpack.c.l.bf16 %v10392_v37  ;;  %v7106_v37 = vpop.permute.xlu0 %1865  ;;  %v10404_v46 = vunpack.c.l.bf16 %v10403_v19  ;;  %v7130_v12 = vld [vmem:[#allocation2 + $0x48] sm:$0xff] }
 0x313   :  { %10378 = vst [vmem:[#allocation236_spill] sm:$0xff] %v7046_v49  ;;  %v7068_v6 = vmul.f32 %v6803_v27, %v10387_v52  ;;  %v7072_v8 = vmul.f32 %v6803_v27, %v10388_v18  ;;  %v10399_v52 = vunpack.c.l.bf16 %v10398_v62  ;;  %10402 = vst [vmem:[#allocation66_spill] sm:$0xff] %v7106_v37  ;;  %v2977_v62 = vmul.f32 %v10408_v0, %v6579_v42  ;;  %v10417_v63 = vld [vmem:[#allocation304_spill] sm:$0xff] }
 0x314   :  { %10381 = vst [vmem:[#allocation101_spill] sm:$0xff] %v7050_v31  ;;  %v7087_v18 = vadd.f32 %v2751_v43, %v10393_v32  ;;  %v10401_v32 = vld [vmem:[#allocation319_spill] sm:$0xff]  ;;  %v7110_v7 = vadd.f32 %v3295_v13, %v10404_v46  ;;  %v10416_v46 = vld [vmem:[#allocation333_spill] sm:$0xff]  ;;  %2159 = vperm.xlu1 %3852, %v7130_v12   ;;  %v10418_v0 = vunpack.c.l.bf16 %v10417_v63 }
 0x315   :  { %10389 = vst [vmem:[#allocation103_spill] sm:$0xff] %v7072_v8  ;;  %v7102_v48 = vadd.f32 %v2975_v14, %v10399_v52  ;;  %v3308_v43 = vmul.f32 %v10401_v32, %v6724_v16  ;;  %v10409_v14 = vld [vmem:[#allocation285_spill] sm:$0xff]  ;;  %v10412_v32 = vld [vmem:[#allocation303_spill] sm:$0xff]  ;;  %v3521_v16 = vmul.f32 %v10416_v46, %v6579_v42 }
 0x316   :  { %10394 = vst [vmem:[#allocation213_spill] sm:$0xff] %v7087_v18  ;;  %10405 = vst [vmem:[#allocation48_spill] sm:$0xff] %v7110_v7  ;;  %v10410_v52 = vunpack.c.l.bf16 %v10409_v14  ;;  %v10413_v31 = vunpack.c.l.bf16 %v10412_v32  ;;  %v10415_v13 = vld [vmem:[#allocation327_spill] sm:$0xff]  ;;  %v7135_v9 = vadd.f32 %v2988_v41, %v10418_v0  ;;  %v10426_v41 = vld [vmem:[#allocation338_spill] sm:$0xff]  ;;  %v7156_v37 = vpop.permute.xlu0 %1873 }
 0x317   :  { %10400 = vst [vmem:[#allocation214_spill] sm:$0xff] %v7102_v48  ;;  %v3297_v19 = vmul.f32 %v10415_v13, %v6579_v42  ;;  %v7144_v42 = vpop.permute.xlu1 %1813  ;;  %v10424_v13 = vld [vmem:[#allocation116_spill] sm:$0xff]  ;;  %v3534_v63 = vmul.f32 %v10426_v41, %v6753_v4  ;;  %v10427_v0 = vld [vmem:[#allocation341_spill] sm:$0xff]  ;;  %10429 = vst [vmem:[#allocation270_spill] sm:$0xff] %v7156_v37 }
 0x318   :  { %v7120_v49 = vadd.f32 %v3519_v45, %v10410_v52  ;;  %v7124_v44 = vadd.f32 %v2764_v51, %v10413_v31  ;;  %10419 = vst [vmem:[#allocation218_spill] sm:$0xff] %v7135_v9  ;;  %v10420_v45 = vld [vmem:[#allocation334_spill] sm:$0xff]  ;;  %v10421_v31 = vld [vmem:[#allocation336_spill] sm:$0xff]  ;;  %v10422_v52 = vld [vmem:[#allocation337_spill] sm:$0xff]  ;;  %v7148_v46 = vmul.f32 %v6803_v27, %v10424_v13 }
 0x319   :  { %v2766_v14 = vmul.f32 %v10420_v45, %v6753_v4  ;;  %v2990_v51 = vmul.f32 %v10421_v31, %v6753_v4  ;;  %v3310_v32 = vmul.f32 %v10422_v52, %v6753_v4  ;;  %10423 = vst [vmem:[#allocation68_spill] sm:$0xff] %v7144_v42  ;;  %v2755_v45 = vmul.f32 %v10427_v0, %v6610_v33  ;;  %v10430_v52 = vld [vmem:[#allocation305_spill] sm:$0xff]  ;;  %v10433_v42 = vld [vmem:[#allocation306_spill] sm:$0xff] }
 0x31a   :  { %10411 = vst [vmem:[#allocation261_spill] sm:$0xff] %v7120_v49  ;;  %10414 = vst [vmem:[#allocation105_spill] sm:$0xff] %v7124_v44  ;;  %v2979_v31 = vmul.f32 %v10428_v55, %v6610_v33  ;;  %v10431_v60 = vunpack.c.l.bf16 %v10430_v52  ;;  %v10434_v53 = vunpack.c.l.bf16 %v10433_v42  ;;  %v10436_v13 = vld [vmem:[#allocation290_spill] sm:$0xff]  ;;  %v10439_v4 = vld [vmem:[#allocation301_spill] sm:$0xff] }
 0x31b   :  { %10425 = vst [vmem:[#allocation262_spill] sm:$0xff] %v7148_v46  ;;  %v10437_v46 = vunpack.c.l.bf16 %v10436_v13  ;;  %v10440_v41 = vunpack.c.l.bf16 %v10439_v4  ;;  %v10505_v49 = vld [vmem:[#allocation339_spill] sm:$0xff]  ;;  %v10571_v48 = vld [vmem:[#allocation365_spill] sm:$0xff] }
 0x31c   :  { %v7160_v50 = vadd.f32 %v3308_v43, %v10431_v60  ;;  %v7164_v8 = vadd.f32 %v3532_v15, %v10434_v53  ;;  %v10442_v60 = vld [vmem:[#allocation308_spill] sm:$0xff] }
 0x31d   :  { %v7168_v29 = vadd.f32 %v2753_v56, %v10437_v46  ;;  %v7172_v0 = vadd.f32 %v2977_v62, %v10440_v41  ;;  %v10443_v43 = vunpack.c.l.bf16 %v10442_v60  ;;  %v10445_v53 = vld [vmem:[#allocation312_spill] sm:$0xff]  ;;  %v7186_v56 = vld [vmem:[#allocation2 + $0x58] sm:$0xff]  ;;  %v10448_v46 = vld [vmem:[#allocation313_spill] sm:$0xff] }
 0x31e   :  { %10432 = vst [vmem:[#allocation244_spill] sm:$0xff] %v7160_v50  ;;  %10435 = vst [vmem:[#allocation245_spill] sm:$0xff] %v7164_v8  ;;  %v10446_v15 = vunpack.c.l.bf16 %v10445_v53  ;;  %2167 = vperm.xlu1 %3852, %v7186_v56   ;;  %v10449_v13 = vunpack.c.l.bf16 %v10448_v46  ;;  %v10451_v41 = vld [vmem:[#allocation317_spill] sm:$0xff] }
 0x31f   :  { %10438 = vst [vmem:[#allocation249_spill] sm:$0xff] %v7168_v29  ;;  %10441 = vst [vmem:[#allocation255_spill] sm:$0xff] %v7172_v0  ;;  %v7180_v37 = vadd.f32 %v3297_v19, %v10443_v43  ;;  %v10452_v52 = vunpack.c.l.bf16 %v10451_v41  ;;  %v10454_v19 = vld [vmem:[#allocation322_spill] sm:$0xff]  ;;  %v10461_v62 = vld [vmem:[#allocation325_spill] sm:$0xff] }
 0x320   :  { %v7184_v42 = vadd.f32 %v3521_v16, %v10446_v15  ;;  %v7193_v4 = vadd.f32 %v2766_v14, %v10449_v13  ;;  %v10455_v43 = vunpack.c.l.bf16 %v10454_v19  ;;  %v7204_v16 = vpop.permute.xlu1 %1821  ;;  %v10458_v15 = vld [vmem:[#allocation323_spill] sm:$0xff]  ;;  %v10462_v46 = vunpack.c.l.bf16 %v10461_v62  ;;  %v10464_v13 = vld [vmem:[#allocation326_spill] sm:$0xff]  ;;  %v10483_v29 = vld [vmem:[#allocation356_spill] sm:$0xff] }
 0x321   :  { %10444 = vst [vmem:[#allocation248_spill] sm:$0xff] %v7180_v37  ;;  %v7197_v60 = vadd.f32 %v2990_v51, %v10452_v52  ;;  %10457 = vst [vmem:[#allocation252_spill] sm:$0xff] %v7204_v16  ;;  %v10459_v55 = vunpack.c.l.bf16 %v10458_v15  ;;  %v10465_v41 = vunpack.c.l.bf16 %v10464_v13  ;;  %v7218_v52 = vpop.permute.xlu0 %1881  ;;  %v10472_v15 = vld [vmem:[#allocation343_spill] sm:$0xff]  ;;  %v10473_v13 = vld [vmem:[#allocation65_spill] sm:$0xff]  ;;  %v9287_v37 = vmov 11  }
 0x322   :  { %10447 = vst [vmem:[#allocation251_spill] sm:$0xff] %v7184_v42  ;;  %10450 = vst [vmem:[#allocation104_spill] sm:$0xff] %v7193_v4  ;;  %v7201_v53 = vadd.f32 %v3310_v32, %v10455_v43  ;;  %v7212_v14 = vadd.f32 %v2755_v45, %v10462_v46  ;;  %v10468_v32 = vld [vmem:[#allocation117_spill] sm:$0xff]  ;;  %v7226_v43 = vmul.f32 %v6803_v27, %v10469_v58  ;;  %v10474_v58 = vld [vmem:[#allocation120_spill] sm:$0xff]  ;;  %3854 = vset.pattern.permute.xlu0 %v9287_v37 }
 0x323   :  { %10453 = vst [vmem:[#allocation70_spill] sm:$0xff] %v7197_v60  ;;  %v7208_v7 = vadd.f32 %v3534_v63, %v10459_v55  ;;  %v7216_v51 = vadd.f32 %v2979_v31, %v10465_v41  ;;  %10467 = vst [vmem:[#allocation222_spill] sm:$0xff] %v7218_v52  ;;  %v7222_v19 = vmul.f32 %v6803_v27, %v10468_v32  ;;  %v10471_v55 = vld [vmem:[#allocation119_spill] sm:$0xff]  ;;  %v7242_v32 = vld [vmem:[#allocation2 + $0x68] sm:$0xff]  ;;  %2320 = vperm.xlu0 %3854, %v6864_v28  }
 0x324   :  { %10456 = vst [vmem:[#allocation274_spill] sm:$0xff] %v7201_v53  ;;  %10463 = vst [vmem:[#allocation51_spill] sm:$0xff] %v7212_v14  ;;  %v7234_v31 = vmul.f32 %v6803_v27, %v10471_v55  ;;  %v3299_v46 = vmul.f32 %v10472_v15, %v6610_v33  ;;  %v3523_v41 = vmul.f32 %v10473_v13, %v6610_v33  ;;  %2175 = vperm.xlu1 %3852, %v7242_v32   ;;  %v10476_v63 = vld [vmem:[#allocation346_spill] sm:$0xff]  ;;  %v7256_v33 = vpop.permute.xlu1 %1829  ;;  %v10479_v42 = vld [vmem:[#allocation215_spill] sm:$0xff] }
 0x325   :  { %10460 = vst [vmem:[#allocation46_spill] sm:$0xff] %v7208_v7  ;;  %10466 = vst [vmem:[#allocation221_spill] sm:$0xff] %v7216_v51  ;;  %v7247_v45 = vmul.f32 %v6803_v27, %v10474_v58  ;;  %v2768_v62 = vmul.f32 %v10476_v63, %v6772_v5  ;;  %v10477_v16 = vld [vmem:[#allocation350_spill] sm:$0xff]  ;;  %v3312_v55 = vmul.f32 %v10479_v42, %v6772_v5  ;;  %v10480_v4 = vld [vmem:[#allocation69_spill] sm:$0xff]  ;;  %v7275_v14 = vpop.permute.xlu0 %1926 }
 0x326   :  { %10470 = vst [vmem:[#allocation232_spill] sm:$0xff] %v7226_v43  ;;  %v2992_v15 = vmul.f32 %v10477_v16, %v6772_v5  ;;  %10478 = vst [vmem:[#allocation106_spill] sm:$0xff] %v7256_v33  ;;  %v3536_v63 = vmul.f32 %v10480_v4, %v6772_v5  ;;  %v10481_v16 = vld [vmem:[#allocation74_spill] sm:$0xff]  ;;  %v3301_v13 = vmul.f32 %v10483_v29, %v6661_v30  ;;  %v10484_v53 = vld [vmem:[#allocation357_spill] sm:$0xff] }
 0x327   :  { %10475 = vst [vmem:[#allocation237_spill] sm:$0xff] %v7247_v45  ;;  %v2757_v60 = vmul.f32 %v10481_v16, %v6661_v30  ;;  %v10482_v37 = vld [vmem:[#allocation354_spill] sm:$0xff]  ;;  %v3525_v58 = vmul.f32 %v10484_v53, %v6661_v30  ;;  %10485 = vst [vmem:[#allocation260_spill] sm:$0xff] %v7275_v14  ;;  %v10486_v42 = vld [vmem:[#allocation328_spill] sm:$0xff]  ;;  %2332 = vperm.xlu0 %3854, %v6966_v38  }
 0x328   :  { %v2981_v33 = vmul.f32 %v10482_v37, %v6661_v30  ;;  %v10487_v51 = vunpack.c.l.bf16 %v10486_v42  ;;  %v10489_v5 = vld [vmem:[#allocation329_spill] sm:$0xff]  ;;  %v10492_v16 = vld [vmem:[#allocation358_spill] sm:$0xff]  ;;  %v10493_v37 = vld [vmem:[#allocation360_spill] sm:$0xff] }
 0x329   :  { %v10490_v28 = vunpack.c.l.bf16 %v10489_v5  ;;  %v2770_v0 = vmul.f32 %v10492_v16, %v6856_v23  ;;  %v2994_v50 = vmul.f32 %v10493_v37, %v6856_v23  ;;  %v7289_v29 = vld [vmem:[#allocation2 + $0x78] sm:$0xff]  ;;  %v7304_v16 = vpop.permute.xlu1 %1837  ;;  %v10502_v37 = vld [vmem:[#allocation335_spill] sm:$0xff] }
 0x32a   :  { %v7279_v7 = vadd.f32 %v3299_v46, %v10487_v51  ;;  %2183 = vperm.xlu1 %3852, %v7289_v29   ;;  %v10494_v30 = vld [vmem:[#allocation330_spill] sm:$0xff]  ;;  %v10497_v51 = vld [vmem:[#allocation331_spill] sm:$0xff]  ;;  %10501 = vst [vmem:[#allocation257_spill] sm:$0xff] %v7304_v16  ;;  %v10503_v44 = vunpack.c.l.bf16 %v10502_v37  ;;  %v10517_v37 = vld [vmem:[#allocation348_spill] sm:$0xff]  ;;  %v7335_v16 = vpop.permute.xlu0 %1938 }
 0x32b   :  { %v7283_v4 = vadd.f32 %v3523_v41, %v10490_v28  ;;  %v10495_v53 = vunpack.c.l.bf16 %v10494_v30  ;;  %v10498_v46 = vunpack.c.l.bf16 %v10497_v51  ;;  %v10500_v41 = vld [vmem:[#allocation363_spill] sm:$0xff]  ;;  %v3538_v28 = vmul.f32 %v6195_v34, %v6856_v23  ;;  %v10508_v51 = vld [vmem:[#allocation344_spill] sm:$0xff]  ;;  %10520 = vst [vmem:[#allocation264_spill] sm:$0xff] %v7335_v16  ;;  %2340 = vperm.xlu0 %3854, %v7020_v10  }
 0x32c   :  { %10488 = vst [vmem:[#allocation52_spill] sm:$0xff] %v7279_v7  ;;  %v3314_v5 = vmul.f32 %v10500_v41, %v6856_v23  ;;  %v7308_v9 = vadd.f32 %v3312_v55, %v10503_v44  ;;  %v10506_v30 = vunpack.c.l.bf16 %v10505_v49  ;;  %v10509_v34 = vunpack.c.l.bf16 %v10508_v51  ;;  %v10514_v55 = vld [vmem:[#allocation347_spill] sm:$0xff]  ;;  %v7443_v7 = vld [vmem:[#allocation6 + $0x358] sm:$0xff]  }
 0x32d   :  { %10491 = vst [vmem:[#allocation278_spill] sm:$0xff] %v7283_v4  ;;  %v7294_v8 = vadd.f32 %v2768_v62, %v10495_v53  ;;  %v7298_v42 = vadd.f32 %v2992_v15, %v10498_v46  ;;  %v2759_v15 = vmul.f32 %v6199_v17, %v6722_v1  ;;  %v2983_v53 = vmul.f32 %v6203_v25, %v6722_v1  ;;  %v10511_v46 = vld [vmem:[#allocation345_spill] sm:$0xff]  ;;  %v10555_v4 = vld [vmem:[#allocation372_spill] sm:$0xff] }
 0x32e   :  { %10504 = vst [vmem:[#allocation258_spill] sm:$0xff] %v7308_v9  ;;  %v7312_v62 = vadd.f32 %v3536_v63, %v10506_v30  ;;  %v7321_v23 = vadd.f32 %v2757_v60, %v10509_v34  ;;  %v10512_v41 = vunpack.c.l.bf16 %v10511_v46  ;;  %v10515_v49 = vunpack.c.l.bf16 %v10514_v55  ;;  %v10521_v25 = vld [vmem:[#allocation121_spill] sm:$0xff]  ;;  %v10522_v60 = vld [vmem:[#allocation351_spill] sm:$0xff]  ;;  %v7351_v55 = vld [vmem:[#allocation2 + $0x88] sm:$0xff] }
 0x32f   :  { %10496 = vst [vmem:[#allocation263_spill] sm:$0xff] %v7294_v8  ;;  %10499 = vst [vmem:[#allocation256_spill] sm:$0xff] %v7298_v42  ;;  %v10518_v30 = vunpack.c.l.bf16 %v10517_v37  ;;  %v7339_v38 = vmul.f32 %v6803_v27, %v10521_v25  ;;  %v10523_v51 = vunpack.c.l.bf16 %v10522_v60  ;;  %2191 = vperm.xlu1 %3852, %v7351_v55   ;;  %2348 = vperm.xlu0 %3854, %v7078_v26   ;;  %v10565_v8 = vld [vmem:[#allocation361_spill] sm:$0xff] }
 0x330   :  { %10507 = vst [vmem:[#allocation107_spill] sm:$0xff] %v7312_v62  ;;  %10510 = vst [vmem:[#allocation267_spill] sm:$0xff] %v7321_v23  ;;  %v7325_v44 = vadd.f32 %v2981_v33, %v10512_v41  ;;  %v7329_v63 = vadd.f32 %v3301_v13, %v10515_v49  ;;  %v10525_v33 = vld [vmem:[#allocation352_spill] sm:$0xff]  ;;  %v3303_v13 = vmul.f32 %v6211_v54, %v6722_v1  ;;  %v7368_v54 = vpop.permute.xlu1 %1845  ;;  %v10566_v42 = vunpack.c.l.bf16 %v10565_v8 }
 0x331   :  { %v7333_v17 = vadd.f32 %v3525_v58, %v10518_v30  ;;  %v7343_v34 = vadd.f32 %v2770_v0, %v10523_v51  ;;  %v10526_v46 = vunpack.c.l.bf16 %v10525_v33  ;;  %v10528_v58 = vld [vmem:[#allocation122_spill] sm:$0xff]  ;;  %v10530_v0 = vld [vmem:[#allocation353_spill] sm:$0xff]  ;;  %10535 = vst [vmem:[#allocation296_spill] sm:$0xff] %v7368_v54  ;;  %v10536_v51 = vld [vmem:[#allocation123_spill] sm:$0xff]  ;;  %v3305_v54 = vmul.f32 %v10555_v4, %v6751_v47 }
 0x332   :  { %10513 = vst [vmem:[#allocation291_spill] sm:$0xff] %v7325_v44  ;;  %10516 = vst [vmem:[#allocation292_spill] sm:$0xff] %v7329_v63  ;;  %v7356_v49 = vmul.f32 %v6803_v27, %v10528_v58  ;;  %v10531_v30 = vunpack.c.l.bf16 %v10530_v0  ;;  %v7372_v33 = vmul.f32 %v6803_v27, %v10536_v51  ;;  %v10537_v58 = vunpack.c.l.bf16 %v6114_v61  ;;  %v10539_v0 = vld [vmem:[#allocation355_spill] sm:$0xff]  ;;  %v7413_v61 = vld [vmem:[#allocation6 + $0x340] sm:$0xff]  }
 0x333   :  { %10519 = vst [vmem:[#allocation108_spill] sm:$0xff] %v7333_v17  ;;  %10524 = vst [vmem:[#allocation266_spill] sm:$0xff] %v7343_v34  ;;  %v7347_v41 = vadd.f32 %v2994_v50, %v10526_v46  ;;  %v10533_v50 = vunpack.c.l.bf16 %v6097_v57  ;;  %v10542_v57 = vld [vmem:[#allocation124_spill] sm:$0xff]  ;;  %v7415_v63 = vld [vmem:[#allocation6 + $0x348] sm:$0xff]   ;;  %2356 = vperm.xlu0 %3854, %v7130_v12  }
 0x334   :  { %10529 = vst [vmem:[#allocation246_spill] sm:$0xff] %v7356_v49  ;;  %v7362_v25 = vadd.f32 %v3314_v5, %v10531_v30  ;;  %v7378_v37 = vadd.f32 %v2759_v15, %v10537_v58  ;;  %v10540_v5 = vunpack.c.l.bf16 %v10539_v0  ;;  %v7395_v15 = vld [vmem:[#allocation6 + $0x318] sm:$0xff]   ;;  %v7397_v58 = vpop.permute.xlu0 %1946  ;;  %v10546_v0 = vld [vmem:[#allocation126_spill] sm:$0xff]  ;;  %v10557_v4 = vld [vmem:[#allocation127_spill] sm:$0xff] }
 0x335   :  { %10527 = vst [vmem:[#allocation241_spill] sm:$0xff] %v7347_v41  ;;  %v7366_v60 = vadd.f32 %v3538_v28, %v10533_v50  ;;  %v7387_v28 = vmul.f32 %v6803_v27, %v10542_v57  ;;  %10544 = vst [vmem:[#allocation277_spill] sm:$0xff] %v7397_v58  ;;  %v10548_v50 = vld [vmem:[#allocation359_spill] sm:$0xff]  ;;  %v7417_v17 = vld [vmem:[#allocation2 + $0x98] sm:$0xff]  ;;  %v7449_v34 = vmul.f32 %v6803_v27, %v10557_v4  ;;  %v10572_v58 = vunpack.c.l.bf16 %v10571_v48 }
 0x336   :  { %10532 = vst [vmem:[#allocation247_spill] sm:$0xff] %v7362_v25  ;;  %10538 = vst [vmem:[#allocation271_spill] sm:$0xff] %v7378_v37  ;;  %v7382_v30 = vadd.f32 %v2983_v53, %v10540_v5  ;;  %v10545_v53 = vld [vmem:[#allocation125_spill] sm:$0xff]  ;;  %v7405_v5 = vmul.f32 %v6803_v27, %v10546_v0  ;;  %v10549_v51 = vunpack.c.l.bf16 %v10548_v50  ;;  %2199 = vperm.xlu1 %3852, %v7417_v17   ;;  %v10551_v0 = vld [vmem:[#allocation368_spill] sm:$0xff] }
 0x337   :  { %10534 = vst [vmem:[#allocation293_spill] sm:$0xff] %v7366_v60  ;;  %10543 = vst [vmem:[#allocation254_spill] sm:$0xff] %v7387_v28  ;;  %v7401_v10 = vmul.f32 %v6803_v27, %v10545_v53  ;;  %v3527_v23 = vmul.f32 %v10551_v0, %v6722_v1  ;;  %v10552_v57 = vld [vmem:[#allocation78_spill] sm:$0xff]  ;;  %v3467_v53 = vunpack.c.h.bf16 %v7395_v15  ;;  %v10561_v1 = vld [vmem:[#allocation77_spill] sm:$0xff]  ;;  %2364 = vperm.xlu0 %3854, %v7186_v56  }
 0x338   :  { %10541 = vst [vmem:[#allocation281_spill] sm:$0xff] %v7382_v30  ;;  %10547 = vst [vmem:[#allocation279_spill] sm:$0xff] %v7405_v5  ;;  %v7411_v46 = vadd.f32 %v3303_v13, %v10549_v51  ;;  %v2761_v44 = vmul.f32 %v10552_v57, %v6751_v47  ;;  %v10553_v13 = vld [vmem:[#allocation371_spill] sm:$0xff]  ;;  %v7428_v51 = vpop.permute.xlu1 %1853  ;;  %v2701_v57 = vunpack.c.h.bf16 %v7413_v61  ;;  %v7445_v37 = vpop.permute.xlu0 %1954  ;;  %v10559_v30 = vld [vmem:[#allocation128_spill] sm:$0xff]  ;;  %v3529_v25 = vmul.f32 %v10561_v1, %v6751_v47 }
 0x339   :  { %v2985_v50 = vmul.f32 %v10553_v13, %v6751_v47  ;;  %10554 = vst [vmem:[#allocation287_spill] sm:$0xff] %v7428_v51  ;;  %v2925_v13 = vunpack.c.h.bf16 %v7415_v63  ;;  %v7441_v51 = vld [vmem:[#allocation6 + $0x350] sm:$0xff]   ;;  %10556 = vst [vmem:[#allocation59_spill] sm:$0xff] %v7445_v37  ;;  %v7453_v26 = vmul.f32 %v6803_v27, %v10559_v30  ;;  %v10562_v0 = vld [vmem:[#allocation373_spill] sm:$0xff]  ;;  %v7466_v4 = vadd.f32 %v3527_v23, %v10566_v42 }
 0x33a   :  { %10550 = vst [vmem:[#allocation55_spill] sm:$0xff] %v7411_v46  ;;  %10558 = vst [vmem:[#allocation309_spill] sm:$0xff] %v7449_v34  ;;  %v10563_v60 = vunpack.c.l.bf16 %v10562_v0  ;;  %v10564_v41 = vunpack.c.h.bf16 %v10562_v0  ;;  %v7461_v62 = vld [vmem:[#allocation2 + $0xa8] sm:$0xff]  ;;  %v2763_v1 = vmul.f32 %v6323_v3, %v6770_v36  ;;  %v3245_v42 = vunpack.c.h.bf16 %v7441_v51  ;;  %v7488_v48 = vld [vmem:[#allocation6 + $0x390] sm:$0xff]  }
 0x33b   :  { %10560 = vst [vmem:[#allocation109_spill] sm:$0xff] %v7453_v26  ;;  %2207 = vperm.xlu1 %3852, %v7461_v62   ;;  %10567 = vst [vmem:[#allocation110_spill] sm:$0xff] %v7466_v4  ;;  %v10568_v37 = vld [vmem:[#allocation364_spill] sm:$0xff]  ;;  %v7474_v47 = vadd.f32 %v2985_v50, %v10572_v58  ;;  %v3469_v23 = vunpack.c.h.bf16 %v7443_v7  ;;  %v10575_v3 = vunpack.c.l.bf16 %v7395_v15  ;;  %v2987_v58 = vmul.f32 %v6330_v2, %v6770_v36 }
 0x33c   :  { %v3275_v9 = vsub.f32 %v10564_v41, %v10563_v60  ;;  %v10569_v18 = vunpack.c.l.bf16 %v10568_v37  ;;  %v7478_v41 = vld [vmem:[#allocation6 + $0x380] sm:$0xff]   ;;  %v7480_v60 = vld [vmem:[#allocation6 + $0x388] sm:$0xff]   ;;  %v7482_v16 = vpop.permute.xlu1 %1861  ;;  %v10576_v50 = vunpack.c.l.bf16 %v7413_v61  ;;  %v7501_v14 = vpop.permute.xlu0 %1962  ;;  %v10584_v12 = vld [vmem:[#allocation76_spill] sm:$0xff]  ;;  %v10587_v45 = vunpack.c.l.bf16 %v7441_v51  ;;  %2372 = vperm.xlu0 %3854, %v7242_v32  }
 0x33d   :  { %10573 = vst [vmem:[#allocation311_spill] sm:$0xff] %v7474_v47  ;;  %10574 = vst [vmem:[#allocation280_spill] sm:$0xff] %v7482_v16  ;;  %v3499_v37 = vsub.f32 %v3467_v53, %v10575_v3  ;;  %v10577_v16 = vunpack.c.l.bf16 %v7415_v63  ;;  %v2703_v26 = vunpack.c.h.bf16 %v7478_v41  ;;  %v2927_v5 = vunpack.c.h.bf16 %v7480_v60  ;;  %v7507_v53 = vld [vmem:[#allocation2 + $0xb8] sm:$0xff]  ;;  %v10608_v32 = vld [vmem:[#allocation131_spill] sm:$0xff] }
 0x33e   :  { %v7470_v30 = vadd.f32 %v2761_v44, %v10569_v18  ;;  %v7490_v44 = vld [vmem:[#allocation6 + $0x398] sm:$0xff]   ;;  %v2733_v8 = vsub.f32 %v2701_v57, %v10576_v50  ;;  %10578 = vst [vmem:[#allocation283_spill] sm:$0xff] %v7501_v14  ;;  %10579 = vst [vmem:[#allocation259_spill] sm:$0xff] %v7507_v53  ;;  %v3247_v57 = vunpack.c.h.bf16 %v7488_v48  ;;  %v10581_v50 = vld [vmem:[#allocation366_spill] sm:$0xff]  ;;  %v10585_v28 = vunpack.c.l.bf16 %v10584_v12 }
 0x33f   :  { %v2957_v18 = vsub.f32 %v2925_v13, %v10577_v16  ;;  %2215 = vperm.xlu1 %3852, %v7507_v53   ;;  %v3471_v13 = vunpack.c.h.bf16 %v7490_v44  ;;  %v10582_v52 = vunpack.c.l.bf16 %v10581_v50  ;;  %v3277_v43 = vsub.f32 %v3245_v42, %v10587_v45  ;;  %v7548_v12 = vld [vmem:[#allocation2 + $0xc8] sm:$0xff]  ;;  %v10682_v47 = vld [vmem:[#allocation29_spill] sm:$0xff] }
 0x340   :  { %10570 = vst [vmem:[#allocation310_spill] sm:$0xff] %v7470_v30  ;;  %v7514_v3 = vpop.permute.xlu1 %1869  ;;  %v7522_v49 = vadd.f32 %v3529_v25, %v10585_v28  ;;  %v10588_v2 = vunpack.c.l.bf16 %v7443_v7  ;;  %v10589_v16 = vunpack.c.l.bf16 %v6217_v20  ;;  %v3531_v25 = vmul.f32 %v3499_v37, %v6770_v36  ;;  %v7539_v28 = vpop.permute.xlu0 %1970  ;;  %2380 = vperm.xlu0 %3854, %v7289_v29   ;;  %v10622_v51 = vld [vmem:[#allocation136_spill] sm:$0xff] }
 0x341   :  { %10580 = vst [vmem:[#allocation268_spill] sm:$0xff] %v7514_v3  ;;  %v7518_v14 = vadd.f32 %v3305_v54, %v10582_v52  ;;  %v10591_v3 = vld [vmem:[#allocation369_spill] sm:$0xff]  ;;  %v3307_v54 = vmul.f32 %v3275_v9, %v6770_v36  ;;  %10594 = vst [vmem:[#allocation289_spill] sm:$0xff] %v7539_v28  ;;  %v2765_v42 = vmul.f32 %v2733_v8, %v6854_v11  ;;  %v10595_v56 = vunpack.c.l.bf16 %v7478_v41 }
 0x342   :  { %10586 = vst [vmem:[#allocation272_spill] sm:$0xff] %v7522_v49  ;;  %v3501_v53 = vsub.f32 %v3469_v23, %v10588_v2  ;;  %v7531_v34 = vadd.f32 %v2763_v1, %v10589_v16  ;;  %v10592_v50 = vunpack.c.l.bf16 %v10591_v3  ;;  %v10596_v1 = vunpack.c.l.bf16 %v7480_v60  ;;  %v7564_v3 = vld [vmem:[#allocation4 + $0x4] ss:$0 sm:$0xff] }
 0x343   :  { %10583 = vst [vmem:[#allocation50_spill] sm:$0xff] %v7518_v14  ;;  %v2735_v20 = vsub.f32 %v2703_v26, %v10595_v56  ;;  %2223 = vperm.xlu1 %3852, %v7548_v12   ;;  %v2989_v9 = vmul.f32 %v2957_v18, %v6854_v11  ;;  %v10597_v37 = vunpack.c.l.bf16 %v7488_v48  ;;  %v10598_v8 = vunpack.c.l.bf16 %v7490_v44  ;;  %v10600_v26 = vld [vmem:[#allocation129_spill] sm:$0xff] }
 0x344   :  { %10590 = vst [vmem:[#allocation288_spill] sm:$0xff] %v7531_v34  ;;  %v7535_v52 = vadd.f32 %v2987_v58, %v10592_v50  ;;  %v2959_v23 = vsub.f32 %v2927_v5, %v10596_v1  ;;  %v7558_v16 = vpop.permute.xlu1 %1877  ;;  %v7562_v5 = vmul.f32 %v6803_v27, %v10600_v26  ;;  %v3309_v56 = vmul.f32 %v3277_v43, %v6854_v11  ;;  %v7585_v43 = vld [vmem:[#allocation6 + $0x3c0] sm:$0xff]  }
 0x345   :  { %v3279_v58 = vsub.f32 %v3247_v57, %v10597_v37  ;;  %v3503_v2 = vsub.f32 %v3471_v13, %v10598_v8  ;;  %10599 = vst [vmem:[#allocation111_spill] sm:$0xff] %v7558_v16  ;;  %v3533_v18 = vmul.f32 %v3501_v53, %v6854_v11  ;;  %v10601_v57 = vld [vmem:[#allocation130_spill] sm:$0xff]  ;;  %v10602_v37 = vunpack.c.l.bf16 %v10562_v0  ;;  %10606 = vst [vmem:[#allocation295_spill] sm:$0xff] %v7585_v43  ;;  %v7587_v11 = vpop.permute.xlu0 %1978 }
 0x346   :  { %10593 = vst [vmem:[#allocation294_spill] sm:$0xff] %v7535_v52  ;;  %v7573_v13 = vmul.f32 %v6803_v27, %v10601_v57  ;;  %v10604_v26 = vunpack.c.l.bf16 %v7395_v15  ;;  %10607 = vst [vmem:[#allocation112_spill] sm:$0xff] %v7587_v11  ;;  %v7591_v53 = vmul.f32 %v6803_v27, %v10608_v32  ;;  %v10609_v57 = vunpack.c.l.bf16 %v7413_v61  ;;  %v10611_v15 = vld [vmem:[#allocation134_spill] sm:$0xff]  ;;  %2388 = vperm.xlu0 %3854, %v7351_v55  }
 0x347   :  { %v7579_v8 = vadd.f32 %v3307_v54, %v10602_v37  ;;  %v2767_v0 = vmul.f32 %v2735_v20, %v6890_v21  ;;  %v2991_v54 = vmul.f32 %v2959_v23, %v6890_v21  ;;  %v7599_v37 = vld [vmem:[#allocation2 + $0xd8] sm:$0xff]  ;;  %v3311_v32 = vmul.f32 %v3279_v58, %v6890_v21  ;;  %v10620_v58 = vld [vmem:[#allocation132_spill] sm:$0xff] }
 0x348   :  { %v7583_v50 = vadd.f32 %v3531_v25, %v10604_v26  ;;  %v7595_v36 = vadd.f32 %v2765_v42, %v10609_v57  ;;  %2231 = vperm.xlu1 %3852, %v7599_v37   ;;  %v1237_v25 = vmul.f32 %v7564_v3, %v10611_v15  ;;  %v10612_v26 = vunpack.c.l.bf16 %v7415_v63  ;;  %v7610_v42 = vld [vmem:[#allocation6 + $0x3c8] sm:$0xff]   ;;  %v7612_v20 = vpop.permute.xlu1 %1885  ;;  %v7649_v63 = vld [vmem:[#allocation6 + $0x3d0] sm:$0xff]  }
 0x349   :  { %10603 = vst [vmem:[#allocation297_spill] sm:$0xff] %v7579_v8  ;;  %v3535_v61 = vmul.f32 %v3503_v2, %v6890_v21  ;;  %10614 = vst [vmem:[#allocation114_spill] sm:$0xff] %v7610_v42  ;;  %v10616_v23 = vmov %v10587_v45  ;;  %v10618_v45 = vunpack.c.l.bf16 %v7443_v7  ;;  %v7627_v21 = vmul.f32 %v6803_v27, %v10620_v58  ;;  %v10621_v2 = vld [vmem:[#allocation133_spill] sm:$0xff]  ;;  %v10634_v8 = vld [vmem:[#allocation138_spill] sm:$0xff] }
 0x34a   :  { %10605 = vst [vmem:[#allocation298_spill] sm:$0xff] %v7583_v50  ;;  %10610 = vst [vmem:[#allocation299_spill] sm:$0xff] %v7595_v36  ;;  %v7606_v1 = vadd.f32 %v2989_v9, %v10612_v26  ;;  %v7616_v57 = vadd.f32 %v3309_v56, %v10616_v23  ;;  %v2705_v9 = vunpack.c.h.bf16 %v7585_v43  ;;  %v7631_v15 = vmul.f32 %v6803_v27, %v10621_v2  ;;  %v10648_v36 = vld [vmem:[#allocation145_spill] sm:$0xff]  ;;  %v10670_v52 = vld [vmem:[#allocation22_spill] sm:$0xff] }
 0x34b   :  { %10615 = vst [vmem:[#allocation314_spill] sm:$0xff] %v7612_v20  ;;  %v7620_v34 = vadd.f32 %v3533_v18, %v10618_v45  ;;  %v1240_v56 = vmul.f32 %v7564_v3, %v10622_v51  ;;  %v7637_v45 = vpop.permute.xlu0 %1986  ;;  %v10624_v18 = vunpack.c.l.bf16 %v7478_v41  ;;  %v10626_v29 = vunpack.c.l.bf16 %v7480_v60  ;;  %10628 = vst [vmem:[#allocation319_spill] sm:$0xff] %v7649_v63  ;;  %v7651_v51 = vld [vmem:[#allocation2 + $0xe8] sm:$0xff]  ;;  %2396 = vperm.xlu0 %3854, %v7417_v17  }
 0x34c   :  { %10613 = vst [vmem:[#allocation113_spill] sm:$0xff] %v7606_v1  ;;  %10617 = vst [vmem:[#allocation315_spill] sm:$0xff] %v7616_v57  ;;  %v2929_v2 = vunpack.c.h.bf16 %v7610_v42  ;;  %2239 = vperm.xlu1 %3852, %v7651_v51   ;;  %v7655_v7 = vadd.f32 %v1237_v25, %v6900_v35  ;;  %v10629_v60 = vunpack.c.l.bf16 %v7488_v48  ;;  %v1242_v50 = vmul.f32 %v7564_v3, %v10634_v8  ;;  %v7677_v48 = vld [vmem:[#allocation6 + $0x3d8] sm:$0xff]   ;;  %v10640_v35 = vld [vmem:[#allocation141_spill] sm:$0xff] }
 0x34d   :  { %10619 = vst [vmem:[#allocation275_spill] sm:$0xff] %v7620_v34  ;;  %10623 = vst [vmem:[#allocation318_spill] sm:$0xff] %v7637_v45  ;;  %v7641_v26 = vadd.f32 %v2767_v0, %v10624_v18  ;;  %v7645_v23 = vadd.f32 %v2991_v54, %v10626_v29  ;;  %v10631_v54 = vunpack.c.l.bf16 %v7490_v44  ;;  %v10633_v29 = vld [vmem:[#allocation135_spill] sm:$0xff]  ;;  %v10635_v25 = vunpack.c.l.bf16 %v7585_v43  ;;  %v7680_v44 = vpop.permute.xlu1 %1930  ;;  %v10643_v8 = vld [vmem:[#allocation142_spill] sm:$0xff] }
 0x34e   :  { %v7661_v0 = vadd.f32 %v3311_v32, %v10629_v60  ;;  %v7669_v58 = vmul.f32 %v6803_v27, %v10633_v29  ;;  %10636 = vst [vmem:[#allocation316_spill] sm:$0xff] %v7677_v48  ;;  %v7683_v32 = vadd.f32 %v1240_v56, %v7042_v24  ;;  %v1238_v55 = vmul.f32 %v7564_v3, %v10640_v35  ;;  %v10644_v34 = vld [vmem:[#allocation143_spill] sm:$0xff] }
 0x34f   :  { %10625 = vst [vmem:[#allocation115_spill] sm:$0xff] %v7641_v26  ;;  %10627 = vst [vmem:[#allocation276_spill] sm:$0xff] %v7645_v23  ;;  %v7665_v18 = vadd.f32 %v3535_v61, %v10631_v54  ;;  %v2737_v41 = vsub.f32 %v2705_v9, %v10635_v25  ;;  %v10637_v61 = vld [vmem:[#allocation137_spill] sm:$0xff]  ;;  %v3249_v54 = vunpack.c.h.bf16 %v7649_v63  ;;  %v7691_v29 = vpop.permute.xlu0 %1994  ;;  %v10639_v9 = vld [vmem:[#allocation140_spill] sm:$0xff]  ;;  %v10641_v56 = vunpack.c.l.bf16 %v7610_v42  ;;  %2404 = vperm.xlu0 %3854, %v7461_v62  }
 0x350   :  { %10630 = vst [vmem:[#allocation284_spill] sm:$0xff] %v7661_v0  ;;  %v7687_v60 = vmul.f32 %v6803_v27, %v10637_v61  ;;  %10638 = vst [vmem:[#allocation321_spill] sm:$0xff] %v7691_v29  ;;  %v1244_v25 = vmul.f32 %v7564_v3, %v10639_v9  ;;  %v7703_v61 = vld [vmem:[#allocation2 + $0xf8] sm:$0xff]  ;;  %v1246_v57 = vmul.f32 %v7564_v3, %v10643_v8  ;;  %v10656_v1 = vmov 11   ;;  %v10666_v62 = vld [vmem:[#allocation156_spill] sm:$0xff] }
 0x351   :  { %10632 = vst [vmem:[#allocation320_spill] sm:$0xff] %v7665_v18  ;;  %v7701_v43 = vsub.f32 %v2929_v2, %v10641_v56  ;;  %2247 = vperm.xlu1 %3852, %v7703_v61   ;;  %v1239_v9 = vmul.f32 %v7564_v3, %v10644_v34  ;;  %v7714_v24 = vadd.f32 %v1242_v50, %v7068_v6  ;;  %v10645_v2 = vld [vmem:[#allocation144_spill] sm:$0xff]  ;;  %v7723_v8 = vpop.permute.xlu1 %1934  ;;  %v10647_v34 = vld [vmem:[#allocation139_spill] sm:$0xff]  ;;  %v10649_v50 = vld [vmem:[#allocation146_spill] sm:$0xff] }
 0x352   :  { %v1248_v56 = vmul.f32 %v7564_v3, %v10645_v2  ;;  %v7720_v23 = vmul.f32 %v2737_v41, %v6911_v59  ;;  %v7727_v35 = vmul.f32 %v6803_v27, %v10647_v34  ;;  %v1241_v6 = vmul.f32 %v7564_v3, %v10648_v36  ;;  %v10653_v18 = vld [vmem:[#allocation163_spill] sm:$0xff] }
 0x353   :  { %10642 = vst [vmem:[#allocation285_spill] sm:$0xff] %v7701_v43  ;;  %v1250_v0 = vmul.f32 %v7564_v3, %v10649_v50  ;;  %v10650_v2 = vunpack.c.l.bf16 %v7649_v63  ;;  %v7737_v41 = vpop.permute.xlu0 %2002  ;;  %v7740_v17 = vadd.f32 %v1244_v25, %v7096_v39  ;;  %v7743_v42 = vadd.f32 %v1238_v55, %v10653_v18  ;;  %v10654_v27 = vld [vmem:[#allocation147_spill] sm:$0xff]  ;;  %v10658_v25 = vld [vmem:[#allocation150_spill] sm:$0xff]  ;;  %v3925_v55 = vld [vmem:[#allocation2 + $0x8] sm:$0xff] }
 0x354   :  { %10646 = vst [vmem:[#allocation303_spill] sm:$0xff] %v7720_v23  ;;  %10652 = vst [vmem:[#allocation333_spill] sm:$0xff] %v7737_v41  ;;  %v1243_v34 = vmul.f32 %v7564_v3, %v10654_v27  ;;  %v10655_v23 = vld [vmem:[#allocation148_spill] sm:$0xff]  ;;  %v7751_v50 = vadd.f32 %v1246_v57, %v7222_v19  ;;  %v1254_v18 = vmul.f32 %v7564_v3, %v10658_v25  ;;  %v10661_v57 = vld [vmem:[#allocation153_spill] sm:$0xff] }
 0x355   :  { %v7735_v26 = vsub.f32 %v3249_v54, %v10650_v2  ;;  %v1252_v36 = vmul.f32 %v7564_v3, %v10655_v23  ;;  %3855 = vset.pattern.permute.xlu1 %v10656_v1  ;;  %v7754_v54 = vadd.f32 %v1239_v9, %v6982_v22  ;;  %v10657_v2 = vld [vmem:[#allocation149_spill] sm:$0xff]  ;;  %v7761_v27 = vadd.f32 %v1248_v56, %v7234_v31  ;;  %v10659_v23 = vld [vmem:[#allocation151_spill] sm:$0xff]  ;;  %v10660_v63 = vld [vmem:[#allocation152_spill] sm:$0xff]  ;;  %v7770_v9 = vpop.permute.xlu1 %1942 }
 0x356   :  { %v1245_v39 = vmul.f32 %v7564_v3, %v10657_v2  ;;  %2324 = vperm.xlu1 %3855, %v3925_v55   ;;  %v1247_v1 = vmul.f32 %v7564_v3, %v10659_v23  ;;  %v1256_v19 = vmul.f32 %v7564_v3, %v10660_v63  ;;  %v1249_v22 = vmul.f32 %v7564_v3, %v10661_v57  ;;  %v10662_v31 = vld [vmem:[#allocation154_spill] sm:$0xff]  ;;  %v10663_v55 = vld [vmem:[#allocation155_spill] sm:$0xff] }
 0x357   :  { %10651 = vst [vmem:[#allocation327_spill] sm:$0xff] %v7735_v26  ;;  %v1273_v2 = vadd.f32 %v1241_v6, %v6860_v40  ;;  %v7774_v25 = vadd.f32 %v1250_v0, %v7339_v38  ;;  %v1258_v56 = vmul.f32 %v7564_v3, %v10662_v31  ;;  %v1251_v23 = vmul.f32 %v7564_v3, %v10663_v55  ;;  %v7780_v26 = vpop.permute.xlu0 %2010  ;;  %v10665_v63 = vld [vmem:[#allocation98_spill] sm:$0xff]  ;;  %v10668_v0 = vld [vmem:[#allocation243_spill] sm:$0xff] }
 0x358   :  { %10664 = vst [vmem:[#allocation304_spill] sm:$0xff] %v7780_v26  ;;  %v1275_v43 = vadd.f32 %v1243_v34, %v10665_v63  ;;  %v7784_v57 = vadd.f32 %v1252_v36, %v7372_v33  ;;  %v1260_v59 = vmul.f32 %v7564_v3, %v10666_v62  ;;  %v10667_v40 = vld [vmem:[#allocation10_spill] sm:$0xff]  ;;  %v7791_v6 = vadd.f32 %v1245_v39, %v10668_v0  ;;  %v10669_v55 = vld [vmem:[#allocation11_spill] sm:$0xff]  ;;  %v10671_v33 = vld [vmem:[#allocation209_spill] sm:$0xff] }
 0x359   :  { %v1253_v38 = vmul.f32 %v7564_v3, %v10667_v40  ;;  %v7794_v31 = vadd.f32 %v1254_v18, %v7401_v10  ;;  %v1262_v48 = vmul.f32 %v7564_v3, %v10669_v55  ;;  %v1255_v34 = vmul.f32 %v7564_v3, %v10670_v52  ;;  %v10672_v36 = vld [vmem:[#allocation240_spill] sm:$0xff]  ;;  %v10673_v62 = vld [vmem:[#allocation309_spill] sm:$0xff]  ;;  %v10674_v40 = vld [vmem:[#allocation103_spill] sm:$0xff]  ;;  %v7813_v55 = vpop.permute.xlu1 %1950 }
 0x35a   :  { %2328 = vperm.xlu1 %3855, %v10671_v33   ;;  %v1279_v63 = vadd.f32 %v1247_v1, %v10672_v36  ;;  %v7803_v14 = vadd.f32 %v1256_v19, %v10673_v62  ;;  %v7806_v49 = vadd.f32 %v1249_v22, %v10674_v40  ;;  %v10675_v39 = vld [vmem:[#allocation15_spill] sm:$0xff]  ;;  %v7816_v52 = vadd.f32 %v1258_v56, %v7562_v5  ;;  %v10677_v33 = vld [vmem:[#allocation262_spill] sm:$0xff]  ;;  %v10683_v56 = vld [vmem:[#allocation164_spill] sm:$0xff] }
 0x35b   :  { %v1264_v10 = vmul.f32 %v7564_v3, %v10675_v39  ;;  %v7810_v18 = vld [vmem:[#allocation4 + $0x7] ss:$0 sm:$0xff]  ;;  %v7819_v1 = vadd.f32 %v1251_v23, %v10677_v33  ;;  %v10678_v19 = vld [vmem:[#allocation26_spill] sm:$0xff]  ;;  %v7825_v40 = vpop.permute.xlu0 %2018  ;;  %v7828_v39 = vadd.f32 %v1260_v59, %v7591_v53  ;;  %v1259_v5 = vmul.f32 %v7564_v3, %v10682_v47 }
 0x35c   :  { %v10676_v0 = vld [vmem:[#allocation259_spill] sm:$0xff]  ;;  %v1257_v36 = vmul.f32 %v7564_v3, %v10678_v19  ;;  %10680 = vst [vmem:[#allocation334_spill] sm:$0xff] %v7825_v40  ;;  %v1268_v23 = vmul.f32 %v7564_v3, %v10683_v56  ;;  %v7838_v33 = vadd.f32 %v1262_v48, %v7631_v15  ;;  %v10684_v19 = vld [vmem:[#allocation237_spill] sm:$0xff]  ;;  %v10687_v56 = vld [vmem:[#allocation32_spill] sm:$0xff] }
 0x35d   :  { %2412 = vperm.xlu0 %3854, %v10676_v0   ;;  %v10679_v22 = vld [vmem:[#allocation27_spill] sm:$0xff]  ;;  %v10681_v0 = vld [vmem:[#allocation232_spill] sm:$0xff]  ;;  %v7841_v46 = vadd.f32 %v1255_v34, %v10684_v19  ;;  %v7850_v47 = vadd.f32 %v1264_v10, %v7669_v58  ;;  %v1263_v15 = vmul.f32 %v7564_v3, %v10687_v56  ;;  %v10689_v19 = vld [vmem:[#allocation38_spill] sm:$0xff] }
 0x35e   :  { %v1266_v62 = vmul.f32 %v7564_v3, %v10679_v22  ;;  %v7831_v30 = vadd.f32 %v1253_v38, %v10681_v0  ;;  %v10685_v22 = vld [vmem:[#allocation174_spill] sm:$0xff]  ;;  %v10686_v59 = vld [vmem:[#allocation31_spill] sm:$0xff]  ;;  %v7847_v38 = vld [vmem:[#allocation4 + $0xa] ss:$0 sm:$0xff]  ;;  %v1434_v20 = vmul.f32 %v7810_v18, %v10689_v19 }
 0x35f   :  { %v1261_v4 = vmul.f32 %v7564_v3, %v10685_v22  ;;  %v1435_v53 = vmul.f32 %v7810_v18, %v10686_v59  ;;  %v3926_v0 = vld [vmem:[#allocation2 + $0x20] sm:$0xff]  ;;  %v10688_v48 = vld [vmem:[#allocation180_spill] sm:$0xff]  ;;  %v7859_v22 = vpop.permute.xlu1 %1958  ;;  %v10690_v59 = vld [vmem:[#allocation246_spill] sm:$0xff] }
 0x360   :  { %2336 = vperm.xlu1 %3855, %v3926_v0   ;;  %v1438_v34 = vmul.f32 %v7810_v18, %v10688_v48  ;;  %v7862_v16 = vadd.f32 %v1257_v36, %v10690_v59  ;;  %v7865_v0 = vadd.f32 %v1266_v62, %v7687_v60  ;;  %v10691_v58 = vld [vmem:[#allocation188_spill] sm:$0xff]  ;;  %v10692_v56 = vld [vmem:[#allocation195_spill] sm:$0xff]  ;;  %v7871_v48 = vpop.permute.xlu0 %2026  ;;  %v10694_v26 = vld [vmem:[#allocation254_spill] sm:$0xff] }
 0x361   :  { %2420 = vperm.xlu0 %3854, %v7548_v12   ;;  %v1265_v10 = vmul.f32 %v7564_v3, %v10691_v58  ;;  %v1440_v40 = vmul.f32 %v7810_v18, %v10692_v56  ;;  %10693 = vst [vmem:[#allocation336_spill] sm:$0xff] %v7871_v48  ;;  %v7874_v19 = vadd.f32 %v1259_v5, %v10694_v26  ;;  %v10695_v41 = vld [vmem:[#allocation35_spill] sm:$0xff] }
 0x362   :  { %v7877_v12 = vadd.f32 %v1268_v23, %v7727_v35  ;;  %v1267_v36 = vmul.f32 %v7564_v3, %v10695_v41  ;;  %v10696_v59 = vld [vmem:[#allocation187_spill] sm:$0xff]  ;;  %v7887_v58 = vadd.f32 %v1435_v53, %v7743_v42  ;;  %v3927_v35 = vld [vmem:[#allocation2 + $0x30] sm:$0xff]  ;;  %v7896_v3 = vadd.f32 %v1438_v34, %v1273_v2 }
 0x363   :  { %v1631_v60 = vmul.f32 %v7847_v38, %v10696_v59  ;;  %v10697_v62 = vld [vmem:[#allocation279_spill] sm:$0xff]  ;;  %v10700_v23 = vld [vmem:[#allocation109_spill] sm:$0xff]  ;;  %v1466_v41 = vadd.f32 %v1434_v20, %v7655_v7  ;;  %v7902_v42 = vpop.permute.xlu1 %1966  ;;  %v7905_v53 = vadd.f32 %v1265_v10, %v7573_v13  ;;  %v10707_v7 = vld [vmem:[#allocation42_spill] sm:$0xff] }
 0x364   :  { %v7884_v29 = vadd.f32 %v1261_v4, %v10697_v62  ;;  %v10698_v56 = vld [vmem:[#allocation199_spill] sm:$0xff]  ;;  %2344 = vperm.xlu1 %3855, %v3927_v35   ;;  %v7894_v45 = vadd.f32 %v1263_v15, %v10700_v23  ;;  %v10701_v4 = vld [vmem:[#allocation216_spill] sm:$0xff]  ;;  %v7907_v62 = vadd.f32 %v1440_v40, %v1275_v43  ;;  %v7913_v34 = vpop.permute.xlu0 %2034  ;;  %v7916_v20 = vadd.f32 %v1267_v36, %v7627_v21  ;;  %v10709_v23 = vld [vmem:[#allocation238_spill] sm:$0xff] }
 0x365   :  { %v1442_v48 = vmul.f32 %v7810_v18, %v10698_v56  ;;  %v10699_v26 = vld [vmem:[#allocation39_spill] sm:$0xff]  ;;  %v1436_v59 = vmul.f32 %v7810_v18, %v10701_v4  ;;  %2428 = vperm.xlu0 %3854, %v7599_v37   ;;  %10702 = vst [vmem:[#allocation337_spill] sm:$0xff] %v7905_v53  ;;  %v10703_v56 = vld [vmem:[#allocation220_spill] sm:$0xff]  ;;  %10705 = vst [vmem:[#allocation116_spill] sm:$0xff] %v7913_v34  ;;  %v1448_v37 = vmul.f32 %v7810_v18, %v10707_v7 }
 0x366   :  { %v1444_v5 = vmul.f32 %v7810_v18, %v10699_v26  ;;  %v1446_v15 = vmul.f32 %v7810_v18, %v10703_v56  ;;  %v10704_v26 = vld [vmem:[#allocation230_spill] sm:$0xff]  ;;  %10706 = vst [vmem:[#allocation338_spill] sm:$0xff] %v7916_v20  ;;  %v10708_v35 = vld [vmem:[#allocation43_spill] sm:$0xff]  ;;  %v1663_v10 = vadd.f32 %v1631_v60, %v1466_v41  ;;  %v1450_v4 = vmul.f32 %v7810_v18, %v10709_v23  ;;  %v10711_v7 = vld [vmem:[#allocation253_spill] sm:$0xff] }
 0x367   :  { %v1437_v2 = vmul.f32 %v7810_v18, %v10704_v26  ;;  %v1439_v13 = vmul.f32 %v7810_v18, %v10708_v35  ;;  %v7923_v43 = vadd.f32 %v1442_v48, %v7791_v6  ;;  %v10710_v56 = vld [vmem:[#allocation250_spill] sm:$0xff]  ;;  %v3928_v21 = vld [vmem:[#allocation2 + $0x40] sm:$0xff]  ;;  %v7932_v36 = vadd.f32 %v1436_v59, %v7754_v54  ;;  %v10712_v60 = vld [vmem:[#allocation45_spill] sm:$0xff] }
 0x368   :  { %v7925_v40 = vadd.f32 %v1444_v5, %v1279_v63  ;;  %v1441_v26 = vmul.f32 %v7810_v18, %v10710_v56  ;;  %2352 = vperm.xlu1 %3855, %v3928_v21   ;;  %v1452_v35 = vmul.f32 %v7810_v18, %v10711_v7  ;;  %v1443_v6 = vmul.f32 %v7810_v18, %v10712_v60  ;;  %v10713_v48 = vld [vmem:[#allocation324_spill] sm:$0xff]  ;;  %v7941_v5 = vpop.permute.xlu1 %1974  ;;  %v10714_v54 = vld [vmem:[#allocation47_spill] sm:$0xff]  ;;  %v10715_v56 = vld [vmem:[#allocation265_spill] sm:$0xff]  ;;  %v7951_v7 = vpop.permute.xlu0 %2042 }
 0x369   :  { %v1634_v63 = vmul.f32 %v7847_v38, %v10713_v48  ;;  %2436 = vperm.xlu0 %3854, %v7651_v51   ;;  %v7944_v41 = vadd.f32 %v1446_v15, %v7806_v49  ;;  %v1469_v23 = vadd.f32 %v1437_v2, %v7683_v32  ;;  %v1454_v59 = vmul.f32 %v7810_v18, %v10714_v54  ;;  %v10717_v48 = vld [vmem:[#allocation49_spill] sm:$0xff]  ;;  %v10741_v34 = vld [vmem:[#allocation28_spill] sm:$0xff] }
 0x36a   :  { %v1445_v21 = vmul.f32 %v7810_v18, %v10715_v56  ;;  %10716 = vst [vmem:[#allocation341_spill] sm:$0xff] %v7951_v7  ;;  %v7954_v60 = vadd.f32 %v1448_v37, %v7819_v1  ;;  %v1471_v51 = vadd.f32 %v1439_v13, %v7714_v24  ;;  %v1456_v20 = vmul.f32 %v7810_v18, %v10717_v48  ;;  %v10719_v2 = vld [vmem:[#allocation269_spill] sm:$0xff]  ;;  %v10722_v37 = vld [vmem:[#allocation282_spill] sm:$0xff] }
 0x36b   :  { %v1695_v49 = vfloor.f32 %v1663_v10  ;;  %v7960_v15 = vadd.f32 %v1450_v4, %v7831_v30  ;;  %v1473_v32 = vadd.f32 %v1441_v26, %v7740_v17  ;;  %v1447_v54 = vmul.f32 %v7810_v18, %v10719_v2  ;;  %v10720_v56 = vld [vmem:[#allocation273_spill] sm:$0xff] }
 0x36c   :  { %v1458_v53 = vmul.f32 %v7810_v18, %v10720_v56  ;;  %v3929_v7 = vld [vmem:[#allocation2 + $0x50] sm:$0xff]  ;;  %v7968_v1 = vadd.f32 %v1452_v35, %v7841_v46  ;;  %v1475_v24 = vadd.f32 %v1443_v6, %v7751_v50  ;;  %v1449_v13 = vmul.f32 %v7810_v18, %v10722_v37  ;;  %v7974_v17 = vpop.permute.xlu1 %1982  ;;  %v10725_v35 = vld [vmem:[#allocation63_spill] sm:$0xff]  ;;  %v7986_v6 = vpop.permute.xlu0 %2050 }
 0x36d   :  { %10718 = vst [vmem:[#allocation342_spill] sm:$0xff] %v7960_v15  ;;  %2360 = vperm.xlu1 %3855, %v3929_v7   ;;  %v1666_v30 = vadd.f32 %v1634_v63, %v1469_v23  ;;  %2444 = vperm.xlu0 %3854, %v7703_v61   ;;  %v7977_v4 = vadd.f32 %v1454_v59, %v7862_v16  ;;  %v10724_v7 = vld [vmem:[#allocation53_spill] sm:$0xff]  ;;  %10726 = vst [vmem:[#allocation290_spill] sm:$0xff] %v7986_v6  ;;  %v10728_v61 = vld [vmem:[#allocation54_spill] sm:$0xff] }
 0x36e   :  { %10721 = vst [vmem:[#allocation305_spill] sm:$0xff] %v7968_v1  ;;  %v7980_v26 = vadd.f32 %v1445_v21, %v7761_v27  ;;  %v1460_v46 = vmul.f32 %v7810_v18, %v10724_v7  ;;  %v1636_v50 = vmul.f32 %v7847_v38, %v10725_v35  ;;  %v7989_v63 = vadd.f32 %v1456_v20, %v7874_v19  ;;  %v10729_v16 = vld [vmem:[#allocation340_spill] sm:$0xff]  ;;  %v7995_v27 = vld [vmem:[#allocation4 + $0x5] ss:$0 sm:$0xff]  ;;  %v10776_v15 = vld [vmem:[#allocation349_spill] sm:$0xff] }
 0x36f   :  { %10723 = vst [vmem:[#allocation306_spill] sm:$0xff] %v7977_v4  ;;  %v1451_v23 = vmul.f32 %v7810_v18, %v10728_v61  ;;  %v1727_v48 = vsub.f32 %v1663_v10, %v1695_v49  ;;  %v1638_v59 = vmul.f32 %v7847_v38, %v10729_v16  ;;  %v7998_v21 = vadd.f32 %v1447_v54, %v7774_v25  ;;  %v10731_v56 = vld [vmem:[#allocation67_spill] sm:$0xff]  ;;  %v10732_v49 = vld [vmem:[#allocation300_spill] sm:$0xff]  ;;  %v10735_v16 = vld [vmem:[#allocation286_spill] sm:$0xff] }
 0x370   :  { %10727 = vst [vmem:[#allocation301_spill] sm:$0xff] %v7989_v63  ;;  %v8001_v2 = vadd.f32 %v1458_v53, %v7884_v29  ;;  %v1640_v37 = vmul.f32 %v7847_v38, %v10731_v56  ;;  %v2058_v19 = vmul.f32 %v7995_v27, %v7680_v44  ;;  %v3930_v20 = vld [vmem:[#allocation2 + $0x60] sm:$0xff]  ;;  %v8008_v10 = vadd.f32 %v1449_v13, %v7784_v57  ;;  %v8016_v53 = vpop.permute.xlu1 %1990  ;;  %v8018_v61 = vld [vmem:[#allocation4 + $0x8] ss:$0 sm:$0xff] }
 0x371   :  { %2368 = vperm.xlu1 %3855, %v3930_v20   ;;  %v1453_v7 = vmul.f32 %v7810_v18, %v10732_v49  ;;  %v10733_v35 = vld [vmem:[#allocation307_spill] sm:$0xff]  ;;  %v1698_v54 = vfloor.f32 %v1666_v30  ;;  %v8021_v44 = vadd.f32 %v1460_v46, %v7894_v45  ;;  %v8025_v57 = vmul.f32 %v7810_v18, %v10735_v16  ;;  %v10737_v56 = vld [vmem:[#allocation184_spill] sm:$0xff] }
 0x372   :  { %10730 = vst [vmem:[#allocation308_spill] sm:$0xff] %v8001_v2  ;;  %v1455_v25 = vmul.f32 %v7810_v18, %v10733_v35  ;;  %v8014_v29 = vld [vmem:[#allocation4 + $0x2] ss:$0 sm:$0xff]  ;;  %v1668_v13 = vadd.f32 %v1636_v50, %v1471_v51  ;;  %v8030_v49 = vadd.f32 %v1451_v23, %v7794_v31  ;;  %v10738_v35 = vld [vmem:[#allocation233_spill] sm:$0xff]  ;;  %v10739_v2 = vld [vmem:[#allocation16_spill] sm:$0xff]  ;;  %v1670_v46 = vadd.f32 %v1638_v59, %v1473_v32 }
 0x373   :  { %10734 = vst [vmem:[#allocation312_spill] sm:$0xff] %v8021_v44  ;;  %10736 = vst [vmem:[#allocation313_spill] sm:$0xff] %v8025_v57  ;;  %v1893_v20 = vmul.f32 %v8014_v29, %v10737_v56  ;;  %v10740_v63 = vsub.f32 %v10738_v35, %v10739_v2  ;;  %v10742_v4 = vld [vmem:[#allocation80_spill] sm:$0xff]  ;;  %v2128_v44 = vpop.permute.xlu0 %2127  ;;  %v1672_v11 = vadd.f32 %v1640_v37, %v1475_v24  ;;  %v3931_v56 = vld [vmem:[#allocation2 + $0x70] sm:$0xff] }
 0x374   :  { %v10743_v1 = vsub.f32 %v10741_v34, %v10742_v4  ;;  %v2061_v51 = vmul.f32 %v7995_v27, %v7770_v9  ;;  %v2255_v50 = vmul.f32 %v8018_v61, %v2128_v44  ;;  %v8042_v31 = vadd.f32 %v1453_v7, %v7803_v14  ;;  %v10744_v23 = vld [vmem:[#allocation36_spill] sm:$0xff]  ;;  %v10745_v24 = vld [vmem:[#allocation61_spill] sm:$0xff]  ;;  %v10757_v57 = vld [vmem:[#allocation219_spill] sm:$0xff] }
 0x375   :  { %v3059_v6 = vmul.f32 %v10740_v63, %v1727_v48  ;;  %v2090_v16 = vadd.f32 %v2058_v19, %v1893_v20  ;;  %2376 = vperm.xlu1 %3855, %v3931_v56   ;;  %v8045_v63 = vadd.f32 %v1455_v25, %v7816_v52  ;;  %v1457_v34 = vmul.f32 %v7810_v18, %v10744_v23  ;;  %v10746_v59 = vld [vmem:[#allocation88_spill] sm:$0xff]  ;;  %v10754_v23 = vld [vmem:[#allocation9_spill] sm:$0xff] }
 0x376   :  { %v3603_v45 = vmul.f32 %v10743_v1, %v1727_v48  ;;  %v1730_v32 = vsub.f32 %v1666_v30, %v1698_v54  ;;  %v8049_v1 = vpop.permute.xlu1 %1998  ;;  %v1459_v48 = vmul.f32 %v7810_v18, %v10745_v24  ;;  %v1700_v9 = vfloor.f32 %v1668_v13  ;;  %v10750_v7 = vld [vmem:[#allocation332_spill] sm:$0xff]  ;;  %v10755_v24 = vld [vmem:[#allocation158_spill] sm:$0xff] }
 0x377   :  { %v1896_v37 = vmul.f32 %v8014_v29, %v10746_v59  ;;  %v8055_v19 = vadd.f32 %v2255_v50, %v2090_v16  ;;  %v8058_v14 = vadd.f32 %v3059_v6, %v10739_v2  ;;  %v1461_v30 = vmul.f32 %v7810_v18, %v10750_v7  ;;  %v2140_v54 = vpop.permute.xlu0 %2139  ;;  %v3932_v16 = vld [vmem:[#allocation2 + $0x80] sm:$0xff] }
 0x378   :  { %v8061_v52 = vadd.f32 %v3603_v45, %v10742_v4  ;;  %v1702_v25 = vfloor.f32 %v1670_v46  ;;  %v1704_v44 = vfloor.f32 %v1672_v11  ;;  %v2063_v35 = vmul.f32 %v7995_v27, %v7813_v55  ;;  %v10751_v2 = vld [vmem:[#allocation79_spill] sm:$0xff]  ;;  %v10752_v4 = vld [vmem:[#allocation160_spill] sm:$0xff] }
 0x379   :  { %10747 = vst [vmem:[#allocation317_spill] sm:$0xff] %v8055_v19  ;;  %10748 = vst [vmem:[#allocation322_spill] sm:$0xff] %v8058_v14  ;;  %v2093_v20 = vadd.f32 %v2061_v51, %v1896_v37  ;;  %v2258_v56 = vmul.f32 %v8018_v61, %v2140_v54  ;;  %2384 = vperm.xlu1 %3855, %v3932_v16   ;;  %v8069_v6 = vadd.f32 %v1457_v34, %v7828_v39  ;;  %v10758_v16 = vld [vmem:[#allocation89_spill] sm:$0xff] }
 0x37a   :  { %10749 = vst [vmem:[#allocation323_spill] sm:$0xff] %v8061_v52  ;;  %v10753_v45 = vsub.f32 %v10751_v2, %v10752_v4  ;;  %v10756_v59 = vsub.f32 %v10754_v23, %v10755_v24  ;;  %v1642_v51 = vmul.f32 %v7847_v38, %v10757_v57  ;;  %v8079_v37 = vpop.permute.xlu1 %2006  ;;  %v8082_v55 = vadd.f32 %v1459_v48, %v7838_v33  ;;  %v10760_v23 = vld [vmem:[#allocation362_spill] sm:$0xff]  ;;  %v10774_v57 = vld [vmem:[#allocation168_spill] sm:$0xff] }
 0x37b   :  { %v1732_v54 = vsub.f32 %v1668_v13, %v1700_v9  ;;  %v1898_v39 = vmul.f32 %v8014_v29, %v10758_v16  ;;  %v8086_v34 = vadd.f32 %v2258_v56, %v2093_v20  ;;  %v8089_v2 = vadd.f32 %v1461_v30, %v7850_v47  ;;  %v3933_v9 = vld [vmem:[#allocation2 + $0x90] sm:$0xff]  ;;  %v10765_v16 = vld [vmem:[#allocation14_spill] sm:$0xff] }
 0x37c   :  { %v3062_v50 = vmul.f32 %v10753_v45, %v1730_v32  ;;  %v3606_v7 = vmul.f32 %v10756_v59, %v1730_v32  ;;  %v1734_v45 = vsub.f32 %v1670_v46, %v1702_v25  ;;  %v1632_v32 = vmul.f32 %v7847_v38, %v10760_v23  ;;  %v2148_v59 = vpop.permute.xlu0 %2147  ;;  %v10761_v25 = vld [vmem:[#allocation71_spill] sm:$0xff] }
 0x37d   :  { %10759 = vst [vmem:[#allocation325_spill] sm:$0xff] %v8086_v34  ;;  %v1736_v19 = vsub.f32 %v1672_v11, %v1704_v44  ;;  %v2095_v33 = vadd.f32 %v2063_v35, %v1898_v39  ;;  %v2065_v13 = vmul.f32 %v7995_v27, %v7859_v22  ;;  %v2260_v48 = vmul.f32 %v8018_v61, %v2148_v59  ;;  %v10762_v44 = vld [vmem:[#allocation20_spill] sm:$0xff]  ;;  %v10763_v35 = vld [vmem:[#allocation82_spill] sm:$0xff]  ;;  %v10766_v39 = vld [vmem:[#allocation81_spill] sm:$0xff] }
 0x37e   :  { %2392 = vperm.xlu1 %3855, %v3933_v9   ;;  %v8099_v47 = vadd.f32 %v3062_v50, %v10752_v4  ;;  %v8102_v46 = vadd.f32 %v3606_v7, %v10755_v24  ;;  %v1674_v30 = vadd.f32 %v1642_v51, %v7980_v26  ;;  %v1644_v20 = vmul.f32 %v7847_v38, %v10761_v25  ;;  %v8107_v11 = vpop.permute.xlu1 %2014  ;;  %v10768_v4 = vld [vmem:[#allocation90_spill] sm:$0xff]  ;;  %v10770_v7 = vld [vmem:[#allocation167_spill] sm:$0xff]  ;;  %v10771_v26 = vld [vmem:[#allocation17_spill] sm:$0xff] }
 0x37f   :  { %v10764_v22 = vsub.f32 %v10762_v44, %v10763_v35  ;;  %v10767_v23 = vsub.f32 %v10765_v16, %v10766_v39  ;;  %v1900_v50 = vmul.f32 %v8014_v29, %v10768_v4  ;;  %v8117_v24 = vadd.f32 %v2260_v48, %v2095_v33  ;;  %v10773_v25 = vld [vmem:[#allocation169_spill] sm:$0xff] }
 0x380   :  { %v10772_v51 = vsub.f32 %v10770_v7, %v10771_v26  ;;  %v10775_v34 = vsub.f32 %v10773_v25, %v10774_v57  ;;  %v1463_v44 = vmul.f32 %v7810_v18, %v10776_v15  ;;  %v2156_v16 = vpop.permute.xlu0 %2155  ;;  %v2067_v48 = vmul.f32 %v7995_v27, %v7902_v42  ;;  %v10780_v25 = vld [vmem:[#allocation182_spill] sm:$0xff]  ;;  %v10783_v15 = vld [vmem:[#allocation72_spill] sm:$0xff] }
 0x381   :  { %v3064_v56 = vmul.f32 %v10764_v22, %v1732_v54  ;;  %v3608_v59 = vmul.f32 %v10767_v23, %v1732_v54  ;;  %10769 = vst [vmem:[#allocation326_spill] sm:$0xff] %v8117_v24  ;;  %v1664_v22 = vadd.f32 %v1632_v32, %v7887_v58  ;;  %v10777_v54 = vld [vmem:[#allocation181_spill] sm:$0xff]  ;;  %v2097_v33 = vadd.f32 %v2065_v13, %v1900_v50  ;;  %v10784_v13 = vld [vmem:[#allocation186_spill] sm:$0xff] }
 0x382   :  { %v3066_v9 = vmul.f32 %v10772_v51, %v1734_v45  ;;  %v3610_v28 = vmul.f32 %v10775_v34, %v1734_v45  ;;  %v10778_v23 = vld [vmem:[#allocation33_spill] sm:$0xff]  ;;  %v2262_v7 = vmul.f32 %v8018_v61, %v2156_v16  ;;  %v3934_v51 = vld [vmem:[#allocation2 + $0xa0] sm:$0xff]  ;;  %v10781_v34 = vld [vmem:[#allocation18_spill] sm:$0xff]  ;;  %v1465_v58 = vmul.f32 %v7810_v18, %v10783_v15 }
 0x383   :  { %v10779_v14 = vsub.f32 %v10777_v54, %v10778_v23  ;;  %2400 = vperm.xlu1 %3855, %v3934_v51   ;;  %v10782_v45 = vsub.f32 %v10780_v25, %v10781_v34  ;;  %v1706_v32 = vfloor.f32 %v1674_v30  ;;  %v1676_v52 = vadd.f32 %v1644_v20, %v7998_v21  ;;  %v8140_v54 = vpop.permute.xlu1 %2022  ;;  %v10786_v20 = vld [vmem:[#allocation73_spill] sm:$0xff] }
 0x384   :  { %v8146_v42 = vadd.f32 %v3608_v59, %v10766_v39  ;;  %v1902_v50 = vmul.f32 %v8014_v29, %v10784_v13  ;;  %v8150_v16 = vadd.f32 %v2262_v7, %v2097_v33  ;;  %v8156_v18 = vadd.f32 %v3610_v28, %v10774_v57  ;;  %v3935_v7 = vld [vmem:[#allocation2 + $0xb0] sm:$0xff] }
 0x385   :  { %v3068_v4 = vmul.f32 %v10779_v14, %v1736_v19  ;;  %v3612_v24 = vmul.f32 %v10782_v45, %v1736_v19  ;;  %v8143_v14 = vadd.f32 %v3064_v56, %v10763_v35  ;;  %v8153_v19 = vadd.f32 %v3066_v9, %v10771_v26  ;;  %v2164_v35 = vpop.permute.xlu0 %2163  ;;  %v10789_v9 = vld [vmem:[#allocation367_spill] sm:$0xff] }
 0x386   :  { %10785 = vst [vmem:[#allocation117_spill] sm:$0xff] %v8150_v16  ;;  %v1696_v21 = vfloor.f32 %v1664_v22  ;;  %v1633_v51 = vmul.f32 %v7847_v38, %v10786_v20  ;;  %v2099_v39 = vadd.f32 %v2067_v48, %v1902_v50  ;;  %v2069_v59 = vmul.f32 %v7995_v27, %v7941_v5  ;;  %v3936_v20 = vld [vmem:[#allocation2 + $0xc0] sm:$0xff] }
 0x387   :  { %v8161_v56 = vadd.f32 %v3068_v4, %v10778_v23  ;;  %v2264_v33 = vmul.f32 %v8018_v61, %v2164_v35  ;;  %2408 = vperm.xlu1 %3855, %v3935_v7   ;;  %v8167_v26 = vadd.f32 %v3612_v24, %v10781_v34  ;;  %v1738_v28 = vsub.f32 %v1674_v30, %v1706_v32  ;;  %v8171_v45 = vpop.permute.xlu1 %2030  ;;  %v10790_v4 = vld [vmem:[#allocation198_spill] sm:$0xff]  ;;  %v10805_v35 = vld [vmem:[#allocation87_spill] sm:$0xff] }
 0x388   :  { %v1708_v57 = vfloor.f32 %v1676_v52  ;;  %v1646_v25 = vmul.f32 %v7847_v38, %v10789_v9  ;;  %v8174_v23 = vadd.f32 %v1463_v44, %v7865_v0  ;;  %v1904_v5 = vmul.f32 %v8014_v29, %v10790_v4  ;;  %v10797_v7 = vld [vmem:[#allocation270_spill] sm:$0xff] }
 0x389   :  { %10787 = vst [vmem:[#allocation118_spill] sm:$0xff] %v8161_v56  ;;  %10788 = vst [vmem:[#allocation119_spill] sm:$0xff] %v8167_v26  ;;  %v8178_v48 = vadd.f32 %v2264_v33, %v2099_v39  ;;  %v8183_v24 = vadd.f32 %v1465_v58, %v7877_v12  ;;  %v1728_v30 = vsub.f32 %v1664_v22, %v1696_v21  ;;  %v2172_v32 = vpop.permute.xlu0 %2171  ;;  %v10793_v12 = vld [vmem:[#allocation25_spill] sm:$0xff]  ;;  %v10796_v33 = vld [vmem:[#allocation224_spill] sm:$0xff] }
 0x38a   :  { %v1665_v34 = vadd.f32 %v1633_v51, %v7932_v36  ;;  %v2101_v0 = vadd.f32 %v2069_v59, %v1904_v5  ;;  %v2071_v44 = vmul.f32 %v7995_v27, %v7974_v17  ;;  %v2266_v50 = vmul.f32 %v8018_v61, %v2172_v32  ;;  %v10794_v58 = vld [vmem:[#allocation85_spill] sm:$0xff]  ;;  %v10799_v32 = vld [vmem:[#allocation166_spill] sm:$0xff] }
 0x38b   :  { %10791 = vst [vmem:[#allocation343_spill] sm:$0xff] %v8178_v48  ;;  %10792 = vst [vmem:[#allocation65_spill] sm:$0xff] %v8183_v24  ;;  %2416 = vperm.xlu1 %3855, %v3936_v20   ;;  %v10795_v22 = vsub.f32 %v10793_v12, %v10794_v58  ;;  %v1740_v36 = vsub.f32 %v1676_v52, %v1708_v57  ;;  %v1678_v51 = vadd.f32 %v1646_v25, %v8008_v10  ;;  %v2039_v39 = vpop.permute.xlu1 %2038  ;;  %v10800_v20 = vld [vmem:[#allocation86_spill] sm:$0xff]  ;;  %v10802_v57 = vld [vmem:[#allocation172_spill] sm:$0xff] }
 0x38c   :  { %v1906_v17 = vmul.f32 %v8014_v29, %v10796_v33  ;;  %v1920_v9 = vmul.f32 %v8014_v29, %v10797_v7  ;;  %v8203_v4 = vadd.f32 %v2266_v50, %v2101_v0  ;;  %v2085_v5 = vmul.f32 %v7995_v27, %v2039_v39  ;;  %v10803_v10 = vld [vmem:[#allocation189_spill] sm:$0xff]  ;;  %v10806_v59 = vld [vmem:[#allocation190_spill] sm:$0xff] }
 0x38d   :  { %v3070_v21 = vmul.f32 %v10795_v22, %v1738_v28  ;;  %v10801_v12 = vsub.f32 %v10799_v32, %v10800_v20  ;;  %v10804_v25 = vsub.f32 %v10802_v57, %v10803_v10  ;;  %v10807_v13 = vsub.f32 %v10805_v35, %v10806_v59  ;;  %v2180_v48 = vpop.permute.xlu0 %2179  ;;  %v3937_v7 = vld [vmem:[#allocation2 + $0xd0] sm:$0xff]  ;;  %v10809_v32 = vld [vmem:[#allocation34_spill] sm:$0xff] }
 0x38e   :  { %10798 = vst [vmem:[#allocation120_spill] sm:$0xff] %v8203_v4  ;;  %v1697_v33 = vfloor.f32 %v1665_v34  ;;  %v2103_v16 = vadd.f32 %v2071_v44, %v1906_v17  ;;  %v2073_v0 = vmul.f32 %v7995_v27, %v8016_v53  ;;  %v8217_v50 = vadd.f32 %v2085_v5, %v1920_v9  ;;  %v10812_v4 = vld [vmem:[#allocation30_spill] sm:$0xff]  ;;  %v10815_v53 = vld [vmem:[#allocation41_spill] sm:$0xff] }
 0x38f   :  { %v3614_v52 = vmul.f32 %v10801_v12, %v1738_v28  ;;  %v3060_v22 = vmul.f32 %v10804_v25, %v1728_v30  ;;  %v3604_v15 = vmul.f32 %v10807_v13, %v1728_v30  ;;  %v2268_v39 = vmul.f32 %v8018_v61, %v2180_v48  ;;  %2424 = vperm.xlu1 %3855, %v3937_v7   ;;  %v10808_v28 = vld [vmem:[#allocation175_spill] sm:$0xff]  ;;  %v10811_v25 = vld [vmem:[#allocation201_spill] sm:$0xff]  ;;  %v10814_v56 = vld [vmem:[#allocation370_spill] sm:$0xff]  ;;  %v2047_v17 = vpop.permute.xlu1 %2046 }
 0x390   :  { %v10810_v12 = vsub.f32 %v10808_v28, %v10809_v32  ;;  %v10813_v35 = vsub.f32 %v10811_v25, %v10812_v4  ;;  %v1710_v13 = vfloor.f32 %v1678_v51  ;;  %v1635_v44 = vmul.f32 %v7847_v38, %v10814_v56  ;;  %v10816_v5 = vld [vmem:[#allocation222_spill] sm:$0xff] }
 0x391   :  { %v1908_v9 = vmul.f32 %v8014_v29, %v10815_v53  ;;  %v1922_v48 = vmul.f32 %v8014_v29, %v10816_v5  ;;  %v8232_v7 = vadd.f32 %v2268_v39, %v2103_v16  ;;  %v2087_v28 = vmul.f32 %v7995_v27, %v2047_v17  ;;  %v2188_v26 = vpop.permute.xlu0 %2187  ;;  %v3938_v39 = vld [vmem:[#allocation2 + $0xe0] sm:$0xff] }
 0x392   :  { %v3072_v57 = vmul.f32 %v10810_v12, %v1740_v36  ;;  %v3616_v30 = vmul.f32 %v10813_v35, %v1740_v36  ;;  %v8236_v12 = vadd.f32 %v3070_v21, %v10794_v58  ;;  %v8239_v36 = vadd.f32 %v3614_v52, %v10800_v20  ;;  %v10820_v35 = vld [vmem:[#allocation75_spill] sm:$0xff] }
 0x393   :  { %10817 = vst [vmem:[#allocation346_spill] sm:$0xff] %v8232_v7  ;;  %v1729_v25 = vsub.f32 %v1665_v34, %v1697_v33  ;;  %v1648_v56 = vmul.f32 %v7847_v38, %v10820_v35  ;;  %v2105_v24 = vadd.f32 %v2073_v0, %v1908_v9  ;;  %v2075_v53 = vmul.f32 %v7995_v27, %v8049_v1  ;;  %v10825_v33 = vld [vmem:[#allocation97_spill] sm:$0xff]  ;;  %v8265_v17 = vpop.permute.xlu1 %2123  ;;  %v10831_v9 = vld [vmem:[#allocation92_spill] sm:$0xff] }
 0x394   :  { %10818 = vst [vmem:[#allocation350_spill] sm:$0xff] %v8236_v12  ;;  %10819 = vst [vmem:[#allocation215_spill] sm:$0xff] %v8239_v36  ;;  %v8245_v5 = vadd.f32 %v2087_v28, %v1922_v48  ;;  %v2270_v16 = vmul.f32 %v8018_v61, %v2188_v26  ;;  %2432 = vperm.xlu1 %3855, %v3938_v39   ;;  %v8249_v58 = vadd.f32 %v3060_v22, %v10803_v10  ;;  %v10832_v48 = vld [vmem:[#allocation206_spill] sm:$0xff]  ;;  %v10834_v35 = vld [vmem:[#allocation13_spill] sm:$0xff] }
 0x395   :  { %v8252_v21 = vadd.f32 %v3604_v15, %v10806_v59  ;;  %v8255_v34 = vadd.f32 %v3072_v57, %v10809_v32  ;;  %v8258_v20 = vadd.f32 %v3616_v30, %v10812_v4  ;;  %v1742_v52 = vsub.f32 %v1678_v51, %v1710_v13  ;;  %v10827_v15 = vld [vmem:[#allocation23_spill] sm:$0xff]  ;;  %v2196_v4 = vpop.permute.xlu0 %2195  ;;  %v10829_v32 = vld [vmem:[#allocation202_spill] sm:$0xff]  ;;  %v10845_v7 = vld [vmem:[#allocation157_spill] sm:$0xff] }
 0x396   :  { %10821 = vst [vmem:[#allocation69_spill] sm:$0xff] %v8249_v58  ;;  %v1667_v1 = vadd.f32 %v1635_v44, %v7896_v3  ;;  %v1910_v26 = vmul.f32 %v8014_v29, %v10825_v33  ;;  %v8263_v0 = vadd.f32 %v2270_v16, %v2105_v24  ;;  %v1680_v10 = vadd.f32 %v1648_v56, %v8030_v49  ;;  %v10828_v3 = vld [vmem:[#allocation177_spill] sm:$0xff]  ;;  %v10835_v16 = vld [vmem:[#allocation159_spill] sm:$0xff]  ;;  %v10836_v33 = vld [vmem:[#allocation178_spill] sm:$0xff] }
 0x397   :  { %10822 = vst [vmem:[#allocation74_spill] sm:$0xff] %v8252_v21  ;;  %10823 = vst [vmem:[#allocation354_spill] sm:$0xff] %v8255_v34  ;;  %v1637_v59 = vmul.f32 %v7847_v38, %v10827_v15  ;;  %v2059_v22 = vmul.f32 %v7995_v27, %v7723_v8  ;;  %v10830_v57 = vsub.f32 %v10828_v3, %v10829_v32  ;;  %v3939_v44 = vld [vmem:[#allocation2 + $0xf0] sm:$0xff]  ;;  %v10943_v58 = vld [vmem:[#allocation322_spill] sm:$0xff] }
 0x398   :  { %10824 = vst [vmem:[#allocation356_spill] sm:$0xff] %v8258_v20  ;;  %10826 = vst [vmem:[#allocation357_spill] sm:$0xff] %v8263_v0  ;;  %v2107_v24 = vadd.f32 %v2075_v53, %v1910_v26  ;;  %v2077_v13 = vmul.f32 %v7995_v27, %v8079_v37  ;;  %v2272_v49 = vmul.f32 %v8018_v61, %v2196_v4  ;;  %2440 = vperm.xlu1 %3855, %v3939_v44   ;;  %v10837_v26 = vld [vmem:[#allocation56_spill] sm:$0xff]  ;;  %v10838_v15 = vld [vmem:[#allocation185_spill] sm:$0xff] }
 0x399   :  { %v3061_v30 = vmul.f32 %v10830_v57, %v1729_v25  ;;  %v10833_v28 = vsub.f32 %v10831_v9, %v10832_v48  ;;  %v1650_v56 = vmul.f32 %v7847_v38, %v10834_v35  ;;  %v1639_v39 = vmul.f32 %v7847_v38, %v10835_v16  ;;  %v10840_v4 = vld [vmem:[#allocation192_spill] sm:$0xff]  ;;  %v10841_v57 = vld [vmem:[#allocation191_spill] sm:$0xff]  ;;  %v10843_v0 = vld [vmem:[#allocation217_spill] sm:$0xff]  ;;  %v2204_v36 = vpop.permute.xlu0 %2203 }
 0x39a   :  { %v1894_v53 = vmul.f32 %v8014_v29, %v10836_v33  ;;  %v10839_v37 = vsub.f32 %v10837_v26, %v10838_v15  ;;  %v10842_v44 = vsub.f32 %v10840_v4, %v10841_v57  ;;  %v8297_v9 = vadd.f32 %v2272_v49, %v2107_v24 }
 0x39b   :  { %v3605_v8 = vmul.f32 %v10833_v28, %v1729_v25  ;;  %v1912_v25 = vmul.f32 %v8014_v29, %v10843_v0  ;;  %v2132_v28 = vpop.permute.xlu1 %2131  ;;  %v1712_v35 = vfloor.f32 %v1680_v10  ;;  %v1652_v16 = vmul.f32 %v7847_v38, %v10845_v7 }
 0x39c   :  { %v3074_v3 = vmul.f32 %v10839_v37, %v1742_v52  ;;  %v3618_v51 = vmul.f32 %v10842_v44, %v1742_v52  ;;  %10844 = vst [vmem:[#allocation328_spill] sm:$0xff] %v8297_v9  ;;  %v2091_v12 = vadd.f32 %v2059_v22, %v1894_v53  ;;  %v2256_v33 = vmul.f32 %v8018_v61, %v2132_v28  ;;  %v10865_v9 = vld [vmem:[#allocation204_spill] sm:$0xff] }
 0x39d   :  { %v1669_v26 = vadd.f32 %v1637_v59, %v7907_v62  ;;  %v2109_v37 = vadd.f32 %v2077_v13, %v1912_v25  ;;  %v2079_v52 = vmul.f32 %v7995_v27, %v8107_v11  ;;  %v2274_v4 = vmul.f32 %v8018_v61, %v2204_v36  ;;  %v10847_v62 = vld [vmem:[#allocation44_spill] sm:$0xff] }
 0x39e   :  { %v1699_v0 = vfloor.f32 %v1667_v1  ;;  %v1682_v24 = vadd.f32 %v1650_v56, %v8042_v31  ;;  %v1671_v49 = vadd.f32 %v1639_v39, %v7923_v43  ;;  %v8308_v44 = vadd.f32 %v2256_v33, %v2091_v12 }
 0x39f   :  { %v8311_v7 = vadd.f32 %v3061_v30, %v10829_v32  ;;  %v8314_v22 = vadd.f32 %v3605_v8, %v10832_v48  ;;  %v1914_v59 = vmul.f32 %v8014_v29, %v10847_v62  ;;  %v8318_v13 = vadd.f32 %v2274_v4, %v2109_v37  ;;  %v8320_v11 = vpop.permute.xlu1 %2135  ;;  %v2212_v32 = vpop.permute.xlu0 %2211  ;;  %v10859_v4 = vld [vmem:[#allocation179_spill] sm:$0xff] }
 0x3a0   :  { %10846 = vst [vmem:[#allocation329_spill] sm:$0xff] %v8308_v44  ;;  %v8323_v36 = vadd.f32 %v3074_v3, %v10838_v15  ;;  %v8326_v43 = vadd.f32 %v3618_v51, %v10841_v57  ;;  %v1744_v31 = vsub.f32 %v1680_v10, %v1712_v35  ;;  %v1684_v12 = vadd.f32 %v1652_v16, %v8045_v63  ;;  %v10851_v3 = vld [vmem:[#allocation161_spill] sm:$0xff]  ;;  %v10853_v57 = vld [vmem:[#allocation102_spill] sm:$0xff] }
 0x3a1   :  { %10848 = vst [vmem:[#allocation358_spill] sm:$0xff] %v8318_v13  ;;  %v1701_v30 = vfloor.f32 %v1669_v26  ;;  %v2111_v48 = vadd.f32 %v2079_v52, %v1914_v59  ;;  %v2081_v8 = vmul.f32 %v7995_v27, %v8140_v54  ;;  %v2276_v56 = vmul.f32 %v8018_v61, %v2212_v32  ;;  %v10852_v10 = vld [vmem:[#allocation165_spill] sm:$0xff]  ;;  %v10855_v16 = vld [vmem:[#allocation162_spill] sm:$0xff] }
 0x3a2   :  { %10849 = vst [vmem:[#allocation360_spill] sm:$0xff] %v8323_v36  ;;  %10850 = vst [vmem:[#allocation330_spill] sm:$0xff] %v8326_v43  ;;  %v1731_v39 = vsub.f32 %v1667_v1, %v1699_v0  ;;  %v1714_v53 = vfloor.f32 %v1682_v24  ;;  %v1703_v25 = vfloor.f32 %v1671_v49  ;;  %v1641_v51 = vmul.f32 %v7847_v38, %v10851_v3  ;;  %v10856_v1 = vld [vmem:[#allocation225_spill] sm:$0xff]  ;;  %v10858_v52 = vld [vmem:[#allocation58_spill] sm:$0xff] }
 0x3a3   :  { %v1654_v63 = vmul.f32 %v7847_v38, %v10852_v10  ;;  %v1916_v28 = vmul.f32 %v8014_v29, %v10853_v57  ;;  %v8340_v35 = vadd.f32 %v2276_v56, %v2111_v48  ;;  %v8342_v54 = vpop.permute.xlu1 %2143  ;;  %v10857_v33 = vsub.f32 %v10855_v16, %v10856_v1  ;;  %v2220_v32 = vpop.permute.xlu0 %2219  ;;  %v10861_v57 = vld [vmem:[#allocation57_spill] sm:$0xff]  ;;  %v10890_v43 = vld [vmem:[#allocation242_spill] sm:$0xff] }
 0x3a4   :  { %v10860_v0 = vsub.f32 %v10858_v52, %v10859_v4  ;;  %v1716_v59 = vfloor.f32 %v1684_v12  ;;  %v1733_v10 = vsub.f32 %v1669_v26, %v1701_v30  ;;  %v2083_v48 = vmul.f32 %v7995_v27, %v8171_v45  ;;  %v10864_v13 = vld [vmem:[#allocation93_spill] sm:$0xff]  ;;  %v10867_v30 = vld [vmem:[#allocation66_spill] sm:$0xff] }
 0x3a5   :  { %10854 = vst [vmem:[#allocation331_spill] sm:$0xff] %v8340_v35  ;;  %v3076_v37 = vmul.f32 %v10857_v33, %v1744_v31  ;;  %v2113_v15 = vadd.f32 %v2081_v8, %v1916_v28  ;;  %v2278_v56 = vmul.f32 %v8018_v61, %v2220_v32  ;;  %v10862_v35 = vld [vmem:[#allocation37_spill] sm:$0xff]  ;;  %v10866_v52 = vsub.f32 %v10864_v13, %v10865_v9 }
 0x3a6   :  { %v3620_v62 = vmul.f32 %v10860_v0, %v1744_v31  ;;  %v10863_v16 = vsub.f32 %v10861_v57, %v10862_v35  ;;  %v1746_v0 = vsub.f32 %v1682_v24, %v1714_v53  ;;  %v1735_v44 = vsub.f32 %v1671_v49, %v1703_v25  ;;  %v10869_v24 = vld [vmem:[#allocation12_spill] sm:$0xff] }
 0x3a7   :  { %v3607_v31 = vmul.f32 %v10866_v52, %v1731_v39  ;;  %v1673_v34 = vadd.f32 %v1641_v51, %v7925_v40  ;;  %v1686_v26 = vadd.f32 %v1654_v63, %v8069_v6  ;;  %v1918_v8 = vmul.f32 %v8014_v29, %v10867_v30  ;;  %v8367_v28 = vpop.permute.xlu1 %2151  ;;  %v2228_v40 = vpop.permute.xlu0 %2227  ;;  %v10871_v6 = vld [vmem:[#allocation227_spill] sm:$0xff]  ;;  %v10873_v51 = vld [vmem:[#allocation21_spill] sm:$0xff] }
 0x3a8   :  { %v3063_v33 = vmul.f32 %v10863_v16, %v1731_v39  ;;  %v8365_v45 = vadd.f32 %v2278_v56, %v2113_v15  ;;  %v8370_v32 = vadd.f32 %v3076_v37, %v10856_v1  ;;  %v8373_v57 = vadd.f32 %v3620_v62, %v10859_v4  ;;  %v10870_v39 = vld [vmem:[#allocation205_spill] sm:$0xff]  ;;  %v10874_v37 = vld [vmem:[#allocation208_spill] sm:$0xff]  ;;  %v10875_v4 = vld [vmem:[#allocation207_spill] sm:$0xff] }
 0x3a9   :  { %v1748_v13 = vsub.f32 %v1684_v12, %v1716_v59  ;;  %v1643_v49 = vmul.f32 %v7847_v38, %v10869_v24  ;;  %v10872_v53 = vsub.f32 %v10870_v39, %v10871_v6  ;;  %v1656_v15 = vmul.f32 %v7847_v38, %v10873_v51  ;;  %v10877_v59 = vld [vmem:[#allocation211_spill] sm:$0xff]  ;;  %v10880_v24 = vld [vmem:[#allocation60_spill] sm:$0xff]  ;;  %v10881_v39 = vld [vmem:[#allocation194_spill] sm:$0xff] }
 0x3aa   :  { %10868 = vst [vmem:[#allocation363_spill] sm:$0xff] %v8365_v45  ;;  %v2115_v63 = vadd.f32 %v2083_v48, %v1918_v8  ;;  %v2280_v56 = vmul.f32 %v8018_v61, %v2228_v40  ;;  %v8384_v1 = vadd.f32 %v3063_v33, %v10862_v35  ;;  %v10876_v12 = vsub.f32 %v10874_v37, %v10875_v4  ;;  %v10878_v16 = vld [vmem:[#allocation95_spill] sm:$0xff]  ;;  %v10884_v51 = vld [vmem:[#allocation212_spill] sm:$0xff] }
 0x3ab   :  { %v3065_v25 = vmul.f32 %v10872_v53, %v1733_v10  ;;  %v10879_v52 = vsub.f32 %v10877_v59, %v10878_v16  ;;  %v10882_v53 = vsub.f32 %v10880_v24, %v10881_v39  ;;  %v10883_v45 = vld [vmem:[#allocation99_spill] sm:$0xff]  ;;  %v1705_v40 = vfloor.f32 %v1673_v34  ;;  %v8400_v33 = vpop.permute.xlu1 %2159  ;;  %v10891_v24 = vld [vmem:[#allocation62_spill] sm:$0xff] }
 0x3ac   :  { %v3609_v62 = vmul.f32 %v10876_v12, %v1733_v10  ;;  %v10885_v48 = vsub.f32 %v10883_v45, %v10884_v51  ;;  %v1718_v36 = vfloor.f32 %v1686_v26  ;;  %v8398_v35 = vadd.f32 %v2280_v56, %v2115_v63  ;;  %v10887_v37 = vld [vmem:[#allocation239_spill] sm:$0xff]  ;;  %v10888_v12 = vld [vmem:[#allocation100_spill] sm:$0xff] }
 0x3ad   :  { %v3078_v30 = vmul.f32 %v10879_v52, %v1746_v0  ;;  %v3622_v3 = vmul.f32 %v10882_v53, %v1746_v0  ;;  %v8403_v10 = vadd.f32 %v3607_v31, %v10865_v9  ;;  %v10889_v59 = vsub.f32 %v10887_v37, %v10888_v12 }
 0x3ae   :  { %v3067_v8 = vmul.f32 %v10885_v48, %v1735_v44  ;;  %10886 = vst [vmem:[#allocation335_spill] sm:$0xff] %v8398_v35  ;;  %v10892_v0 = vsub.f32 %v10890_v43, %v10891_v24  ;;  %v1675_v45 = vadd.f32 %v1643_v49, %v7944_v41  ;;  %v2236_v48 = vpop.permute.xlu0 %2235  ;;  %v8413_v20 = vadd.f32 %v3065_v25, %v10871_v6  ;;  %v10895_v41 = vld [vmem:[#allocation64_spill] sm:$0xff]  ;;  %v10896_v49 = vld [vmem:[#allocation197_spill] sm:$0xff] }
 0x3af   :  { %v3611_v52 = vmul.f32 %v10889_v59, %v1735_v44  ;;  %v1688_v63 = vadd.f32 %v1656_v15, %v8082_v55  ;;  %v2282_v56 = vmul.f32 %v8018_v61, %v2236_v48  ;;  %v8420_v31 = vadd.f32 %v3609_v62, %v10875_v4  ;;  %v8437_v4 = vpop.permute.xlu1 %2167  ;;  %v10906_v48 = vld [vmem:[#allocation200_spill] sm:$0xff] }
 0x3b0   :  { %v3080_v53 = vmul.f32 %v10892_v0, %v1748_v13  ;;  %v8423_v44 = vadd.f32 %v3078_v30, %v10878_v16  ;;  %v8426_v43 = vadd.f32 %v3622_v3, %v10881_v39  ;;  %v10897_v6 = vsub.f32 %v10895_v41, %v10896_v49  ;;  %v10901_v30 = vld [vmem:[#allocation260_spill] sm:$0xff]  ;;  %v10915_v0 = vld [vmem:[#allocation101_spill] sm:$0xff] }
 0x3b1   :  { %v8432_v55 = vadd.f32 %v3067_v8, %v10884_v51  ;;  %v1737_v15 = vsub.f32 %v1673_v34, %v1705_v40  ;;  %v1750_v37 = vsub.f32 %v1686_v26, %v1718_v36  ;;  %v8435_v59 = vadd.f32 %v2282_v56, %v8217_v50  ;;  %v10902_v8 = vld [vmem:[#allocation83_spill] sm:$0xff]  ;;  %v10903_v36 = vld [vmem:[#allocation170_spill] sm:$0xff]  ;;  %v10916_v35 = vld [vmem:[#allocation236_spill] sm:$0xff] }
 0x3b2   :  { %10893 = vst [vmem:[#allocation339_spill] sm:$0xff] %v8423_v44  ;;  %10894 = vst [vmem:[#allocation344_spill] sm:$0xff] %v8426_v43  ;;  %v3624_v25 = vmul.f32 %v10897_v6, %v1748_v13  ;;  %v8440_v62 = vadd.f32 %v3611_v52, %v10888_v12  ;;  %v8443_v3 = vadd.f32 %v3080_v53, %v10891_v24  ;;  %v1707_v16 = vfloor.f32 %v1675_v45  ;;  %v2244_v39 = vpop.permute.xlu0 %2243  ;;  %v10904_v12 = vld [vmem:[#allocation94_spill] sm:$0xff]  ;;  %v10918_v44 = vld [vmem:[#allocation264_spill] sm:$0xff] }
 0x3b3   :  { %10898 = vst [vmem:[#allocation345_spill] sm:$0xff] %v8432_v55  ;;  %10899 = vst [vmem:[#allocation347_spill] sm:$0xff] %v8435_v59  ;;  %v2057_v13 = vmul.f32 %v7995_v27, %v10901_v30  ;;  %v1720_v51 = vfloor.f32 %v1688_v63  ;;  %v1645_v34 = vmul.f32 %v7847_v38, %v10902_v8  ;;  %v1658_v50 = vmul.f32 %v7847_v38, %v10903_v36  ;;  %v10905_v53 = vld [vmem:[#allocation226_spill] sm:$0xff]  ;;  %v10909_v30 = vld [vmem:[#allocation228_spill] sm:$0xff]  ;;  %v8473_v59 = vpop.permute.xlu1 %2175 }
 0x3b4   :  { %10900 = vst [vmem:[#allocation348_spill] sm:$0xff] %v8440_v62  ;;  %v2284_v26 = vmul.f32 %v8018_v61, %v2244_v39  ;;  %v8453_v40 = vadd.f32 %v3624_v25, %v10896_v49  ;;  %v1892_v52 = vmul.f32 %v8014_v29, %v10904_v12  ;;  %v2254_v24 = vmul.f32 %v8018_v61, %v8265_v17  ;;  %v10908_v6 = vld [vmem:[#allocation234_spill] sm:$0xff]  ;;  %v10911_v36 = vld [vmem:[#allocation229_spill] sm:$0xff]  ;;  %v10912_v49 = vld [vmem:[#allocation235_spill] sm:$0xff] }
 0x3b5   :  { %v10907_v56 = vsub.f32 %v10905_v53, %v10906_v48  ;;  %v10910_v8 = vsub.f32 %v10908_v6, %v10909_v30  ;;  %v10913_v25 = vsub.f32 %v10911_v36, %v10912_v49  ;;  %v8475_v17 = vld [vmem:[#allocation4 + $0xb] ss:$0 sm:$0xff]  ;;  %v10917_v62 = vsub.f32 %v10915_v0, %v10916_v35 }
 0x3b6   :  { %v8471_v12 = vadd.f32 %v2284_v26, %v8245_v5  ;;  %v2089_v55 = vadd.f32 %v2057_v13, %v1892_v52  ;;  %v1752_v6 = vsub.f32 %v1688_v63, %v1720_v51  ;;  %v1690_v36 = vadd.f32 %v1658_v50, %v8089_v2  ;;  %v2321_v5 = vpop.permute.xlu0 %2320  ;;  %v10922_v63 = vld [vmem:[#allocation277_spill] sm:$0xff]  ;;  %v10927_v0 = vld [vmem:[#allocation48_spill] sm:$0xff] }
 0x3b7   :  { %v3069_v41 = vmul.f32 %v10907_v56, %v1737_v15  ;;  %v3613_v39 = vmul.f32 %v10910_v8, %v1737_v15  ;;  %v3082_v9 = vmul.f32 %v10913_v25, %v1750_v37  ;;  %v3626_v53 = vmul.f32 %v10917_v62, %v1750_v37  ;;  %v10919_v25 = vld [vmem:[#allocation96_spill] sm:$0xff]  ;;  %v10924_v13 = vld [vmem:[#allocation213_spill] sm:$0xff] }
 0x3b8   :  { %10914 = vst [vmem:[#allocation121_spill] sm:$0xff] %v8471_v12  ;;  %v1739_v56 = vsub.f32 %v1675_v45, %v1707_v16  ;;  %v2060_v15 = vmul.f32 %v7995_v27, %v10918_v44  ;;  %v1677_v8 = vadd.f32 %v1645_v34, %v7954_v60  ;;  %v1895_v12 = vmul.f32 %v8014_v29, %v10919_v25  ;;  %v8502_v16 = vpop.permute.xlu1 %2183 }
 0x3b9   :  { %v2286_v43 = vadd.f32 %v2254_v24, %v2089_v55  ;;  %v2257_v45 = vmul.f32 %v8018_v61, %v8320_v11  ;;  %v2451_v37 = vmul.f32 %v8475_v17, %v2321_v5  ;;  %v8492_v44 = vadd.f32 %v3069_v41, %v10906_v48  ;;  %v10923_v11 = vld [vmem:[#allocation214_spill] sm:$0xff]  ;;  %v10926_v24 = vld [vmem:[#allocation261_spill] sm:$0xff]  ;;  %v10932_v5 = vld [vmem:[#allocation196_spill] sm:$0xff] }
 0x3ba   :  { %v8495_v60 = vadd.f32 %v3613_v39, %v10909_v30  ;;  %v8498_v2 = vadd.f32 %v3082_v9, %v10912_v49  ;;  %v2062_v62 = vmul.f32 %v7995_v27, %v10922_v63  ;;  %v8505_v55 = vadd.f32 %v3626_v53, %v10916_v35  ;;  %v10929_v9 = vld [vmem:[#allocation218_spill] sm:$0xff]  ;;  %v10930_v30 = vld [vmem:[#allocation105_spill] sm:$0xff]  ;;  %v2333_v53 = vpop.permute.xlu0 %2332 }
 0x3bb   :  { %10920 = vst [vmem:[#allocation351_spill] sm:$0xff] %v8492_v44  ;;  %v10925_v51 = vsub.f32 %v10923_v11, %v10924_v13  ;;  %v2092_v50 = vadd.f32 %v2060_v15, %v1895_v12  ;;  %v2483_v52 = vadd.f32 %v2451_v37, %v2286_v43  ;;  %v10928_v48 = vsub.f32 %v10926_v24, %v10927_v0  ;;  %v10933_v63 = vld [vmem:[#allocation245_spill] sm:$0xff]  ;;  %v10934_v11 = vld [vmem:[#allocation244_spill] sm:$0xff] }
 0x3bc   :  { %10921 = vst [vmem:[#allocation352_spill] sm:$0xff] %v8495_v60  ;;  %v10931_v39 = vsub.f32 %v10929_v9, %v10930_v30  ;;  %v1897_v25 = vmul.f32 %v8014_v29, %v10932_v5  ;;  %v2259_v35 = vmul.f32 %v8018_v61, %v8342_v54  ;;  %v2454_v37 = vmul.f32 %v8475_v17, %v2333_v53  ;;  %v8526_v26 = vpop.permute.xlu1 %2191  ;;  %v10937_v5 = vld [vmem:[#allocation19_spill] sm:$0xff] }
 0x3bd   :  { %v3071_v34 = vmul.f32 %v10925_v51, %v1739_v56  ;;  %v3615_v41 = vmul.f32 %v10928_v48, %v1739_v56  ;;  %v10935_v51 = vsub.f32 %v10933_v63, %v10934_v11  ;;  %v2289_v43 = vadd.f32 %v2257_v45, %v2092_v50  ;;  %v10936_v48 = vld [vmem:[#allocation84_spill] sm:$0xff]  ;;  %v10938_v60 = vld [vmem:[#allocation59_spill] sm:$0xff] }
 0x3be   :  { %v3084_v49 = vmul.f32 %v10931_v39, %v1752_v6  ;;  %v2515_v15 = vfloor.f32 %v2483_v52  ;;  %v1709_v56 = vfloor.f32 %v1677_v8  ;;  %v1722_v24 = vfloor.f32 %v1690_v36  ;;  %v10941_v53 = vld [vmem:[#allocation223_spill] sm:$0xff] }
 0x3bf   :  { %v3628_v12 = vmul.f32 %v10935_v51, %v1752_v6  ;;  %v1647_v9 = vmul.f32 %v7847_v38, %v10936_v48  ;;  %v2094_v39 = vadd.f32 %v2062_v62, %v1897_v25  ;;  %v1660_v54 = vmul.f32 %v7847_v38, %v10937_v5  ;;  %v2341_v25 = vpop.permute.xlu0 %2340  ;;  %v10942_v5 = vld [vmem:[#allocation323_spill] sm:$0xff] }
 0x3c0   :  { %v2064_v44 = vmul.f32 %v7995_v27, %v10938_v60  ;;  %v2547_v63 = vsub.f32 %v2483_v52, %v2515_v15  ;;  %v2486_v6 = vadd.f32 %v2454_v37, %v2289_v43  ;;  %v8533_v45 = vadd.f32 %v3071_v34, %v10924_v13  ;;  %v8554_v15 = vpop.permute.xlu1 %2199 }
 0x3c1   :  { %v8536_v50 = vadd.f32 %v3615_v41, %v10927_v0  ;;  %v1899_v51 = vmul.f32 %v8014_v29, %v10941_v53  ;;  %v2291_v62 = vadd.f32 %v2259_v35, %v2094_v39  ;;  %v2261_v48 = vmul.f32 %v8018_v61, %v8367_v28  ;;  %v10945_v41 = vld [vmem:[#allocation283_spill] sm:$0xff]  ;;  %v10946_v53 = vld [vmem:[#allocation342_spill] sm:$0xff] }
 0x3c2   :  { %10939 = vst [vmem:[#allocation122_spill] sm:$0xff] %v8533_v45  ;;  %v10944_v21 = vsub.f32 %v10942_v5, %v10943_v58  ;;  %v2518_v52 = vfloor.f32 %v2486_v6  ;;  %v2456_v43 = vmul.f32 %v8475_v17, %v2341_v25  ;;  %v8547_v13 = vadd.f32 %v3084_v49, %v10930_v30  ;;  %v10947_v30 = vld [vmem:[#allocation231_spill] sm:$0xff]  ;;  %v10951_v5 = vld [vmem:[#allocation289_spill] sm:$0xff] }
 0x3c3   :  { %10940 = vst [vmem:[#allocation353_spill] sm:$0xff] %v8536_v50  ;;  %v8550_v34 = vadd.f32 %v3628_v12, %v10934_v11  ;;  %v1741_v0 = vsub.f32 %v1677_v8, %v1709_v56  ;;  %v2066_v35 = vmul.f32 %v7995_v27, %v10945_v41  ;;  %v2096_v28 = vadd.f32 %v2064_v44, %v1899_v51  ;;  %v2349_v11 = vpop.permute.xlu0 %2348  ;;  %v10952_v41 = vld [vmem:[#allocation40_spill] sm:$0xff] }
 0x3c4   :  { %v3699_v60 = vmul.f32 %v10944_v21, %v2547_v63  ;;  %v2550_v39 = vsub.f32 %v2486_v6, %v2518_v52  ;;  %v2488_v21 = vadd.f32 %v2456_v43, %v2291_v62  ;;  %v1754_v63 = vsub.f32 %v1690_v36, %v1722_v24 }
 0x3c5   :  { %v8558_v25 = vadd.f32 %v1647_v9, %v10946_v53  ;;  %v1901_v49 = vmul.f32 %v8014_v29, %v10947_v30  ;;  %v2263_v8 = vmul.f32 %v8018_v61, %v8400_v33  ;;  %v2293_v12 = vadd.f32 %v2261_v48, %v2096_v28  ;;  %v10949_v9 = vld [vmem:[#allocation183_spill] sm:$0xff]  ;;  %v10950_v33 = vld [vmem:[#allocation24_spill] sm:$0xff]  ;;  %v8578_v48 = vpop.permute.xlu1 %2207 }
 0x3c6   :  { %v3731_v37 = vadd.f32 %v3699_v60, %v10943_v58  ;;  %v10948_v58 = vsub.f32 %v8102_v46, %v8099_v47  ;;  %v2520_v36 = vfloor.f32 %v2488_v21  ;;  %v2458_v56 = vmul.f32 %v8475_v17, %v2349_v11 }
 0x3c7   :  { %v8572_v24 = vadd.f32 %v1660_v54, %v8174_v23  ;;  %v1649_v6 = vmul.f32 %v7847_v38, %v10949_v9  ;;  %v1662_v51 = vmul.f32 %v7847_v38, %v10950_v33  ;;  %v2098_v62 = vadd.f32 %v2066_v35, %v1901_v49  ;;  %v2357_v28 = vpop.permute.xlu0 %2356  ;;  %v10954_v49 = vld [vmem:[#allocation255_spill] sm:$0xff]  ;;  %v10961_v9 = vld [vmem:[#allocation104_spill] sm:$0xff] }
 0x3c8   :  { %3763 = vst [vmem:[%s9052_s3] sm:$0xff] %v3731_v37  ;;  %v3702_v44 = vmul.f32 %v10948_v58, %v2550_v39  ;;  %v2068_v60 = vmul.f32 %v7995_v27, %v10951_v5  ;;  %v2552_v52 = vsub.f32 %v2488_v21, %v2520_v36  ;;  %v2490_v43 = vadd.f32 %v2458_v56, %v2293_v12  ;;  %v10957_v58 = vld [vmem:[#allocation251_spill] sm:$0xff]  ;;  %v10963_v5 = vld [vmem:[#allocation112_spill] sm:$0xff] }
 0x3c9   :  { %v1903_v23 = vmul.f32 %v8014_v29, %v10952_v41  ;;  %v2295_v54 = vadd.f32 %v2263_v8, %v2098_v62  ;;  %v2265_v39 = vmul.f32 %v8018_v61, %v8437_v4  ;;  %v2460_v30 = vmul.f32 %v8475_v17, %v2357_v28  ;;  %v10955_v8 = vld [vmem:[#allocation249_spill] sm:$0xff]  ;;  %v10960_v4 = vld [vmem:[#allocation70_spill] sm:$0xff] }
 0x3ca   :  { %v3734_v46 = vadd.f32 %v3702_v44, %v8099_v47  ;;  %v10953_v47 = vsub.f32 %v8146_v42, %v8143_v14  ;;  %v2522_v53 = vfloor.f32 %v2490_v43  ;;  %v10956_v11 = vsub.f32 %v10954_v49, %v10955_v8  ;;  %v10958_v44 = vld [vmem:[#allocation248_spill] sm:$0xff]  ;;  %v10964_v49 = vld [vmem:[#allocation46_spill] sm:$0xff] }
 0x3cb   :  { %v10959_v36 = vsub.f32 %v10957_v58, %v10958_v44  ;;  %v10962_v33 = vsub.f32 %v10960_v4, %v10961_v9  ;;  %v2070_v42 = vmul.f32 %v7995_v27, %v10963_v5  ;;  %v2365_v5 = vpop.permute.xlu0 %2364 }
 0x3cc   :  { %3766 = vst [vmem:[%s9052_s3 + $0x18] sm:$0xff] %v3734_v46  ;;  %v3704_v21 = vmul.f32 %v10953_v47, %v2552_v52  ;;  %v3073_v12 = vmul.f32 %v10956_v11, %v1741_v0  ;;  %v8611_v46 = vpop.permute.xlu1 %2215  ;;  %v2100_v52 = vadd.f32 %v2068_v60, %v1903_v23  ;;  %v2554_v28 = vsub.f32 %v2490_v43, %v2522_v53  ;;  %v10965_v11 = vld [vmem:[#allocation274_spill] sm:$0xff] }
 0x3cd   :  { %v8604_v56 = vmul.f32 %v10959_v36, %v1741_v0  ;;  %v3086_v62 = vmul.f32 %v10962_v33, %v1754_v63  ;;  %v2492_v47 = vadd.f32 %v2460_v30, %v2295_v54  ;;  %v10966_v35 = vsub.f32 %v10964_v49, %v10965_v11  ;;  %v10967_v36 = vld [vmem:[#allocation68_spill] sm:$0xff]  ;;  %v10969_v54 = vld [vmem:[#allocation305_spill] sm:$0xff]  ;;  %v10971_v30 = vld [vmem:[#allocation318_spill] sm:$0xff] }
 0x3ce   :  { %v3736_v41 = vadd.f32 %v3704_v21, %v8143_v14  ;;  %v1711_v0 = vfloor.f32 %v8558_v25  ;;  %v1905_v4 = vmul.f32 %v8014_v29, %v10967_v36  ;;  %v2267_v33 = vmul.f32 %v8018_v61, %v8473_v59  ;;  %v10970_v21 = vld [vmem:[#allocation65_spill] sm:$0xff] }
 0x3cf   :  { %v3630_v58 = vmul.f32 %v10966_v35, %v1754_v63  ;;  %v2297_v37 = vadd.f32 %v2265_v39, %v2100_v52  ;;  %v10968_v14 = vsub.f32 %v8156_v18, %v8153_v19  ;;  %v2524_v43 = vfloor.f32 %v2492_v47 }
 0x3d0   :  { %3768 = vst [vmem:[%s9052_s3 + $0x28] sm:$0xff] %v3736_v41  ;;  %v2462_v63 = vmul.f32 %v8475_v17, %v2365_v5  ;;  %v1724_v23 = vfloor.f32 %v8572_v24  ;;  %v8631_v35 = vadd.f32 %v1649_v6, %v10969_v54  ;;  %v1694_v59 = vadd.f32 %v1662_v51, %v10970_v21  ;;  %v8634_v39 = vpop.permute.xlu1 %2223  ;;  %v10973_v6 = vld [vmem:[#allocation252_spill] sm:$0xff] }
 0x3d1   :  { %v3706_v60 = vmul.f32 %v10968_v14, %v2554_v28  ;;  %v2102_v53 = vadd.f32 %v2070_v42, %v1905_v4  ;;  %v2072_v52 = vmul.f32 %v7995_v27, %v10971_v30  ;;  %v2556_v18 = vsub.f32 %v2492_v47, %v2524_v43  ;;  %v2373_v42 = vpop.permute.xlu0 %2372 }
 0x3d2   :  { %v2494_v28 = vadd.f32 %v2462_v63, %v2297_v37  ;;  %v8640_v49 = vadd.f32 %v3073_v12, %v10955_v8  ;;  %v8643_v36 = vadd.f32 %v3086_v62, %v10961_v9  ;;  %v1907_v5 = vmul.f32 %v8014_v29, %v10973_v6  ;;  %v10975_v37 = vld [vmem:[#allocation118_spill] sm:$0xff] }
 0x3d3   :  { %v3738_v41 = vadd.f32 %v3706_v60, %v8153_v19  ;;  %v2299_v51 = vadd.f32 %v2267_v33, %v2102_v53  ;;  %v2269_v4 = vmul.f32 %v8018_v61, %v8502_v16  ;;  %v10974_v19 = vld [vmem:[#allocation119_spill] sm:$0xff]  ;;  %v2464_v9 = vmul.f32 %v8475_v17, %v2373_v42  ;;  %v10977_v60 = vld [vmem:[#allocation321_spill] sm:$0xff] }
 0x3d4   :  { %10972 = vst [vmem:[#allocation123_spill] sm:$0xff] %v8640_v49  ;;  %v10976_v47 = vsub.f32 %v10974_v19, %v10975_v37  ;;  %v2526_v12 = vfloor.f32 %v2494_v28  ;;  %v8657_v62 = vadd.f32 %v3630_v58, %v10965_v11  ;;  %v8660_v33 = vsub.f32 %v8558_v25, %v1711_v0  ;;  %v8664_v43 = vpop.permute.xlu1 %2231  ;;  %v10979_v58 = vld [vmem:[#allocation106_spill] sm:$0xff] }
 0x3d5   :  { %3770 = vst [vmem:[%s9052_s3 + $0x38] sm:$0xff] %v3738_v41  ;;  %v1726_v14 = vfloor.f32 %v1694_v59  ;;  %v2074_v16 = vmul.f32 %v7995_v27, %v10977_v60  ;;  %v2104_v63 = vadd.f32 %v2072_v52, %v1907_v5  ;;  %v2496_v53 = vadd.f32 %v2464_v9, %v2299_v51  ;;  %v10978_v41 = vld [vmem:[#allocation171_spill] sm:$0xff]  ;;  %v10984_v60 = vld [vmem:[#allocation256_spill] sm:$0xff] }
 0x3d6   :  { %v3708_v8 = vmul.f32 %v10976_v47, %v2556_v18  ;;  %v2558_v21 = vsub.f32 %v2494_v28, %v2526_v12  ;;  %v1756_v30 = vsub.f32 %v8572_v24, %v1724_v23  ;;  %v1651_v11 = vmul.f32 %v7847_v38, %v10978_v41  ;;  %v2381_v18 = vpop.permute.xlu0 %2380  ;;  %v10980_v52 = vld [vmem:[#allocation215_spill] sm:$0xff]  ;;  %v10981_v28 = vld [vmem:[#allocation350_spill] sm:$0xff] }
 0x3d7   :  { %v1909_v25 = vmul.f32 %v8014_v29, %v10979_v58  ;;  %v2271_v0 = vmul.f32 %v8018_v61, %v8526_v26  ;;  %v2301_v6 = vadd.f32 %v2269_v4, %v2104_v63  ;;  %v10982_v5 = vsub.f32 %v10980_v52, %v10981_v28  ;;  %v10985_v63 = vld [vmem:[#allocation263_spill] sm:$0xff]  ;;  %v10990_v58 = vld [vmem:[#allocation257_spill] sm:$0xff] }
 0x3d8   :  { %v3740_v54 = vadd.f32 %v3708_v8, %v10975_v37  ;;  %v2528_v24 = vfloor.f32 %v2496_v53  ;;  %v2466_v23 = vmul.f32 %v8475_v17, %v2381_v18  ;;  %v1758_v38 = vsub.f32 %v1694_v59, %v1726_v14  ;;  %v8681_v19 = vpop.permute.xlu1 %2239  ;;  %v10983_v37 = vld [vmem:[#allocation333_spill] sm:$0xff]  ;;  %v10987_v14 = vld [vmem:[#allocation107_spill] sm:$0xff] }
 0x3d9   :  { %v3710_v51 = vmul.f32 %v10982_v5, %v2558_v21  ;;  %v2106_v42 = vadd.f32 %v2074_v16, %v1909_v25  ;;  %v2076_v47 = vmul.f32 %v7995_v27, %v10983_v37  ;;  %v10988_v16 = vld [vmem:[#allocation258_spill] sm:$0xff]  ;;  %v1911_v25 = vmul.f32 %v8014_v29, %v10990_v58 }
 0x3da   :  { %3772 = vst [vmem:[%s9052_s3 + $0x48] sm:$0xff] %v3740_v54  ;;  %v2560_v12 = vsub.f32 %v2496_v53, %v2528_v24  ;;  %v2498_v9 = vadd.f32 %v2466_v23, %v2301_v6  ;;  %v10986_v54 = vsub.f32 %v10984_v60, %v10985_v63  ;;  %v10989_v21 = vsub.f32 %v10987_v14, %v10988_v16  ;;  %v2389_v52 = vpop.permute.xlu0 %2388  ;;  %v10991_v53 = vld [vmem:[#allocation356_spill] sm:$0xff]  ;;  %v10992_v6 = vld [vmem:[#allocation354_spill] sm:$0xff] }
 0x3db   :  { %v3742_v8 = vadd.f32 %v3710_v51, %v10981_v28  ;;  %v2303_v18 = vadd.f32 %v2271_v0, %v2106_v42  ;;  %v2273_v5 = vmul.f32 %v8018_v61, %v8554_v15  ;;  %v10993_v28 = vsub.f32 %v10991_v53, %v10992_v6  ;;  %v10995_v37 = vld [vmem:[#allocation266_spill] sm:$0xff]  ;;  %v8713_v14 = vld [vmem:[#allocation4 + $0xa] ss:$0 sm:$0xff]  ;;  %v10998_v15 = vld [vmem:[#allocation173_spill] sm:$0xff] }
 0x3dc   :  { %v3088_v59 = vmul.f32 %v10986_v54, %v1756_v30  ;;  %v3632_v41 = vmul.f32 %v10989_v21, %v1756_v30  ;;  %v2530_v24 = vfloor.f32 %v2498_v9  ;;  %v2468_v23 = vmul.f32 %v8475_v17, %v2389_v52  ;;  %v10994_v30 = vld [vmem:[#allocation241_spill] sm:$0xff]  ;;  %v10997_v0 = vld [vmem:[#allocation306_spill] sm:$0xff] }
 0x3dd   :  { %3774 = vst [vmem:[%s9052_s3 + $0x58] sm:$0xff] %v3742_v8  ;;  %v3712_v51 = vmul.f32 %v10993_v28, %v2560_v12  ;;  %v10996_v60 = vsub.f32 %v10994_v30, %v10995_v37  ;;  %v8711_v42 = vadd.f32 %v1651_v11, %v10997_v0  ;;  %v8717_v21 = vmul.f32 %v8713_v14, %v10998_v15  ;;  %v10999_v8 = vld [vmem:[#allocation304_spill] sm:$0xff]  ;;  %v8721_v12 = vpop.permute.xlu1 %2247 }
 0x3de   :  { %v2078_v58 = vmul.f32 %v7995_v27, %v10999_v8  ;;  %v2108_v53 = vadd.f32 %v2076_v47, %v1911_v25  ;;  %v2562_v28 = vsub.f32 %v2498_v9, %v2530_v24  ;;  %v2500_v30 = vadd.f32 %v2468_v23, %v2303_v18  ;;  %v11000_v0 = vld [vmem:[#allocation296_spill] sm:$0xff]  ;;  %v2397_v8 = vpop.permute.xlu0 %2396  ;;  %v11001_v47 = vld [vmem:[#allocation330_spill] sm:$0xff]  ;;  %v11004_v18 = vld [vmem:[#allocation293_spill] sm:$0xff] }
 0x3df   :  { %v3090_v54 = vmul.f32 %v10996_v60, %v1758_v38  ;;  %v3744_v52 = vadd.f32 %v3712_v51, %v10992_v6  ;;  %v8725_v60 = vadd.f32 %v3088_v59, %v10985_v63  ;;  %v8728_v11 = vadd.f32 %v3632_v41, %v10988_v16  ;;  %v11002_v9 = vld [vmem:[#allocation360_spill] sm:$0xff]  ;;  %v11005_v6 = vld [vmem:[#allocation247_spill] sm:$0xff]  ;;  %v11007_v23 = vld [vmem:[#allocation334_spill] sm:$0xff] }
 0x3e0   :  { %v1913_v15 = vmul.f32 %v8014_v29, %v11000_v0  ;;  %v2275_v4 = vmul.f32 %v8018_v61, %v8578_v48  ;;  %v2305_v26 = vadd.f32 %v2273_v5, %v2108_v53  ;;  %v11003_v25 = vsub.f32 %v11001_v47, %v11002_v9  ;;  %v11008_v47 = vld [vmem:[#allocation287_spill] sm:$0xff] }
 0x3e1   :  { %3776 = vst [vmem:[%s9052_s3 + $0x68] sm:$0xff] %v3744_v52  ;;  %v2532_v59 = vfloor.f32 %v2500_v30  ;;  %v2470_v16 = vmul.f32 %v8475_v17, %v2397_v8  ;;  %v8742_v41 = vadd.f32 %v3090_v54, %v10995_v37  ;;  %v11006_v51 = vsub.f32 %v11004_v18, %v11005_v6  ;;  %v2325_v8 = vpop.permute.xlu1 %2324 }
 0x3e2   :  { %v3714_v63 = vmul.f32 %v11003_v25, %v2562_v28  ;;  %v2110_v5 = vadd.f32 %v2078_v58, %v1913_v15  ;;  %v2080_v53 = vmul.f32 %v7995_v27, %v11007_v23  ;;  %v1915_v37 = vmul.f32 %v8014_v29, %v11008_v47 }
 0x3e3   :  { %v8747_v48 = vmul.f32 %v11006_v51, %v1758_v38  ;;  %v2564_v28 = vsub.f32 %v2500_v30, %v2532_v59  ;;  %v2502_v0 = vadd.f32 %v2470_v16, %v2305_v26  ;;  %v2452_v25 = vmul.f32 %v8475_v17, %v2325_v8  ;;  %v2405_v38 = vpop.permute.xlu0 %2404  ;;  %v11011_v16 = vld [vmem:[#allocation268_spill] sm:$0xff] }
 0x3e4   :  { %v3746_v52 = vadd.f32 %v3714_v63, %v11002_v9  ;;  %v2307_v54 = vadd.f32 %v2275_v4, %v2110_v5  ;;  %v2277_v15 = vmul.f32 %v8018_v61, %v8611_v46  ;;  %v11009_v26 = vsub.f32 %v8373_v57, %v8370_v32  ;;  %v11010_v63 = vld [vmem:[#allocation280_spill] sm:$0xff]  ;;  %v11013_v5 = vld [vmem:[#allocation317_spill] sm:$0xff] }
 0x3e5   :  { %v2534_v9 = vfloor.f32 %v2502_v0  ;;  %v2472_v4 = vmul.f32 %v8475_v17, %v2405_v38  ;;  %v1917_v59 = vmul.f32 %v8014_v29, %v11010_v63  ;;  %v1919_v18 = vmul.f32 %v8014_v29, %v11011_v16  ;;  %v11012_v51 = vld [vmem:[#allocation336_spill] sm:$0xff] }
 0x3e6   :  { %3778 = vst [vmem:[%s9052_s3 + $0x78] sm:$0xff] %v3746_v52  ;;  %v3716_v30 = vmul.f32 %v11009_v26, %v2564_v28  ;;  %v2082_v46 = vmul.f32 %v7995_v27, %v11012_v51  ;;  %v2484_v23 = vadd.f32 %v2452_v25, %v11013_v5  ;;  %v2112_v8 = vadd.f32 %v2080_v53, %v1915_v37  ;;  %v2329_v28 = vpop.permute.xlu1 %2328  ;;  %v11014_v26 = vld [vmem:[#allocation111_spill] sm:$0xff]  ;;  %v11015_v27 = vld [vmem:[#allocation344_spill] sm:$0xff]  ;;  %v11018_v25 = vld [vmem:[#allocation314_spill] sm:$0xff] }
 0x3e7   :  { %v2566_v47 = vsub.f32 %v2502_v0, %v2534_v9  ;;  %v2504_v57 = vadd.f32 %v2472_v4, %v2307_v54  ;;  %v1921_v38 = vmul.f32 %v8014_v29, %v11014_v26  ;;  %v2279_v63 = vmul.f32 %v8018_v61, %v8634_v39  ;;  %v2413_v24 = vpop.permute.xlu0 %2412  ;;  %v11019_v9 = vld [vmem:[#allocation329_spill] sm:$0xff]  ;;  %v11020_v51 = vld [vmem:[#allocation116_spill] sm:$0xff] }
 0x3e8   :  { %v3748_v52 = vadd.f32 %v3716_v30, %v8370_v32  ;;  %v2516_v58 = vfloor.f32 %v2484_v23  ;;  %v2453_v16 = vmul.f32 %v8475_v17, %v2329_v28  ;;  %v2309_v49 = vadd.f32 %v2277_v15, %v2112_v8  ;;  %v11016_v32 = vld [vmem:[#allocation339_spill] sm:$0xff] }
 0x3e9   :  { %v11017_v53 = vsub.f32 %v11015_v27, %v11016_v32  ;;  %v2536_v37 = vfloor.f32 %v2504_v57  ;;  %v2474_v54 = vmul.f32 %v8475_v17, %v2413_v24  ;;  %v8790_v30 = vmul.f32 %v8014_v29, %v11018_v25  ;;  %v3941_v15 = vld [vmem:[#allocation4 + $0x5] ss:$0 sm:$0xff]  ;;  %v11021_v27 = vld [vmem:[#allocation74_spill] sm:$0xff] }
 0x3ea   :  { %3780 = vst [vmem:[%s9052_s3 + $0x88] sm:$0xff] %v3748_v52  ;;  %v2114_v61 = vadd.f32 %v2082_v46, %v1917_v59  ;;  %v2548_v39 = vsub.f32 %v2484_v23, %v2516_v58  ;;  %v2485_v4 = vadd.f32 %v2453_v16, %v11019_v9  ;;  %v2084_v5 = vmul.f32 %v3941_v15, %v11020_v51  ;;  %v2337_v26 = vpop.permute.xlu1 %2336  ;;  %v3942_v58 = vld [vmem:[#allocation4 + $0x8] ss:$0 sm:$0xff]  ;;  %v11025_v16 = vld [vmem:[#allocation341_spill] sm:$0xff] }
 0x3eb   :  { %v3718_v0 = vmul.f32 %v11017_v53, %v2566_v47  ;;  %v2568_v52 = vsub.f32 %v2504_v57, %v2536_v37  ;;  %v2506_v28 = vadd.f32 %v2474_v54, %v2309_v49  ;;  %v11022_v53 = vld [vmem:[#allocation69_spill] sm:$0xff]  ;;  %v2455_v29 = vmul.f32 %v8475_v17, %v2337_v26  ;;  %v2421_v59 = vpop.permute.xlu0 %2420 }
 0x3ec   :  { %v2311_v47 = vadd.f32 %v2279_v63, %v2114_v61  ;;  %v11023_v24 = vsub.f32 %v11021_v27, %v11022_v53  ;;  %v2517_v45 = vfloor.f32 %v2485_v4  ;;  %v2281_v46 = vmul.f32 %v3942_v58, %v8664_v43  ;;  %v11026_v54 = vld [vmem:[#allocation325_spill] sm:$0xff]  ;;  %v11029_v27 = vld [vmem:[#allocation326_spill] sm:$0xff] }
 0x3ed   :  { %v3750_v8 = vadd.f32 %v3718_v0, %v11016_v32  ;;  %v11024_v49 = vsub.f32 %v8453_v40, %v8443_v3  ;;  %v2538_v57 = vfloor.f32 %v2506_v28  ;;  %v2476_v63 = vmul.f32 %v8475_v17, %v2421_v59 }
 0x3ee   :  { %v3700_v50 = vmul.f32 %v11023_v24, %v2548_v39  ;;  %v2086_v32 = vmul.f32 %v3941_v15, %v11025_v16  ;;  %v2549_v37 = vsub.f32 %v2485_v4, %v2517_v45  ;;  %v2487_v25 = vadd.f32 %v2455_v29, %v11026_v54  ;;  %v2345_v51 = vpop.permute.xlu1 %2344  ;;  %v11030_v24 = vld [vmem:[#allocation290_spill] sm:$0xff] }
 0x3ef   :  { %3782 = vst [vmem:[%s9052_s3 + $0x98] sm:$0xff] %v3750_v8  ;;  %v3720_v23 = vmul.f32 %v11024_v49, %v2568_v52  ;;  %v2116_v61 = vadd.f32 %v2084_v5, %v1919_v18  ;;  %v2570_v39 = vsub.f32 %v2506_v28, %v2538_v57  ;;  %v2508_v9 = vadd.f32 %v2476_v63, %v2311_v47  ;;  %v2429_v4 = vpop.permute.xlu0 %2428 }
 0x3f0   :  { %v3732_v0 = vadd.f32 %v3700_v50, %v11022_v53  ;;  %v2283_v8 = vmul.f32 %v3942_v58, %v8681_v19  ;;  %v11027_v40 = vsub.f32 %v8314_v22, %v8311_v7  ;;  %v2519_v50 = vfloor.f32 %v2487_v25 }
 0x3f1   :  { %v3752_v43 = vadd.f32 %v3720_v23, %v8443_v3  ;;  %v2457_v45 = vmul.f32 %v8475_v17, %v2345_v51  ;;  %v2313_v18 = vadd.f32 %v2281_v46, %v2116_v61  ;;  %v11028_v3 = vsub.f32 %v8505_v55, %v8498_v2  ;;  %v11033_v61 = vld [vmem:[#allocation117_spill] sm:$0xff] }
 0x3f2   :  { %3764 = vst [vmem:[%s9052_s3 + $0x8] sm:$0xff] %v3732_v0  ;;  %v3701_v52 = vmul.f32 %v11027_v40, %v2549_v37  ;;  %v2540_v5 = vfloor.f32 %v2508_v9  ;;  %v2478_v28 = vmul.f32 %v8475_v17, %v2429_v4  ;;  %v2118_v26 = vadd.f32 %v2086_v32, %v1921_v38  ;;  %v2353_v23 = vpop.permute.xlu1 %2352  ;;  %v11035_v4 = vld [vmem:[#allocation345_spill] sm:$0xff] }
 0x3f3   :  { %3784 = vst [vmem:[%s9052_s3 + $0xa8] sm:$0xff] %v3752_v43  ;;  %v3722_v19 = vmul.f32 %v11028_v3, %v2570_v39  ;;  %v2551_v47 = vsub.f32 %v2487_v25, %v2519_v50  ;;  %v2489_v53 = vadd.f32 %v2457_v45, %v11029_v27  ;;  %v2088_v29 = vmul.f32 %v3941_v15, %v11030_v24  ;;  %v2437_v16 = vpop.permute.xlu0 %2436  ;;  %v11037_v3 = vld [vmem:[#allocation343_spill] sm:$0xff] }
 0x3f4   :  { %v3733_v22 = vadd.f32 %v3701_v52, %v8311_v7  ;;  %v2572_v46 = vsub.f32 %v2508_v9, %v2540_v5  ;;  %v2510_v49 = vadd.f32 %v2478_v28, %v2313_v18  ;;  %v2315_v57 = vadd.f32 %v2283_v8, %v2118_v26  ;;  %v11036_v18 = vld [vmem:[#allocation348_spill] sm:$0xff] }
 0x3f5   :  { %v3754_v59 = vadd.f32 %v3722_v19, %v8498_v2  ;;  %v11031_v55 = vsub.f32 %v8403_v10, %v8384_v1  ;;  %v2521_v7 = vfloor.f32 %v2489_v53  ;;  %v2459_v63 = vmul.f32 %v8475_v17, %v2353_v23 }
 0x3f6   :  { %3765 = vst [vmem:[%s9052_s3 + $0x10] sm:$0xff] %v3733_v22  ;;  %v2285_v15 = vmul.f32 %v3942_v58, %v8721_v12  ;;  %v11032_v2 = vsub.f32 %v8550_v34, %v8547_v13  ;;  %v2542_v0 = vfloor.f32 %v2510_v49  ;;  %v2480_v37 = vmul.f32 %v8475_v17, %v2437_v16  ;;  %v2361_v51 = vpop.permute.xlu1 %2360  ;;  %v11042_v16 = vld [vmem:[#allocation176_spill] sm:$0xff] }
 0x3f7   :  { %v3703_v38 = vmul.f32 %v11031_v55, %v2551_v47  ;;  %3786 = vst [vmem:[%s9052_s3 + $0xb8] sm:$0xff] %v3754_v59  ;;  %v2553_v54 = vsub.f32 %v2489_v53, %v2521_v7  ;;  %v3694_v25 = vsub.f32 %v8657_v62, %v8643_v36  ;;  %v2491_v43 = vadd.f32 %v2459_v63, %v11033_v61  ;;  %v11038_v59 = vld [vmem:[#allocation301_spill] sm:$0xff]  ;;  %v11040_v55 = vld [vmem:[#allocation352_spill] sm:$0xff] }
 0x3f8   :  { %v3724_v32 = vmul.f32 %v11032_v2, %v2572_v46  ;;  %v2120_v12 = vadd.f32 %v2088_v29, %v8790_v30  ;;  %v2574_v39 = vsub.f32 %v2510_v49, %v2542_v0  ;;  %v2512_v9 = vadd.f32 %v2480_v37, %v2315_v57  ;;  %v2445_v30 = vpop.permute.xlu0 %2444  ;;  %v11039_v57 = vld [vmem:[#allocation351_spill] sm:$0xff]  ;;  %v11041_v7 = vld [vmem:[#allocation120_spill] sm:$0xff]  ;;  %v11043_v61 = vld [vmem:[#allocation221_spill] sm:$0xff] }
 0x3f9   :  { %v3735_v10 = vadd.f32 %v3703_v38, %v8384_v1  ;;  %v3666_v34 = vadd.f32 %v8747_v48, %v11005_v6  ;;  %v11034_v1 = vsub.f32 %v8420_v31, %v8413_v20  ;;  %v2523_v8 = vfloor.f32 %v2491_v43 }
 0x3fa   :  { %v3756_v58 = vadd.f32 %v3724_v32, %v8547_v13  ;;  %v2461_v40 = vmul.f32 %v8475_v17, %v2361_v51  ;;  %v2317_v52 = vadd.f32 %v2285_v15, %v2120_v12  ;;  %v3726_v13 = vmul.f32 %v3694_v25, %v2574_v39  ;;  %v2369_v47 = vpop.permute.xlu1 %2368  ;;  %v11047_v39 = vld [vmem:[#allocation52_spill] sm:$0xff] }
 0x3fb   :  { %3767 = vst [vmem:[%s9052_s3 + $0x20] sm:$0xff] %v3735_v10  ;;  %v3705_v62 = vmul.f32 %v11034_v1, %v2553_v54  ;;  %v2544_v50 = vfloor.f32 %v2512_v9  ;;  %v2482_v6 = vmul.f32 %v8475_v17, %v2445_v30  ;;  %v2555_v45 = vsub.f32 %v2491_v43, %v2523_v8  ;;  %v11044_v43 = vld [vmem:[#allocation51_spill] sm:$0xff]  ;;  %v11050_v8 = vld [vmem:[#allocation353_spill] sm:$0xff]  ;;  %v11051_v30 = vld [vmem:[#allocation346_spill] sm:$0xff] }
 0x3fc   :  { %3788 = vst [vmem:[%s9052_s3 + $0xc8] sm:$0xff] %v3756_v58  ;;  %v3675_v31 = vsub.f32 %v11036_v18, %v11035_v4  ;;  %v2493_v19 = vadd.f32 %v2461_v40, %v11037_v3  ;;  %v3758_v5 = vadd.f32 %v3726_v13, %v8643_v36  ;;  %v3696_v28 = vsub.f32 %v8728_v11, %v8725_v60  ;;  %v11046_v58 = vld [vmem:[#allocation278_spill] sm:$0xff] }
 0x3fd   :  { %v3737_v48 = vadd.f32 %v3705_v62, %v8413_v20  ;;  %v2576_v26 = vsub.f32 %v2512_v9, %v2544_v50  ;;  %v2514_v22 = vadd.f32 %v2482_v6, %v2317_v52  ;;  %v1713_v27 = vfloor.f32 %v8631_v35  ;;  %v11049_v62 = vld [vmem:[#allocation122_spill] sm:$0xff]  ;;  %v11052_v6 = vld [vmem:[#allocation308_spill] sm:$0xff] }
 0x3fe   :  { %v3707_v20 = vmul.f32 %v3675_v31, %v2555_v45  ;;  %v2525_v53 = vfloor.f32 %v2493_v19  ;;  %v2463_v24 = vmul.f32 %v8475_v17, %v2369_v47  ;;  %v1715_v29 = vfloor.f32 %v8711_v42  ;;  %3790 = vst [vmem:[%s9052_s3 + $0xd8] sm:$0xff] %v3758_v5  ;;  %v2377_v0 = vpop.permute.xlu1 %2376  ;;  %v11053_v45 = vld [vmem:[#allocation203_spill] sm:$0xff]  ;;  %v11058_v47 = vld [vmem:[#allocation292_spill] sm:$0xff] }
 0x3ff   :  { %3769 = vst [vmem:[%s9052_s3 + $0x30] sm:$0xff] %v3737_v48  ;;  %v1685_v36 = vadd.f32 %v8717_v21, %v11038_v59  ;;  %v3728_v11 = vmul.f32 %v3696_v28, %v2576_v26  ;;  %v2546_v46 = vfloor.f32 %v2514_v22  ;;  %v3677_v38 = vsub.f32 %v11040_v55, %v11039_v57  ;;  %v11054_v5 = vld [vmem:[#allocation291_spill] sm:$0xff]  ;;  %v11064_v55 = vld [vmem:[#allocation281_spill] sm:$0xff] }
 0x400   :  { %v3739_v49 = vadd.f32 %v3707_v20, %v11035_v4  ;;  %v2557_v23 = vsub.f32 %v2493_v19, %v2525_v53  ;;  %v2495_v63 = vadd.f32 %v2463_v24, %v11041_v7  ;;  %v1655_v15 = vmul.f32 %v8713_v14, %v11042_v16  ;;  %v11055_v28 = vld [vmem:[#allocation267_spill] sm:$0xff] }
 0x401   :  { %v3760_v2 = vadd.f32 %v3728_v11, %v8725_v60  ;;  %v3698_v21 = vsub.f32 %v3666_v34, %v8742_v41  ;;  %v2578_v32 = vsub.f32 %v2514_v22, %v2546_v46  ;;  %v3649_v37 = vadd.f32 %v8604_v56, %v10958_v44  ;;  %v11057_v22 = vld [vmem:[#allocation108_spill] sm:$0xff]  ;;  %v11061_v11 = vld [vmem:[#allocation357_spill] sm:$0xff] }
 0x402   :  { %3771 = vst [vmem:[%s9052_s3 + $0x40] sm:$0xff] %v3739_v49  ;;  %v3709_v10 = vmul.f32 %v3677_v38, %v2557_v23  ;;  %v2527_v54 = vfloor.f32 %v2495_v63  ;;  %v2465_v25 = vmul.f32 %v8475_v17, %v2377_v0  ;;  %v11045_v12 = vsub.f32 %v11043_v61, %v11044_v43  ;;  %v2385_v48 = vpop.permute.xlu1 %2384  ;;  %v11062_v49 = vld [vmem:[#allocation337_spill] sm:$0xff]  ;;  %v11065_v38 = vld [vmem:[#allocation271_spill] sm:$0xff]  ;;  %v11068_v61 = vld [vmem:[#allocation110_spill] sm:$0xff] }
 0x403   :  { %v11048_v9 = vsub.f32 %v11046_v58, %v11047_v39  ;;  %v1745_v44 = vsub.f32 %v8631_v35, %v1713_v27  ;;  %3792 = vst [vmem:[%s9052_s3 + $0xe8] sm:$0xff] %v3760_v2  ;;  %v3730_v56 = vmul.f32 %v3698_v21, %v2578_v32  ;;  %v3679_v40 = vsub.f32 %v11050_v8, %v11049_v62  ;;  %v11063_v23 = vld [vmem:[#allocation313_spill] sm:$0xff]  ;;  %v11067_v21 = vld [vmem:[#allocation312_spill] sm:$0xff] }
 0x404   :  { %v3075_v60 = vmul.f32 %v11045_v12, %v8660_v33  ;;  %v3741_v34 = vadd.f32 %v3709_v10, %v11039_v57  ;;  %v2559_v1 = vsub.f32 %v2495_v63, %v2527_v54  ;;  %v2497_v52 = vadd.f32 %v2465_v25, %v11051_v30  ;;  %v11075_v30 = vld [vmem:[#allocation310_spill] sm:$0xff] }
 0x405   :  { %v3619_v51 = vmul.f32 %v11048_v9, %v8660_v33  ;;  %v1747_v13 = vsub.f32 %v8711_v42, %v1715_v29  ;;  %v1717_v50 = vfloor.f32 %v1685_v36  ;;  %v1687_v33 = vadd.f32 %v1655_v15, %v11052_v6  ;;  %v11060_v29 = vld [vmem:[#allocation123_spill] sm:$0xff] }
 0x406   :  { %v3762_v35 = vadd.f32 %v3730_v56, %v8742_v41  ;;  %v1657_v4 = vmul.f32 %v8713_v14, %v11053_v45  ;;  %3773 = vst [vmem:[%s9052_s3 + $0x50] sm:$0xff] %v3741_v34  ;;  %v3711_v18 = vmul.f32 %v3679_v40, %v2559_v1  ;;  %v2529_v31 = vfloor.f32 %v2497_v52  ;;  %v2393_v2 = vpop.permute.xlu1 %2392  ;;  %v3943_v34 = vld [vmem:[#allocation4 + $0x7] ss:$0 sm:$0xff]  ;;  %v11073_v1 = vld [vmem:[#allocation302_spill] sm:$0xff] }
 0x407   :  { %v2467_v3 = vmul.f32 %v8475_v17, %v2385_v48  ;;  %v3107_v19 = vadd.f32 %v3075_v60, %v11044_v43  ;;  %v3651_v42 = vadd.f32 %v3619_v51, %v11047_v39  ;;  %v11056_v26 = vsub.f32 %v11054_v5, %v11055_v28  ;;  %v11069_v43 = vld [vmem:[#allocation55_spill] sm:$0xff] }
 0x408   :  { %v11059_v27 = vsub.f32 %v11057_v22, %v11058_v47  ;;  %3794 = vst [vmem:[%s9052_s3 + $0xf8] sm:$0xff] %v3762_v35  ;;  %v3743_v53 = vadd.f32 %v3711_v18, %v11049_v62  ;;  %v2561_v24 = vsub.f32 %v2497_v52, %v2529_v31  ;;  %v3681_v59 = vsub.f32 %v3649_v37, %v11060_v29  ;;  %v11071_v60 = vld [vmem:[#allocation91_spill] sm:$0xff]  ;;  %v11077_v31 = vld [vmem:[#allocation272_spill] sm:$0xff] }
 0x409   :  { %v3077_v41 = vmul.f32 %v11056_v26, %v1745_v44  ;;  %v2499_v46 = vadd.f32 %v2467_v3, %v11061_v11  ;;  %v1494_v57 = vadd.f32 %v11063_v23, %v11062_v49  ;;  %v11066_v7 = vsub.f32 %v11064_v55, %v11065_v38  ;;  %v11074_v40 = vld [vmem:[#allocation311_spill] sm:$0xff]  ;;  %v11078_v3 = vld [vmem:[#allocation50_spill] sm:$0xff]  ;;  %v11080_v26 = vld [vmem:[#allocation193_spill] sm:$0xff] }
 0x40a   :  { %v3621_v20 = vmul.f32 %v11059_v27, %v1745_v44  ;;  %v1749_v16 = vsub.f32 %v1685_v36, %v1717_v50  ;;  %v1719_v15 = vfloor.f32 %v1687_v33  ;;  %v1689_v32 = vadd.f32 %v1657_v4, %v11067_v21  ;;  %3775 = vst [vmem:[%s9052_s3 + $0x60] sm:$0xff] %v3743_v53  ;;  %v11072_v44 = vld [vmem:[#allocation328_spill] sm:$0xff]  ;;  %v11081_v27 = vld [vmem:[#allocation358_spill] sm:$0xff]  ;;  %v11090_v21 = vld [vmem:[#allocation297_spill] sm:$0xff] }
 0x40b   :  { %v3079_v63 = vmul.f32 %v11066_v7, %v1747_v13  ;;  %v3713_v0 = vmul.f32 %v3681_v59, %v2561_v24  ;;  %v2531_v37 = vfloor.f32 %v2499_v46  ;;  %v2469_v10 = vmul.f32 %v8475_v17, %v2393_v2  ;;  %v11082_v53 = vld [vmem:[#allocation338_spill] sm:$0xff]  ;;  %v11084_v11 = vld [vmem:[#allocation288_spill] sm:$0xff] }
 0x40c   :  { %v3109_v54 = vadd.f32 %v3077_v41, %v11055_v28  ;;  %v3653_v25 = vadd.f32 %v3621_v20, %v11058_v47  ;;  %v11070_v12 = vsub.f32 %v11068_v61, %v11069_v43  ;;  %v1659_v58 = vmul.f32 %v8713_v14, %v11071_v60  ;;  %v11083_v59 = vld [vmem:[#allocation294_spill] sm:$0xff]  ;;  %v11086_v23 = vld [vmem:[#allocation316_spill] sm:$0xff] }
 0x40d   :  { %v3745_v39 = vadd.f32 %v3713_v0, %v11060_v29  ;;  %v2563_v9 = vsub.f32 %v2499_v46, %v2531_v37  ;;  %v3683_v51 = vsub.f32 %v3651_v42, %v3107_v19  ;;  %v2501_v56 = vadd.f32 %v2469_v10, %v11072_v44  ;;  %v11089_v2 = vld [vmem:[#allocation298_spill] sm:$0xff] }
 0x40e   :  { %v3623_v36 = vmul.f32 %v11070_v12, %v1747_v13  ;;  %v1464_v62 = vmul.f32 %v3943_v34, %v11073_v1  ;;  %v3111_v8 = vadd.f32 %v3079_v63, %v11065_v38  ;;  %v11076_v52 = vsub.f32 %v11074_v40, %v11075_v30  ;;  %v2401_v13 = vpop.permute.xlu1 %2400  ;;  %v11096_v1 = vld [vmem:[#allocation113_spill] sm:$0xff] }
 0x40f   :  { %v1751_v6 = vsub.f32 %v1687_v33, %v1719_v15  ;;  %v1721_v35 = vfloor.f32 %v1689_v32  ;;  %3777 = vst [vmem:[%s9052_s3 + $0x70] sm:$0xff] %v3745_v39  ;;  %v3715_v48 = vmul.f32 %v3683_v51, %v2563_v9  ;;  %v2533_v45 = vfloor.f32 %v2501_v56  ;;  %v11094_v39 = vld [vmem:[#allocation285_spill] sm:$0xff]  ;;  %v11095_v51 = vld [vmem:[#allocation327_spill] sm:$0xff] }
 0x410   :  { %v3081_v50 = vmul.f32 %v11076_v52, %v1749_v16  ;;  %v2471_v4 = vmul.f32 %v8475_v17, %v2401_v13  ;;  %v3655_v18 = vadd.f32 %v3623_v36, %v11069_v43  ;;  %v11079_v42 = vsub.f32 %v11077_v31, %v11078_v3  ;;  %v11099_v13 = vld [vmem:[#allocation275_spill] sm:$0xff] }
 0x411   :  { %v1691_v28 = vadd.f32 %v1659_v58, %v1494_v57  ;;  %v1661_v33 = vmul.f32 %v8713_v14, %v11080_v26  ;;  %v3747_v41 = vadd.f32 %v3715_v48, %v3107_v19  ;;  %v2565_v22 = vsub.f32 %v2501_v56, %v2533_v45  ;;  %v11093_v58 = vld [vmem:[#allocation210_spill] sm:$0xff] }
 0x412   :  { %v3625_v5 = vmul.f32 %v11079_v42, %v1749_v16  ;;  %v3685_v47 = vsub.f32 %v3653_v25, %v3109_v54  ;;  %v2503_v20 = vadd.f32 %v2471_v4, %v11081_v27  ;;  %v1496_v24 = vadd.f32 %v1464_v62, %v11082_v53  ;;  %v2409_v7 = vpop.permute.xlu1 %2408  ;;  %v11097_v62 = vld [vmem:[#allocation299_spill] sm:$0xff]  ;;  %v11106_v27 = vld [vmem:[#allocation114_spill] sm:$0xff] }
 0x413   :  { %v3113_v29 = vadd.f32 %v3081_v50, %v11075_v30  ;;  %v11085_v46 = vsub.f32 %v11083_v59, %v11084_v11  ;;  %v11087_v55 = vunpack.c.l.bf16 %v11086_v23  ;;  %v11088_v57 = vunpack.c.h.bf16 %v11086_v23  ;;  %3779 = vst [vmem:[%s9052_s3 + $0x80] sm:$0xff] %v3747_v41  ;;  %v11115_v23 = vld [vmem:[#allocation284_spill] sm:$0xff] }
 0x414   :  { %v1753_v14 = vsub.f32 %v1689_v32, %v1721_v35  ;;  %v3717_v19 = vmul.f32 %v3685_v47, %v2565_v22  ;;  %v2535_v63 = vfloor.f32 %v2503_v20  ;;  %v2473_v16 = vmul.f32 %v8475_v17, %v2409_v7  ;;  %v11092_v32 = vld [vmem:[#allocation331_spill] sm:$0xff] }
 0x415   :  { %v3083_v49 = vmul.f32 %v11085_v46, %v1751_v6  ;;  %v3505_v38 = vsub.f32 %v11088_v57, %v11087_v55  ;;  %v3657_v15 = vadd.f32 %v3625_v5, %v11078_v3  ;;  %v11091_v0 = vsub.f32 %v11089_v2, %v11090_v21  ;;  %v11100_v35 = vld [vmem:[#allocation315_spill] sm:$0xff] }
 0x416   :  { %v1723_v10 = vfloor.f32 %v1691_v28  ;;  %v1693_v25 = vadd.f32 %v1661_v33, %v1496_v24  ;;  %v3749_v61 = vadd.f32 %v3717_v19, %v3109_v54  ;;  %v2567_v43 = vsub.f32 %v2503_v20, %v2535_v63  ;;  %v2417_v34 = vpop.permute.xlu1 %2416  ;;  %v11102_v5 = vld [vmem:[#allocation363_spill] sm:$0xff] }
 0x417   :  { %v3627_v37 = vmul.f32 %v11091_v0, %v1751_v6  ;;  %v3687_v12 = vsub.f32 %v3655_v18, %v3111_v8  ;;  %v2505_v36 = vadd.f32 %v2473_v16, %v11092_v32  ;;  %v3115_v60 = vadd.f32 %v3083_v49, %v11084_v11  ;;  %v11103_v33 = vld [vmem:[#allocation295_spill] sm:$0xff] }
 0x418   :  { %v2993_v9 = vmul.f32 %v11094_v39, %v11093_v58  ;;  %v3313_v44 = vmul.f32 %v11095_v51, %v11093_v58  ;;  %v3537_v56 = vmul.f32 %v3505_v38, %v11093_v58  ;;  %v11098_v40 = vsub.f32 %v11096_v1, %v11097_v62  ;;  %3781 = vst [vmem:[%s9052_s3 + $0x90] sm:$0xff] %v3749_v61  ;;  %v11105_v22 = vld [vmem:[#allocation303_spill] sm:$0xff] }
 0x419   :  { %v3719_v54 = vmul.f32 %v3687_v12, %v2567_v43  ;;  %v2537_v52 = vfloor.f32 %v2505_v36  ;;  %v2475_v50 = vmul.f32 %v8475_v17, %v2417_v34  ;;  %v3659_v6 = vadd.f32 %v3627_v37, %v11090_v21  ;;  %v11108_v24 = vld [vmem:[#allocation319_spill] sm:$0xff] }
 0x41a   :  { %v3085_v30 = vmul.f32 %v11098_v40, %v1753_v14  ;;  %v11101_v48 = vsub.f32 %v11099_v13, %v11100_v35  ;;  %v1755_v4 = vsub.f32 %v1691_v28, %v1723_v10  ;;  %v1725_v18 = vfloor.f32 %v1693_v25  ;;  %v2425_v28 = vpop.permute.xlu1 %2424  ;;  %v11112_v19 = vld [vmem:[#allocation115_spill] sm:$0xff] }
 0x41b   :  { %v3751_v31 = vadd.f32 %v3719_v54, %v3111_v8  ;;  %v2569_v3 = vsub.f32 %v2505_v36, %v2537_v52  ;;  %v3689_v42 = vsub.f32 %v3657_v15, %v3113_v29  ;;  %v2507_v26 = vadd.f32 %v2475_v50, %v11102_v5  ;;  %v11114_v15 = vld [vmem:[#allocation320_spill] sm:$0xff]  ;;  %v11117_v43 = vld [vmem:[#allocation335_spill] sm:$0xff] }
 0x41c   :  { %v3629_v45 = vmul.f32 %v11101_v48, %v1753_v14  ;;  %v11104_v41 = vunpack.c.l.bf16 %v11103_v33  ;;  %v11107_v20 = vunpack.c.l.bf16 %v11106_v27  ;;  %v11109_v59 = vunpack.c.l.bf16 %v11108_v24  ;;  %v11111_v14 = vld [vmem:[#allocation276_spill] sm:$0xff]  ;;  %v11118_v40 = vld [vmem:[#allocation347_spill] sm:$0xff] }
 0x41d   :  { %v11110_v46 = vmov %v11087_v55  ;;  %v3117_v8 = vadd.f32 %v3085_v30, %v11097_v62  ;;  %3783 = vst [vmem:[%s9052_s3 + $0xa0] sm:$0xff] %v3751_v31  ;;  %v3721_v55 = vmul.f32 %v3689_v42, %v2569_v3  ;;  %v2539_v57 = vfloor.f32 %v2507_v26 }
 0x41e   :  { %v2801_v47 = vadd.f32 %v11105_v22, %v11104_v41  ;;  %v3025_v53 = vadd.f32 %v2993_v9, %v11107_v20  ;;  %v3345_v11 = vadd.f32 %v3313_v44, %v11109_v59  ;;  %v3569_v49 = vadd.f32 %v3537_v56, %v11110_v46  ;;  %v2433_v36 = vpop.permute.xlu1 %2432 }
 0x41f   :  { %v2477_v38 = vmul.f32 %v8475_v17, %v2425_v28  ;;  %v3661_v7 = vadd.f32 %v3629_v45, %v11100_v35  ;;  %v11113_v63 = vsub.f32 %v11111_v14, %v11112_v19  ;;  %v11116_v2 = vsub.f32 %v11114_v15, %v11115_v23 }
 0x420   :  { %v1757_v0 = vsub.f32 %v1693_v25, %v1725_v18  ;;  %v3753_v37 = vadd.f32 %v3721_v55, %v3113_v29  ;;  %v2571_v10 = vsub.f32 %v2507_v26, %v2539_v57  ;;  %v3691_v61 = vsub.f32 %v3659_v6, %v3115_v60  ;;  %v11119_v18 = vld [vmem:[#allocation121_spill] sm:$0xff] }
 0x421   :  { %v3087_v16 = vmul.f32 %v11113_v63, %v1755_v4  ;;  %v3631_v21 = vmul.f32 %v11116_v2, %v1755_v4  ;;  %v2509_v12 = vadd.f32 %v2477_v38, %v11117_v43  ;;  %v3057_v32 = vsub.f32 %v3025_v53, %v2801_v47 }
 0x422   :  { %v3601_v58 = vsub.f32 %v3569_v49, %v3345_v11  ;;  %3785 = vst [vmem:[%s9052_s3 + $0xb0] sm:$0xff] %v3753_v37  ;;  %v3723_v39 = vmul.f32 %v3691_v61, %v2571_v10  ;;  %v2479_v51 = vmul.f32 %v8475_v17, %v2433_v36  ;;  %v3693_v56 = vsub.f32 %v3661_v7, %v3117_v8  ;;  %v2441_v54 = vpop.permute.xlu1 %2440 }
 0x423   :  { %v2541_v9 = vfloor.f32 %v2509_v12  ;;  %v3119_v44 = vadd.f32 %v3087_v16, %v11112_v19  ;;  %v3663_v25 = vadd.f32 %v3631_v21, %v11115_v23  ;;  %v3089_v29 = vmul.f32 %v3057_v32, %v1757_v0 }
 0x424   :  { %v3633_v34 = vmul.f32 %v3601_v58, %v1757_v0  ;;  %v3755_v1 = vadd.f32 %v3723_v39, %v3115_v60  ;;  %v2511_v30 = vadd.f32 %v2479_v51, %v11118_v40  ;;  %v2481_v6 = vmul.f32 %v8475_v17, %v2441_v54 }
 0x425   :  { %v2573_v62 = vsub.f32 %v2509_v12, %v2541_v9  ;;  %v3121_v13 = vadd.f32 %v3089_v29, %v2801_v47  ;;  %v3695_v35 = vsub.f32 %v3663_v25, %v3119_v44 }
 0x426   :  { %3787 = vst [vmem:[%s9052_s3 + $0xc0] sm:$0xff] %v3755_v1  ;;  %v2543_v50 = vfloor.f32 %v2511_v30  ;;  %v3665_v48 = vadd.f32 %v3633_v34, %v3345_v11  ;;  %v2513_v31 = vadd.f32 %v2481_v6, %v11119_v18 }
 0x427   :  { %v3725_v52 = vmul.f32 %v3693_v56, %v2573_v62 }
 0x428   :  { %v2575_v4 = vsub.f32 %v2511_v30, %v2543_v50  ;;  %v2545_v3 = vfloor.f32 %v2513_v31  ;;  %v3697_v26 = vsub.f32 %v3665_v48, %v3121_v13 }
 0x429   :  { %v3757_v45 = vadd.f32 %v3725_v52, %v3117_v8 }
 0x42a   :  { %v3727_v60 = vmul.f32 %v3695_v35, %v2575_v4  ;;  %v2577_v5 = vsub.f32 %v2513_v31, %v2545_v3 }
 0x42b   :  { %3789 = vst [vmem:[%s9052_s3 + $0xd0] sm:$0xff] %v3757_v45 }
 0x42c   :  { %v3759_v42 = vadd.f32 %v3727_v60, %v3119_v44  ;;  %v3729_v17 = vmul.f32 %v3697_v26, %v2577_v5 }
 0x42e   :  { %3791 = vst [vmem:[%s9052_s3 + $0xe0] sm:$0xff] %v3759_v42  ;;  %v3761_v33 = vadd.f32 %v3729_v17, %v3121_v13 }
 0x430   :  { %3793 = vst [vmem:[%s9052_s3 + $0xf0] sm:$0xff] %v3761_v33 }
 0x431   :  { %3799 = vsyncpa [#allocation3], 1 }
 0x432   :  { %3800 = vsyncpa [#allocation5], 1 }

</bundles_post_ra>
